<compile_context>
chip_gen: v7x
topology: tpu7x:2x2x1
jax: 0.10.0
libtpu: 0.0.40
codegen_flags: <defaults>
</compile_context>

<pallas_src>
import math
import functools
import numpy as np

import jax
import jax.numpy as jnp
from jax import lax
from jax.experimental import pallas as pl
from jax.experimental.pallas import tpu as pltpu

BN_EPS = 1e-5


def _round128(n):
    return ((n + 127) // 128) * 128


def _hardswish(x):
    return x * jnp.clip(x + 3.0, 0.0, 6.0) * (1.0 / 6.0)


# ----------------------- fused transformer-block kernel -----------------------

def _levit_block_kernel(*refs, heads, qk_dim, v_dim, scale, q_sub):
    """One LeViT block for one batch element (all heads), fully in VMEM.

    q_sub=False (TransformerBlock):
        refs = (x, qkv_w, qkv_s, qkv_b, bias, pw, ps, pb,
                f1w, f1s, f1b, f2w, f2s, f2b, out)
        out = y + FF(y),  y = x + ProjBN(Hardswish(Attn(QKV(x))))
    q_sub=True (PoolingBlock):
        refs = (x, xq, kv_w, kv_s, kv_b, q_w, q_s, q_b, bias, pw, ps, pb,
                f1w, f1s, f1b, f2w, f2s, f2b, out)
        out = y + FF(y),  y = ProjBN(Hardswish(Attn(Q(xq), KV(x))))
    """
    if q_sub:
        (x_ref, xq_ref, kv_w, kv_s, kv_b, q_w, q_s, q_b, bias_ref,
         pw, ps, pb, f1w, f1s, f1b, f2w, f2s, f2b, o_ref) = refs
    else:
        (x_ref, qkv_w, qkv_s, qkv_b, bias_ref,
         pw, ps, pb, f1w, f1s, f1b, f2w, f2s, f2b, o_ref) = refs

    nqk = heads * qk_dim
    x = x_ref[0]                                            # (Nk, Cin_pad) bf16

    if q_sub:
        kv = jnp.dot(x, kv_w[...], preferred_element_type=jnp.float32)
        kv = kv * kv_s[...] + kv_b[...]                     # folded BN, f32
        k_all = kv[:, :nqk].astype(jnp.bfloat16)            # (Nk, nqk)
        v_all = kv[:, nqk:].astype(jnp.bfloat16)            # (Nk, nv)
        qf = jnp.dot(xq_ref[0], q_w[...], preferred_element_type=jnp.float32)
        q_all = (qf * q_s[...] + q_b[...]).astype(jnp.bfloat16)   # (Nq, nqk)
    else:
        qkv = jnp.dot(x, qkv_w[...], preferred_element_type=jnp.float32)
        qkv = qkv * qkv_s[...] + qkv_b[...]                 # folded BN, f32
        q_all = qkv[:, :nqk].astype(jnp.bfloat16)
        k_all = qkv[:, nqk:2 * nqk].astype(jnp.bfloat16)
        v_all = qkv[:, 2 * nqk:].astype(jnp.bfloat16)

    nq = q_all.shape[0]
    cout = pw.shape[1]

    # Per-head attention (static unrolled loop, everything stays 2-D) with the
    # Hardswish fused and the head-merge folded into a per-head projection
    # accumulation: y += Hardswish(softmax(qk^T*scale+bias) v) @ W_proj[head].
    y = jnp.zeros((nq, cout), jnp.float32)
    for h in range(heads):
        qh = q_all[:, h * qk_dim:(h + 1) * qk_dim]          # (Nq, 16) bf16
        kh = k_all[:, h * qk_dim:(h + 1) * qk_dim]          # (Nk, 16) bf16
        vh = v_all[:, h * v_dim:(h + 1) * v_dim]            # (Nk, Dv) bf16
        s = lax.dot_general(qh, kh, (((1,), (1,)), ((), ())),
                            preferred_element_type=jnp.float32)   # (Nq, Nk)
        s = s * scale + bias_ref[h]                          # rel-pos bias, f32
        s = s - jnp.max(s, axis=-1, keepdims=True)
        e = jnp.exp(s)
        p = e * pl.reciprocal(jnp.sum(e, axis=-1, keepdims=True), approx=True)
        oh = jnp.dot(p.astype(jnp.bfloat16), vh,
                     preferred_element_type=jnp.float32)     # (Nq, Dv) f32
        oh = _hardswish(oh)
        y = y + jnp.dot(oh.astype(jnp.bfloat16),
                        pw[h * v_dim:(h + 1) * v_dim, :],
                        preferred_element_type=jnp.float32)  # (Nq, Cout_pad)
    y = y * ps[...] + pb[...]                                # projection BN
    if not q_sub:
        y = y + x.astype(jnp.float32)                        # attention residual

    # Feed-forward (fc1 + Hardswish, fc2) with the block residual fused.
    h1 = jnp.dot(y.astype(jnp.bfloat16), f1w[...],
                 preferred_element_type=jnp.float32)
    h1 = _hardswish(h1 * f1s[...] + f1b[...])
    out = jnp.dot(h1.astype(jnp.bfloat16), f2w[...],
                  preferred_element_type=jnp.float32)
    out = out * f2s[...] + f2b[...] + y
    o_ref[0] = out.astype(o_ref.dtype)


def levit_block_forward(x, blk, B, H, W):
    """x: (B, H*W, Cin_pad) bf16 channels-last. Returns ((B, Nq, Cout_pad), Hq, Wq)."""
    attn, ff = blk['attn'], blk['ff']
    heads, qk, q_sub = attn['heads'], attn['qk_dim'], attn['q_sub']
    v_dim = (4 if q_sub else 2) * qk
    Nk = H * W
    Cin = x.shape[-1]
    Cout = ff['fc2']['w'].shape[1]

    if q_sub:
        Hq, Wq = -(-H // 2), -(-W // 2)
        Nq = Hq * Wq
        # 1x1 conv with stride 2 == 1x1 conv applied to the subsampled rows.
        xq = x.reshape(B, H, W, Cin)[:, ::2, ::2, :].reshape(B, Nq, Cin)
    else:
        Hq, Wq, Nq = H, W, Nk

    def const2(arr):
        return pl.BlockSpec(arr.shape, lambda b: (0, 0))

    args = [x]
    in_specs = [pl.BlockSpec((1, Nk, Cin), lambda b: (b, 0, 0))]
    if q_sub:
        args.append(xq)
        in_specs.append(pl.BlockSpec((1, Nq, Cin), lambda b: (b, 0, 0)))
        for name in ('kv', 'q'):
            for suffix in ('_w', '_scale', '_shift'):
                a = attn[name + suffix]
                args.append(a)
                in_specs.append(const2(a))
    else:
        for suffix in ('_w', '_scale', '_shift'):
            a = attn['qkv' + suffix]
            args.append(a)
            in_specs.append(const2(a))
    args.append(attn['attn_bias'])
    in_specs.append(pl.BlockSpec(attn['attn_bias'].shape, lambda b: (0, 0, 0)))
    for layer in (attn['proj'], ff['fc1'], ff['fc2']):
        for key in ('w', 'scale', 'shift'):
            args.append(layer[key])
            in_specs.append(const2(layer[key]))

    kernel = functools.partial(_levit_block_kernel, heads=heads, qk_dim=qk,
                               v_dim=v_dim, scale=qk ** (-0.5), q_sub=q_sub)
    out = pl.pallas_call(
        kernel,
        out_shape=jax.ShapeDtypeStruct((B, Nq, Cout), jnp.bfloat16),
        grid=(B,),
        in_specs=in_specs,
        out_specs=pl.BlockSpec((1, Nq, Cout), lambda b: (b, 0, 0)),
        compiler_params=pltpu.CompilerParams(dimension_semantics=("parallel",)),
    )(*args)
    return out, Hq, Wq


# --------------------------------- model glue ---------------------------------

def levit_forward(image, params):
    # NCHW (PyTorch convention) -> NHWC once; channels-last everywhere after.
    x = jnp.transpose(image, (0, 2, 3, 1)).astype(jnp.bfloat16)

    # Stem: 4x (3x3 / stride-2 / pad-1 ConvNorm) via lax.conv, BN scale folded.
    for cp in params['stem']:
        y = lax.conv_general_dilated(
            x, cp['w'], window_strides=(2, 2), padding=((1, 1), (1, 1)),
            dimension_numbers=('NHWC', 'HWIO', 'NHWC'),
            preferred_element_type=jnp.float32)
        x = (y + cp['shift']).astype(jnp.bfloat16)

    B, H, W, C = x.shape
    c_pad = params['c0_pad']
    if c_pad > C:                       # lane-dense channel padding (zeros)
        x = jnp.pad(x, ((0, 0), (0, 0), (0, 0), (0, c_pad - C)))
    xf = x.reshape(B, H * W, c_pad)

    for blk in params['blocks']:
        xf, H, W = levit_block_forward(xf, blk, B, H, W)

    # classifier head: global average pool + linear (tiny, plain XLA).
    xm = jnp.mean(xf.astype(jnp.float32), axis=1)
    return xm @ params['head_w'] + params['head_b']


# --------------------------- parameter construction ---------------------------

def _fold_bn(key, cout, cout_pad):
    kg, kb = jax.random.split(key)
    gamma = 1.0 + 0.1 * jax.random.normal(kg, (cout,), jnp.float32)
    beta = 0.1 * jax.random.normal(kb, (cout,), jnp.float32)
    scale = gamma / jnp.sqrt(1.0 + BN_EPS)      # eval BN, running mean 0 / var 1
    shift = beta
    if cout_pad > cout:                          # padded channels stay exact 0
        scale = jnp.concatenate([scale, jnp.ones((cout_pad - cout,), jnp.float32)])
        shift = jnp.concatenate([shift, jnp.zeros((cout_pad - cout,), jnp.float32)])
    return scale.reshape(1, -1), shift.reshape(1, -1)


def init_stem_conv(key, cin, cout):
    kw, kbn = jax.random.split(key)
    w = jax.random.normal(kw, (3, 3, cin, cout), jnp.float32) / math.sqrt(cin * 9)
    scale, shift = _fold_bn(kbn, cout, cout)
    return {'w': (w * scale.reshape(1, 1, 1, -1)).astype(jnp.bfloat16),
            'shift': shift.reshape(-1)}


def init_conv1x1(key, cin, cout, cin_pad=None, cout_pad=None):
    cin_pad = cin if cin_pad is None else cin_pad
    cout_pad = cout if cout_pad is None else cout_pad
    kw, kbn = jax.random.split(key)
    w = jax.random.normal(kw, (cin, cout), jnp.float32) / math.sqrt(cin)
    w = jnp.pad(w, ((0, cin_pad - cin), (0, cout_pad - cout)))
    scale, shift = _fold_bn(kbn, cout, cout_pad)
    return {'w': w.astype(jnp.bfloat16), 'scale': scale, 'shift': shift}


def relative_position_index(feature_size, stride):
    H, W = feature_size
    qh, qw = np.arange(0, H, stride), np.arange(0, W, stride)
    kh, kw = np.arange(H), np.arange(W)
    q_coords = np.stack(np.meshgrid(qh, qw, indexing='ij')).reshape(2, -1)
    k_coords = np.stack(np.meshgrid(kh, kw, indexing='ij')).reshape(2, -1)
    rel = np.abs(q_coords[:, :, None] - k_coords[:, None, :]).transpose(1, 2, 0).copy()
    rel[:, :, 0] *= W
    return rel.sum(-1)                                      # (Nq, Nk)


def init_mhsa(key, feature_size, in_dim, out_dim, qk_dim, heads, q_sub):
    k0, k1, k2, k3, k4 = jax.random.split(key, 5)
    stride = 2 if q_sub else 1
    v_dim = (4 if q_sub else 2) * qk_dim
    H, W = feature_size
    cin_pad, cout_pad = _round128(in_dim), _round128(out_dim)
    nqk, nv = heads * qk_dim, heads * v_dim

    pq = init_conv1x1(k0, in_dim, nqk, cin_pad=cin_pad)
    pk = init_conv1x1(k1, in_dim, nqk, cin_pad=cin_pad)
    pv = init_conv1x1(k2, in_dim, nv, cin_pad=cin_pad)

    idx = relative_position_index(feature_size, stride)
    table = 0.1 * jax.random.normal(k4, (heads, H * W), jnp.float32)
    attn_bias = table[:, jnp.asarray(idx.reshape(-1))].reshape(
        heads, idx.shape[0], idx.shape[1])

    p = {'proj': init_conv1x1(k3, nv, out_dim, cout_pad=cout_pad),
         'attn_bias': attn_bias, 'heads': heads, 'qk_dim': qk_dim, 'q_sub': q_sub}
    if q_sub:
        # Q GEMM runs on subsampled rows only; K/V fused into one GEMM.
        p['q_w'], p['q_scale'], p['q_shift'] = pq['w'], pq['scale'], pq['shift']
        p['kv_w'] = jnp.concatenate([pk['w'], pv['w']], axis=1)
        p['kv_scale'] = jnp.concatenate([pk['scale'], pv['scale']], axis=1)
        p['kv_shift'] = jnp.concatenate([pk['shift'], pv['shift']], axis=1)
    else:
        p['qkv_w'] = jnp.concatenate([pq['w'], pk['w'], pv['w']], axis=1)
        p['qkv_scale'] = jnp.concatenate([pq['scale'], pk['scale'], pv['scale']], axis=1)
        p['qkv_shift'] = jnp.concatenate([pq['shift'], pk['shift'], pv['shift']], axis=1)
    return p


def init_ff(key, dim, hidden):
    k0, k1 = jax.random.split(key)
    dim_pad = _round128(dim)
    return {'fc1': init_conv1x1(k0, dim, hidden, cin_pad=dim_pad),
            'fc2': init_conv1x1(k1, hidden, dim, cout_pad=dim_pad)}


def init_levit(key, image_size, embedding_dimension, num_layers, num_heads,
               qk_embedding_dimension, num_classes):
    num_stem_layers = 4
    keys = jax.random.split(key, 64)
    ki = iter(range(64))
    params = {'c0_pad': _round128(embedding_dimension[0])}

    # stem: 3 -> emb0/8 -> emb0/4 -> emb0/2 -> emb0, all 3x3 stride-2 pad-1
    stem, in_dim = [], 3
    for i in range(num_stem_layers)[::-1]:
        out_dim = embedding_dimension[0] // 2 ** i
        stem.append(init_stem_conv(keys[next(ki)], in_dim, out_dim))
        in_dim = out_dim
    params['stem'] = stem

    feature_size = [image_size // 2 ** num_stem_layers] * 2
    blocks = []
    for i, num_block in enumerate(num_layers):
        for _ in range(num_block):
            blocks.append({
                'type': 'transformer',
                'attn': init_mhsa(keys[next(ki)], feature_size, embedding_dimension[i],
                                  embedding_dimension[i], qk_embedding_dimension,
                                  num_heads[i], False),
                'ff': init_ff(keys[next(ki)], embedding_dimension[i],
                              embedding_dimension[i] * 2),
            })
        if i < len(num_layers) - 1:
            pool_heads = embedding_dimension[i] // qk_embedding_dimension
            blocks.append({
                'type': 'pooling',
                'attn': init_mhsa(keys[next(ki)], feature_size, embedding_dimension[i],
                                  embedding_dimension[i + 1], qk_embedding_dimension,
                                  pool_heads, True),
                'ff': init_ff(keys[next(ki)], embedding_dimension[i + 1],
                              embedding_dimension[i + 1] * 2),
            })
            feature_size = [math.ceil(f / 2) for f in feature_size]
    params['blocks'] = blocks

    kh, kb = jax.random.split(keys[next(ki)])
    c_last, c_last_pad = embedding_dimension[-1], _round128(embedding_dimension[-1])
    head_w = jax.random.normal(kh, (c_last, num_classes), jnp.float32) / math.sqrt(c_last)
    params['head_w'] = jnp.pad(head_w, ((0, c_last_pad - c_last), (0, 0)))
    params['head_b'] = 0.1 * jax.random.normal(kb, (num_classes,), jnp.float32)
    return params


# ------------------------------------ main ------------------------------------

if __name__ == "__main__":
    # small LeViT config (same structure as the reference module, reduced sizes)
    image_size = 128
    embedding_dimension = [64, 128, 192]
    num_layers = [1, 1, 1]
    num_heads = [2, 4, 6]
    qk_dim = 16
    num_classes = 10
    B = 2

    params = init_levit(jax.random.PRNGKey(1), image_size, embedding_dimension,
                        num_layers, num_heads, qk_dim, num_classes)
    image = jax.random.normal(jax.random.PRNGKey(0),
                              (B, 3, image_size, image_size), jnp.float32)

    fwd = jax.jit(lambda img: levit_forward(img, params))
    out = jax.block_until_ready(fwd(image))
    assert out.shape == (B, num_classes), out.shape
    assert bool(jnp.all(jnp.isfinite(out)))
    print("KERNEL_OK")
</pallas_src>

<mosaic_0001>
module attributes {stable_mosaic.version = 11 : i64} {
  func.func @_levit_block_kernel(%arg0: i32, %arg1: memref<1x64x128xbf16, #tpu.memory_space<vmem>>, %arg2: memref<128x128xbf16, #tpu.memory_space<vmem>>, %arg3: memref<1x128xf32, #tpu.memory_space<vmem>>, %arg4: memref<1x128xf32, #tpu.memory_space<vmem>>, %arg5: memref<2x64x64xf32, #tpu.memory_space<vmem>>, %arg6: memref<64x128xbf16, #tpu.memory_space<vmem>>, %arg7: memref<1x128xf32, #tpu.memory_space<vmem>>, %arg8: memref<1x128xf32, #tpu.memory_space<vmem>>, %arg9: memref<128x128xbf16, #tpu.memory_space<vmem>>, %arg10: memref<1x128xf32, #tpu.memory_space<vmem>>, %arg11: memref<1x128xf32, #tpu.memory_space<vmem>>, %arg12: memref<128x128xbf16, #tpu.memory_space<vmem>>, %arg13: memref<1x128xf32, #tpu.memory_space<vmem>>, %arg14: memref<1x128xf32, #tpu.memory_space<vmem>>, %arg15: memref<1x64x128xbf16, #tpu.memory_space<vmem>>) attributes {dimension_semantics = [#tpu.dimension_semantics<parallel>], iteration_bounds = array<i64: 2>, scalar_prefetch = 0 : i64, scratch_operands = 0 : i64, tpu.core_type = #tpu.core_type<tc>, window_params = [{transform_indices = @transform_0, window_bounds = array<i64: 1, 64, 128>}, {pipeline_mode = #tpu.pipeline_mode<synchronous>, transform_indices = @transform_1, window_bounds = array<i64: 128, 128>}, {pipeline_mode = #tpu.pipeline_mode<synchronous>, transform_indices = @transform_2, window_bounds = array<i64: 1, 128>}, {pipeline_mode = #tpu.pipeline_mode<synchronous>, transform_indices = @transform_3, window_bounds = array<i64: 1, 128>}, {pipeline_mode = #tpu.pipeline_mode<synchronous>, transform_indices = @transform_4, window_bounds = array<i64: 2, 64, 64>}, {pipeline_mode = #tpu.pipeline_mode<synchronous>, transform_indices = @transform_5, window_bounds = array<i64: 64, 128>}, {pipeline_mode = #tpu.pipeline_mode<synchronous>, transform_indices = @transform_6, window_bounds = array<i64: 1, 128>}, {pipeline_mode = #tpu.pipeline_mode<synchronous>, transform_indices = @transform_7, window_bounds = array<i64: 1, 128>}, {pipeline_mode = #tpu.pipeline_mode<synchronous>, transform_indices = @transform_8, window_bounds = array<i64: 128, 128>}, {pipeline_mode = #tpu.pipeline_mode<synchronous>, transform_indices = @transform_9, window_bounds = array<i64: 1, 128>}, {pipeline_mode = #tpu.pipeline_mode<synchronous>, transform_indices = @transform_10, window_bounds = array<i64: 1, 128>}, {pipeline_mode = #tpu.pipeline_mode<synchronous>, transform_indices = @transform_11, window_bounds = array<i64: 128, 128>}, {pipeline_mode = #tpu.pipeline_mode<synchronous>, transform_indices = @transform_12, window_bounds = array<i64: 1, 128>}, {pipeline_mode = #tpu.pipeline_mode<synchronous>, transform_indices = @transform_13, window_bounds = array<i64: 1, 128>}, {transform_indices = @transform_14, window_bounds = array<i64: 1, 64, 128>}]} {
    %c0 = arith.constant 0 : index
    %c0_0 = arith.constant 0 : index
    %c0_1 = arith.constant 0 : index
    %0 = vector.load %arg1[%c0, %c0_0, %c0_1] : memref<1x64x128xbf16, #tpu.memory_space<vmem>>, vector<1x64x128xbf16>
    %1 = vector.shape_cast %0 : vector<1x64x128xbf16> to vector<64x128xbf16>
    %c0_2 = arith.constant 0 : index
    %c0_3 = arith.constant 0 : index
    %2 = vector.load %arg2[%c0_2, %c0_3] : memref<128x128xbf16, #tpu.memory_space<vmem>>, vector<128x128xbf16>
    %cst = arith.constant dense<0.000000e+00> : vector<64x128xf32>
    %3 = tpu.matmul %1, %2, %cst {dimension_numbers = #tpu.dot_dimension_numbers<[1], [0], [0], [1], [0, 0, 1, 1], [], []>} : vector<64x128xbf16>, vector<128x128xbf16>, vector<64x128xf32> -> vector<64x128xf32>
    %c0_4 = arith.constant 0 : index
    %c0_5 = arith.constant 0 : index
    %4 = vector.load %arg3[%c0_4, %c0_5] : memref<1x128xf32, #tpu.memory_space<vmem>>, vector<1x128xf32>
    %5 = vector.broadcast %4 : vector<1x128xf32> to vector<64x128xf32>
    %6 = arith.mulf %3, %5 : vector<64x128xf32>
    %c0_6 = arith.constant 0 : index
    %c0_7 = arith.constant 0 : index
    %7 = vector.load %arg4[%c0_6, %c0_7] : memref<1x128xf32, #tpu.memory_space<vmem>>, vector<1x128xf32>
    %8 = vector.broadcast %7 : vector<1x128xf32> to vector<64x128xf32>
    %9 = arith.addf %6, %8 : vector<64x128xf32>
    %10 = vector.extract_strided_slice %9 {offsets = [0, 0], sizes = [64, 32], strides = [1, 1]} : vector<64x128xf32> to vector<64x32xf32>
    %11 = arith.truncf %10 : vector<64x32xf32> to vector<64x32xbf16>
    %12 = vector.extract_strided_slice %9 {offsets = [0, 32], sizes = [64, 32], strides = [1, 1]} : vector<64x128xf32> to vector<64x32xf32>
    %13 = arith.truncf %12 : vector<64x32xf32> to vector<64x32xbf16>
    %14 = vector.extract_strided_slice %9 {offsets = [0, 64], sizes = [64, 64], strides = [1, 1]} : vector<64x128xf32> to vector<64x64xf32>
    %15 = arith.truncf %14 : vector<64x64xf32> to vector<64x64xbf16>
    %cst_8 = arith.constant 0.000000e+00 : f32
    %16 = vector.broadcast %cst_8 : f32 to vector<64x128xf32>
    %17 = vector.extract_strided_slice %11 {offsets = [0, 0], sizes = [64, 16], strides = [1, 1]} : vector<64x32xbf16> to vector<64x16xbf16>
    %18 = vector.extract_strided_slice %13 {offsets = [0, 0], sizes = [64, 16], strides = [1, 1]} : vector<64x32xbf16> to vector<64x16xbf16>
    %19 = vector.extract_strided_slice %15 {offsets = [0, 0], sizes = [64, 32], strides = [1, 1]} : vector<64x64xbf16> to vector<64x32xbf16>
    %cst_9 = arith.constant dense<0.000000e+00> : vector<64x64xf32>
    %20 = tpu.matmul %17, %18, %cst_9 {dimension_numbers = #tpu.dot_dimension_numbers<[1], [1], [0], [0], [0, 0, 1, 0], [], []>} : vector<64x16xbf16>, vector<64x16xbf16>, vector<64x64xf32> -> vector<64x64xf32>
    %cst_10 = arith.constant 2.500000e-01 : f32
    %21 = vector.broadcast %cst_10 : f32 to vector<64x64xf32>
    %22 = arith.mulf %20, %21 : vector<64x64xf32>
    %c0_11 = arith.constant 0 : index
    %c0_12 = arith.constant 0 : index
    %c0_13 = arith.constant 0 : index
    %23 = vector.load %arg5[%c0_11, %c0_12, %c0_13] : memref<2x64x64xf32, #tpu.memory_space<vmem>>, vector<1x64x64xf32>
    %24 = vector.shape_cast %23 : vector<1x64x64xf32> to vector<64x64xf32>
    %25 = arith.addf %22, %24 : vector<64x64xf32>
    %cst_14 = arith.constant dense<0xFF800000> : vector<64xf32>
    %26 = vector.multi_reduction <maximumf>, %25, %cst_14 [1] : vector<64x64xf32> to vector<64xf32>
    %27 = vector.shape_cast %26 : vector<64xf32> to vector<64x1xf32>
    %28 = vector.broadcast %27 : vector<64x1xf32> to vector<64x64xf32>
    %29 = arith.subf %25, %28 : vector<64x64xf32>
    %30 = math.exp %29 : vector<64x64xf32>
    %cst_15 = arith.constant dense<0.000000e+00> : vector<64xf32>
    %31 = vector.multi_reduction <add>, %30, %cst_15 [1] : vector<64x64xf32> to vector<64xf32>
    %32 = vector.shape_cast %31 : vector<64xf32> to vector<64x1xf32>
    %33 = tpu.reciprocal %32 {approx = true} : vector<64x1xf32> -> vector<64x1xf32>
    %34 = vector.broadcast %33 : vector<64x1xf32> to vector<64x64xf32>
    %35 = arith.mulf %30, %34 : vector<64x64xf32>
    %36 = arith.truncf %35 : vector<64x64xf32> to vector<64x64xbf16>
    %cst_16 = arith.constant dense<0.000000e+00> : vector<64x32xf32>
    %37 = tpu.matmul %36, %19, %cst_16 {dimension_numbers = #tpu.dot_dimension_numbers<[1], [0], [0], [1], [0, 0, 1, 1], [], []>} : vector<64x64xbf16>, vector<64x32xbf16>, vector<64x32xf32> -> vector<64x32xf32>
    %cst_17 = arith.constant 3.000000e+00 : f32
    %38 = vector.broadcast %cst_17 : f32 to vector<64x32xf32>
    %39 = arith.addf %37, %38 : vector<64x32xf32>
    %cst_18 = arith.constant 0.000000e+00 : f32
    %cst_19 = arith.constant 6.000000e+00 : f32
    %40 = vector.broadcast %cst_18 : f32 to vector<64x32xf32>
    %41 = arith.maximumf %40, %39 : vector<64x32xf32>
    %42 = vector.broadcast %cst_19 : f32 to vector<64x32xf32>
    %43 = arith.minimumf %42, %41 : vector<64x32xf32>
    %44 = arith.mulf %37, %43 : vector<64x32xf32>
    %cst_20 = arith.constant 0.166666672 : f32
    %45 = vector.broadcast %cst_20 : f32 to vector<64x32xf32>
    %46 = arith.mulf %44, %45 : vector<64x32xf32>
    %47 = arith.truncf %46 : vector<64x32xf32> to vector<64x32xbf16>
    %c0_21 = arith.constant 0 : index
    %c0_22 = arith.constant 0 : index
    %48 = vector.load %arg6[%c0_21, %c0_22] : memref<64x128xbf16, #tpu.memory_space<vmem>>, vector<32x128xbf16>
    %cst_23 = arith.constant dense<0.000000e+00> : vector<64x128xf32>
    %49 = tpu.matmul %47, %48, %cst_23 {dimension_numbers = #tpu.dot_dimension_numbers<[1], [0], [0], [1], [0, 0, 1, 1], [], []>} : vector<64x32xbf16>, vector<32x128xbf16>, vector<64x128xf32> -> vector<64x128xf32>
    %50 = arith.addf %16, %49 : vector<64x128xf32>
    %51 = vector.extract_strided_slice %11 {offsets = [0, 16], sizes = [64, 16], strides = [1, 1]} : vector<64x32xbf16> to vector<64x16xbf16>
    %52 = vector.extract_strided_slice %13 {offsets = [0, 16], sizes = [64, 16], strides = [1, 1]} : vector<64x32xbf16> to vector<64x16xbf16>
    %53 = vector.extract_strided_slice %15 {offsets = [0, 32], sizes = [64, 32], strides = [1, 1]} : vector<64x64xbf16> to vector<64x32xbf16>
    %cst_24 = arith.constant dense<0.000000e+00> : vector<64x64xf32>
    %54 = tpu.matmul %51, %52, %cst_24 {dimension_numbers = #tpu.dot_dimension_numbers<[1], [1], [0], [0], [0, 0, 1, 0], [], []>} : vector<64x16xbf16>, vector<64x16xbf16>, vector<64x64xf32> -> vector<64x64xf32>
    %cst_25 = arith.constant 2.500000e-01 : f32
    %55 = vector.broadcast %cst_25 : f32 to vector<64x64xf32>
    %56 = arith.mulf %54, %55 : vector<64x64xf32>
    %c1 = arith.constant 1 : index
    %c0_26 = arith.constant 0 : index
    %c0_27 = arith.constant 0 : index
    %57 = vector.load %arg5[%c1, %c0_26, %c0_27] : memref<2x64x64xf32, #tpu.memory_space<vmem>>, vector<1x64x64xf32>
    %58 = vector.shape_cast %57 : vector<1x64x64xf32> to vector<64x64xf32>
    %59 = arith.addf %56, %58 : vector<64x64xf32>
    %cst_28 = arith.constant dense<0xFF800000> : vector<64xf32>
    %60 = vector.multi_reduction <maximumf>, %59, %cst_28 [1] : vector<64x64xf32> to vector<64xf32>
    %61 = vector.shape_cast %60 : vector<64xf32> to vector<64x1xf32>
    %62 = vector.broadcast %61 : vector<64x1xf32> to vector<64x64xf32>
    %63 = arith.subf %59, %62 : vector<64x64xf32>
    %64 = math.exp %63 : vector<64x64xf32>
    %cst_29 = arith.constant dense<0.000000e+00> : vector<64xf32>
    %65 = vector.multi_reduction <add>, %64, %cst_29 [1] : vector<64x64xf32> to vector<64xf32>
    %66 = vector.shape_cast %65 : vector<64xf32> to vector<64x1xf32>
    %67 = tpu.reciprocal %66 {approx = true} : vector<64x1xf32> -> vector<64x1xf32>
    %68 = vector.broadcast %67 : vector<64x1xf32> to vector<64x64xf32>
    %69 = arith.mulf %64, %68 : vector<64x64xf32>
    %70 = arith.truncf %69 : vector<64x64xf32> to vector<64x64xbf16>
    %cst_30 = arith.constant dense<0.000000e+00> : vector<64x32xf32>
    %71 = tpu.matmul %70, %53, %cst_30 {dimension_numbers = #tpu.dot_dimension_numbers<[1], [0], [0], [1], [0, 0, 1, 1], [], []>} : vector<64x64xbf16>, vector<64x32xbf16>, vector<64x32xf32> -> vector<64x32xf32>
    %cst_31 = arith.constant 3.000000e+00 : f32
    %72 = vector.broadcast %cst_31 : f32 to vector<64x32xf32>
    %73 = arith.addf %71, %72 : vector<64x32xf32>
    %cst_32 = arith.constant 0.000000e+00 : f32
    %cst_33 = arith.constant 6.000000e+00 : f32
    %74 = vector.broadcast %cst_32 : f32 to vector<64x32xf32>
    %75 = arith.maximumf %74, %73 : vector<64x32xf32>
    %76 = vector.broadcast %cst_33 : f32 to vector<64x32xf32>
    %77 = arith.minimumf %76, %75 : vector<64x32xf32>
    %78 = arith.mulf %71, %77 : vector<64x32xf32>
    %cst_34 = arith.constant 0.166666672 : f32
    %79 = vector.broadcast %cst_34 : f32 to vector<64x32xf32>
    %80 = arith.mulf %78, %79 : vector<64x32xf32>
    %81 = arith.truncf %80 : vector<64x32xf32> to vector<64x32xbf16>
    %c32 = arith.constant 32 : index
    %c0_35 = arith.constant 0 : index
    %82 = vector.load %arg6[%c32, %c0_35] : memref<64x128xbf16, #tpu.memory_space<vmem>>, vector<32x128xbf16>
    %cst_36 = arith.constant dense<0.000000e+00> : vector<64x128xf32>
    %83 = tpu.matmul %81, %82, %cst_36 {dimension_numbers = #tpu.dot_dimension_numbers<[1], [0], [0], [1], [0, 0, 1, 1], [], []>} : vector<64x32xbf16>, vector<32x128xbf16>, vector<64x128xf32> -> vector<64x128xf32>
    %84 = arith.addf %50, %83 : vector<64x128xf32>
    %c0_37 = arith.constant 0 : index
    %c0_38 = arith.constant 0 : index
    %85 = vector.load %arg7[%c0_37, %c0_38] : memref<1x128xf32, #tpu.memory_space<vmem>>, vector<1x128xf32>
    %86 = vector.broadcast %85 : vector<1x128xf32> to vector<64x128xf32>
    %87 = arith.mulf %84, %86 : vector<64x128xf32>
    %c0_39 = arith.constant 0 : index
    %c0_40 = arith.constant 0 : index
    %88 = vector.load %arg8[%c0_39, %c0_40] : memref<1x128xf32, #tpu.memory_space<vmem>>, vector<1x128xf32>
    %89 = vector.broadcast %88 : vector<1x128xf32> to vector<64x128xf32>
    %90 = arith.addf %87, %89 : vector<64x128xf32>
    %91 = arith.extf %1 : vector<64x128xbf16> to vector<64x128xf32>
    %92 = arith.addf %90, %91 : vector<64x128xf32>
    %93 = arith.truncf %92 : vector<64x128xf32> to vector<64x128xbf16>
    %c0_41 = arith.constant 0 : index
    %c0_42 = arith.constant 0 : index
    %94 = vector.load %arg9[%c0_41, %c0_42] : memref<128x128xbf16, #tpu.memory_space<vmem>>, vector<128x128xbf16>
    %cst_43 = arith.constant dense<0.000000e+00> : vector<64x128xf32>
    %95 = tpu.matmul %93, %94, %cst_43 {dimension_numbers = #tpu.dot_dimension_numbers<[1], [0], [0], [1], [0, 0, 1, 1], [], []>} : vector<64x128xbf16>, vector<128x128xbf16>, vector<64x128xf32> -> vector<64x128xf32>
    %c0_44 = arith.constant 0 : index
    %c0_45 = arith.constant 0 : index
    %96 = vector.load %arg10[%c0_44, %c0_45] : memref<1x128xf32, #tpu.memory_space<vmem>>, vector<1x128xf32>
    %97 = vector.broadcast %96 : vector<1x128xf32> to vector<64x128xf32>
    %98 = arith.mulf %95, %97 : vector<64x128xf32>
    %c0_46 = arith.constant 0 : index
    %c0_47 = arith.constant 0 : index
    %99 = vector.load %arg11[%c0_46, %c0_47] : memref<1x128xf32, #tpu.memory_space<vmem>>, vector<1x128xf32>
    %100 = vector.broadcast %99 : vector<1x128xf32> to vector<64x128xf32>
    %101 = arith.addf %98, %100 : vector<64x128xf32>
    %cst_48 = arith.constant 3.000000e+00 : f32
    %102 = vector.broadcast %cst_48 : f32 to vector<64x128xf32>
    %103 = arith.addf %101, %102 : vector<64x128xf32>
    %cst_49 = arith.constant 0.000000e+00 : f32
    %cst_50 = arith.constant 6.000000e+00 : f32
    %104 = vector.broadcast %cst_49 : f32 to vector<64x128xf32>
    %105 = arith.maximumf %104, %103 : vector<64x128xf32>
    %106 = vector.broadcast %cst_50 : f32 to vector<64x128xf32>
    %107 = arith.minimumf %106, %105 : vector<64x128xf32>
    %108 = arith.mulf %101, %107 : vector<64x128xf32>
    %cst_51 = arith.constant 0.166666672 : f32
    %109 = vector.broadcast %cst_51 : f32 to vector<64x128xf32>
    %110 = arith.mulf %108, %109 : vector<64x128xf32>
    %111 = arith.truncf %110 : vector<64x128xf32> to vector<64x128xbf16>
    %c0_52 = arith.constant 0 : index
    %c0_53 = arith.constant 0 : index
    %112 = vector.load %arg12[%c0_52, %c0_53] : memref<128x128xbf16, #tpu.memory_space<vmem>>, vector<128x128xbf16>
    %cst_54 = arith.constant dense<0.000000e+00> : vector<64x128xf32>
    %113 = tpu.matmul %111, %112, %cst_54 {dimension_numbers = #tpu.dot_dimension_numbers<[1], [0], [0], [1], [0, 0, 1, 1], [], []>} : vector<64x128xbf16>, vector<128x128xbf16>, vector<64x128xf32> -> vector<64x128xf32>
    %c0_55 = arith.constant 0 : index
    %c0_56 = arith.constant 0 : index
    %114 = vector.load %arg13[%c0_55, %c0_56] : memref<1x128xf32, #tpu.memory_space<vmem>>, vector<1x128xf32>
    %115 = vector.broadcast %114 : vector<1x128xf32> to vector<64x128xf32>
    %116 = arith.mulf %113, %115 : vector<64x128xf32>
    %c0_57 = arith.constant 0 : index
    %c0_58 = arith.constant 0 : index
    %117 = vector.load %arg14[%c0_57, %c0_58] : memref<1x128xf32, #tpu.memory_space<vmem>>, vector<1x128xf32>
    %118 = vector.broadcast %117 : vector<1x128xf32> to vector<64x128xf32>
    %119 = arith.addf %116, %118 : vector<64x128xf32>
    %120 = arith.addf %119, %92 : vector<64x128xf32>
    %121 = arith.truncf %120 : vector<64x128xf32> to vector<64x128xbf16>
    %c0_59 = arith.constant 0 : index
    %c0_60 = arith.constant 0 : index
    %c0_61 = arith.constant 0 : index
    %122 = vector.load %arg15[%c0_59, %c0_60, %c0_61] : memref<1x64x128xbf16, #tpu.memory_space<vmem>>, vector<1x64x128xbf16>
    %123 = vector.shape_cast %122 : vector<1x64x128xbf16> to vector<64x128xbf16>
    %124 = vector.shape_cast %121 : vector<64x128xbf16> to vector<1x64x128xbf16>
    tpu.vector_store %arg15[%c0_59, %c0_60, %c0_61], %124 {strides = array<i32>} : memref<1x64x128xbf16, #tpu.memory_space<vmem>>, vector<1x64x128xbf16>,
    return
  }
  func.func @transform_0(%arg0: i32) -> (i32, i32, i32) {
    %c0_i32 = arith.constant 0 : i32
    %c0_i32_0 = arith.constant 0 : i32
    %c0_i32_1 = arith.constant 0 : i32
    return %arg0, %c0_i32, %c0_i32_0 : i32, i32, i32
  }
  func.func @transform_1(%arg0: i32) -> (i32, i32) {
    %c0_i32 = arith.constant 0 : i32
    %c0_i32_0 = arith.constant 0 : i32
    %c0_i32_1 = arith.constant 0 : i32
    return %c0_i32, %c0_i32_0 : i32, i32
  }
  func.func @transform_2(%arg0: i32) -> (i32, i32) {
    %c0_i32 = arith.constant 0 : i32
    %c0_i32_0 = arith.constant 0 : i32
    %c0_i32_1 = arith.constant 0 : i32
    return %c0_i32, %c0_i32_0 : i32, i32
  }
  func.func @transform_3(%arg0: i32) -> (i32, i32) {
    %c0_i32 = arith.constant 0 : i32
    %c0_i32_0 = arith.constant 0 : i32
    %c0_i32_1 = arith.constant 0 : i32
    return %c0_i32, %c0_i32_0 : i32, i32
  }
  func.func @transform_4(%arg0: i32) -> (i32, i32, i32) {
    %c0_i32 = arith.constant 0 : i32
    %c0_i32_0 = arith.constant 0 : i32
    %c0_i32_1 = arith.constant 0 : i32
    %c0_i32_2 = arith.constant 0 : i32
    return %c0_i32, %c0_i32_0, %c0_i32_1 : i32, i32, i32
  }
  func.func @transform_5(%arg0: i32) -> (i32, i32) {
    %c0_i32 = arith.constant 0 : i32
    %c0_i32_0 = arith.constant 0 : i32
    %c0_i32_1 = arith.constant 0 : i32
    return %c0_i32, %c0_i32_0 : i32, i32
  }
  func.func @transform_6(%arg0: i32) -> (i32, i32) {
    %c0_i32 = arith.constant 0 : i32
    %c0_i32_0 = arith.constant 0 : i32
    %c0_i32_1 = arith.constant 0 : i32
    return %c0_i32, %c0_i32_0 : i32, i32
  }
  func.func @transform_7(%arg0: i32) -> (i32, i32) {
    %c0_i32 = arith.constant 0 : i32
    %c0_i32_0 = arith.constant 0 : i32
    %c0_i32_1 = arith.constant 0 : i32
    return %c0_i32, %c0_i32_0 : i32, i32
  }
  func.func @transform_8(%arg0: i32) -> (i32, i32) {
    %c0_i32 = arith.constant 0 : i32
    %c0_i32_0 = arith.constant 0 : i32
    %c0_i32_1 = arith.constant 0 : i32
    return %c0_i32, %c0_i32_0 : i32, i32
  }
  func.func @transform_9(%arg0: i32) -> (i32, i32) {
    %c0_i32 = arith.constant 0 : i32
    %c0_i32_0 = arith.constant 0 : i32
    %c0_i32_1 = arith.constant 0 : i32
    return %c0_i32, %c0_i32_0 : i32, i32
  }
  func.func @transform_10(%arg0: i32) -> (i32, i32) {
    %c0_i32 = arith.constant 0 : i32
    %c0_i32_0 = arith.constant 0 : i32
    %c0_i32_1 = arith.constant 0 : i32
    return %c0_i32, %c0_i32_0 : i32, i32
  }
  func.func @transform_11(%arg0: i32) -> (i32, i32) {
    %c0_i32 = arith.constant 0 : i32
    %c0_i32_0 = arith.constant 0 : i32
    %c0_i32_1 = arith.constant 0 : i32
    return %c0_i32, %c0_i32_0 : i32, i32
  }
  func.func @transform_12(%arg0: i32) -> (i32, i32) {
    %c0_i32 = arith.constant 0 : i32
    %c0_i32_0 = arith.constant 0 : i32
    %c0_i32_1 = arith.constant 0 : i32
    return %c0_i32, %c0_i32_0 : i32, i32
  }
  func.func @transform_13(%arg0: i32) -> (i32, i32) {
    %c0_i32 = arith.constant 0 : i32
    %c0_i32_0 = arith.constant 0 : i32
    %c0_i32_1 = arith.constant 0 : i32
    return %c0_i32, %c0_i32_0 : i32, i32
  }
  func.func @transform_14(%arg0: i32) -> (i32, i32, i32) {
    %c0_i32 = arith.constant 0 : i32
    %c0_i32_0 = arith.constant 0 : i32
    %c0_i32_1 = arith.constant 0 : i32
    return %arg0, %c0_i32, %c0_i32_0 : i32, i32, i32
  }
}

module attributes {stable_mosaic.version = 11 : i64} {
  func.func @_levit_block_kernel(%arg0: i32, %arg1: memref<1x64x128xbf16, #tpu.memory_space<vmem>>, %arg2: memref<1x16x128xbf16, #tpu.memory_space<vmem>>, %arg3: memref<128x320xbf16, #tpu.memory_space<vmem>>, %arg4: memref<1x320xf32, #tpu.memory_space<vmem>>, %arg5: memref<1x320xf32, #tpu.memory_space<vmem>>, %arg6: memref<128x64xbf16, #tpu.memory_space<vmem>>, %arg7: memref<1x64xf32, #tpu.memory_space<vmem>>, %arg8: memref<1x64xf32, #tpu.memory_space<vmem>>, %arg9: memref<4x16x64xf32, #tpu.memory_space<vmem>>, %arg10: memref<256x128xbf16, #tpu.memory_space<vmem>>, %arg11: memref<1x128xf32, #tpu.memory_space<vmem>>, %arg12: memref<1x128xf32, #tpu.memory_space<vmem>>, %arg13: memref<128x256xbf16, #tpu.memory_space<vmem>>, %arg14: memref<1x256xf32, #tpu.memory_space<vmem>>, %arg15: memref<1x256xf32, #tpu.memory_space<vmem>>, %arg16: memref<256x128xbf16, #tpu.memory_space<vmem>>, %arg17: memref<1x128xf32, #tpu.memory_space<vmem>>, %arg18: memref<1x128xf32, #tpu.memory_space<vmem>>, %arg19: memref<1x16x128xbf16, #tpu.memory_space<vmem>>) attributes {dimension_semantics = [#tpu.dimension_semantics<parallel>], iteration_bounds = array<i64: 2>, scalar_prefetch = 0 : i64, scratch_operands = 0 : i64, tpu.core_type = #tpu.core_type<tc>, window_params = [{transform_indices = @transform_0, window_bounds = array<i64: 1, 64, 128>}, {transform_indices = @transform_1, window_bounds = array<i64: 1, 16, 128>}, {pipeline_mode = #tpu.pipeline_mode<synchronous>, transform_indices = @transform_2, window_bounds = array<i64: 128, 320>}, {pipeline_mode = #tpu.pipeline_mode<synchronous>, transform_indices = @transform_3, window_bounds = array<i64: 1, 320>}, {pipeline_mode = #tpu.pipeline_mode<synchronous>, transform_indices = @transform_4, window_bounds = array<i64: 1, 320>}, {pipeline_mode = #tpu.pipeline_mode<synchronous>, transform_indices = @transform_5, window_bounds = array<i64: 128, 64>}, {pipeline_mode = #tpu.pipeline_mode<synchronous>, transform_indices = @transform_6, window_bounds = array<i64: 1, 64>}, {pipeline_mode = #tpu.pipeline_mode<synchronous>, transform_indices = @transform_7, window_bounds = array<i64: 1, 64>}, {pipeline_mode = #tpu.pipeline_mode<synchronous>, transform_indices = @transform_8, window_bounds = array<i64: 4, 16, 64>}, {pipeline_mode = #tpu.pipeline_mode<synchronous>, transform_indices = @transform_9, window_bounds = array<i64: 256, 128>}, {pipeline_mode = #tpu.pipeline_mode<synchronous>, transform_indices = @transform_10, window_bounds = array<i64: 1, 128>}, {pipeline_mode = #tpu.pipeline_mode<synchronous>, transform_indices = @transform_11, window_bounds = array<i64: 1, 128>}, {pipeline_mode = #tpu.pipeline_mode<synchronous>, transform_indices = @transform_12, window_bounds = array<i64: 128, 256>}, {pipeline_mode = #tpu.pipeline_mode<synchronous>, transform_indices = @transform_13, window_bounds = array<i64: 1, 256>}, {pipeline_mode = #tpu.pipeline_mode<synchronous>, transform_indices = @transform_14, window_bounds = array<i64: 1, 256>}, {pipeline_mode = #tpu.pipeline_mode<synchronous>, transform_indices = @transform_15, window_bounds = array<i64: 256, 128>}, {pipeline_mode = #tpu.pipeline_mode<synchronous>, transform_indices = @transform_16, window_bounds = array<i64: 1, 128>}, {pipeline_mode = #tpu.pipeline_mode<synchronous>, transform_indices = @transform_17, window_bounds = array<i64: 1, 128>}, {transform_indices = @transform_18, window_bounds = array<i64: 1, 16, 128>}]} {
    %c0 = arith.constant 0 : index
    %c0_0 = arith.constant 0 : index
    %c0_1 = arith.constant 0 : index
    %0 = vector.load %arg1[%c0, %c0_0, %c0_1] : memref<1x64x128xbf16, #tpu.memory_space<vmem>>, vector<1x64x128xbf16>
    %1 = vector.shape_cast %0 : vector<1x64x128xbf16> to vector<64x128xbf16>
    %c0_2 = arith.constant 0 : index
    %c0_3 = arith.constant 0 : index
    %2 = vector.load %arg3[%c0_2, %c0_3] : memref<128x320xbf16, #tpu.memory_space<vmem>>, vector<128x320xbf16>
    %cst = arith.constant dense<0.000000e+00> : vector<64x320xf32>
    %3 = tpu.matmul %1, %2, %cst {dimension_numbers = #tpu.dot_dimension_numbers<[1], [0], [0], [1], [0, 0, 1, 1], [], []>} : vector<64x128xbf16>, vector<128x320xbf16>, vector<64x320xf32> -> vector<64x320xf32>
    %c0_4 = arith.constant 0 : index
    %c0_5 = arith.constant 0 : index
    %4 = vector.load %arg4[%c0_4, %c0_5] : memref<1x320xf32, #tpu.memory_space<vmem>>, vector<1x320xf32>
    %5 = vector.broadcast %4 : vector<1x320xf32> to vector<64x320xf32>
    %6 = arith.mulf %3, %5 : vector<64x320xf32>
    %c0_6 = arith.constant 0 : index
    %c0_7 = arith.constant 0 : index
    %7 = vector.load %arg5[%c0_6, %c0_7] : memref<1x320xf32, #tpu.memory_space<vmem>>, vector<1x320xf32>
    %8 = vector.broadcast %7 : vector<1x320xf32> to vector<64x320xf32>
    %9 = arith.addf %6, %8 : vector<64x320xf32>
    %10 = vector.extract_strided_slice %9 {offsets = [0, 0], sizes = [64, 64], strides = [1, 1]} : vector<64x320xf32> to vector<64x64xf32>
    %11 = arith.truncf %10 : vector<64x64xf32> to vector<64x64xbf16>
    %12 = vector.extract_strided_slice %9 {offsets = [0, 64], sizes = [64, 256], strides = [1, 1]} : vector<64x320xf32> to vector<64x256xf32>
    %13 = arith.truncf %12 : vector<64x256xf32> to vector<64x256xbf16>
    %c0_8 = arith.constant 0 : index
    %c0_9 = arith.constant 0 : index
    %c0_10 = arith.constant 0 : index
    %14 = vector.load %arg2[%c0_8, %c0_9, %c0_10] : memref<1x16x128xbf16, #tpu.memory_space<vmem>>, vector<1x16x128xbf16>
    %15 = vector.shape_cast %14 : vector<1x16x128xbf16> to vector<16x128xbf16>
    %c0_11 = arith.constant 0 : index
    %c0_12 = arith.constant 0 : index
    %16 = vector.load %arg6[%c0_11, %c0_12] : memref<128x64xbf16, #tpu.memory_space<vmem>>, vector<128x64xbf16>
    %cst_13 = arith.constant dense<0.000000e+00> : vector<16x64xf32>
    %17 = tpu.matmul %15, %16, %cst_13 {dimension_numbers = #tpu.dot_dimension_numbers<[1], [0], [0], [1], [0, 0, 1, 1], [], []>} : vector<16x128xbf16>, vector<128x64xbf16>, vector<16x64xf32> -> vector<16x64xf32>
    %c0_14 = arith.constant 0 : index
    %c0_15 = arith.constant 0 : index
    %18 = vector.load %arg7[%c0_14, %c0_15] : memref<1x64xf32, #tpu.memory_space<vmem>>, vector<1x64xf32>
    %19 = vector.broadcast %18 : vector<1x64xf32> to vector<16x64xf32>
    %20 = arith.mulf %17, %19 : vector<16x64xf32>
    %c0_16 = arith.constant 0 : index
    %c0_17 = arith.constant 0 : index
    %21 = vector.load %arg8[%c0_16, %c0_17] : memref<1x64xf32, #tpu.memory_space<vmem>>, vector<1x64xf32>
    %22 = vector.broadcast %21 : vector<1x64xf32> to vector<16x64xf32>
    %23 = arith.addf %20, %22 : vector<16x64xf32>
    %24 = arith.truncf %23 : vector<16x64xf32> to vector<16x64xbf16>
    %cst_18 = arith.constant 0.000000e+00 : f32
    %25 = vector.broadcast %cst_18 : f32 to vector<16x128xf32>
    %26 = vector.extract_strided_slice %24 {offsets = [0, 0], sizes = [16, 16], strides = [1, 1]} : vector<16x64xbf16> to vector<16x16xbf16>
    %27 = vector.extract_strided_slice %11 {offsets = [0, 0], sizes = [64, 16], strides = [1, 1]} : vector<64x64xbf16> to vector<64x16xbf16>
    %28 = vector.extract_strided_slice %13 {offsets = [0, 0], sizes = [64, 64], strides = [1, 1]} : vector<64x256xbf16> to vector<64x64xbf16>
    %cst_19 = arith.constant dense<0.000000e+00> : vector<16x64xf32>
    %29 = tpu.matmul %26, %27, %cst_19 {dimension_numbers = #tpu.dot_dimension_numbers<[1], [1], [0], [0], [0, 0, 1, 0], [], []>} : vector<16x16xbf16>, vector<64x16xbf16>, vector<16x64xf32> -> vector<16x64xf32>
    %cst_20 = arith.constant 2.500000e-01 : f32
    %30 = vector.broadcast %cst_20 : f32 to vector<16x64xf32>
    %31 = arith.mulf %29, %30 : vector<16x64xf32>
    %c0_21 = arith.constant 0 : index
    %c0_22 = arith.constant 0 : index
    %c0_23 = arith.constant 0 : index
    %32 = vector.load %arg9[%c0_21, %c0_22, %c0_23] : memref<4x16x64xf32, #tpu.memory_space<vmem>>, vector<1x16x64xf32>
    %33 = vector.shape_cast %32 : vector<1x16x64xf32> to vector<16x64xf32>
    %34 = arith.addf %31, %33 : vector<16x64xf32>
    %cst_24 = arith.constant dense<0xFF800000> : vector<16xf32>
    %35 = vector.multi_reduction <maximumf>, %34, %cst_24 [1] : vector<16x64xf32> to vector<16xf32>
    %36 = vector.shape_cast %35 : vector<16xf32> to vector<16x1xf32>
    %37 = vector.broadcast %36 : vector<16x1xf32> to vector<16x64xf32>
    %38 = arith.subf %34, %37 : vector<16x64xf32>
    %39 = math.exp %38 : vector<16x64xf32>
    %cst_25 = arith.constant dense<0.000000e+00> : vector<16xf32>
    %40 = vector.multi_reduction <add>, %39, %cst_25 [1] : vector<16x64xf32> to vector<16xf32>
    %41 = vector.shape_cast %40 : vector<16xf32> to vector<16x1xf32>
    %42 = tpu.reciprocal %41 {approx = true} : vector<16x1xf32> -> vector<16x1xf32>
    %43 = vector.broadcast %42 : vector<16x1xf32> to vector<16x64xf32>
    %44 = arith.mulf %39, %43 : vector<16x64xf32>
    %45 = arith.truncf %44 : vector<16x64xf32> to vector<16x64xbf16>
    %cst_26 = arith.constant dense<0.000000e+00> : vector<16x64xf32>
    %46 = tpu.matmul %45, %28, %cst_26 {dimension_numbers = #tpu.dot_dimension_numbers<[1], [0], [0], [1], [0, 0, 1, 1], [], []>} : vector<16x64xbf16>, vector<64x64xbf16>, vector<16x64xf32> -> vector<16x64xf32>
    %cst_27 = arith.constant 3.000000e+00 : f32
    %47 = vector.broadcast %cst_27 : f32 to vector<16x64xf32>
    %48 = arith.addf %46, %47 : vector<16x64xf32>
    %cst_28 = arith.constant 0.000000e+00 : f32
    %cst_29 = arith.constant 6.000000e+00 : f32
    %49 = vector.broadcast %cst_28 : f32 to vector<16x64xf32>
    %50 = arith.maximumf %49, %48 : vector<16x64xf32>
    %51 = vector.broadcast %cst_29 : f32 to vector<16x64xf32>
    %52 = arith.minimumf %51, %50 : vector<16x64xf32>
    %53 = arith.mulf %46, %52 : vector<16x64xf32>
    %cst_30 = arith.constant 0.166666672 : f32
    %54 = vector.broadcast %cst_30 : f32 to vector<16x64xf32>
    %55 = arith.mulf %53, %54 : vector<16x64xf32>
    %56 = arith.truncf %55 : vector<16x64xf32> to vector<16x64xbf16>
    %c0_31 = arith.constant 0 : index
    %c0_32 = arith.constant 0 : index
    %57 = vector.load %arg10[%c0_31, %c0_32] : memref<256x128xbf16, #tpu.memory_space<vmem>>, vector<64x128xbf16>
    %cst_33 = arith.constant dense<0.000000e+00> : vector<16x128xf32>
    %58 = tpu.matmul %56, %57, %cst_33 {dimension_numbers = #tpu.dot_dimension_numbers<[1], [0], [0], [1], [0, 0, 1, 1], [], []>} : vector<16x64xbf16>, vector<64x128xbf16>, vector<16x128xf32> -> vector<16x128xf32>
    %59 = arith.addf %25, %58 : vector<16x128xf32>
    %60 = vector.extract_strided_slice %24 {offsets = [0, 16], sizes = [16, 16], strides = [1, 1]} : vector<16x64xbf16> to vector<16x16xbf16>
    %61 = vector.extract_strided_slice %11 {offsets = [0, 16], sizes = [64, 16], strides = [1, 1]} : vector<64x64xbf16> to vector<64x16xbf16>
    %62 = vector.extract_strided_slice %13 {offsets = [0, 64], sizes = [64, 64], strides = [1, 1]} : vector<64x256xbf16> to vector<64x64xbf16>
    %cst_34 = arith.constant dense<0.000000e+00> : vector<16x64xf32>
    %63 = tpu.matmul %60, %61, %cst_34 {dimension_numbers = #tpu.dot_dimension_numbers<[1], [1], [0], [0], [0, 0, 1, 0], [], []>} : vector<16x16xbf16>, vector<64x16xbf16>, vector<16x64xf32> -> vector<16x64xf32>
    %cst_35 = arith.constant 2.500000e-01 : f32
    %64 = vector.broadcast %cst_35 : f32 to vector<16x64xf32>
    %65 = arith.mulf %63, %64 : vector<16x64xf32>
    %c1 = arith.constant 1 : index
    %c0_36 = arith.constant 0 : index
    %c0_37 = arith.constant 0 : index
    %66 = vector.load %arg9[%c1, %c0_36, %c0_37] : memref<4x16x64xf32, #tpu.memory_space<vmem>>, vector<1x16x64xf32>
    %67 = vector.shape_cast %66 : vector<1x16x64xf32> to vector<16x64xf32>
    %68 = arith.addf %65, %67 : vector<16x64xf32>
    %cst_38 = arith.constant dense<0xFF800000> : vector<16xf32>
    %69 = vector.multi_reduction <maximumf>, %68, %cst_38 [1] : vector<16x64xf32> to vector<16xf32>
    %70 = vector.shape_cast %69 : vector<16xf32> to vector<16x1xf32>
    %71 = vector.broadcast %70 : vector<16x1xf32> to vector<16x64xf32>
    %72 = arith.subf %68, %71 : vector<16x64xf32>
    %73 = math.exp %72 : vector<16x64xf32>
    %cst_39 = arith.constant dense<0.000000e+00> : vector<16xf32>
    %74 = vector.multi_reduction <add>, %73, %cst_39 [1] : vector<16x64xf32> to vector<16xf32>
    %75 = vector.shape_cast %74 : vector<16xf32> to vector<16x1xf32>
    %76 = tpu.reciprocal %75 {approx = true} : vector<16x1xf32> -> vector<16x1xf32>
    %77 = vector.broadcast %76 : vector<16x1xf32> to vector<16x64xf32>
    %78 = arith.mulf %73, %77 : vector<16x64xf32>
    %79 = arith.truncf %78 : vector<16x64xf32> to vector<16x64xbf16>
    %cst_40 = arith.constant dense<0.000000e+00> : vector<16x64xf32>
    %80 = tpu.matmul %79, %62, %cst_40 {dimension_numbers = #tpu.dot_dimension_numbers<[1], [0], [0], [1], [0, 0, 1, 1], [], []>} : vector<16x64xbf16>, vector<64x64xbf16>, vector<16x64xf32> -> vector<16x64xf32>
    %cst_41 = arith.constant 3.000000e+00 : f32
    %81 = vector.broadcast %cst_41 : f32 to vector<16x64xf32>
    %82 = arith.addf %80, %81 : vector<16x64xf32>
    %cst_42 = arith.constant 0.000000e+00 : f32
    %cst_43 = arith.constant 6.000000e+00 : f32
    %83 = vector.broadcast %cst_42 : f32 to vector<16x64xf32>
    %84 = arith.maximumf %83, %82 : vector<16x64xf32>
    %85 = vector.broadcast %cst_43 : f32 to vector<16x64xf32>
    %86 = arith.minimumf %85, %84 : vector<16x64xf32>
    %87 = arith.mulf %80, %86 : vector<16x64xf32>
    %cst_44 = arith.constant 0.166666672 : f32
    %88 = vector.broadcast %cst_44 : f32 to vector<16x64xf32>
    %89 = arith.mulf %87, %88 : vector<16x64xf32>
    %90 = arith.truncf %89 : vector<16x64xf32> to vector<16x64xbf16>
    %c64 = arith.constant 64 : index
    %c0_45 = arith.constant 0 : index
    %91 = vector.load %arg10[%c64, %c0_45] : memref<256x128xbf16, #tpu.memory_space<vmem>>, vector<64x128xbf16>
    %cst_46 = arith.constant dense<0.000000e+00> : vector<16x128xf32>
    %92 = tpu.matmul %90, %91, %cst_46 {dimension_numbers = #tpu.dot_dimension_numbers<[1], [0], [0], [1], [0, 0, 1, 1], [], []>} : vector<16x64xbf16>, vector<64x128xbf16>, vector<16x128xf32> -> vector<16x128xf32>
    %93 = arith.addf %59, %92 : vector<16x128xf32>
    %94 = vector.extract_strided_slice %24 {offsets = [0, 32], sizes = [16, 16], strides = [1, 1]} : vector<16x64xbf16> to vector<16x16xbf16>
    %95 = vector.extract_strided_slice %11 {offsets = [0, 32], sizes = [64, 16], strides = [1, 1]} : vector<64x64xbf16> to vector<64x16xbf16>
    %96 = vector.extract_strided_slice %13 {offsets = [0, 128], sizes = [64, 64], strides = [1, 1]} : vector<64x256xbf16> to vector<64x64xbf16>
    %cst_47 = arith.constant dense<0.000000e+00> : vector<16x64xf32>
    %97 = tpu.matmul %94, %95, %cst_47 {dimension_numbers = #tpu.dot_dimension_numbers<[1], [1], [0], [0], [0, 0, 1, 0], [], []>} : vector<16x16xbf16>, vector<64x16xbf16>, vector<16x64xf32> -> vector<16x64xf32>
    %cst_48 = arith.constant 2.500000e-01 : f32
    %98 = vector.broadcast %cst_48 : f32 to vector<16x64xf32>
    %99 = arith.mulf %97, %98 : vector<16x64xf32>
    %c2 = arith.constant 2 : index
    %c0_49 = arith.constant 0 : index
    %c0_50 = arith.constant 0 : index
    %100 = vector.load %arg9[%c2, %c0_49, %c0_50] : memref<4x16x64xf32, #tpu.memory_space<vmem>>, vector<1x16x64xf32>
    %101 = vector.shape_cast %100 : vector<1x16x64xf32> to vector<16x64xf32>
    %102 = arith.addf %99, %101 : vector<16x64xf32>
    %cst_51 = arith.constant dense<0xFF800000> : vector<16xf32>
    %103 = vector.multi_reduction <maximumf>, %102, %cst_51 [1] : vector<16x64xf32> to vector<16xf32>
    %104 = vector.shape_cast %103 : vector<16xf32> to vector<16x1xf32>
    %105 = vector.broadcast %104 : vector<16x1xf32> to vector<16x64xf32>
    %106 = arith.subf %102, %105 : vector<16x64xf32>
    %107 = math.exp %106 : vector<16x64xf32>
    %cst_52 = arith.constant dense<0.000000e+00> : vector<16xf32>
    %108 = vector.multi_reduction <add>, %107, %cst_52 [1] : vector<16x64xf32> to vector<16xf32>
    %109 = vector.shape_cast %108 : vector<16xf32> to vector<16x1xf32>
    %110 = tpu.reciprocal %109 {approx = true} : vector<16x1xf32> -> vector<16x1xf32>
    %111 = vector.broadcast %110 : vector<16x1xf32> to vector<16x64xf32>
    %112 = arith.mulf %107, %111 : vector<16x64xf32>
    %113 = arith.truncf %112 : vector<16x64xf32> to vector<16x64xbf16>
    %cst_53 = arith.constant dense<0.000000e+00> : vector<16x64xf32>
    %114 = tpu.matmul %113, %96, %cst_53 {dimension_numbers = #tpu.dot_dimension_numbers<[1], [0], [0], [1], [0, 0, 1, 1], [], []>} : vector<16x64xbf16>, vector<64x64xbf16>, vector<16x64xf32> -> vector<16x64xf32>
    %cst_54 = arith.constant 3.000000e+00 : f32
    %115 = vector.broadcast %cst_54 : f32 to vector<16x64xf32>
    %116 = arith.addf %114, %115 : vector<16x64xf32>
    %cst_55 = arith.constant 0.000000e+00 : f32
    %cst_56 = arith.constant 6.000000e+00 : f32
    %117 = vector.broadcast %cst_55 : f32 to vector<16x64xf32>
    %118 = arith.maximumf %117, %116 : vector<16x64xf32>
    %119 = vector.broadcast %cst_56 : f32 to vector<16x64xf32>
    %120 = arith.minimumf %119, %118 : vector<16x64xf32>
    %121 = arith.mulf %114, %120 : vector<16x64xf32>
    %cst_57 = arith.constant 0.166666672 : f32
    %122 = vector.broadcast %cst_57 : f32 to vector<16x64xf32>
    %123 = arith.mulf %121, %122 : vector<16x64xf32>
    %124 = arith.truncf %123 : vector<16x64xf32> to vector<16x64xbf16>
    %c128 = arith.constant 128 : index
    %c0_58 = arith.constant 0 : index
    %125 = vector.load %arg10[%c128, %c0_58] : memref<256x128xbf16, #tpu.memory_space<vmem>>, vector<64x128xbf16>
    %cst_59 = arith.constant dense<0.000000e+00> : vector<16x128xf32>
    %126 = tpu.matmul %124, %125, %cst_59 {dimension_numbers = #tpu.dot_dimension_numbers<[1], [0], [0], [1], [0, 0, 1, 1], [], []>} : vector<16x64xbf16>, vector<64x128xbf16>, vector<16x128xf32> -> vector<16x128xf32>
    %127 = arith.addf %93, %126 : vector<16x128xf32>
    %128 = vector.extract_strided_slice %24 {offsets = [0, 48], sizes = [16, 16], strides = [1, 1]} : vector<16x64xbf16> to vector<16x16xbf16>
    %129 = vector.extract_strided_slice %11 {offsets = [0, 48], sizes = [64, 16], strides = [1, 1]} : vector<64x64xbf16> to vector<64x16xbf16>
    %130 = vector.extract_strided_slice %13 {offsets = [0, 192], sizes = [64, 64], strides = [1, 1]} : vector<64x256xbf16> to vector<64x64xbf16>
    %cst_60 = arith.constant dense<0.000000e+00> : vector<16x64xf32>
    %131 = tpu.matmul %128, %129, %cst_60 {dimension_numbers = #tpu.dot_dimension_numbers<[1], [1], [0], [0], [0, 0, 1, 0], [], []>} : vector<16x16xbf16>, vector<64x16xbf16>, vector<16x64xf32> -> vector<16x64xf32>
    %cst_61 = arith.constant 2.500000e-01 : f32
    %132 = vector.broadcast %cst_61 : f32 to vector<16x64xf32>
    %133 = arith.mulf %131, %132 : vector<16x64xf32>
    %c3 = arith.constant 3 : index
    %c0_62 = arith.constant 0 : index
    %c0_63 = arith.constant 0 : index
    %134 = vector.load %arg9[%c3, %c0_62, %c0_63] : memref<4x16x64xf32, #tpu.memory_space<vmem>>, vector<1x16x64xf32>
    %135 = vector.shape_cast %134 : vector<1x16x64xf32> to vector<16x64xf32>
    %136 = arith.addf %133, %135 : vector<16x64xf32>
    %cst_64 = arith.constant dense<0xFF800000> : vector<16xf32>
    %137 = vector.multi_reduction <maximumf>, %136, %cst_64 [1] : vector<16x64xf32> to vector<16xf32>
    %138 = vector.shape_cast %137 : vector<16xf32> to vector<16x1xf32>
    %139 = vector.broadcast %138 : vector<16x1xf32> to vector<16x64xf32>
    %140 = arith.subf %136, %139 : vector<16x64xf32>
    %141 = math.exp %140 : vector<16x64xf32>
    %cst_65 = arith.constant dense<0.000000e+00> : vector<16xf32>
    %142 = vector.multi_reduction <add>, %141, %cst_65 [1] : vector<16x64xf32> to vector<16xf32>
    %143 = vector.shape_cast %142 : vector<16xf32> to vector<16x1xf32>
    %144 = tpu.reciprocal %143 {approx = true} : vector<16x1xf32> -> vector<16x1xf32>
    %145 = vector.broadcast %144 : vector<16x1xf32> to vector<16x64xf32>
    %146 = arith.mulf %141, %145 : vector<16x64xf32>
    %147 = arith.truncf %146 : vector<16x64xf32> to vector<16x64xbf16>
    %cst_66 = arith.constant dense<0.000000e+00> : vector<16x64xf32>
    %148 = tpu.matmul %147, %130, %cst_66 {dimension_numbers = #tpu.dot_dimension_numbers<[1], [0], [0], [1], [0, 0, 1, 1], [], []>} : vector<16x64xbf16>, vector<64x64xbf16>, vector<16x64xf32> -> vector<16x64xf32>
    %cst_67 = arith.constant 3.000000e+00 : f32
    %149 = vector.broadcast %cst_67 : f32 to vector<16x64xf32>
    %150 = arith.addf %148, %149 : vector<16x64xf32>
    %cst_68 = arith.constant 0.000000e+00 : f32
    %cst_69 = arith.constant 6.000000e+00 : f32
    %151 = vector.broadcast %cst_68 : f32 to vector<16x64xf32>
    %152 = arith.maximumf %151, %150 : vector<16x64xf32>
    %153 = vector.broadcast %cst_69 : f32 to vector<16x64xf32>
    %154 = arith.minimumf %153, %152 : vector<16x64xf32>
    %155 = arith.mulf %148, %154 : vector<16x64xf32>
    %cst_70 = arith.constant 0.166666672 : f32
    %156 = vector.broadcast %cst_70 : f32 to vector<16x64xf32>
    %157 = arith.mulf %155, %156 : vector<16x64xf32>
    %158 = arith.truncf %157 : vector<16x64xf32> to vector<16x64xbf16>
    %c192 = arith.constant 192 : index
    %c0_71 = arith.constant 0 : index
    %159 = vector.load %arg10[%c192, %c0_71] : memref<256x128xbf16, #tpu.memory_space<vmem>>, vector<64x128xbf16>
    %cst_72 = arith.constant dense<0.000000e+00> : vector<16x128xf32>
    %160 = tpu.matmul %158, %159, %cst_72 {dimension_numbers = #tpu.dot_dimension_numbers<[1], [0], [0], [1], [0, 0, 1, 1], [], []>} : vector<16x64xbf16>, vector<64x128xbf16>, vector<16x128xf32> -> vector<16x128xf32>
    %161 = arith.addf %127, %160 : vector<16x128xf32>
    %c0_73 = arith.constant 0 : index
    %c0_74 = arith.constant 0 : index
    %162 = vector.load %arg11[%c0_73, %c0_74] : memref<1x128xf32, #tpu.memory_space<vmem>>, vector<1x128xf32>
    %163 = vector.broadcast %162 : vector<1x128xf32> to vector<16x128xf32>
    %164 = arith.mulf %161, %163 : vector<16x128xf32>
    %c0_75 = arith.constant 0 : index
    %c0_76 = arith.constant 0 : index
    %165 = vector.load %arg12[%c0_75, %c0_76] : memref<1x128xf32, #tpu.memory_space<vmem>>, vector<1x128xf32>
    %166 = vector.broadcast %165 : vector<1x128xf32> to vector<16x128xf32>
    %167 = arith.addf %164, %166 : vector<16x128xf32>
    %168 = arith.truncf %167 : vector<16x128xf32> to vector<16x128xbf16>
    %c0_77 = arith.constant 0 : index
    %c0_78 = arith.constant 0 : index
    %169 = vector.load %arg13[%c0_77, %c0_78] : memref<128x256xbf16, #tpu.memory_space<vmem>>, vector<128x256xbf16>
    %cst_79 = arith.constant dense<0.000000e+00> : vector<16x256xf32>
    %170 = tpu.matmul %168, %169, %cst_79 {dimension_numbers = #tpu.dot_dimension_numbers<[1], [0], [0], [1], [0, 0, 1, 1], [], []>} : vector<16x128xbf16>, vector<128x256xbf16>, vector<16x256xf32> -> vector<16x256xf32>
    %c0_80 = arith.constant 0 : index
    %c0_81 = arith.constant 0 : index
    %171 = vector.load %arg14[%c0_80, %c0_81] : memref<1x256xf32, #tpu.memory_space<vmem>>, vector<1x256xf32>
    %172 = vector.broadcast %171 : vector<1x256xf32> to vector<16x256xf32>
    %173 = arith.mulf %170, %172 : vector<16x256xf32>
    %c0_82 = arith.constant 0 : index
    %c0_83 = arith.constant 0 : index
    %174 = vector.load %arg15[%c0_82, %c0_83] : memref<1x256xf32, #tpu.memory_space<vmem>>, vector<1x256xf32>
    %175 = vector.broadcast %174 : vector<1x256xf32> to vector<16x256xf32>
    %176 = arith.addf %173, %175 : vector<16x256xf32>
    %cst_84 = arith.constant 3.000000e+00 : f32
    %177 = vector.broadcast %cst_84 : f32 to vector<16x256xf32>
    %178 = arith.addf %176, %177 : vector<16x256xf32>
    %cst_85 = arith.constant 0.000000e+00 : f32
    %cst_86 = arith.constant 6.000000e+00 : f32
    %179 = vector.broadcast %cst_85 : f32 to vector<16x256xf32>
    %180 = arith.maximumf %179, %178 : vector<16x256xf32>
    %181 = vector.broadcast %cst_86 : f32 to vector<16x256xf32>
    %182 = arith.minimumf %181, %180 : vector<16x256xf32>
    %183 = arith.mulf %176, %182 : vector<16x256xf32>
    %cst_87 = arith.constant 0.166666672 : f32
    %184 = vector.broadcast %cst_87 : f32 to vector<16x256xf32>
    %185 = arith.mulf %183, %184 : vector<16x256xf32>
    %186 = arith.truncf %185 : vector<16x256xf32> to vector<16x256xbf16>
    %c0_88 = arith.constant 0 : index
    %c0_89 = arith.constant 0 : index
    %187 = vector.load %arg16[%c0_88, %c0_89] : memref<256x128xbf16, #tpu.memory_space<vmem>>, vector<256x128xbf16>
    %cst_90 = arith.constant dense<0.000000e+00> : vector<16x128xf32>
    %188 = tpu.matmul %186, %187, %cst_90 {dimension_numbers = #tpu.dot_dimension_numbers<[1], [0], [0], [1], [0, 0, 1, 1], [], []>} : vector<16x256xbf16>, vector<256x128xbf16>, vector<16x128xf32> -> vector<16x128xf32>
    %c0_91 = arith.constant 0 : index
    %c0_92 = arith.constant 0 : index
    %189 = vector.load %arg17[%c0_91, %c0_92] : memref<1x128xf32, #tpu.memory_space<vmem>>, vector<1x128xf32>
    %190 = vector.broadcast %189 : vector<1x128xf32> to vector<16x128xf32>
    %191 = arith.mulf %188, %190 : vector<16x128xf32>
    %c0_93 = arith.constant 0 : index
    %c0_94 = arith.constant 0 : index
    %192 = vector.load %arg18[%c0_93, %c0_94] : memref<1x128xf32, #tpu.memory_space<vmem>>, vector<1x128xf32>
    %193 = vector.broadcast %192 : vector<1x128xf32> to vector<16x128xf32>
    %194 = arith.addf %191, %193 : vector<16x128xf32>
    %195 = arith.addf %194, %167 : vector<16x128xf32>
    %196 = arith.truncf %195 : vector<16x128xf32> to vector<16x128xbf16>
    %c0_95 = arith.constant 0 : index
    %c0_96 = arith.constant 0 : index
    %c0_97 = arith.constant 0 : index
    %197 = vector.load %arg19[%c0_95, %c0_96, %c0_97] : memref<1x16x128xbf16, #tpu.memory_space<vmem>>, vector<1x16x128xbf16>
    %198 = vector.shape_cast %197 : vector<1x16x128xbf16> to vector<16x128xbf16>
    %199 = vector.shape_cast %196 : vector<16x128xbf16> to vector<1x16x128xbf16>
    tpu.vector_store %arg19[%c0_95, %c0_96, %c0_97], %199 {strides = array<i32>} : memref<1x16x128xbf16, #tpu.memory_space<vmem>>, vector<1x16x128xbf16>,
    return
  }
  func.func @transform_0(%arg0: i32) -> (i32, i32, i32) {
    %c0_i32 = arith.constant 0 : i32
    %c0_i32_0 = arith.constant 0 : i32
    %c0_i32_1 = arith.constant 0 : i32
    return %arg0, %c0_i32, %c0_i32_0 : i32, i32, i32
  }
  func.func @transform_1(%arg0: i32) -> (i32, i32, i32) {
    %c0_i32 = arith.constant 0 : i32
    %c0_i32_0 = arith.constant 0 : i32
    %c0_i32_1 = arith.constant 0 : i32
    return %arg0, %c0_i32, %c0_i32_0 : i32, i32, i32
  }
  func.func @transform_2(%arg0: i32) -> (i32, i32) {
    %c0_i32 = arith.constant 0 : i32
    %c0_i32_0 = arith.constant 0 : i32
    %c0_i32_1 = arith.constant 0 : i32
    return %c0_i32, %c0_i32_0 : i32, i32
  }
  func.func @transform_3(%arg0: i32) -> (i32, i32) {
    %c0_i32 = arith.constant 0 : i32
    %c0_i32_0 = arith.constant 0 : i32
    %c0_i32_1 = arith.constant 0 : i32
    return %c0_i32, %c0_i32_0 : i32, i32
  }
  func.func @transform_4(%arg0: i32) -> (i32, i32) {
    %c0_i32 = arith.constant 0 : i32
    %c0_i32_0 = arith.constant 0 : i32
    %c0_i32_1 = arith.constant 0 : i32
    return %c0_i32, %c0_i32_0 : i32, i32
  }
  func.func @transform_5(%arg0: i32) -> (i32, i32) {
    %c0_i32 = arith.constant 0 : i32
    %c0_i32_0 = arith.constant 0 : i32
    %c0_i32_1 = arith.constant 0 : i32
    return %c0_i32, %c0_i32_0 : i32, i32
  }
  func.func @transform_6(%arg0: i32) -> (i32, i32) {
    %c0_i32 = arith.constant 0 : i32
    %c0_i32_0 = arith.constant 0 : i32
    %c0_i32_1 = arith.constant 0 : i32
    return %c0_i32, %c0_i32_0 : i32, i32
  }
  func.func @transform_7(%arg0: i32) -> (i32, i32) {
    %c0_i32 = arith.constant 0 : i32
    %c0_i32_0 = arith.constant 0 : i32
    %c0_i32_1 = arith.constant 0 : i32
    return %c0_i32, %c0_i32_0 : i32, i32
  }
  func.func @transform_8(%arg0: i32) -> (i32, i32, i32) {
    %c0_i32 = arith.constant 0 : i32
    %c0_i32_0 = arith.constant 0 : i32
    %c0_i32_1 = arith.constant 0 : i32
    %c0_i32_2 = arith.constant 0 : i32
    return %c0_i32, %c0_i32_0, %c0_i32_1 : i32, i32, i32
  }
  func.func @transform_9(%arg0: i32) -> (i32, i32) {
    %c0_i32 = arith.constant 0 : i32
    %c0_i32_0 = arith.constant 0 : i32
    %c0_i32_1 = arith.constant 0 : i32
    return %c0_i32, %c0_i32_0 : i32, i32
  }
  func.func @transform_10(%arg0: i32) -> (i32, i32) {
    %c0_i32 = arith.constant 0 : i32
    %c0_i32_0 = arith.constant 0 : i32
    %c0_i32_1 = arith.constant 0 : i32
    return %c0_i32, %c0_i32_0 : i32, i32
  }
  func.func @transform_11(%arg0: i32) -> (i32, i32) {
    %c0_i32 = arith.constant 0 : i32
    %c0_i32_0 = arith.constant 0 : i32
    %c0_i32_1 = arith.constant 0 : i32
    return %c0_i32, %c0_i32_0 : i32, i32
  }
  func.func @transform_12(%arg0: i32) -> (i32, i32) {
    %c0_i32 = arith.constant 0 : i32
    %c0_i32_0 = arith.constant 0 : i32
    %c0_i32_1 = arith.constant 0 : i32
    return %c0_i32, %c0_i32_0 : i32, i32
  }
  func.func @transform_13(%arg0: i32) -> (i32, i32) {
    %c0_i32 = arith.constant 0 : i32
    %c0_i32_0 = arith.constant 0 : i32
    %c0_i32_1 = arith.constant 0 : i32
    return %c0_i32, %c0_i32_0 : i32, i32
  }
  func.func @transform_14(%arg0: i32) -> (i32, i32) {
    %c0_i32 = arith.constant 0 : i32
    %c0_i32_0 = arith.constant 0 : i32
    %c0_i32_1 = arith.constant 0 : i32
    return %c0_i32, %c0_i32_0 : i32, i32
  }
  func.func @transform_15(%arg0: i32) -> (i32, i32) {
    %c0_i32 = arith.constant 0 : i32
    %c0_i32_0 = arith.constant 0 : i32
    %c0_i32_1 = arith.constant 0 : i32
    return %c0_i32, %c0_i32_0 : i32, i32
  }
  func.func @transform_16(%arg0: i32) -> (i32, i32) {
    %c0_i32 = arith.constant 0 : i32
    %c0_i32_0 = arith.constant 0 : i32
    %c0_i32_1 = arith.constant 0 : i32
    return %c0_i32, %c0_i32_0 : i32, i32
  }
  func.func @transform_17(%arg0: i32) -> (i32, i32) {
    %c0_i32 = arith.constant 0 : i32
    %c0_i32_0 = arith.constant 0 : i32
    %c0_i32_1 = arith.constant 0 : i32
    return %c0_i32, %c0_i32_0 : i32, i32
  }
  func.func @transform_18(%arg0: i32) -> (i32, i32, i32) {
    %c0_i32 = arith.constant 0 : i32
    %c0_i32_0 = arith.constant 0 : i32
    %c0_i32_1 = arith.constant 0 : i32
    return %arg0, %c0_i32, %c0_i32_0 : i32, i32, i32
  }
}

module attributes {stable_mosaic.version = 11 : i64} {
  func.func @_levit_block_kernel(%arg0: i32, %arg1: memref<1x16x128xbf16, #tpu.memory_space<vmem>>, %arg2: memref<128x256xbf16, #tpu.memory_space<vmem>>, %arg3: memref<1x256xf32, #tpu.memory_space<vmem>>, %arg4: memref<1x256xf32, #tpu.memory_space<vmem>>, %arg5: memref<4x16x16xf32, #tpu.memory_space<vmem>>, %arg6: memref<128x128xbf16, #tpu.memory_space<vmem>>, %arg7: memref<1x128xf32, #tpu.memory_space<vmem>>, %arg8: memref<1x128xf32, #tpu.memory_space<vmem>>, %arg9: memref<128x256xbf16, #tpu.memory_space<vmem>>, %arg10: memref<1x256xf32, #tpu.memory_space<vmem>>, %arg11: memref<1x256xf32, #tpu.memory_space<vmem>>, %arg12: memref<256x128xbf16, #tpu.memory_space<vmem>>, %arg13: memref<1x128xf32, #tpu.memory_space<vmem>>, %arg14: memref<1x128xf32, #tpu.memory_space<vmem>>, %arg15: memref<1x16x128xbf16, #tpu.memory_space<vmem>>) attributes {dimension_semantics = [#tpu.dimension_semantics<parallel>], iteration_bounds = array<i64: 2>, scalar_prefetch = 0 : i64, scratch_operands = 0 : i64, tpu.core_type = #tpu.core_type<tc>, window_params = [{transform_indices = @transform_0, window_bounds = array<i64: 1, 16, 128>}, {pipeline_mode = #tpu.pipeline_mode<synchronous>, transform_indices = @transform_1, window_bounds = array<i64: 128, 256>}, {pipeline_mode = #tpu.pipeline_mode<synchronous>, transform_indices = @transform_2, window_bounds = array<i64: 1, 256>}, {pipeline_mode = #tpu.pipeline_mode<synchronous>, transform_indices = @transform_3, window_bounds = array<i64: 1, 256>}, {pipeline_mode = #tpu.pipeline_mode<synchronous>, transform_indices = @transform_4, window_bounds = array<i64: 4, 16, 16>}, {pipeline_mode = #tpu.pipeline_mode<synchronous>, transform_indices = @transform_5, window_bounds = array<i64: 128, 128>}, {pipeline_mode = #tpu.pipeline_mode<synchronous>, transform_indices = @transform_6, window_bounds = array<i64: 1, 128>}, {pipeline_mode = #tpu.pipeline_mode<synchronous>, transform_indices = @transform_7, window_bounds = array<i64: 1, 128>}, {pipeline_mode = #tpu.pipeline_mode<synchronous>, transform_indices = @transform_8, window_bounds = array<i64: 128, 256>}, {pipeline_mode = #tpu.pipeline_mode<synchronous>, transform_indices = @transform_9, window_bounds = array<i64: 1, 256>}, {pipeline_mode = #tpu.pipeline_mode<synchronous>, transform_indices = @transform_10, window_bounds = array<i64: 1, 256>}, {pipeline_mode = #tpu.pipeline_mode<synchronous>, transform_indices = @transform_11, window_bounds = array<i64: 256, 128>}, {pipeline_mode = #tpu.pipeline_mode<synchronous>, transform_indices = @transform_12, window_bounds = array<i64: 1, 128>}, {pipeline_mode = #tpu.pipeline_mode<synchronous>, transform_indices = @transform_13, window_bounds = array<i64: 1, 128>}, {transform_indices = @transform_14, window_bounds = array<i64: 1, 16, 128>}]} {
    %c0 = arith.constant 0 : index
    %c0_0 = arith.constant 0 : index
    %c0_1 = arith.constant 0 : index
    %0 = vector.load %arg1[%c0, %c0_0, %c0_1] : memref<1x16x128xbf16, #tpu.memory_space<vmem>>, vector<1x16x128xbf16>
    %1 = vector.shape_cast %0 : vector<1x16x128xbf16> to vector<16x128xbf16>
    %c0_2 = arith.constant 0 : index
    %c0_3 = arith.constant 0 : index
    %2 = vector.load %arg2[%c0_2, %c0_3] : memref<128x256xbf16, #tpu.memory_space<vmem>>, vector<128x256xbf16>
    %cst = arith.constant dense<0.000000e+00> : vector<16x256xf32>
    %3 = tpu.matmul %1, %2, %cst {dimension_numbers = #tpu.dot_dimension_numbers<[1], [0], [0], [1], [0, 0, 1, 1], [], []>} : vector<16x128xbf16>, vector<128x256xbf16>, vector<16x256xf32> -> vector<16x256xf32>
    %c0_4 = arith.constant 0 : index
    %c0_5 = arith.constant 0 : index
    %4 = vector.load %arg3[%c0_4, %c0_5] : memref<1x256xf32, #tpu.memory_space<vmem>>, vector<1x256xf32>
    %5 = vector.broadcast %4 : vector<1x256xf32> to vector<16x256xf32>
    %6 = arith.mulf %3, %5 : vector<16x256xf32>
    %c0_6 = arith.constant 0 : index
    %c0_7 = arith.constant 0 : index
    %7 = vector.load %arg4[%c0_6, %c0_7] : memref<1x256xf32, #tpu.memory_space<vmem>>, vector<1x256xf32>
    %8 = vector.broadcast %7 : vector<1x256xf32> to vector<16x256xf32>
    %9 = arith.addf %6, %8 : vector<16x256xf32>
    %10 = vector.extract_strided_slice %9 {offsets = [0, 0], sizes = [16, 64], strides = [1, 1]} : vector<16x256xf32> to vector<16x64xf32>
    %11 = arith.truncf %10 : vector<16x64xf32> to vector<16x64xbf16>
    %12 = vector.extract_strided_slice %9 {offsets = [0, 64], sizes = [16, 64], strides = [1, 1]} : vector<16x256xf32> to vector<16x64xf32>
    %13 = arith.truncf %12 : vector<16x64xf32> to vector<16x64xbf16>
    %14 = vector.extract_strided_slice %9 {offsets = [0, 128], sizes = [16, 128], strides = [1, 1]} : vector<16x256xf32> to vector<16x128xf32>
    %15 = arith.truncf %14 : vector<16x128xf32> to vector<16x128xbf16>
    %cst_8 = arith.constant 0.000000e+00 : f32
    %16 = vector.broadcast %cst_8 : f32 to vector<16x128xf32>
    %17 = vector.extract_strided_slice %11 {offsets = [0, 0], sizes = [16, 16], strides = [1, 1]} : vector<16x64xbf16> to vector<16x16xbf16>
    %18 = vector.extract_strided_slice %13 {offsets = [0, 0], sizes = [16, 16], strides = [1, 1]} : vector<16x64xbf16> to vector<16x16xbf16>
    %19 = vector.extract_strided_slice %15 {offsets = [0, 0], sizes = [16, 32], strides = [1, 1]} : vector<16x128xbf16> to vector<16x32xbf16>
    %cst_9 = arith.constant dense<0.000000e+00> : vector<16x16xf32>
    %20 = tpu.matmul %17, %18, %cst_9 {dimension_numbers = #tpu.dot_dimension_numbers<[1], [1], [0], [0], [0, 0, 1, 0], [], []>} : vector<16x16xbf16>, vector<16x16xbf16>, vector<16x16xf32> -> vector<16x16xf32>
    %cst_10 = arith.constant 2.500000e-01 : f32
    %21 = vector.broadcast %cst_10 : f32 to vector<16x16xf32>
    %22 = arith.mulf %20, %21 : vector<16x16xf32>
    %c0_11 = arith.constant 0 : index
    %c0_12 = arith.constant 0 : index
    %c0_13 = arith.constant 0 : index
    %23 = vector.load %arg5[%c0_11, %c0_12, %c0_13] : memref<4x16x16xf32, #tpu.memory_space<vmem>>, vector<1x16x16xf32>
    %24 = vector.shape_cast %23 : vector<1x16x16xf32> to vector<16x16xf32>
    %25 = arith.addf %22, %24 : vector<16x16xf32>
    %cst_14 = arith.constant dense<0xFF800000> : vector<16xf32>
    %26 = vector.multi_reduction <maximumf>, %25, %cst_14 [1] : vector<16x16xf32> to vector<16xf32>
    %27 = vector.shape_cast %26 : vector<16xf32> to vector<16x1xf32>
    %28 = vector.broadcast %27 : vector<16x1xf32> to vector<16x16xf32>
    %29 = arith.subf %25, %28 : vector<16x16xf32>
    %30 = math.exp %29 : vector<16x16xf32>
    %cst_15 = arith.constant dense<0.000000e+00> : vector<16xf32>
    %31 = vector.multi_reduction <add>, %30, %cst_15 [1] : vector<16x16xf32> to vector<16xf32>
    %32 = vector.shape_cast %31 : vector<16xf32> to vector<16x1xf32>
    %33 = tpu.reciprocal %32 {approx = true} : vector<16x1xf32> -> vector<16x1xf32>
    %34 = vector.broadcast %33 : vector<16x1xf32> to vector<16x16xf32>
    %35 = arith.mulf %30, %34 : vector<16x16xf32>
    %36 = arith.truncf %35 : vector<16x16xf32> to vector<16x16xbf16>
    %cst_16 = arith.constant dense<0.000000e+00> : vector<16x32xf32>
    %37 = tpu.matmul %36, %19, %cst_16 {dimension_numbers = #tpu.dot_dimension_numbers<[1], [0], [0], [1], [0, 0, 1, 1], [], []>} : vector<16x16xbf16>, vector<16x32xbf16>, vector<16x32xf32> -> vector<16x32xf32>
    %cst_17 = arith.constant 3.000000e+00 : f32
    %38 = vector.broadcast %cst_17 : f32 to vector<16x32xf32>
    %39 = arith.addf %37, %38 : vector<16x32xf32>
    %cst_18 = arith.constant 0.000000e+00 : f32
    %cst_19 = arith.constant 6.000000e+00 : f32
    %40 = vector.broadcast %cst_18 : f32 to vector<16x32xf32>
    %41 = arith.maximumf %40, %39 : vector<16x32xf32>
    %42 = vector.broadcast %cst_19 : f32 to vector<16x32xf32>
    %43 = arith.minimumf %42, %41 : vector<16x32xf32>
    %44 = arith.mulf %37, %43 : vector<16x32xf32>
    %cst_20 = arith.constant 0.166666672 : f32
    %45 = vector.broadcast %cst_20 : f32 to vector<16x32xf32>
    %46 = arith.mulf %44, %45 : vector<16x32xf32>
    %47 = arith.truncf %46 : vector<16x32xf32> to vector<16x32xbf16>
    %c0_21 = arith.constant 0 : index
    %c0_22 = arith.constant 0 : index
    %48 = vector.load %arg6[%c0_21, %c0_22] : memref<128x128xbf16, #tpu.memory_space<vmem>>, vector<32x128xbf16>
    %cst_23 = arith.constant dense<0.000000e+00> : vector<16x128xf32>
    %49 = tpu.matmul %47, %48, %cst_23 {dimension_numbers = #tpu.dot_dimension_numbers<[1], [0], [0], [1], [0, 0, 1, 1], [], []>} : vector<16x32xbf16>, vector<32x128xbf16>, vector<16x128xf32> -> vector<16x128xf32>
    %50 = arith.addf %16, %49 : vector<16x128xf32>
    %51 = vector.extract_strided_slice %11 {offsets = [0, 16], sizes = [16, 16], strides = [1, 1]} : vector<16x64xbf16> to vector<16x16xbf16>
    %52 = vector.extract_strided_slice %13 {offsets = [0, 16], sizes = [16, 16], strides = [1, 1]} : vector<16x64xbf16> to vector<16x16xbf16>
    %53 = vector.extract_strided_slice %15 {offsets = [0, 32], sizes = [16, 32], strides = [1, 1]} : vector<16x128xbf16> to vector<16x32xbf16>
    %cst_24 = arith.constant dense<0.000000e+00> : vector<16x16xf32>
    %54 = tpu.matmul %51, %52, %cst_24 {dimension_numbers = #tpu.dot_dimension_numbers<[1], [1], [0], [0], [0, 0, 1, 0], [], []>} : vector<16x16xbf16>, vector<16x16xbf16>, vector<16x16xf32> -> vector<16x16xf32>
    %cst_25 = arith.constant 2.500000e-01 : f32
    %55 = vector.broadcast %cst_25 : f32 to vector<16x16xf32>
    %56 = arith.mulf %54, %55 : vector<16x16xf32>
    %c1 = arith.constant 1 : index
    %c0_26 = arith.constant 0 : index
    %c0_27 = arith.constant 0 : index
    %57 = vector.load %arg5[%c1, %c0_26, %c0_27] : memref<4x16x16xf32, #tpu.memory_space<vmem>>, vector<1x16x16xf32>
    %58 = vector.shape_cast %57 : vector<1x16x16xf32> to vector<16x16xf32>
    %59 = arith.addf %56, %58 : vector<16x16xf32>
    %cst_28 = arith.constant dense<0xFF800000> : vector<16xf32>
    %60 = vector.multi_reduction <maximumf>, %59, %cst_28 [1] : vector<16x16xf32> to vector<16xf32>
    %61 = vector.shape_cast %60 : vector<16xf32> to vector<16x1xf32>
    %62 = vector.broadcast %61 : vector<16x1xf32> to vector<16x16xf32>
    %63 = arith.subf %59, %62 : vector<16x16xf32>
    %64 = math.exp %63 : vector<16x16xf32>
    %cst_29 = arith.constant dense<0.000000e+00> : vector<16xf32>
    %65 = vector.multi_reduction <add>, %64, %cst_29 [1] : vector<16x16xf32> to vector<16xf32>
    %66 = vector.shape_cast %65 : vector<16xf32> to vector<16x1xf32>
    %67 = tpu.reciprocal %66 {approx = true} : vector<16x1xf32> -> vector<16x1xf32>
    %68 = vector.broadcast %67 : vector<16x1xf32> to vector<16x16xf32>
    %69 = arith.mulf %64, %68 : vector<16x16xf32>
    %70 = arith.truncf %69 : vector<16x16xf32> to vector<16x16xbf16>
    %cst_30 = arith.constant dense<0.000000e+00> : vector<16x32xf32>
    %71 = tpu.matmul %70, %53, %cst_30 {dimension_numbers = #tpu.dot_dimension_numbers<[1], [0], [0], [1], [0, 0, 1, 1], [], []>} : vector<16x16xbf16>, vector<16x32xbf16>, vector<16x32xf32> -> vector<16x32xf32>
    %cst_31 = arith.constant 3.000000e+00 : f32
    %72 = vector.broadcast %cst_31 : f32 to vector<16x32xf32>
    %73 = arith.addf %71, %72 : vector<16x32xf32>
    %cst_32 = arith.constant 0.000000e+00 : f32
    %cst_33 = arith.constant 6.000000e+00 : f32
    %74 = vector.broadcast %cst_32 : f32 to vector<16x32xf32>
    %75 = arith.maximumf %74, %73 : vector<16x32xf32>
    %76 = vector.broadcast %cst_33 : f32 to vector<16x32xf32>
    %77 = arith.minimumf %76, %75 : vector<16x32xf32>
    %78 = arith.mulf %71, %77 : vector<16x32xf32>
    %cst_34 = arith.constant 0.166666672 : f32
    %79 = vector.broadcast %cst_34 : f32 to vector<16x32xf32>
    %80 = arith.mulf %78, %79 : vector<16x32xf32>
    %81 = arith.truncf %80 : vector<16x32xf32> to vector<16x32xbf16>
    %c32 = arith.constant 32 : index
    %c0_35 = arith.constant 0 : index
    %82 = vector.load %arg6[%c32, %c0_35] : memref<128x128xbf16, #tpu.memory_space<vmem>>, vector<32x128xbf16>
    %cst_36 = arith.constant dense<0.000000e+00> : vector<16x128xf32>
    %83 = tpu.matmul %81, %82, %cst_36 {dimension_numbers = #tpu.dot_dimension_numbers<[1], [0], [0], [1], [0, 0, 1, 1], [], []>} : vector<16x32xbf16>, vector<32x128xbf16>, vector<16x128xf32> -> vector<16x128xf32>
    %84 = arith.addf %50, %83 : vector<16x128xf32>
    %85 = vector.extract_strided_slice %11 {offsets = [0, 32], sizes = [16, 16], strides = [1, 1]} : vector<16x64xbf16> to vector<16x16xbf16>
    %86 = vector.extract_strided_slice %13 {offsets = [0, 32], sizes = [16, 16], strides = [1, 1]} : vector<16x64xbf16> to vector<16x16xbf16>
    %87 = vector.extract_strided_slice %15 {offsets = [0, 64], sizes = [16, 32], strides = [1, 1]} : vector<16x128xbf16> to vector<16x32xbf16>
    %cst_37 = arith.constant dense<0.000000e+00> : vector<16x16xf32>
    %88 = tpu.matmul %85, %86, %cst_37 {dimension_numbers = #tpu.dot_dimension_numbers<[1], [1], [0], [0], [0, 0, 1, 0], [], []>} : vector<16x16xbf16>, vector<16x16xbf16>, vector<16x16xf32> -> vector<16x16xf32>
    %cst_38 = arith.constant 2.500000e-01 : f32
    %89 = vector.broadcast %cst_38 : f32 to vector<16x16xf32>
    %90 = arith.mulf %88, %89 : vector<16x16xf32>
    %c2 = arith.constant 2 : index
    %c0_39 = arith.constant 0 : index
    %c0_40 = arith.constant 0 : index
    %91 = vector.load %arg5[%c2, %c0_39, %c0_40] : memref<4x16x16xf32, #tpu.memory_space<vmem>>, vector<1x16x16xf32>
    %92 = vector.shape_cast %91 : vector<1x16x16xf32> to vector<16x16xf32>
    %93 = arith.addf %90, %92 : vector<16x16xf32>
    %cst_41 = arith.constant dense<0xFF800000> : vector<16xf32>
    %94 = vector.multi_reduction <maximumf>, %93, %cst_41 [1] : vector<16x16xf32> to vector<16xf32>
    %95 = vector.shape_cast %94 : vector<16xf32> to vector<16x1xf32>
    %96 = vector.broadcast %95 : vector<16x1xf32> to vector<16x16xf32>
    %97 = arith.subf %93, %96 : vector<16x16xf32>
    %98 = math.exp %97 : vector<16x16xf32>
    %cst_42 = arith.constant dense<0.000000e+00> : vector<16xf32>
    %99 = vector.multi_reduction <add>, %98, %cst_42 [1] : vector<16x16xf32> to vector<16xf32>
    %100 = vector.shape_cast %99 : vector<16xf32> to vector<16x1xf32>
    %101 = tpu.reciprocal %100 {approx = true} : vector<16x1xf32> -> vector<16x1xf32>
    %102 = vector.broadcast %101 : vector<16x1xf32> to vector<16x16xf32>
    %103 = arith.mulf %98, %102 : vector<16x16xf32>
    %104 = arith.truncf %103 : vector<16x16xf32> to vector<16x16xbf16>
    %cst_43 = arith.constant dense<0.000000e+00> : vector<16x32xf32>
    %105 = tpu.matmul %104, %87, %cst_43 {dimension_numbers = #tpu.dot_dimension_numbers<[1], [0], [0], [1], [0, 0, 1, 1], [], []>} : vector<16x16xbf16>, vector<16x32xbf16>, vector<16x32xf32> -> vector<16x32xf32>
    %cst_44 = arith.constant 3.000000e+00 : f32
    %106 = vector.broadcast %cst_44 : f32 to vector<16x32xf32>
    %107 = arith.addf %105, %106 : vector<16x32xf32>
    %cst_45 = arith.constant 0.000000e+00 : f32
    %cst_46 = arith.constant 6.000000e+00 : f32
    %108 = vector.broadcast %cst_45 : f32 to vector<16x32xf32>
    %109 = arith.maximumf %108, %107 : vector<16x32xf32>
    %110 = vector.broadcast %cst_46 : f32 to vector<16x32xf32>
    %111 = arith.minimumf %110, %109 : vector<16x32xf32>
    %112 = arith.mulf %105, %111 : vector<16x32xf32>
    %cst_47 = arith.constant 0.166666672 : f32
    %113 = vector.broadcast %cst_47 : f32 to vector<16x32xf32>
    %114 = arith.mulf %112, %113 : vector<16x32xf32>
    %115 = arith.truncf %114 : vector<16x32xf32> to vector<16x32xbf16>
    %c64 = arith.constant 64 : index
    %c0_48 = arith.constant 0 : index
    %116 = vector.load %arg6[%c64, %c0_48] : memref<128x128xbf16, #tpu.memory_space<vmem>>, vector<32x128xbf16>
    %cst_49 = arith.constant dense<0.000000e+00> : vector<16x128xf32>
    %117 = tpu.matmul %115, %116, %cst_49 {dimension_numbers = #tpu.dot_dimension_numbers<[1], [0], [0], [1], [0, 0, 1, 1], [], []>} : vector<16x32xbf16>, vector<32x128xbf16>, vector<16x128xf32> -> vector<16x128xf32>
    %118 = arith.addf %84, %117 : vector<16x128xf32>
    %119 = vector.extract_strided_slice %11 {offsets = [0, 48], sizes = [16, 16], strides = [1, 1]} : vector<16x64xbf16> to vector<16x16xbf16>
    %120 = vector.extract_strided_slice %13 {offsets = [0, 48], sizes = [16, 16], strides = [1, 1]} : vector<16x64xbf16> to vector<16x16xbf16>
    %121 = vector.extract_strided_slice %15 {offsets = [0, 96], sizes = [16, 32], strides = [1, 1]} : vector<16x128xbf16> to vector<16x32xbf16>
    %cst_50 = arith.constant dense<0.000000e+00> : vector<16x16xf32>
    %122 = tpu.matmul %119, %120, %cst_50 {dimension_numbers = #tpu.dot_dimension_numbers<[1], [1], [0], [0], [0, 0, 1, 0], [], []>} : vector<16x16xbf16>, vector<16x16xbf16>, vector<16x16xf32> -> vector<16x16xf32>
    %cst_51 = arith.constant 2.500000e-01 : f32
    %123 = vector.broadcast %cst_51 : f32 to vector<16x16xf32>
    %124 = arith.mulf %122, %123 : vector<16x16xf32>
    %c3 = arith.constant 3 : index
    %c0_52 = arith.constant 0 : index
    %c0_53 = arith.constant 0 : index
    %125 = vector.load %arg5[%c3, %c0_52, %c0_53] : memref<4x16x16xf32, #tpu.memory_space<vmem>>, vector<1x16x16xf32>
    %126 = vector.shape_cast %125 : vector<1x16x16xf32> to vector<16x16xf32>
    %127 = arith.addf %124, %126 : vector<16x16xf32>
    %cst_54 = arith.constant dense<0xFF800000> : vector<16xf32>
    %128 = vector.multi_reduction <maximumf>, %127, %cst_54 [1] : vector<16x16xf32> to vector<16xf32>
    %129 = vector.shape_cast %128 : vector<16xf32> to vector<16x1xf32>
    %130 = vector.broadcast %129 : vector<16x1xf32> to vector<16x16xf32>
    %131 = arith.subf %127, %130 : vector<16x16xf32>
    %132 = math.exp %131 : vector<16x16xf32>
    %cst_55 = arith.constant dense<0.000000e+00> : vector<16xf32>
    %133 = vector.multi_reduction <add>, %132, %cst_55 [1] : vector<16x16xf32> to vector<16xf32>
    %134 = vector.shape_cast %133 : vector<16xf32> to vector<16x1xf32>
    %135 = tpu.reciprocal %134 {approx = true} : vector<16x1xf32> -> vector<16x1xf32>
    %136 = vector.broadcast %135 : vector<16x1xf32> to vector<16x16xf32>
    %137 = arith.mulf %132, %136 : vector<16x16xf32>
    %138 = arith.truncf %137 : vector<16x16xf32> to vector<16x16xbf16>
    %cst_56 = arith.constant dense<0.000000e+00> : vector<16x32xf32>
    %139 = tpu.matmul %138, %121, %cst_56 {dimension_numbers = #tpu.dot_dimension_numbers<[1], [0], [0], [1], [0, 0, 1, 1], [], []>} : vector<16x16xbf16>, vector<16x32xbf16>, vector<16x32xf32> -> vector<16x32xf32>
    %cst_57 = arith.constant 3.000000e+00 : f32
    %140 = vector.broadcast %cst_57 : f32 to vector<16x32xf32>
    %141 = arith.addf %139, %140 : vector<16x32xf32>
    %cst_58 = arith.constant 0.000000e+00 : f32
    %cst_59 = arith.constant 6.000000e+00 : f32
    %142 = vector.broadcast %cst_58 : f32 to vector<16x32xf32>
    %143 = arith.maximumf %142, %141 : vector<16x32xf32>
    %144 = vector.broadcast %cst_59 : f32 to vector<16x32xf32>
    %145 = arith.minimumf %144, %143 : vector<16x32xf32>
    %146 = arith.mulf %139, %145 : vector<16x32xf32>
    %cst_60 = arith.constant 0.166666672 : f32
    %147 = vector.broadcast %cst_60 : f32 to vector<16x32xf32>
    %148 = arith.mulf %146, %147 : vector<16x32xf32>
    %149 = arith.truncf %148 : vector<16x32xf32> to vector<16x32xbf16>
    %c96 = arith.constant 96 : index
    %c0_61 = arith.constant 0 : index
    %150 = vector.load %arg6[%c96, %c0_61] : memref<128x128xbf16, #tpu.memory_space<vmem>>, vector<32x128xbf16>
    %cst_62 = arith.constant dense<0.000000e+00> : vector<16x128xf32>
    %151 = tpu.matmul %149, %150, %cst_62 {dimension_numbers = #tpu.dot_dimension_numbers<[1], [0], [0], [1], [0, 0, 1, 1], [], []>} : vector<16x32xbf16>, vector<32x128xbf16>, vector<16x128xf32> -> vector<16x128xf32>
    %152 = arith.addf %118, %151 : vector<16x128xf32>
    %c0_63 = arith.constant 0 : index
    %c0_64 = arith.constant 0 : index
    %153 = vector.load %arg7[%c0_63, %c0_64] : memref<1x128xf32, #tpu.memory_space<vmem>>, vector<1x128xf32>
    %154 = vector.broadcast %153 : vector<1x128xf32> to vector<16x128xf32>
    %155 = arith.mulf %152, %154 : vector<16x128xf32>
    %c0_65 = arith.constant 0 : index
    %c0_66 = arith.constant 0 : index
    %156 = vector.load %arg8[%c0_65, %c0_66] : memref<1x128xf32, #tpu.memory_space<vmem>>, vector<1x128xf32>
    %157 = vector.broadcast %156 : vector<1x128xf32> to vector<16x128xf32>
    %158 = arith.addf %155, %157 : vector<16x128xf32>
    %159 = arith.extf %1 : vector<16x128xbf16> to vector<16x128xf32>
    %160 = arith.addf %158, %159 : vector<16x128xf32>
    %161 = arith.truncf %160 : vector<16x128xf32> to vector<16x128xbf16>
    %c0_67 = arith.constant 0 : index
    %c0_68 = arith.constant 0 : index
    %162 = vector.load %arg9[%c0_67, %c0_68] : memref<128x256xbf16, #tpu.memory_space<vmem>>, vector<128x256xbf16>
    %cst_69 = arith.constant dense<0.000000e+00> : vector<16x256xf32>
    %163 = tpu.matmul %161, %162, %cst_69 {dimension_numbers = #tpu.dot_dimension_numbers<[1], [0], [0], [1], [0, 0, 1, 1], [], []>} : vector<16x128xbf16>, vector<128x256xbf16>, vector<16x256xf32> -> vector<16x256xf32>
    %c0_70 = arith.constant 0 : index
    %c0_71 = arith.constant 0 : index
    %164 = vector.load %arg10[%c0_70, %c0_71] : memref<1x256xf32, #tpu.memory_space<vmem>>, vector<1x256xf32>
    %165 = vector.broadcast %164 : vector<1x256xf32> to vector<16x256xf32>
    %166 = arith.mulf %163, %165 : vector<16x256xf32>
    %c0_72 = arith.constant 0 : index
    %c0_73 = arith.constant 0 : index
    %167 = vector.load %arg11[%c0_72, %c0_73] : memref<1x256xf32, #tpu.memory_space<vmem>>, vector<1x256xf32>
    %168 = vector.broadcast %167 : vector<1x256xf32> to vector<16x256xf32>
    %169 = arith.addf %166, %168 : vector<16x256xf32>
    %cst_74 = arith.constant 3.000000e+00 : f32
    %170 = vector.broadcast %cst_74 : f32 to vector<16x256xf32>
    %171 = arith.addf %169, %170 : vector<16x256xf32>
    %cst_75 = arith.constant 0.000000e+00 : f32
    %cst_76 = arith.constant 6.000000e+00 : f32
    %172 = vector.broadcast %cst_75 : f32 to vector<16x256xf32>
    %173 = arith.maximumf %172, %171 : vector<16x256xf32>
    %174 = vector.broadcast %cst_76 : f32 to vector<16x256xf32>
    %175 = arith.minimumf %174, %173 : vector<16x256xf32>
    %176 = arith.mulf %169, %175 : vector<16x256xf32>
    %cst_77 = arith.constant 0.166666672 : f32
    %177 = vector.broadcast %cst_77 : f32 to vector<16x256xf32>
    %178 = arith.mulf %176, %177 : vector<16x256xf32>
    %179 = arith.truncf %178 : vector<16x256xf32> to vector<16x256xbf16>
    %c0_78 = arith.constant 0 : index
    %c0_79 = arith.constant 0 : index
    %180 = vector.load %arg12[%c0_78, %c0_79] : memref<256x128xbf16, #tpu.memory_space<vmem>>, vector<256x128xbf16>
    %cst_80 = arith.constant dense<0.000000e+00> : vector<16x128xf32>
    %181 = tpu.matmul %179, %180, %cst_80 {dimension_numbers = #tpu.dot_dimension_numbers<[1], [0], [0], [1], [0, 0, 1, 1], [], []>} : vector<16x256xbf16>, vector<256x128xbf16>, vector<16x128xf32> -> vector<16x128xf32>
    %c0_81 = arith.constant 0 : index
    %c0_82 = arith.constant 0 : index
    %182 = vector.load %arg13[%c0_81, %c0_82] : memref<1x128xf32, #tpu.memory_space<vmem>>, vector<1x128xf32>
    %183 = vector.broadcast %182 : vector<1x128xf32> to vector<16x128xf32>
    %184 = arith.mulf %181, %183 : vector<16x128xf32>
    %c0_83 = arith.constant 0 : index
    %c0_84 = arith.constant 0 : index
    %185 = vector.load %arg14[%c0_83, %c0_84] : memref<1x128xf32, #tpu.memory_space<vmem>>, vector<1x128xf32>
    %186 = vector.broadcast %185 : vector<1x128xf32> to vector<16x128xf32>
    %187 = arith.addf %184, %186 : vector<16x128xf32>
    %188 = arith.addf %187, %160 : vector<16x128xf32>
    %189 = arith.truncf %188 : vector<16x128xf32> to vector<16x128xbf16>
    %c0_85 = arith.constant 0 : index
    %c0_86 = arith.constant 0 : index
    %c0_87 = arith.constant 0 : index
    %190 = vector.load %arg15[%c0_85, %c0_86, %c0_87] : memref<1x16x128xbf16, #tpu.memory_space<vmem>>, vector<1x16x128xbf16>
    %191 = vector.shape_cast %190 : vector<1x16x128xbf16> to vector<16x128xbf16>
    %192 = vector.shape_cast %189 : vector<16x128xbf16> to vector<1x16x128xbf16>
    tpu.vector_store %arg15[%c0_85, %c0_86, %c0_87], %192 {strides = array<i32>} : memref<1x16x128xbf16, #tpu.memory_space<vmem>>, vector<1x16x128xbf16>,
    return
  }
  func.func @transform_0(%arg0: i32) -> (i32, i32, i32) {
    %c0_i32 = arith.constant 0 : i32
    %c0_i32_0 = arith.constant 0 : i32
    %c0_i32_1 = arith.constant 0 : i32
    return %arg0, %c0_i32, %c0_i32_0 : i32, i32, i32
  }
  func.func @transform_1(%arg0: i32) -> (i32, i32) {
    %c0_i32 = arith.constant 0 : i32
    %c0_i32_0 = arith.constant 0 : i32
    %c0_i32_1 = arith.constant 0 : i32
    return %c0_i32, %c0_i32_0 : i32, i32
  }
  func.func @transform_2(%arg0: i32) -> (i32, i32) {
    %c0_i32 = arith.constant 0 : i32
    %c0_i32_0 = arith.constant 0 : i32
    %c0_i32_1 = arith.constant 0 : i32
    return %c0_i32, %c0_i32_0 : i32, i32
  }
  func.func @transform_3(%arg0: i32) -> (i32, i32) {
    %c0_i32 = arith.constant 0 : i32
    %c0_i32_0 = arith.constant 0 : i32
    %c0_i32_1 = arith.constant 0 : i32
    return %c0_i32, %c0_i32_0 : i32, i32
  }
  func.func @transform_4(%arg0: i32) -> (i32, i32, i32) {
    %c0_i32 = arith.constant 0 : i32
    %c0_i32_0 = arith.constant 0 : i32
    %c0_i32_1 = arith.constant 0 : i32
    %c0_i32_2 = arith.constant 0 : i32
    return %c0_i32, %c0_i32_0, %c0_i32_1 : i32, i32, i32
  }
  func.func @transform_5(%arg0: i32) -> (i32, i32) {
    %c0_i32 = arith.constant 0 : i32
    %c0_i32_0 = arith.constant 0 : i32
    %c0_i32_1 = arith.constant 0 : i32
    return %c0_i32, %c0_i32_0 : i32, i32
  }
  func.func @transform_6(%arg0: i32) -> (i32, i32) {
    %c0_i32 = arith.constant 0 : i32
    %c0_i32_0 = arith.constant 0 : i32
    %c0_i32_1 = arith.constant 0 : i32
    return %c0_i32, %c0_i32_0 : i32, i32
  }
  func.func @transform_7(%arg0: i32) -> (i32, i32) {
    %c0_i32 = arith.constant 0 : i32
    %c0_i32_0 = arith.constant 0 : i32
    %c0_i32_1 = arith.constant 0 : i32
    return %c0_i32, %c0_i32_0 : i32, i32
  }
  func.func @transform_8(%arg0: i32) -> (i32, i32) {
    %c0_i32 = arith.constant 0 : i32
    %c0_i32_0 = arith.constant 0 : i32
    %c0_i32_1 = arith.constant 0 : i32
    return %c0_i32, %c0_i32_0 : i32, i32
  }
  func.func @transform_9(%arg0: i32) -> (i32, i32) {
    %c0_i32 = arith.constant 0 : i32
    %c0_i32_0 = arith.constant 0 : i32
    %c0_i32_1 = arith.constant 0 : i32
    return %c0_i32, %c0_i32_0 : i32, i32
  }
  func.func @transform_10(%arg0: i32) -> (i32, i32) {
    %c0_i32 = arith.constant 0 : i32
    %c0_i32_0 = arith.constant 0 : i32
    %c0_i32_1 = arith.constant 0 : i32
    return %c0_i32, %c0_i32_0 : i32, i32
  }
  func.func @transform_11(%arg0: i32) -> (i32, i32) {
    %c0_i32 = arith.constant 0 : i32
    %c0_i32_0 = arith.constant 0 : i32
    %c0_i32_1 = arith.constant 0 : i32
    return %c0_i32, %c0_i32_0 : i32, i32
  }
  func.func @transform_12(%arg0: i32) -> (i32, i32) {
    %c0_i32 = arith.constant 0 : i32
    %c0_i32_0 = arith.constant 0 : i32
    %c0_i32_1 = arith.constant 0 : i32
    return %c0_i32, %c0_i32_0 : i32, i32
  }
  func.func @transform_13(%arg0: i32) -> (i32, i32) {
    %c0_i32 = arith.constant 0 : i32
    %c0_i32_0 = arith.constant 0 : i32
    %c0_i32_1 = arith.constant 0 : i32
    return %c0_i32, %c0_i32_0 : i32, i32
  }
  func.func @transform_14(%arg0: i32) -> (i32, i32, i32) {
    %c0_i32 = arith.constant 0 : i32
    %c0_i32_0 = arith.constant 0 : i32
    %c0_i32_1 = arith.constant 0 : i32
    return %arg0, %c0_i32, %c0_i32_0 : i32, i32, i32
  }
}

module attributes {stable_mosaic.version = 11 : i64} {
  func.func @_levit_block_kernel(%arg0: i32, %arg1: memref<1x16x128xbf16, #tpu.memory_space<vmem>>, %arg2: memref<1x4x128xbf16, #tpu.memory_space<vmem>>, %arg3: memref<128x640xbf16, #tpu.memory_space<vmem>>, %arg4: memref<1x640xf32, #tpu.memory_space<vmem>>, %arg5: memref<1x640xf32, #tpu.memory_space<vmem>>, %arg6: memref<128x128xbf16, #tpu.memory_space<vmem>>, %arg7: memref<1x128xf32, #tpu.memory_space<vmem>>, %arg8: memref<1x128xf32, #tpu.memory_space<vmem>>, %arg9: memref<8x4x16xf32, #tpu.memory_space<vmem>>, %arg10: memref<512x256xbf16, #tpu.memory_space<vmem>>, %arg11: memref<1x256xf32, #tpu.memory_space<vmem>>, %arg12: memref<1x256xf32, #tpu.memory_space<vmem>>, %arg13: memref<256x384xbf16, #tpu.memory_space<vmem>>, %arg14: memref<1x384xf32, #tpu.memory_space<vmem>>, %arg15: memref<1x384xf32, #tpu.memory_space<vmem>>, %arg16: memref<384x256xbf16, #tpu.memory_space<vmem>>, %arg17: memref<1x256xf32, #tpu.memory_space<vmem>>, %arg18: memref<1x256xf32, #tpu.memory_space<vmem>>, %arg19: memref<1x4x256xbf16, #tpu.memory_space<vmem>>) attributes {dimension_semantics = [#tpu.dimension_semantics<parallel>], iteration_bounds = array<i64: 2>, scalar_prefetch = 0 : i64, scratch_operands = 0 : i64, tpu.core_type = #tpu.core_type<tc>, window_params = [{transform_indices = @transform_0, window_bounds = array<i64: 1, 16, 128>}, {transform_indices = @transform_1, window_bounds = array<i64: 1, 4, 128>}, {pipeline_mode = #tpu.pipeline_mode<synchronous>, transform_indices = @transform_2, window_bounds = array<i64: 128, 640>}, {pipeline_mode = #tpu.pipeline_mode<synchronous>, transform_indices = @transform_3, window_bounds = array<i64: 1, 640>}, {pipeline_mode = #tpu.pipeline_mode<synchronous>, transform_indices = @transform_4, window_bounds = array<i64: 1, 640>}, {pipeline_mode = #tpu.pipeline_mode<synchronous>, transform_indices = @transform_5, window_bounds = array<i64: 128, 128>}, {pipeline_mode = #tpu.pipeline_mode<synchronous>, transform_indices = @transform_6, window_bounds = array<i64: 1, 128>}, {pipeline_mode = #tpu.pipeline_mode<synchronous>, transform_indices = @transform_7, window_bounds = array<i64: 1, 128>}, {pipeline_mode = #tpu.pipeline_mode<synchronous>, transform_indices = @transform_8, window_bounds = array<i64: 8, 4, 16>}, {pipeline_mode = #tpu.pipeline_mode<synchronous>, transform_indices = @transform_9, window_bounds = array<i64: 512, 256>}, {pipeline_mode = #tpu.pipeline_mode<synchronous>, transform_indices = @transform_10, window_bounds = array<i64: 1, 256>}, {pipeline_mode = #tpu.pipeline_mode<synchronous>, transform_indices = @transform_11, window_bounds = array<i64: 1, 256>}, {pipeline_mode = #tpu.pipeline_mode<synchronous>, transform_indices = @transform_12, window_bounds = array<i64: 256, 384>}, {pipeline_mode = #tpu.pipeline_mode<synchronous>, transform_indices = @transform_13, window_bounds = array<i64: 1, 384>}, {pipeline_mode = #tpu.pipeline_mode<synchronous>, transform_indices = @transform_14, window_bounds = array<i64: 1, 384>}, {pipeline_mode = #tpu.pipeline_mode<synchronous>, transform_indices = @transform_15, window_bounds = array<i64: 384, 256>}, {pipeline_mode = #tpu.pipeline_mode<synchronous>, transform_indices = @transform_16, window_bounds = array<i64: 1, 256>}, {pipeline_mode = #tpu.pipeline_mode<synchronous>, transform_indices = @transform_17, window_bounds = array<i64: 1, 256>}, {transform_indices = @transform_18, window_bounds = array<i64: 1, 4, 256>}]} {
    %c0 = arith.constant 0 : index
    %c0_0 = arith.constant 0 : index
    %c0_1 = arith.constant 0 : index
    %0 = vector.load %arg1[%c0, %c0_0, %c0_1] : memref<1x16x128xbf16, #tpu.memory_space<vmem>>, vector<1x16x128xbf16>
    %1 = vector.shape_cast %0 : vector<1x16x128xbf16> to vector<16x128xbf16>
    %c0_2 = arith.constant 0 : index
    %c0_3 = arith.constant 0 : index
    %2 = vector.load %arg3[%c0_2, %c0_3] : memref<128x640xbf16, #tpu.memory_space<vmem>>, vector<128x640xbf16>
    %cst = arith.constant dense<0.000000e+00> : vector<16x640xf32>
    %3 = tpu.matmul %1, %2, %cst {dimension_numbers = #tpu.dot_dimension_numbers<[1], [0], [0], [1], [0, 0, 1, 1], [], []>} : vector<16x128xbf16>, vector<128x640xbf16>, vector<16x640xf32> -> vector<16x640xf32>
    %c0_4 = arith.constant 0 : index
    %c0_5 = arith.constant 0 : index
    %4 = vector.load %arg4[%c0_4, %c0_5] : memref<1x640xf32, #tpu.memory_space<vmem>>, vector<1x640xf32>
    %5 = vector.broadcast %4 : vector<1x640xf32> to vector<16x640xf32>
    %6 = arith.mulf %3, %5 : vector<16x640xf32>
    %c0_6 = arith.constant 0 : index
    %c0_7 = arith.constant 0 : index
    %7 = vector.load %arg5[%c0_6, %c0_7] : memref<1x640xf32, #tpu.memory_space<vmem>>, vector<1x640xf32>
    %8 = vector.broadcast %7 : vector<1x640xf32> to vector<16x640xf32>
    %9 = arith.addf %6, %8 : vector<16x640xf32>
    %10 = vector.extract_strided_slice %9 {offsets = [0, 0], sizes = [16, 128], strides = [1, 1]} : vector<16x640xf32> to vector<16x128xf32>
    %11 = arith.truncf %10 : vector<16x128xf32> to vector<16x128xbf16>
    %12 = vector.extract_strided_slice %9 {offsets = [0, 128], sizes = [16, 512], strides = [1, 1]} : vector<16x640xf32> to vector<16x512xf32>
    %13 = arith.truncf %12 : vector<16x512xf32> to vector<16x512xbf16>
    %c0_8 = arith.constant 0 : index
    %c0_9 = arith.constant 0 : index
    %c0_10 = arith.constant 0 : index
    %14 = vector.load %arg2[%c0_8, %c0_9, %c0_10] : memref<1x4x128xbf16, #tpu.memory_space<vmem>>, vector<1x4x128xbf16>
    %15 = vector.shape_cast %14 : vector<1x4x128xbf16> to vector<4x128xbf16>
    %c0_11 = arith.constant 0 : index
    %c0_12 = arith.constant 0 : index
    %16 = vector.load %arg6[%c0_11, %c0_12] : memref<128x128xbf16, #tpu.memory_space<vmem>>, vector<128x128xbf16>
    %cst_13 = arith.constant dense<0.000000e+00> : vector<4x128xf32>
    %17 = tpu.matmul %15, %16, %cst_13 {dimension_numbers = #tpu.dot_dimension_numbers<[1], [0], [0], [1], [0, 0, 1, 1], [], []>} : vector<4x128xbf16>, vector<128x128xbf16>, vector<4x128xf32> -> vector<4x128xf32>
    %c0_14 = arith.constant 0 : index
    %c0_15 = arith.constant 0 : index
    %18 = vector.load %arg7[%c0_14, %c0_15] : memref<1x128xf32, #tpu.memory_space<vmem>>, vector<1x128xf32>
    %19 = vector.broadcast %18 : vector<1x128xf32> to vector<4x128xf32>
    %20 = arith.mulf %17, %19 : vector<4x128xf32>
    %c0_16 = arith.constant 0 : index
    %c0_17 = arith.constant 0 : index
    %21 = vector.load %arg8[%c0_16, %c0_17] : memref<1x128xf32, #tpu.memory_space<vmem>>, vector<1x128xf32>
    %22 = vector.broadcast %21 : vector<1x128xf32> to vector<4x128xf32>
    %23 = arith.addf %20, %22 : vector<4x128xf32>
    %24 = arith.truncf %23 : vector<4x128xf32> to vector<4x128xbf16>
    %cst_18 = arith.constant 0.000000e+00 : f32
    %25 = vector.broadcast %cst_18 : f32 to vector<4x256xf32>
    %26 = vector.extract_strided_slice %24 {offsets = [0, 0], sizes = [4, 16], strides = [1, 1]} : vector<4x128xbf16> to vector<4x16xbf16>
    %27 = vector.extract_strided_slice %11 {offsets = [0, 0], sizes = [16, 16], strides = [1, 1]} : vector<16x128xbf16> to vector<16x16xbf16>
    %28 = vector.extract_strided_slice %13 {offsets = [0, 0], sizes = [16, 64], strides = [1, 1]} : vector<16x512xbf16> to vector<16x64xbf16>
    %cst_19 = arith.constant dense<0.000000e+00> : vector<4x16xf32>
    %29 = tpu.matmul %26, %27, %cst_19 {dimension_numbers = #tpu.dot_dimension_numbers<[1], [1], [0], [0], [0, 0, 1, 0], [], []>} : vector<4x16xbf16>, vector<16x16xbf16>, vector<4x16xf32> -> vector<4x16xf32>
    %cst_20 = arith.constant 2.500000e-01 : f32
    %30 = vector.broadcast %cst_20 : f32 to vector<4x16xf32>
    %31 = arith.mulf %29, %30 : vector<4x16xf32>
    %c0_21 = arith.constant 0 : index
    %c0_22 = arith.constant 0 : index
    %c0_23 = arith.constant 0 : index
    %32 = vector.load %arg9[%c0_21, %c0_22, %c0_23] : memref<8x4x16xf32, #tpu.memory_space<vmem>>, vector<1x4x16xf32>
    %33 = vector.shape_cast %32 : vector<1x4x16xf32> to vector<4x16xf32>
    %34 = arith.addf %31, %33 : vector<4x16xf32>
    %cst_24 = arith.constant dense<0xFF800000> : vector<4xf32>
    %35 = vector.multi_reduction <maximumf>, %34, %cst_24 [1] : vector<4x16xf32> to vector<4xf32>
    %36 = vector.shape_cast %35 : vector<4xf32> to vector<4x1xf32>
    %37 = vector.broadcast %36 : vector<4x1xf32> to vector<4x16xf32>
    %38 = arith.subf %34, %37 : vector<4x16xf32>
    %39 = math.exp %38 : vector<4x16xf32>
    %cst_25 = arith.constant dense<0.000000e+00> : vector<4xf32>
    %40 = vector.multi_reduction <add>, %39, %cst_25 [1] : vector<4x16xf32> to vector<4xf32>
    %41 = vector.shape_cast %40 : vector<4xf32> to vector<4x1xf32>
    %42 = tpu.reciprocal %41 {approx = true} : vector<4x1xf32> -> vector<4x1xf32>
    %43 = vector.broadcast %42 : vector<4x1xf32> to vector<4x16xf32>
    %44 = arith.mulf %39, %43 : vector<4x16xf32>
    %45 = arith.truncf %44 : vector<4x16xf32> to vector<4x16xbf16>
    %cst_26 = arith.constant dense<0.000000e+00> : vector<4x64xf32>
    %46 = tpu.matmul %45, %28, %cst_26 {dimension_numbers = #tpu.dot_dimension_numbers<[1], [0], [0], [1], [0, 0, 1, 1], [], []>} : vector<4x16xbf16>, vector<16x64xbf16>, vector<4x64xf32> -> vector<4x64xf32>
    %cst_27 = arith.constant 3.000000e+00 : f32
    %47 = vector.broadcast %cst_27 : f32 to vector<4x64xf32>
    %48 = arith.addf %46, %47 : vector<4x64xf32>
    %cst_28 = arith.constant 0.000000e+00 : f32
    %cst_29 = arith.constant 6.000000e+00 : f32
    %49 = vector.broadcast %cst_28 : f32 to vector<4x64xf32>
    %50 = arith.maximumf %49, %48 : vector<4x64xf32>
    %51 = vector.broadcast %cst_29 : f32 to vector<4x64xf32>
    %52 = arith.minimumf %51, %50 : vector<4x64xf32>
    %53 = arith.mulf %46, %52 : vector<4x64xf32>
    %cst_30 = arith.constant 0.166666672 : f32
    %54 = vector.broadcast %cst_30 : f32 to vector<4x64xf32>
    %55 = arith.mulf %53, %54 : vector<4x64xf32>
    %56 = arith.truncf %55 : vector<4x64xf32> to vector<4x64xbf16>
    %c0_31 = arith.constant 0 : index
    %c0_32 = arith.constant 0 : index
    %57 = vector.load %arg10[%c0_31, %c0_32] : memref<512x256xbf16, #tpu.memory_space<vmem>>, vector<64x256xbf16>
    %cst_33 = arith.constant dense<0.000000e+00> : vector<4x256xf32>
    %58 = tpu.matmul %56, %57, %cst_33 {dimension_numbers = #tpu.dot_dimension_numbers<[1], [0], [0], [1], [0, 0, 1, 1], [], []>} : vector<4x64xbf16>, vector<64x256xbf16>, vector<4x256xf32> -> vector<4x256xf32>
    %59 = arith.addf %25, %58 : vector<4x256xf32>
    %60 = vector.extract_strided_slice %24 {offsets = [0, 16], sizes = [4, 16], strides = [1, 1]} : vector<4x128xbf16> to vector<4x16xbf16>
    %61 = vector.extract_strided_slice %11 {offsets = [0, 16], sizes = [16, 16], strides = [1, 1]} : vector<16x128xbf16> to vector<16x16xbf16>
    %62 = vector.extract_strided_slice %13 {offsets = [0, 64], sizes = [16, 64], strides = [1, 1]} : vector<16x512xbf16> to vector<16x64xbf16>
    %cst_34 = arith.constant dense<0.000000e+00> : vector<4x16xf32>
    %63 = tpu.matmul %60, %61, %cst_34 {dimension_numbers = #tpu.dot_dimension_numbers<[1], [1], [0], [0], [0, 0, 1, 0], [], []>} : vector<4x16xbf16>, vector<16x16xbf16>, vector<4x16xf32> -> vector<4x16xf32>
    %cst_35 = arith.constant 2.500000e-01 : f32
    %64 = vector.broadcast %cst_35 : f32 to vector<4x16xf32>
    %65 = arith.mulf %63, %64 : vector<4x16xf32>
    %c1 = arith.constant 1 : index
    %c0_36 = arith.constant 0 : index
    %c0_37 = arith.constant 0 : index
    %66 = vector.load %arg9[%c1, %c0_36, %c0_37] : memref<8x4x16xf32, #tpu.memory_space<vmem>>, vector<1x4x16xf32>
    %67 = vector.shape_cast %66 : vector<1x4x16xf32> to vector<4x16xf32>
    %68 = arith.addf %65, %67 : vector<4x16xf32>
    %cst_38 = arith.constant dense<0xFF800000> : vector<4xf32>
    %69 = vector.multi_reduction <maximumf>, %68, %cst_38 [1] : vector<4x16xf32> to vector<4xf32>
    %70 = vector.shape_cast %69 : vector<4xf32> to vector<4x1xf32>
    %71 = vector.broadcast %70 : vector<4x1xf32> to vector<4x16xf32>
    %72 = arith.subf %68, %71 : vector<4x16xf32>
    %73 = math.exp %72 : vector<4x16xf32>
    %cst_39 = arith.constant dense<0.000000e+00> : vector<4xf32>
    %74 = vector.multi_reduction <add>, %73, %cst_39 [1] : vector<4x16xf32> to vector<4xf32>
    %75 = vector.shape_cast %74 : vector<4xf32> to vector<4x1xf32>
    %76 = tpu.reciprocal %75 {approx = true} : vector<4x1xf32> -> vector<4x1xf32>
    %77 = vector.broadcast %76 : vector<4x1xf32> to vector<4x16xf32>
    %78 = arith.mulf %73, %77 : vector<4x16xf32>
    %79 = arith.truncf %78 : vector<4x16xf32> to vector<4x16xbf16>
    %cst_40 = arith.constant dense<0.000000e+00> : vector<4x64xf32>
    %80 = tpu.matmul %79, %62, %cst_40 {dimension_numbers = #tpu.dot_dimension_numbers<[1], [0], [0], [1], [0, 0, 1, 1], [], []>} : vector<4x16xbf16>, vector<16x64xbf16>, vector<4x64xf32> -> vector<4x64xf32>
    %cst_41 = arith.constant 3.000000e+00 : f32
    %81 = vector.broadcast %cst_41 : f32 to vector<4x64xf32>
    %82 = arith.addf %80, %81 : vector<4x64xf32>
    %cst_42 = arith.constant 0.000000e+00 : f32
    %cst_43 = arith.constant 6.000000e+00 : f32
    %83 = vector.broadcast %cst_42 : f32 to vector<4x64xf32>
    %84 = arith.maximumf %83, %82 : vector<4x64xf32>
    %85 = vector.broadcast %cst_43 : f32 to vector<4x64xf32>
    %86 = arith.minimumf %85, %84 : vector<4x64xf32>
    %87 = arith.mulf %80, %86 : vector<4x64xf32>
    %cst_44 = arith.constant 0.166666672 : f32
    %88 = vector.broadcast %cst_44 : f32 to vector<4x64xf32>
    %89 = arith.mulf %87, %88 : vector<4x64xf32>
    %90 = arith.truncf %89 : vector<4x64xf32> to vector<4x64xbf16>
    %c64 = arith.constant 64 : index
    %c0_45 = arith.constant 0 : index
    %91 = vector.load %arg10[%c64, %c0_45] : memref<512x256xbf16, #tpu.memory_space<vmem>>, vector<64x256xbf16>
    %cst_46 = arith.constant dense<0.000000e+00> : vector<4x256xf32>
    %92 = tpu.matmul %90, %91, %cst_46 {dimension_numbers = #tpu.dot_dimension_numbers<[1], [0], [0], [1], [0, 0, 1, 1], [], []>} : vector<4x64xbf16>, vector<64x256xbf16>, vector<4x256xf32> -> vector<4x256xf32>
    %93 = arith.addf %59, %92 : vector<4x256xf32>
    %94 = vector.extract_strided_slice %24 {offsets = [0, 32], sizes = [4, 16], strides = [1, 1]} : vector<4x128xbf16> to vector<4x16xbf16>
    %95 = vector.extract_strided_slice %11 {offsets = [0, 32], sizes = [16, 16], strides = [1, 1]} : vector<16x128xbf16> to vector<16x16xbf16>
    %96 = vector.extract_strided_slice %13 {offsets = [0, 128], sizes = [16, 64], strides = [1, 1]} : vector<16x512xbf16> to vector<16x64xbf16>
    %cst_47 = arith.constant dense<0.000000e+00> : vector<4x16xf32>
    %97 = tpu.matmul %94, %95, %cst_47 {dimension_numbers = #tpu.dot_dimension_numbers<[1], [1], [0], [0], [0, 0, 1, 0], [], []>} : vector<4x16xbf16>, vector<16x16xbf16>, vector<4x16xf32> -> vector<4x16xf32>
    %cst_48 = arith.constant 2.500000e-01 : f32
    %98 = vector.broadcast %cst_48 : f32 to vector<4x16xf32>
    %99 = arith.mulf %97, %98 : vector<4x16xf32>
    %c2 = arith.constant 2 : index
    %c0_49 = arith.constant 0 : index
    %c0_50 = arith.constant 0 : index
    %100 = vector.load %arg9[%c2, %c0_49, %c0_50] : memref<8x4x16xf32, #tpu.memory_space<vmem>>, vector<1x4x16xf32>
    %101 = vector.shape_cast %100 : vector<1x4x16xf32> to vector<4x16xf32>
    %102 = arith.addf %99, %101 : vector<4x16xf32>
    %cst_51 = arith.constant dense<0xFF800000> : vector<4xf32>
    %103 = vector.multi_reduction <maximumf>, %102, %cst_51 [1] : vector<4x16xf32> to vector<4xf32>
    %104 = vector.shape_cast %103 : vector<4xf32> to vector<4x1xf32>
    %105 = vector.broadcast %104 : vector<4x1xf32> to vector<4x16xf32>
    %106 = arith.subf %102, %105 : vector<4x16xf32>
    %107 = math.exp %106 : vector<4x16xf32>
    %cst_52 = arith.constant dense<0.000000e+00> : vector<4xf32>
    %108 = vector.multi_reduction <add>, %107, %cst_52 [1] : vector<4x16xf32> to vector<4xf32>
    %109 = vector.shape_cast %108 : vector<4xf32> to vector<4x1xf32>
    %110 = tpu.reciprocal %109 {approx = true} : vector<4x1xf32> -> vector<4x1xf32>
    %111 = vector.broadcast %110 : vector<4x1xf32> to vector<4x16xf32>
    %112 = arith.mulf %107, %111 : vector<4x16xf32>
    %113 = arith.truncf %112 : vector<4x16xf32> to vector<4x16xbf16>
    %cst_53 = arith.constant dense<0.000000e+00> : vector<4x64xf32>
    %114 = tpu.matmul %113, %96, %cst_53 {dimension_numbers = #tpu.dot_dimension_numbers<[1], [0], [0], [1], [0, 0, 1, 1], [], []>} : vector<4x16xbf16>, vector<16x64xbf16>, vector<4x64xf32> -> vector<4x64xf32>
    %cst_54 = arith.constant 3.000000e+00 : f32
    %115 = vector.broadcast %cst_54 : f32 to vector<4x64xf32>
    %116 = arith.addf %114, %115 : vector<4x64xf32>
    %cst_55 = arith.constant 0.000000e+00 : f32
    %cst_56 = arith.constant 6.000000e+00 : f32
    %117 = vector.broadcast %cst_55 : f32 to vector<4x64xf32>
    %118 = arith.maximumf %117, %116 : vector<4x64xf32>
    %119 = vector.broadcast %cst_56 : f32 to vector<4x64xf32>
    %120 = arith.minimumf %119, %118 : vector<4x64xf32>
    %121 = arith.mulf %114, %120 : vector<4x64xf32>
    %cst_57 = arith.constant 0.166666672 : f32
    %122 = vector.broadcast %cst_57 : f32 to vector<4x64xf32>
    %123 = arith.mulf %121, %122 : vector<4x64xf32>
    %124 = arith.truncf %123 : vector<4x64xf32> to vector<4x64xbf16>
    %c128 = arith.constant 128 : index
    %c0_58 = arith.constant 0 : index
    %125 = vector.load %arg10[%c128, %c0_58] : memref<512x256xbf16, #tpu.memory_space<vmem>>, vector<64x256xbf16>
    %cst_59 = arith.constant dense<0.000000e+00> : vector<4x256xf32>
    %126 = tpu.matmul %124, %125, %cst_59 {dimension_numbers = #tpu.dot_dimension_numbers<[1], [0], [0], [1], [0, 0, 1, 1], [], []>} : vector<4x64xbf16>, vector<64x256xbf16>, vector<4x256xf32> -> vector<4x256xf32>
    %127 = arith.addf %93, %126 : vector<4x256xf32>
    %128 = vector.extract_strided_slice %24 {offsets = [0, 48], sizes = [4, 16], strides = [1, 1]} : vector<4x128xbf16> to vector<4x16xbf16>
    %129 = vector.extract_strided_slice %11 {offsets = [0, 48], sizes = [16, 16], strides = [1, 1]} : vector<16x128xbf16> to vector<16x16xbf16>
    %130 = vector.extract_strided_slice %13 {offsets = [0, 192], sizes = [16, 64], strides = [1, 1]} : vector<16x512xbf16> to vector<16x64xbf16>
    %cst_60 = arith.constant dense<0.000000e+00> : vector<4x16xf32>
    %131 = tpu.matmul %128, %129, %cst_60 {dimension_numbers = #tpu.dot_dimension_numbers<[1], [1], [0], [0], [0, 0, 1, 0], [], []>} : vector<4x16xbf16>, vector<16x16xbf16>, vector<4x16xf32> -> vector<4x16xf32>
    %cst_61 = arith.constant 2.500000e-01 : f32
    %132 = vector.broadcast %cst_61 : f32 to vector<4x16xf32>
    %133 = arith.mulf %131, %132 : vector<4x16xf32>
    %c3 = arith.constant 3 : index
    %c0_62 = arith.constant 0 : index
    %c0_63 = arith.constant 0 : index
    %134 = vector.load %arg9[%c3, %c0_62, %c0_63] : memref<8x4x16xf32, #tpu.memory_space<vmem>>, vector<1x4x16xf32>
    %135 = vector.shape_cast %134 : vector<1x4x16xf32> to vector<4x16xf32>
    %136 = arith.addf %133, %135 : vector<4x16xf32>
    %cst_64 = arith.constant dense<0xFF800000> : vector<4xf32>
    %137 = vector.multi_reduction <maximumf>, %136, %cst_64 [1] : vector<4x16xf32> to vector<4xf32>
    %138 = vector.shape_cast %137 : vector<4xf32> to vector<4x1xf32>
    %139 = vector.broadcast %138 : vector<4x1xf32> to vector<4x16xf32>
    %140 = arith.subf %136, %139 : vector<4x16xf32>
    %141 = math.exp %140 : vector<4x16xf32>
    %cst_65 = arith.constant dense<0.000000e+00> : vector<4xf32>
    %142 = vector.multi_reduction <add>, %141, %cst_65 [1] : vector<4x16xf32> to vector<4xf32>
    %143 = vector.shape_cast %142 : vector<4xf32> to vector<4x1xf32>
    %144 = tpu.reciprocal %143 {approx = true} : vector<4x1xf32> -> vector<4x1xf32>
    %145 = vector.broadcast %144 : vector<4x1xf32> to vector<4x16xf32>
    %146 = arith.mulf %141, %145 : vector<4x16xf32>
    %147 = arith.truncf %146 : vector<4x16xf32> to vector<4x16xbf16>
    %cst_66 = arith.constant dense<0.000000e+00> : vector<4x64xf32>
    %148 = tpu.matmul %147, %130, %cst_66 {dimension_numbers = #tpu.dot_dimension_numbers<[1], [0], [0], [1], [0, 0, 1, 1], [], []>} : vector<4x16xbf16>, vector<16x64xbf16>, vector<4x64xf32> -> vector<4x64xf32>
    %cst_67 = arith.constant 3.000000e+00 : f32
    %149 = vector.broadcast %cst_67 : f32 to vector<4x64xf32>
    %150 = arith.addf %148, %149 : vector<4x64xf32>
    %cst_68 = arith.constant 0.000000e+00 : f32
    %cst_69 = arith.constant 6.000000e+00 : f32
    %151 = vector.broadcast %cst_68 : f32 to vector<4x64xf32>
    %152 = arith.maximumf %151, %150 : vector<4x64xf32>
    %153 = vector.broadcast %cst_69 : f32 to vector<4x64xf32>
    %154 = arith.minimumf %153, %152 : vector<4x64xf32>
    %155 = arith.mulf %148, %154 : vector<4x64xf32>
    %cst_70 = arith.constant 0.166666672 : f32
    %156 = vector.broadcast %cst_70 : f32 to vector<4x64xf32>
    %157 = arith.mulf %155, %156 : vector<4x64xf32>
    %158 = arith.truncf %157 : vector<4x64xf32> to vector<4x64xbf16>
    %c192 = arith.constant 192 : index
    %c0_71 = arith.constant 0 : index
    %159 = vector.load %arg10[%c192, %c0_71] : memref<512x256xbf16, #tpu.memory_space<vmem>>, vector<64x256xbf16>
    %cst_72 = arith.constant dense<0.000000e+00> : vector<4x256xf32>
    %160 = tpu.matmul %158, %159, %cst_72 {dimension_numbers = #tpu.dot_dimension_numbers<[1], [0], [0], [1], [0, 0, 1, 1], [], []>} : vector<4x64xbf16>, vector<64x256xbf16>, vector<4x256xf32> -> vector<4x256xf32>
    %161 = arith.addf %127, %160 : vector<4x256xf32>
    %162 = vector.extract_strided_slice %24 {offsets = [0, 64], sizes = [4, 16], strides = [1, 1]} : vector<4x128xbf16> to vector<4x16xbf16>
    %163 = vector.extract_strided_slice %11 {offsets = [0, 64], sizes = [16, 16], strides = [1, 1]} : vector<16x128xbf16> to vector<16x16xbf16>
    %164 = vector.extract_strided_slice %13 {offsets = [0, 256], sizes = [16, 64], strides = [1, 1]} : vector<16x512xbf16> to vector<16x64xbf16>
    %cst_73 = arith.constant dense<0.000000e+00> : vector<4x16xf32>
    %165 = tpu.matmul %162, %163, %cst_73 {dimension_numbers = #tpu.dot_dimension_numbers<[1], [1], [0], [0], [0, 0, 1, 0], [], []>} : vector<4x16xbf16>, vector<16x16xbf16>, vector<4x16xf32> -> vector<4x16xf32>
    %cst_74 = arith.constant 2.500000e-01 : f32
    %166 = vector.broadcast %cst_74 : f32 to vector<4x16xf32>
    %167 = arith.mulf %165, %166 : vector<4x16xf32>
    %c4 = arith.constant 4 : index
    %c0_75 = arith.constant 0 : index
    %c0_76 = arith.constant 0 : index
    %168 = vector.load %arg9[%c4, %c0_75, %c0_76] : memref<8x4x16xf32, #tpu.memory_space<vmem>>, vector<1x4x16xf32>
    %169 = vector.shape_cast %168 : vector<1x4x16xf32> to vector<4x16xf32>
    %170 = arith.addf %167, %169 : vector<4x16xf32>
    %cst_77 = arith.constant dense<0xFF800000> : vector<4xf32>
    %171 = vector.multi_reduction <maximumf>, %170, %cst_77 [1] : vector<4x16xf32> to vector<4xf32>
    %172 = vector.shape_cast %171 : vector<4xf32> to vector<4x1xf32>
    %173 = vector.broadcast %172 : vector<4x1xf32> to vector<4x16xf32>
    %174 = arith.subf %170, %173 : vector<4x16xf32>
    %175 = math.exp %174 : vector<4x16xf32>
    %cst_78 = arith.constant dense<0.000000e+00> : vector<4xf32>
    %176 = vector.multi_reduction <add>, %175, %cst_78 [1] : vector<4x16xf32> to vector<4xf32>
    %177 = vector.shape_cast %176 : vector<4xf32> to vector<4x1xf32>
    %178 = tpu.reciprocal %177 {approx = true} : vector<4x1xf32> -> vector<4x1xf32>
    %179 = vector.broadcast %178 : vector<4x1xf32> to vector<4x16xf32>
    %180 = arith.mulf %175, %179 : vector<4x16xf32>
    %181 = arith.truncf %180 : vector<4x16xf32> to vector<4x16xbf16>
    %cst_79 = arith.constant dense<0.000000e+00> : vector<4x64xf32>
    %182 = tpu.matmul %181, %164, %cst_79 {dimension_numbers = #tpu.dot_dimension_numbers<[1], [0], [0], [1], [0, 0, 1, 1], [], []>} : vector<4x16xbf16>, vector<16x64xbf16>, vector<4x64xf32> -> vector<4x64xf32>
    %cst_80 = arith.constant 3.000000e+00 : f32
    %183 = vector.broadcast %cst_80 : f32 to vector<4x64xf32>
    %184 = arith.addf %182, %183 : vector<4x64xf32>
    %cst_81 = arith.constant 0.000000e+00 : f32
    %cst_82 = arith.constant 6.000000e+00 : f32
    %185 = vector.broadcast %cst_81 : f32 to vector<4x64xf32>
    %186 = arith.maximumf %185, %184 : vector<4x64xf32>
    %187 = vector.broadcast %cst_82 : f32 to vector<4x64xf32>
    %188 = arith.minimumf %187, %186 : vector<4x64xf32>
    %189 = arith.mulf %182, %188 : vector<4x64xf32>
    %cst_83 = arith.constant 0.166666672 : f32
    %190 = vector.broadcast %cst_83 : f32 to vector<4x64xf32>
    %191 = arith.mulf %189, %190 : vector<4x64xf32>
    %192 = arith.truncf %191 : vector<4x64xf32> to vector<4x64xbf16>
    %c256 = arith.constant 256 : index
    %c0_84 = arith.constant 0 : index
    %193 = vector.load %arg10[%c256, %c0_84] : memref<512x256xbf16, #tpu.memory_space<vmem>>, vector<64x256xbf16>
    %cst_85 = arith.constant dense<0.000000e+00> : vector<4x256xf32>
    %194 = tpu.matmul %192, %193, %cst_85 {dimension_numbers = #tpu.dot_dimension_numbers<[1], [0], [0], [1], [0, 0, 1, 1], [], []>} : vector<4x64xbf16>, vector<64x256xbf16>, vector<4x256xf32> -> vector<4x256xf32>
    %195 = arith.addf %161, %194 : vector<4x256xf32>
    %196 = vector.extract_strided_slice %24 {offsets = [0, 80], sizes = [4, 16], strides = [1, 1]} : vector<4x128xbf16> to vector<4x16xbf16>
    %197 = vector.extract_strided_slice %11 {offsets = [0, 80], sizes = [16, 16], strides = [1, 1]} : vector<16x128xbf16> to vector<16x16xbf16>
    %198 = vector.extract_strided_slice %13 {offsets = [0, 320], sizes = [16, 64], strides = [1, 1]} : vector<16x512xbf16> to vector<16x64xbf16>
    %cst_86 = arith.constant dense<0.000000e+00> : vector<4x16xf32>
    %199 = tpu.matmul %196, %197, %cst_86 {dimension_numbers = #tpu.dot_dimension_numbers<[1], [1], [0], [0], [0, 0, 1, 0], [], []>} : vector<4x16xbf16>, vector<16x16xbf16>, vector<4x16xf32> -> vector<4x16xf32>
    %cst_87 = arith.constant 2.500000e-01 : f32
    %200 = vector.broadcast %cst_87 : f32 to vector<4x16xf32>
    %201 = arith.mulf %199, %200 : vector<4x16xf32>
    %c5 = arith.constant 5 : index
    %c0_88 = arith.constant 0 : index
    %c0_89 = arith.constant 0 : index
    %202 = vector.load %arg9[%c5, %c0_88, %c0_89] : memref<8x4x16xf32, #tpu.memory_space<vmem>>, vector<1x4x16xf32>
    %203 = vector.shape_cast %202 : vector<1x4x16xf32> to vector<4x16xf32>
    %204 = arith.addf %201, %203 : vector<4x16xf32>
    %cst_90 = arith.constant dense<0xFF800000> : vector<4xf32>
    %205 = vector.multi_reduction <maximumf>, %204, %cst_90 [1] : vector<4x16xf32> to vector<4xf32>
    %206 = vector.shape_cast %205 : vector<4xf32> to vector<4x1xf32>
    %207 = vector.broadcast %206 : vector<4x1xf32> to vector<4x16xf32>
    %208 = arith.subf %204, %207 : vector<4x16xf32>
    %209 = math.exp %208 : vector<4x16xf32>
    %cst_91 = arith.constant dense<0.000000e+00> : vector<4xf32>
    %210 = vector.multi_reduction <add>, %209, %cst_91 [1] : vector<4x16xf32> to vector<4xf32>
    %211 = vector.shape_cast %210 : vector<4xf32> to vector<4x1xf32>
    %212 = tpu.reciprocal %211 {approx = true} : vector<4x1xf32> -> vector<4x1xf32>
    %213 = vector.broadcast %212 : vector<4x1xf32> to vector<4x16xf32>
    %214 = arith.mulf %209, %213 : vector<4x16xf32>
    %215 = arith.truncf %214 : vector<4x16xf32> to vector<4x16xbf16>
    %cst_92 = arith.constant dense<0.000000e+00> : vector<4x64xf32>
    %216 = tpu.matmul %215, %198, %cst_92 {dimension_numbers = #tpu.dot_dimension_numbers<[1], [0], [0], [1], [0, 0, 1, 1], [], []>} : vector<4x16xbf16>, vector<16x64xbf16>, vector<4x64xf32> -> vector<4x64xf32>
    %cst_93 = arith.constant 3.000000e+00 : f32
    %217 = vector.broadcast %cst_93 : f32 to vector<4x64xf32>
    %218 = arith.addf %216, %217 : vector<4x64xf32>
    %cst_94 = arith.constant 0.000000e+00 : f32
    %cst_95 = arith.constant 6.000000e+00 : f32
    %219 = vector.broadcast %cst_94 : f32 to vector<4x64xf32>
    %220 = arith.maximumf %219, %218 : vector<4x64xf32>
    %221 = vector.broadcast %cst_95 : f32 to vector<4x64xf32>
    %222 = arith.minimumf %221, %220 : vector<4x64xf32>
    %223 = arith.mulf %216, %222 : vector<4x64xf32>
    %cst_96 = arith.constant 0.166666672 : f32
    %224 = vector.broadcast %cst_96 : f32 to vector<4x64xf32>
    %225 = arith.mulf %223, %224 : vector<4x64xf32>
    %226 = arith.truncf %225 : vector<4x64xf32> to vector<4x64xbf16>
    %c320 = arith.constant 320 : index
    %c0_97 = arith.constant 0 : index
    %227 = vector.load %arg10[%c320, %c0_97] : memref<512x256xbf16, #tpu.memory_space<vmem>>, vector<64x256xbf16>
    %cst_98 = arith.constant dense<0.000000e+00> : vector<4x256xf32>
    %228 = tpu.matmul %226, %227, %cst_98 {dimension_numbers = #tpu.dot_dimension_numbers<[1], [0], [0], [1], [0, 0, 1, 1], [], []>} : vector<4x64xbf16>, vector<64x256xbf16>, vector<4x256xf32> -> vector<4x256xf32>
    %229 = arith.addf %195, %228 : vector<4x256xf32>
    %230 = vector.extract_strided_slice %24 {offsets = [0, 96], sizes = [4, 16], strides = [1, 1]} : vector<4x128xbf16> to vector<4x16xbf16>
    %231 = vector.extract_strided_slice %11 {offsets = [0, 96], sizes = [16, 16], strides = [1, 1]} : vector<16x128xbf16> to vector<16x16xbf16>
    %232 = vector.extract_strided_slice %13 {offsets = [0, 384], sizes = [16, 64], strides = [1, 1]} : vector<16x512xbf16> to vector<16x64xbf16>
    %cst_99 = arith.constant dense<0.000000e+00> : vector<4x16xf32>
    %233 = tpu.matmul %230, %231, %cst_99 {dimension_numbers = #tpu.dot_dimension_numbers<[1], [1], [0], [0], [0, 0, 1, 0], [], []>} : vector<4x16xbf16>, vector<16x16xbf16>, vector<4x16xf32> -> vector<4x16xf32>
    %cst_100 = arith.constant 2.500000e-01 : f32
    %234 = vector.broadcast %cst_100 : f32 to vector<4x16xf32>
    %235 = arith.mulf %233, %234 : vector<4x16xf32>
    %c6 = arith.constant 6 : index
    %c0_101 = arith.constant 0 : index
    %c0_102 = arith.constant 0 : index
    %236 = vector.load %arg9[%c6, %c0_101, %c0_102] : memref<8x4x16xf32, #tpu.memory_space<vmem>>, vector<1x4x16xf32>
    %237 = vector.shape_cast %236 : vector<1x4x16xf32> to vector<4x16xf32>
    %238 = arith.addf %235, %237 : vector<4x16xf32>
    %cst_103 = arith.constant dense<0xFF800000> : vector<4xf32>
    %239 = vector.multi_reduction <maximumf>, %238, %cst_103 [1] : vector<4x16xf32> to vector<4xf32>
    %240 = vector.shape_cast %239 : vector<4xf32> to vector<4x1xf32>
    %241 = vector.broadcast %240 : vector<4x1xf32> to vector<4x16xf32>
    %242 = arith.subf %238, %241 : vector<4x16xf32>
    %243 = math.exp %242 : vector<4x16xf32>
    %cst_104 = arith.constant dense<0.000000e+00> : vector<4xf32>
    %244 = vector.multi_reduction <add>, %243, %cst_104 [1] : vector<4x16xf32> to vector<4xf32>
    %245 = vector.shape_cast %244 : vector<4xf32> to vector<4x1xf32>
    %246 = tpu.reciprocal %245 {approx = true} : vector<4x1xf32> -> vector<4x1xf32>
    %247 = vector.broadcast %246 : vector<4x1xf32> to vector<4x16xf32>
    %248 = arith.mulf %243, %247 : vector<4x16xf32>
    %249 = arith.truncf %248 : vector<4x16xf32> to vector<4x16xbf16>
    %cst_105 = arith.constant dense<0.000000e+00> : vector<4x64xf32>
    %250 = tpu.matmul %249, %232, %cst_105 {dimension_numbers = #tpu.dot_dimension_numbers<[1], [0], [0], [1], [0, 0, 1, 1], [], []>} : vector<4x16xbf16>, vector<16x64xbf16>, vector<4x64xf32> -> vector<4x64xf32>
    %cst_106 = arith.constant 3.000000e+00 : f32
    %251 = vector.broadcast %cst_106 : f32 to vector<4x64xf32>
    %252 = arith.addf %250, %251 : vector<4x64xf32>
    %cst_107 = arith.constant 0.000000e+00 : f32
    %cst_108 = arith.constant 6.000000e+00 : f32
    %253 = vector.broadcast %cst_107 : f32 to vector<4x64xf32>
    %254 = arith.maximumf %253, %252 : vector<4x64xf32>
    %255 = vector.broadcast %cst_108 : f32 to vector<4x64xf32>
    %256 = arith.minimumf %255, %254 : vector<4x64xf32>
    %257 = arith.mulf %250, %256 : vector<4x64xf32>
    %cst_109 = arith.constant 0.166666672 : f32
    %258 = vector.broadcast %cst_109 : f32 to vector<4x64xf32>
    %259 = arith.mulf %257, %258 : vector<4x64xf32>
    %260 = arith.truncf %259 : vector<4x64xf32> to vector<4x64xbf16>
    %c384 = arith.constant 384 : index
    %c0_110 = arith.constant 0 : index
    %261 = vector.load %arg10[%c384, %c0_110] : memref<512x256xbf16, #tpu.memory_space<vmem>>, vector<64x256xbf16>
    %cst_111 = arith.constant dense<0.000000e+00> : vector<4x256xf32>
    %262 = tpu.matmul %260, %261, %cst_111 {dimension_numbers = #tpu.dot_dimension_numbers<[1], [0], [0], [1], [0, 0, 1, 1], [], []>} : vector<4x64xbf16>, vector<64x256xbf16>, vector<4x256xf32> -> vector<4x256xf32>
    %263 = arith.addf %229, %262 : vector<4x256xf32>
    %264 = vector.extract_strided_slice %24 {offsets = [0, 112], sizes = [4, 16], strides = [1, 1]} : vector<4x128xbf16> to vector<4x16xbf16>
    %265 = vector.extract_strided_slice %11 {offsets = [0, 112], sizes = [16, 16], strides = [1, 1]} : vector<16x128xbf16> to vector<16x16xbf16>
    %266 = vector.extract_strided_slice %13 {offsets = [0, 448], sizes = [16, 64], strides = [1, 1]} : vector<16x512xbf16> to vector<16x64xbf16>
    %cst_112 = arith.constant dense<0.000000e+00> : vector<4x16xf32>
    %267 = tpu.matmul %264, %265, %cst_112 {dimension_numbers = #tpu.dot_dimension_numbers<[1], [1], [0], [0], [0, 0, 1, 0], [], []>} : vector<4x16xbf16>, vector<16x16xbf16>, vector<4x16xf32> -> vector<4x16xf32>
    %cst_113 = arith.constant 2.500000e-01 : f32
    %268 = vector.broadcast %cst_113 : f32 to vector<4x16xf32>
    %269 = arith.mulf %267, %268 : vector<4x16xf32>
    %c7 = arith.constant 7 : index
    %c0_114 = arith.constant 0 : index
    %c0_115 = arith.constant 0 : index
    %270 = vector.load %arg9[%c7, %c0_114, %c0_115] : memref<8x4x16xf32, #tpu.memory_space<vmem>>, vector<1x4x16xf32>
    %271 = vector.shape_cast %270 : vector<1x4x16xf32> to vector<4x16xf32>
    %272 = arith.addf %269, %271 : vector<4x16xf32>
    %cst_116 = arith.constant dense<0xFF800000> : vector<4xf32>
    %273 = vector.multi_reduction <maximumf>, %272, %cst_116 [1] : vector<4x16xf32> to vector<4xf32>
    %274 = vector.shape_cast %273 : vector<4xf32> to vector<4x1xf32>
    %275 = vector.broadcast %274 : vector<4x1xf32> to vector<4x16xf32>
    %276 = arith.subf %272, %275 : vector<4x16xf32>
    %277 = math.exp %276 : vector<4x16xf32>
    %cst_117 = arith.constant dense<0.000000e+00> : vector<4xf32>
    %278 = vector.multi_reduction <add>, %277, %cst_117 [1] : vector<4x16xf32> to vector<4xf32>
    %279 = vector.shape_cast %278 : vector<4xf32> to vector<4x1xf32>
    %280 = tpu.reciprocal %279 {approx = true} : vector<4x1xf32> -> vector<4x1xf32>
    %281 = vector.broadcast %280 : vector<4x1xf32> to vector<4x16xf32>
    %282 = arith.mulf %277, %281 : vector<4x16xf32>
    %283 = arith.truncf %282 : vector<4x16xf32> to vector<4x16xbf16>
    %cst_118 = arith.constant dense<0.000000e+00> : vector<4x64xf32>
    %284 = tpu.matmul %283, %266, %cst_118 {dimension_numbers = #tpu.dot_dimension_numbers<[1], [0], [0], [1], [0, 0, 1, 1], [], []>} : vector<4x16xbf16>, vector<16x64xbf16>, vector<4x64xf32> -> vector<4x64xf32>
    %cst_119 = arith.constant 3.000000e+00 : f32
    %285 = vector.broadcast %cst_119 : f32 to vector<4x64xf32>
    %286 = arith.addf %284, %285 : vector<4x64xf32>
    %cst_120 = arith.constant 0.000000e+00 : f32
    %cst_121 = arith.constant 6.000000e+00 : f32
    %287 = vector.broadcast %cst_120 : f32 to vector<4x64xf32>
    %288 = arith.maximumf %287, %286 : vector<4x64xf32>
    %289 = vector.broadcast %cst_121 : f32 to vector<4x64xf32>
    %290 = arith.minimumf %289, %288 : vector<4x64xf32>
    %291 = arith.mulf %284, %290 : vector<4x64xf32>
    %cst_122 = arith.constant 0.166666672 : f32
    %292 = vector.broadcast %cst_122 : f32 to vector<4x64xf32>
    %293 = arith.mulf %291, %292 : vector<4x64xf32>
    %294 = arith.truncf %293 : vector<4x64xf32> to vector<4x64xbf16>
    %c448 = arith.constant 448 : index
    %c0_123 = arith.constant 0 : index
    %295 = vector.load %arg10[%c448, %c0_123] : memref<512x256xbf16, #tpu.memory_space<vmem>>, vector<64x256xbf16>
    %cst_124 = arith.constant dense<0.000000e+00> : vector<4x256xf32>
    %296 = tpu.matmul %294, %295, %cst_124 {dimension_numbers = #tpu.dot_dimension_numbers<[1], [0], [0], [1], [0, 0, 1, 1], [], []>} : vector<4x64xbf16>, vector<64x256xbf16>, vector<4x256xf32> -> vector<4x256xf32>
    %297 = arith.addf %263, %296 : vector<4x256xf32>
    %c0_125 = arith.constant 0 : index
    %c0_126 = arith.constant 0 : index
    %298 = vector.load %arg11[%c0_125, %c0_126] : memref<1x256xf32, #tpu.memory_space<vmem>>, vector<1x256xf32>
    %299 = vector.broadcast %298 : vector<1x256xf32> to vector<4x256xf32>
    %300 = arith.mulf %297, %299 : vector<4x256xf32>
    %c0_127 = arith.constant 0 : index
    %c0_128 = arith.constant 0 : index
    %301 = vector.load %arg12[%c0_127, %c0_128] : memref<1x256xf32, #tpu.memory_space<vmem>>, vector<1x256xf32>
    %302 = vector.broadcast %301 : vector<1x256xf32> to vector<4x256xf32>
    %303 = arith.addf %300, %302 : vector<4x256xf32>
    %304 = arith.truncf %303 : vector<4x256xf32> to vector<4x256xbf16>
    %c0_129 = arith.constant 0 : index
    %c0_130 = arith.constant 0 : index
    %305 = vector.load %arg13[%c0_129, %c0_130] : memref<256x384xbf16, #tpu.memory_space<vmem>>, vector<256x384xbf16>
    %cst_131 = arith.constant dense<0.000000e+00> : vector<4x384xf32>
    %306 = tpu.matmul %304, %305, %cst_131 {dimension_numbers = #tpu.dot_dimension_numbers<[1], [0], [0], [1], [0, 0, 1, 1], [], []>} : vector<4x256xbf16>, vector<256x384xbf16>, vector<4x384xf32> -> vector<4x384xf32>
    %c0_132 = arith.constant 0 : index
    %c0_133 = arith.constant 0 : index
    %307 = vector.load %arg14[%c0_132, %c0_133] : memref<1x384xf32, #tpu.memory_space<vmem>>, vector<1x384xf32>
    %308 = vector.broadcast %307 : vector<1x384xf32> to vector<4x384xf32>
    %309 = arith.mulf %306, %308 : vector<4x384xf32>
    %c0_134 = arith.constant 0 : index
    %c0_135 = arith.constant 0 : index
    %310 = vector.load %arg15[%c0_134, %c0_135] : memref<1x384xf32, #tpu.memory_space<vmem>>, vector<1x384xf32>
    %311 = vector.broadcast %310 : vector<1x384xf32> to vector<4x384xf32>
    %312 = arith.addf %309, %311 : vector<4x384xf32>
    %cst_136 = arith.constant 3.000000e+00 : f32
    %313 = vector.broadcast %cst_136 : f32 to vector<4x384xf32>
    %314 = arith.addf %312, %313 : vector<4x384xf32>
    %cst_137 = arith.constant 0.000000e+00 : f32
    %cst_138 = arith.constant 6.000000e+00 : f32
    %315 = vector.broadcast %cst_137 : f32 to vector<4x384xf32>
    %316 = arith.maximumf %315, %314 : vector<4x384xf32>
    %317 = vector.broadcast %cst_138 : f32 to vector<4x384xf32>
    %318 = arith.minimumf %317, %316 : vector<4x384xf32>
    %319 = arith.mulf %312, %318 : vector<4x384xf32>
    %cst_139 = arith.constant 0.166666672 : f32
    %320 = vector.broadcast %cst_139 : f32 to vector<4x384xf32>
    %321 = arith.mulf %319, %320 : vector<4x384xf32>
    %322 = arith.truncf %321 : vector<4x384xf32> to vector<4x384xbf16>
    %c0_140 = arith.constant 0 : index
    %c0_141 = arith.constant 0 : index
    %323 = vector.load %arg16[%c0_140, %c0_141] : memref<384x256xbf16, #tpu.memory_space<vmem>>, vector<384x256xbf16>
    %cst_142 = arith.constant dense<0.000000e+00> : vector<4x256xf32>
    %324 = tpu.matmul %322, %323, %cst_142 {dimension_numbers = #tpu.dot_dimension_numbers<[1], [0], [0], [1], [0, 0, 1, 1], [], []>} : vector<4x384xbf16>, vector<384x256xbf16>, vector<4x256xf32> -> vector<4x256xf32>
    %c0_143 = arith.constant 0 : index
    %c0_144 = arith.constant 0 : index
    %325 = vector.load %arg17[%c0_143, %c0_144] : memref<1x256xf32, #tpu.memory_space<vmem>>, vector<1x256xf32>
    %326 = vector.broadcast %325 : vector<1x256xf32> to vector<4x256xf32>
    %327 = arith.mulf %324, %326 : vector<4x256xf32>
    %c0_145 = arith.constant 0 : index
    %c0_146 = arith.constant 0 : index
    %328 = vector.load %arg18[%c0_145, %c0_146] : memref<1x256xf32, #tpu.memory_space<vmem>>, vector<1x256xf32>
    %329 = vector.broadcast %328 : vector<1x256xf32> to vector<4x256xf32>
    %330 = arith.addf %327, %329 : vector<4x256xf32>
    %331 = arith.addf %330, %303 : vector<4x256xf32>
    %332 = arith.truncf %331 : vector<4x256xf32> to vector<4x256xbf16>
    %c0_147 = arith.constant 0 : index
    %c0_148 = arith.constant 0 : index
    %c0_149 = arith.constant 0 : index
    %333 = vector.load %arg19[%c0_147, %c0_148, %c0_149] : memref<1x4x256xbf16, #tpu.memory_space<vmem>>, vector<1x4x256xbf16>
    %334 = vector.shape_cast %333 : vector<1x4x256xbf16> to vector<4x256xbf16>
    %335 = vector.shape_cast %332 : vector<4x256xbf16> to vector<1x4x256xbf16>
    tpu.vector_store %arg19[%c0_147, %c0_148, %c0_149], %335 {strides = array<i32>} : memref<1x4x256xbf16, #tpu.memory_space<vmem>>, vector<1x4x256xbf16>,
    return
  }
  func.func @transform_0(%arg0: i32) -> (i32, i32, i32) {
    %c0_i32 = arith.constant 0 : i32
    %c0_i32_0 = arith.constant 0 : i32
    %c0_i32_1 = arith.constant 0 : i32
    return %arg0, %c0_i32, %c0_i32_0 : i32, i32, i32
  }
  func.func @transform_1(%arg0: i32) -> (i32, i32, i32) {
    %c0_i32 = arith.constant 0 : i32
    %c0_i32_0 = arith.constant 0 : i32
    %c0_i32_1 = arith.constant 0 : i32
    return %arg0, %c0_i32, %c0_i32_0 : i32, i32, i32
  }
  func.func @transform_2(%arg0: i32) -> (i32, i32) {
    %c0_i32 = arith.constant 0 : i32
    %c0_i32_0 = arith.constant 0 : i32
    %c0_i32_1 = arith.constant 0 : i32
    return %c0_i32, %c0_i32_0 : i32, i32
  }
  func.func @transform_3(%arg0: i32) -> (i32, i32) {
    %c0_i32 = arith.constant 0 : i32
    %c0_i32_0 = arith.constant 0 : i32
    %c0_i32_1 = arith.constant 0 : i32
    return %c0_i32, %c0_i32_0 : i32, i32
  }
  func.func @transform_4(%arg0: i32) -> (i32, i32) {
    %c0_i32 = arith.constant 0 : i32
    %c0_i32_0 = arith.constant 0 : i32
    %c0_i32_1 = arith.constant 0 : i32
    return %c0_i32, %c0_i32_0 : i32, i32
  }
  func.func @transform_5(%arg0: i32) -> (i32, i32) {
    %c0_i32 = arith.constant 0 : i32
    %c0_i32_0 = arith.constant 0 : i32
    %c0_i32_1 = arith.constant 0 : i32
    return %c0_i32, %c0_i32_0 : i32, i32
  }
  func.func @transform_6(%arg0: i32) -> (i32, i32) {
    %c0_i32 = arith.constant 0 : i32
    %c0_i32_0 = arith.constant 0 : i32
    %c0_i32_1 = arith.constant 0 : i32
    return %c0_i32, %c0_i32_0 : i32, i32
  }
  func.func @transform_7(%arg0: i32) -> (i32, i32) {
    %c0_i32 = arith.constant 0 : i32
    %c0_i32_0 = arith.constant 0 : i32
    %c0_i32_1 = arith.constant 0 : i32
    return %c0_i32, %c0_i32_0 : i32, i32
  }
  func.func @transform_8(%arg0: i32) -> (i32, i32, i32) {
    %c0_i32 = arith.constant 0 : i32
    %c0_i32_0 = arith.constant 0 : i32
    %c0_i32_1 = arith.constant 0 : i32
    %c0_i32_2 = arith.constant 0 : i32
    return %c0_i32, %c0_i32_0, %c0_i32_1 : i32, i32, i32
  }
  func.func @transform_9(%arg0: i32) -> (i32, i32) {
    %c0_i32 = arith.constant 0 : i32
    %c0_i32_0 = arith.constant 0 : i32
    %c0_i32_1 = arith.constant 0 : i32
    return %c0_i32, %c0_i32_0 : i32, i32
  }
  func.func @transform_10(%arg0: i32) -> (i32, i32) {
    %c0_i32 = arith.constant 0 : i32
    %c0_i32_0 = arith.constant 0 : i32
    %c0_i32_1 = arith.constant 0 : i32
    return %c0_i32, %c0_i32_0 : i32, i32
  }
  func.func @transform_11(%arg0: i32) -> (i32, i32) {
    %c0_i32 = arith.constant 0 : i32
    %c0_i32_0 = arith.constant 0 : i32
    %c0_i32_1 = arith.constant 0 : i32
    return %c0_i32, %c0_i32_0 : i32, i32
  }
  func.func @transform_12(%arg0: i32) -> (i32, i32) {
    %c0_i32 = arith.constant 0 : i32
    %c0_i32_0 = arith.constant 0 : i32
    %c0_i32_1 = arith.constant 0 : i32
    return %c0_i32, %c0_i32_0 : i32, i32
  }
  func.func @transform_13(%arg0: i32) -> (i32, i32) {
    %c0_i32 = arith.constant 0 : i32
    %c0_i32_0 = arith.constant 0 : i32
    %c0_i32_1 = arith.constant 0 : i32
    return %c0_i32, %c0_i32_0 : i32, i32
  }
  func.func @transform_14(%arg0: i32) -> (i32, i32) {
    %c0_i32 = arith.constant 0 : i32
    %c0_i32_0 = arith.constant 0 : i32
    %c0_i32_1 = arith.constant 0 : i32
    return %c0_i32, %c0_i32_0 : i32, i32
  }
  func.func @transform_15(%arg0: i32) -> (i32, i32) {
    %c0_i32 = arith.constant 0 : i32
    %c0_i32_0 = arith.constant 0 : i32
    %c0_i32_1 = arith.constant 0 : i32
    return %c0_i32, %c0_i32_0 : i32, i32
  }
  func.func @transform_16(%arg0: i32) -> (i32, i32) {
    %c0_i32 = arith.constant 0 : i32
    %c0_i32_0 = arith.constant 0 : i32
    %c0_i32_1 = arith.constant 0 : i32
    return %c0_i32, %c0_i32_0 : i32, i32
  }
  func.func @transform_17(%arg0: i32) -> (i32, i32) {
    %c0_i32 = arith.constant 0 : i32
    %c0_i32_0 = arith.constant 0 : i32
    %c0_i32_1 = arith.constant 0 : i32
    return %c0_i32, %c0_i32_0 : i32, i32
  }
  func.func @transform_18(%arg0: i32) -> (i32, i32, i32) {
    %c0_i32 = arith.constant 0 : i32
    %c0_i32_0 = arith.constant 0 : i32
    %c0_i32_1 = arith.constant 0 : i32
    return %arg0, %c0_i32, %c0_i32_0 : i32, i32, i32
  }
}

module attributes {stable_mosaic.version = 11 : i64} {
  func.func @_levit_block_kernel(%arg0: i32, %arg1: memref<1x4x256xbf16, #tpu.memory_space<vmem>>, %arg2: memref<256x384xbf16, #tpu.memory_space<vmem>>, %arg3: memref<1x384xf32, #tpu.memory_space<vmem>>, %arg4: memref<1x384xf32, #tpu.memory_space<vmem>>, %arg5: memref<6x4x4xf32, #tpu.memory_space<vmem>>, %arg6: memref<192x256xbf16, #tpu.memory_space<vmem>>, %arg7: memref<1x256xf32, #tpu.memory_space<vmem>>, %arg8: memref<1x256xf32, #tpu.memory_space<vmem>>, %arg9: memref<256x384xbf16, #tpu.memory_space<vmem>>, %arg10: memref<1x384xf32, #tpu.memory_space<vmem>>, %arg11: memref<1x384xf32, #tpu.memory_space<vmem>>, %arg12: memref<384x256xbf16, #tpu.memory_space<vmem>>, %arg13: memref<1x256xf32, #tpu.memory_space<vmem>>, %arg14: memref<1x256xf32, #tpu.memory_space<vmem>>, %arg15: memref<1x4x256xbf16, #tpu.memory_space<vmem>>) attributes {dimension_semantics = [#tpu.dimension_semantics<parallel>], iteration_bounds = array<i64: 2>, scalar_prefetch = 0 : i64, scratch_operands = 0 : i64, tpu.core_type = #tpu.core_type<tc>, window_params = [{transform_indices = @transform_0, window_bounds = array<i64: 1, 4, 256>}, {pipeline_mode = #tpu.pipeline_mode<synchronous>, transform_indices = @transform_1, window_bounds = array<i64: 256, 384>}, {pipeline_mode = #tpu.pipeline_mode<synchronous>, transform_indices = @transform_2, window_bounds = array<i64: 1, 384>}, {pipeline_mode = #tpu.pipeline_mode<synchronous>, transform_indices = @transform_3, window_bounds = array<i64: 1, 384>}, {pipeline_mode = #tpu.pipeline_mode<synchronous>, transform_indices = @transform_4, window_bounds = array<i64: 6, 4, 4>}, {pipeline_mode = #tpu.pipeline_mode<synchronous>, transform_indices = @transform_5, window_bounds = array<i64: 192, 256>}, {pipeline_mode = #tpu.pipeline_mode<synchronous>, transform_indices = @transform_6, window_bounds = array<i64: 1, 256>}, {pipeline_mode = #tpu.pipeline_mode<synchronous>, transform_indices = @transform_7, window_bounds = array<i64: 1, 256>}, {pipeline_mode = #tpu.pipeline_mode<synchronous>, transform_indices = @transform_8, window_bounds = array<i64: 256, 384>}, {pipeline_mode = #tpu.pipeline_mode<synchronous>, transform_indices = @transform_9, window_bounds = array<i64: 1, 384>}, {pipeline_mode = #tpu.pipeline_mode<synchronous>, transform_indices = @transform_10, window_bounds = array<i64: 1, 384>}, {pipeline_mode = #tpu.pipeline_mode<synchronous>, transform_indices = @transform_11, window_bounds = array<i64: 384, 256>}, {pipeline_mode = #tpu.pipeline_mode<synchronous>, transform_indices = @transform_12, window_bounds = array<i64: 1, 256>}, {pipeline_mode = #tpu.pipeline_mode<synchronous>, transform_indices = @transform_13, window_bounds = array<i64: 1, 256>}, {transform_indices = @transform_14, window_bounds = array<i64: 1, 4, 256>}]} {
    %c0 = arith.constant 0 : index
    %c0_0 = arith.constant 0 : index
    %c0_1 = arith.constant 0 : index
    %0 = vector.load %arg1[%c0, %c0_0, %c0_1] : memref<1x4x256xbf16, #tpu.memory_space<vmem>>, vector<1x4x256xbf16>
    %1 = vector.shape_cast %0 : vector<1x4x256xbf16> to vector<4x256xbf16>
    %c0_2 = arith.constant 0 : index
    %c0_3 = arith.constant 0 : index
    %2 = vector.load %arg2[%c0_2, %c0_3] : memref<256x384xbf16, #tpu.memory_space<vmem>>, vector<256x384xbf16>
    %cst = arith.constant dense<0.000000e+00> : vector<4x384xf32>
    %3 = tpu.matmul %1, %2, %cst {dimension_numbers = #tpu.dot_dimension_numbers<[1], [0], [0], [1], [0, 0, 1, 1], [], []>} : vector<4x256xbf16>, vector<256x384xbf16>, vector<4x384xf32> -> vector<4x384xf32>
    %c0_4 = arith.constant 0 : index
    %c0_5 = arith.constant 0 : index
    %4 = vector.load %arg3[%c0_4, %c0_5] : memref<1x384xf32, #tpu.memory_space<vmem>>, vector<1x384xf32>
    %5 = vector.broadcast %4 : vector<1x384xf32> to vector<4x384xf32>
    %6 = arith.mulf %3, %5 : vector<4x384xf32>
    %c0_6 = arith.constant 0 : index
    %c0_7 = arith.constant 0 : index
    %7 = vector.load %arg4[%c0_6, %c0_7] : memref<1x384xf32, #tpu.memory_space<vmem>>, vector<1x384xf32>
    %8 = vector.broadcast %7 : vector<1x384xf32> to vector<4x384xf32>
    %9 = arith.addf %6, %8 : vector<4x384xf32>
    %10 = vector.extract_strided_slice %9 {offsets = [0, 0], sizes = [4, 96], strides = [1, 1]} : vector<4x384xf32> to vector<4x96xf32>
    %11 = arith.truncf %10 : vector<4x96xf32> to vector<4x96xbf16>
    %12 = vector.extract_strided_slice %9 {offsets = [0, 96], sizes = [4, 96], strides = [1, 1]} : vector<4x384xf32> to vector<4x96xf32>
    %13 = arith.truncf %12 : vector<4x96xf32> to vector<4x96xbf16>
    %14 = vector.extract_strided_slice %9 {offsets = [0, 192], sizes = [4, 192], strides = [1, 1]} : vector<4x384xf32> to vector<4x192xf32>
    %15 = arith.truncf %14 : vector<4x192xf32> to vector<4x192xbf16>
    %cst_8 = arith.constant 0.000000e+00 : f32
    %16 = vector.broadcast %cst_8 : f32 to vector<4x256xf32>
    %17 = vector.extract_strided_slice %11 {offsets = [0, 0], sizes = [4, 16], strides = [1, 1]} : vector<4x96xbf16> to vector<4x16xbf16>
    %18 = vector.extract_strided_slice %13 {offsets = [0, 0], sizes = [4, 16], strides = [1, 1]} : vector<4x96xbf16> to vector<4x16xbf16>
    %19 = vector.extract_strided_slice %15 {offsets = [0, 0], sizes = [4, 32], strides = [1, 1]} : vector<4x192xbf16> to vector<4x32xbf16>
    %cst_9 = arith.constant dense<0.000000e+00> : vector<4x4xf32>
    %20 = tpu.matmul %17, %18, %cst_9 {dimension_numbers = #tpu.dot_dimension_numbers<[1], [1], [0], [0], [0, 0, 1, 0], [], []>} : vector<4x16xbf16>, vector<4x16xbf16>, vector<4x4xf32> -> vector<4x4xf32>
    %cst_10 = arith.constant 2.500000e-01 : f32
    %21 = vector.broadcast %cst_10 : f32 to vector<4x4xf32>
    %22 = arith.mulf %20, %21 : vector<4x4xf32>
    %c0_11 = arith.constant 0 : index
    %c0_12 = arith.constant 0 : index
    %c0_13 = arith.constant 0 : index
    %23 = vector.load %arg5[%c0_11, %c0_12, %c0_13] : memref<6x4x4xf32, #tpu.memory_space<vmem>>, vector<1x4x4xf32>
    %24 = vector.shape_cast %23 : vector<1x4x4xf32> to vector<4x4xf32>
    %25 = arith.addf %22, %24 : vector<4x4xf32>
    %cst_14 = arith.constant dense<0xFF800000> : vector<4xf32>
    %26 = vector.multi_reduction <maximumf>, %25, %cst_14 [1] : vector<4x4xf32> to vector<4xf32>
    %27 = vector.shape_cast %26 : vector<4xf32> to vector<4x1xf32>
    %28 = vector.broadcast %27 : vector<4x1xf32> to vector<4x4xf32>
    %29 = arith.subf %25, %28 : vector<4x4xf32>
    %30 = math.exp %29 : vector<4x4xf32>
    %cst_15 = arith.constant dense<0.000000e+00> : vector<4xf32>
    %31 = vector.multi_reduction <add>, %30, %cst_15 [1] : vector<4x4xf32> to vector<4xf32>
    %32 = vector.shape_cast %31 : vector<4xf32> to vector<4x1xf32>
    %33 = tpu.reciprocal %32 {approx = true} : vector<4x1xf32> -> vector<4x1xf32>
    %34 = vector.broadcast %33 : vector<4x1xf32> to vector<4x4xf32>
    %35 = arith.mulf %30, %34 : vector<4x4xf32>
    %36 = arith.truncf %35 : vector<4x4xf32> to vector<4x4xbf16>
    %cst_16 = arith.constant dense<0.000000e+00> : vector<4x32xf32>
    %37 = tpu.matmul %36, %19, %cst_16 {dimension_numbers = #tpu.dot_dimension_numbers<[1], [0], [0], [1], [0, 0, 1, 1], [], []>} : vector<4x4xbf16>, vector<4x32xbf16>, vector<4x32xf32> -> vector<4x32xf32>
    %cst_17 = arith.constant 3.000000e+00 : f32
    %38 = vector.broadcast %cst_17 : f32 to vector<4x32xf32>
    %39 = arith.addf %37, %38 : vector<4x32xf32>
    %cst_18 = arith.constant 0.000000e+00 : f32
    %cst_19 = arith.constant 6.000000e+00 : f32
    %40 = vector.broadcast %cst_18 : f32 to vector<4x32xf32>
    %41 = arith.maximumf %40, %39 : vector<4x32xf32>
    %42 = vector.broadcast %cst_19 : f32 to vector<4x32xf32>
    %43 = arith.minimumf %42, %41 : vector<4x32xf32>
    %44 = arith.mulf %37, %43 : vector<4x32xf32>
    %cst_20 = arith.constant 0.166666672 : f32
    %45 = vector.broadcast %cst_20 : f32 to vector<4x32xf32>
    %46 = arith.mulf %44, %45 : vector<4x32xf32>
    %47 = arith.truncf %46 : vector<4x32xf32> to vector<4x32xbf16>
    %c0_21 = arith.constant 0 : index
    %c0_22 = arith.constant 0 : index
    %48 = vector.load %arg6[%c0_21, %c0_22] : memref<192x256xbf16, #tpu.memory_space<vmem>>, vector<32x256xbf16>
    %cst_23 = arith.constant dense<0.000000e+00> : vector<4x256xf32>
    %49 = tpu.matmul %47, %48, %cst_23 {dimension_numbers = #tpu.dot_dimension_numbers<[1], [0], [0], [1], [0, 0, 1, 1], [], []>} : vector<4x32xbf16>, vector<32x256xbf16>, vector<4x256xf32> -> vector<4x256xf32>
    %50 = arith.addf %16, %49 : vector<4x256xf32>
    %51 = vector.extract_strided_slice %11 {offsets = [0, 16], sizes = [4, 16], strides = [1, 1]} : vector<4x96xbf16> to vector<4x16xbf16>
    %52 = vector.extract_strided_slice %13 {offsets = [0, 16], sizes = [4, 16], strides = [1, 1]} : vector<4x96xbf16> to vector<4x16xbf16>
    %53 = vector.extract_strided_slice %15 {offsets = [0, 32], sizes = [4, 32], strides = [1, 1]} : vector<4x192xbf16> to vector<4x32xbf16>
    %cst_24 = arith.constant dense<0.000000e+00> : vector<4x4xf32>
    %54 = tpu.matmul %51, %52, %cst_24 {dimension_numbers = #tpu.dot_dimension_numbers<[1], [1], [0], [0], [0, 0, 1, 0], [], []>} : vector<4x16xbf16>, vector<4x16xbf16>, vector<4x4xf32> -> vector<4x4xf32>
    %cst_25 = arith.constant 2.500000e-01 : f32
    %55 = vector.broadcast %cst_25 : f32 to vector<4x4xf32>
    %56 = arith.mulf %54, %55 : vector<4x4xf32>
    %c1 = arith.constant 1 : index
    %c0_26 = arith.constant 0 : index
    %c0_27 = arith.constant 0 : index
    %57 = vector.load %arg5[%c1, %c0_26, %c0_27] : memref<6x4x4xf32, #tpu.memory_space<vmem>>, vector<1x4x4xf32>
    %58 = vector.shape_cast %57 : vector<1x4x4xf32> to vector<4x4xf32>
    %59 = arith.addf %56, %58 : vector<4x4xf32>
    %cst_28 = arith.constant dense<0xFF800000> : vector<4xf32>
    %60 = vector.multi_reduction <maximumf>, %59, %cst_28 [1] : vector<4x4xf32> to vector<4xf32>
    %61 = vector.shape_cast %60 : vector<4xf32> to vector<4x1xf32>
    %62 = vector.broadcast %61 : vector<4x1xf32> to vector<4x4xf32>
    %63 = arith.subf %59, %62 : vector<4x4xf32>
    %64 = math.exp %63 : vector<4x4xf32>
    %cst_29 = arith.constant dense<0.000000e+00> : vector<4xf32>
    %65 = vector.multi_reduction <add>, %64, %cst_29 [1] : vector<4x4xf32> to vector<4xf32>
    %66 = vector.shape_cast %65 : vector<4xf32> to vector<4x1xf32>
    %67 = tpu.reciprocal %66 {approx = true} : vector<4x1xf32> -> vector<4x1xf32>
    %68 = vector.broadcast %67 : vector<4x1xf32> to vector<4x4xf32>
    %69 = arith.mulf %64, %68 : vector<4x4xf32>
    %70 = arith.truncf %69 : vector<4x4xf32> to vector<4x4xbf16>
    %cst_30 = arith.constant dense<0.000000e+00> : vector<4x32xf32>
    %71 = tpu.matmul %70, %53, %cst_30 {dimension_numbers = #tpu.dot_dimension_numbers<[1], [0], [0], [1], [0, 0, 1, 1], [], []>} : vector<4x4xbf16>, vector<4x32xbf16>, vector<4x32xf32> -> vector<4x32xf32>
    %cst_31 = arith.constant 3.000000e+00 : f32
    %72 = vector.broadcast %cst_31 : f32 to vector<4x32xf32>
    %73 = arith.addf %71, %72 : vector<4x32xf32>
    %cst_32 = arith.constant 0.000000e+00 : f32
    %cst_33 = arith.constant 6.000000e+00 : f32
    %74 = vector.broadcast %cst_32 : f32 to vector<4x32xf32>
    %75 = arith.maximumf %74, %73 : vector<4x32xf32>
    %76 = vector.broadcast %cst_33 : f32 to vector<4x32xf32>
    %77 = arith.minimumf %76, %75 : vector<4x32xf32>
    %78 = arith.mulf %71, %77 : vector<4x32xf32>
    %cst_34 = arith.constant 0.166666672 : f32
    %79 = vector.broadcast %cst_34 : f32 to vector<4x32xf32>
    %80 = arith.mulf %78, %79 : vector<4x32xf32>
    %81 = arith.truncf %80 : vector<4x32xf32> to vector<4x32xbf16>
    %c32 = arith.constant 32 : index
    %c0_35 = arith.constant 0 : index
    %82 = vector.load %arg6[%c32, %c0_35] : memref<192x256xbf16, #tpu.memory_space<vmem>>, vector<32x256xbf16>
    %cst_36 = arith.constant dense<0.000000e+00> : vector<4x256xf32>
    %83 = tpu.matmul %81, %82, %cst_36 {dimension_numbers = #tpu.dot_dimension_numbers<[1], [0], [0], [1], [0, 0, 1, 1], [], []>} : vector<4x32xbf16>, vector<32x256xbf16>, vector<4x256xf32> -> vector<4x256xf32>
    %84 = arith.addf %50, %83 : vector<4x256xf32>
    %85 = vector.extract_strided_slice %11 {offsets = [0, 32], sizes = [4, 16], strides = [1, 1]} : vector<4x96xbf16> to vector<4x16xbf16>
    %86 = vector.extract_strided_slice %13 {offsets = [0, 32], sizes = [4, 16], strides = [1, 1]} : vector<4x96xbf16> to vector<4x16xbf16>
    %87 = vector.extract_strided_slice %15 {offsets = [0, 64], sizes = [4, 32], strides = [1, 1]} : vector<4x192xbf16> to vector<4x32xbf16>
    %cst_37 = arith.constant dense<0.000000e+00> : vector<4x4xf32>
    %88 = tpu.matmul %85, %86, %cst_37 {dimension_numbers = #tpu.dot_dimension_numbers<[1], [1], [0], [0], [0, 0, 1, 0], [], []>} : vector<4x16xbf16>, vector<4x16xbf16>, vector<4x4xf32> -> vector<4x4xf32>
    %cst_38 = arith.constant 2.500000e-01 : f32
    %89 = vector.broadcast %cst_38 : f32 to vector<4x4xf32>
    %90 = arith.mulf %88, %89 : vector<4x4xf32>
    %c2 = arith.constant 2 : index
    %c0_39 = arith.constant 0 : index
    %c0_40 = arith.constant 0 : index
    %91 = vector.load %arg5[%c2, %c0_39, %c0_40] : memref<6x4x4xf32, #tpu.memory_space<vmem>>, vector<1x4x4xf32>
    %92 = vector.shape_cast %91 : vector<1x4x4xf32> to vector<4x4xf32>
    %93 = arith.addf %90, %92 : vector<4x4xf32>
    %cst_41 = arith.constant dense<0xFF800000> : vector<4xf32>
    %94 = vector.multi_reduction <maximumf>, %93, %cst_41 [1] : vector<4x4xf32> to vector<4xf32>
    %95 = vector.shape_cast %94 : vector<4xf32> to vector<4x1xf32>
    %96 = vector.broadcast %95 : vector<4x1xf32> to vector<4x4xf32>
    %97 = arith.subf %93, %96 : vector<4x4xf32>
    %98 = math.exp %97 : vector<4x4xf32>
    %cst_42 = arith.constant dense<0.000000e+00> : vector<4xf32>
    %99 = vector.multi_reduction <add>, %98, %cst_42 [1] : vector<4x4xf32> to vector<4xf32>
    %100 = vector.shape_cast %99 : vector<4xf32> to vector<4x1xf32>
    %101 = tpu.reciprocal %100 {approx = true} : vector<4x1xf32> -> vector<4x1xf32>
    %102 = vector.broadcast %101 : vector<4x1xf32> to vector<4x4xf32>
    %103 = arith.mulf %98, %102 : vector<4x4xf32>
    %104 = arith.truncf %103 : vector<4x4xf32> to vector<4x4xbf16>
    %cst_43 = arith.constant dense<0.000000e+00> : vector<4x32xf32>
    %105 = tpu.matmul %104, %87, %cst_43 {dimension_numbers = #tpu.dot_dimension_numbers<[1], [0], [0], [1], [0, 0, 1, 1], [], []>} : vector<4x4xbf16>, vector<4x32xbf16>, vector<4x32xf32> -> vector<4x32xf32>
    %cst_44 = arith.constant 3.000000e+00 : f32
    %106 = vector.broadcast %cst_44 : f32 to vector<4x32xf32>
    %107 = arith.addf %105, %106 : vector<4x32xf32>
    %cst_45 = arith.constant 0.000000e+00 : f32
    %cst_46 = arith.constant 6.000000e+00 : f32
    %108 = vector.broadcast %cst_45 : f32 to vector<4x32xf32>
    %109 = arith.maximumf %108, %107 : vector<4x32xf32>
    %110 = vector.broadcast %cst_46 : f32 to vector<4x32xf32>
    %111 = arith.minimumf %110, %109 : vector<4x32xf32>
    %112 = arith.mulf %105, %111 : vector<4x32xf32>
    %cst_47 = arith.constant 0.166666672 : f32
    %113 = vector.broadcast %cst_47 : f32 to vector<4x32xf32>
    %114 = arith.mulf %112, %113 : vector<4x32xf32>
    %115 = arith.truncf %114 : vector<4x32xf32> to vector<4x32xbf16>
    %c64 = arith.constant 64 : index
    %c0_48 = arith.constant 0 : index
    %116 = vector.load %arg6[%c64, %c0_48] : memref<192x256xbf16, #tpu.memory_space<vmem>>, vector<32x256xbf16>
    %cst_49 = arith.constant dense<0.000000e+00> : vector<4x256xf32>
    %117 = tpu.matmul %115, %116, %cst_49 {dimension_numbers = #tpu.dot_dimension_numbers<[1], [0], [0], [1], [0, 0, 1, 1], [], []>} : vector<4x32xbf16>, vector<32x256xbf16>, vector<4x256xf32> -> vector<4x256xf32>
    %118 = arith.addf %84, %117 : vector<4x256xf32>
    %119 = vector.extract_strided_slice %11 {offsets = [0, 48], sizes = [4, 16], strides = [1, 1]} : vector<4x96xbf16> to vector<4x16xbf16>
    %120 = vector.extract_strided_slice %13 {offsets = [0, 48], sizes = [4, 16], strides = [1, 1]} : vector<4x96xbf16> to vector<4x16xbf16>
    %121 = vector.extract_strided_slice %15 {offsets = [0, 96], sizes = [4, 32], strides = [1, 1]} : vector<4x192xbf16> to vector<4x32xbf16>
    %cst_50 = arith.constant dense<0.000000e+00> : vector<4x4xf32>
    %122 = tpu.matmul %119, %120, %cst_50 {dimension_numbers = #tpu.dot_dimension_numbers<[1], [1], [0], [0], [0, 0, 1, 0], [], []>} : vector<4x16xbf16>, vector<4x16xbf16>, vector<4x4xf32> -> vector<4x4xf32>
    %cst_51 = arith.constant 2.500000e-01 : f32
    %123 = vector.broadcast %cst_51 : f32 to vector<4x4xf32>
    %124 = arith.mulf %122, %123 : vector<4x4xf32>
    %c3 = arith.constant 3 : index
    %c0_52 = arith.constant 0 : index
    %c0_53 = arith.constant 0 : index
    %125 = vector.load %arg5[%c3, %c0_52, %c0_53] : memref<6x4x4xf32, #tpu.memory_space<vmem>>, vector<1x4x4xf32>
    %126 = vector.shape_cast %125 : vector<1x4x4xf32> to vector<4x4xf32>
    %127 = arith.addf %124, %126 : vector<4x4xf32>
    %cst_54 = arith.constant dense<0xFF800000> : vector<4xf32>
    %128 = vector.multi_reduction <maximumf>, %127, %cst_54 [1] : vector<4x4xf32> to vector<4xf32>
    %129 = vector.shape_cast %128 : vector<4xf32> to vector<4x1xf32>
    %130 = vector.broadcast %129 : vector<4x1xf32> to vector<4x4xf32>
    %131 = arith.subf %127, %130 : vector<4x4xf32>
    %132 = math.exp %131 : vector<4x4xf32>
    %cst_55 = arith.constant dense<0.000000e+00> : vector<4xf32>
    %133 = vector.multi_reduction <add>, %132, %cst_55 [1] : vector<4x4xf32> to vector<4xf32>
    %134 = vector.shape_cast %133 : vector<4xf32> to vector<4x1xf32>
    %135 = tpu.reciprocal %134 {approx = true} : vector<4x1xf32> -> vector<4x1xf32>
    %136 = vector.broadcast %135 : vector<4x1xf32> to vector<4x4xf32>
    %137 = arith.mulf %132, %136 : vector<4x4xf32>
    %138 = arith.truncf %137 : vector<4x4xf32> to vector<4x4xbf16>
    %cst_56 = arith.constant dense<0.000000e+00> : vector<4x32xf32>
    %139 = tpu.matmul %138, %121, %cst_56 {dimension_numbers = #tpu.dot_dimension_numbers<[1], [0], [0], [1], [0, 0, 1, 1], [], []>} : vector<4x4xbf16>, vector<4x32xbf16>, vector<4x32xf32> -> vector<4x32xf32>
    %cst_57 = arith.constant 3.000000e+00 : f32
    %140 = vector.broadcast %cst_57 : f32 to vector<4x32xf32>
    %141 = arith.addf %139, %140 : vector<4x32xf32>
    %cst_58 = arith.constant 0.000000e+00 : f32
    %cst_59 = arith.constant 6.000000e+00 : f32
    %142 = vector.broadcast %cst_58 : f32 to vector<4x32xf32>
    %143 = arith.maximumf %142, %141 : vector<4x32xf32>
    %144 = vector.broadcast %cst_59 : f32 to vector<4x32xf32>
    %145 = arith.minimumf %144, %143 : vector<4x32xf32>
    %146 = arith.mulf %139, %145 : vector<4x32xf32>
    %cst_60 = arith.constant 0.166666672 : f32
    %147 = vector.broadcast %cst_60 : f32 to vector<4x32xf32>
    %148 = arith.mulf %146, %147 : vector<4x32xf32>
    %149 = arith.truncf %148 : vector<4x32xf32> to vector<4x32xbf16>
    %c96 = arith.constant 96 : index
    %c0_61 = arith.constant 0 : index
    %150 = vector.load %arg6[%c96, %c0_61] : memref<192x256xbf16, #tpu.memory_space<vmem>>, vector<32x256xbf16>
    %cst_62 = arith.constant dense<0.000000e+00> : vector<4x256xf32>
    %151 = tpu.matmul %149, %150, %cst_62 {dimension_numbers = #tpu.dot_dimension_numbers<[1], [0], [0], [1], [0, 0, 1, 1], [], []>} : vector<4x32xbf16>, vector<32x256xbf16>, vector<4x256xf32> -> vector<4x256xf32>
    %152 = arith.addf %118, %151 : vector<4x256xf32>
    %153 = vector.extract_strided_slice %11 {offsets = [0, 64], sizes = [4, 16], strides = [1, 1]} : vector<4x96xbf16> to vector<4x16xbf16>
    %154 = vector.extract_strided_slice %13 {offsets = [0, 64], sizes = [4, 16], strides = [1, 1]} : vector<4x96xbf16> to vector<4x16xbf16>
    %155 = vector.extract_strided_slice %15 {offsets = [0, 128], sizes = [4, 32], strides = [1, 1]} : vector<4x192xbf16> to vector<4x32xbf16>
    %cst_63 = arith.constant dense<0.000000e+00> : vector<4x4xf32>
    %156 = tpu.matmul %153, %154, %cst_63 {dimension_numbers = #tpu.dot_dimension_numbers<[1], [1], [0], [0], [0, 0, 1, 0], [], []>} : vector<4x16xbf16>, vector<4x16xbf16>, vector<4x4xf32> -> vector<4x4xf32>
    %cst_64 = arith.constant 2.500000e-01 : f32
    %157 = vector.broadcast %cst_64 : f32 to vector<4x4xf32>
    %158 = arith.mulf %156, %157 : vector<4x4xf32>
    %c4 = arith.constant 4 : index
    %c0_65 = arith.constant 0 : index
    %c0_66 = arith.constant 0 : index
    %159 = vector.load %arg5[%c4, %c0_65, %c0_66] : memref<6x4x4xf32, #tpu.memory_space<vmem>>, vector<1x4x4xf32>
    %160 = vector.shape_cast %159 : vector<1x4x4xf32> to vector<4x4xf32>
    %161 = arith.addf %158, %160 : vector<4x4xf32>
    %cst_67 = arith.constant dense<0xFF800000> : vector<4xf32>
    %162 = vector.multi_reduction <maximumf>, %161, %cst_67 [1] : vector<4x4xf32> to vector<4xf32>
    %163 = vector.shape_cast %162 : vector<4xf32> to vector<4x1xf32>
    %164 = vector.broadcast %163 : vector<4x1xf32> to vector<4x4xf32>
    %165 = arith.subf %161, %164 : vector<4x4xf32>
    %166 = math.exp %165 : vector<4x4xf32>
    %cst_68 = arith.constant dense<0.000000e+00> : vector<4xf32>
    %167 = vector.multi_reduction <add>, %166, %cst_68 [1] : vector<4x4xf32> to vector<4xf32>
    %168 = vector.shape_cast %167 : vector<4xf32> to vector<4x1xf32>
    %169 = tpu.reciprocal %168 {approx = true} : vector<4x1xf32> -> vector<4x1xf32>
    %170 = vector.broadcast %169 : vector<4x1xf32> to vector<4x4xf32>
    %171 = arith.mulf %166, %170 : vector<4x4xf32>
    %172 = arith.truncf %171 : vector<4x4xf32> to vector<4x4xbf16>
    %cst_69 = arith.constant dense<0.000000e+00> : vector<4x32xf32>
    %173 = tpu.matmul %172, %155, %cst_69 {dimension_numbers = #tpu.dot_dimension_numbers<[1], [0], [0], [1], [0, 0, 1, 1], [], []>} : vector<4x4xbf16>, vector<4x32xbf16>, vector<4x32xf32> -> vector<4x32xf32>
    %cst_70 = arith.constant 3.000000e+00 : f32
    %174 = vector.broadcast %cst_70 : f32 to vector<4x32xf32>
    %175 = arith.addf %173, %174 : vector<4x32xf32>
    %cst_71 = arith.constant 0.000000e+00 : f32
    %cst_72 = arith.constant 6.000000e+00 : f32
    %176 = vector.broadcast %cst_71 : f32 to vector<4x32xf32>
    %177 = arith.maximumf %176, %175 : vector<4x32xf32>
    %178 = vector.broadcast %cst_72 : f32 to vector<4x32xf32>
    %179 = arith.minimumf %178, %177 : vector<4x32xf32>
    %180 = arith.mulf %173, %179 : vector<4x32xf32>
    %cst_73 = arith.constant 0.166666672 : f32
    %181 = vector.broadcast %cst_73 : f32 to vector<4x32xf32>
    %182 = arith.mulf %180, %181 : vector<4x32xf32>
    %183 = arith.truncf %182 : vector<4x32xf32> to vector<4x32xbf16>
    %c128 = arith.constant 128 : index
    %c0_74 = arith.constant 0 : index
    %184 = vector.load %arg6[%c128, %c0_74] : memref<192x256xbf16, #tpu.memory_space<vmem>>, vector<32x256xbf16>
    %cst_75 = arith.constant dense<0.000000e+00> : vector<4x256xf32>
    %185 = tpu.matmul %183, %184, %cst_75 {dimension_numbers = #tpu.dot_dimension_numbers<[1], [0], [0], [1], [0, 0, 1, 1], [], []>} : vector<4x32xbf16>, vector<32x256xbf16>, vector<4x256xf32> -> vector<4x256xf32>
    %186 = arith.addf %152, %185 : vector<4x256xf32>
    %187 = vector.extract_strided_slice %11 {offsets = [0, 80], sizes = [4, 16], strides = [1, 1]} : vector<4x96xbf16> to vector<4x16xbf16>
    %188 = vector.extract_strided_slice %13 {offsets = [0, 80], sizes = [4, 16], strides = [1, 1]} : vector<4x96xbf16> to vector<4x16xbf16>
    %189 = vector.extract_strided_slice %15 {offsets = [0, 160], sizes = [4, 32], strides = [1, 1]} : vector<4x192xbf16> to vector<4x32xbf16>
    %cst_76 = arith.constant dense<0.000000e+00> : vector<4x4xf32>
    %190 = tpu.matmul %187, %188, %cst_76 {dimension_numbers = #tpu.dot_dimension_numbers<[1], [1], [0], [0], [0, 0, 1, 0], [], []>} : vector<4x16xbf16>, vector<4x16xbf16>, vector<4x4xf32> -> vector<4x4xf32>
    %cst_77 = arith.constant 2.500000e-01 : f32
    %191 = vector.broadcast %cst_77 : f32 to vector<4x4xf32>
    %192 = arith.mulf %190, %191 : vector<4x4xf32>
    %c5 = arith.constant 5 : index
    %c0_78 = arith.constant 0 : index
    %c0_79 = arith.constant 0 : index
    %193 = vector.load %arg5[%c5, %c0_78, %c0_79] : memref<6x4x4xf32, #tpu.memory_space<vmem>>, vector<1x4x4xf32>
    %194 = vector.shape_cast %193 : vector<1x4x4xf32> to vector<4x4xf32>
    %195 = arith.addf %192, %194 : vector<4x4xf32>
    %cst_80 = arith.constant dense<0xFF800000> : vector<4xf32>
    %196 = vector.multi_reduction <maximumf>, %195, %cst_80 [1] : vector<4x4xf32> to vector<4xf32>
    %197 = vector.shape_cast %196 : vector<4xf32> to vector<4x1xf32>
    %198 = vector.broadcast %197 : vector<4x1xf32> to vector<4x4xf32>
    %199 = arith.subf %195, %198 : vector<4x4xf32>
    %200 = math.exp %199 : vector<4x4xf32>
    %cst_81 = arith.constant dense<0.000000e+00> : vector<4xf32>
    %201 = vector.multi_reduction <add>, %200, %cst_81 [1] : vector<4x4xf32> to vector<4xf32>
    %202 = vector.shape_cast %201 : vector<4xf32> to vector<4x1xf32>
    %203 = tpu.reciprocal %202 {approx = true} : vector<4x1xf32> -> vector<4x1xf32>
    %204 = vector.broadcast %203 : vector<4x1xf32> to vector<4x4xf32>
    %205 = arith.mulf %200, %204 : vector<4x4xf32>
    %206 = arith.truncf %205 : vector<4x4xf32> to vector<4x4xbf16>
    %cst_82 = arith.constant dense<0.000000e+00> : vector<4x32xf32>
    %207 = tpu.matmul %206, %189, %cst_82 {dimension_numbers = #tpu.dot_dimension_numbers<[1], [0], [0], [1], [0, 0, 1, 1], [], []>} : vector<4x4xbf16>, vector<4x32xbf16>, vector<4x32xf32> -> vector<4x32xf32>
    %cst_83 = arith.constant 3.000000e+00 : f32
    %208 = vector.broadcast %cst_83 : f32 to vector<4x32xf32>
    %209 = arith.addf %207, %208 : vector<4x32xf32>
    %cst_84 = arith.constant 0.000000e+00 : f32
    %cst_85 = arith.constant 6.000000e+00 : f32
    %210 = vector.broadcast %cst_84 : f32 to vector<4x32xf32>
    %211 = arith.maximumf %210, %209 : vector<4x32xf32>
    %212 = vector.broadcast %cst_85 : f32 to vector<4x32xf32>
    %213 = arith.minimumf %212, %211 : vector<4x32xf32>
    %214 = arith.mulf %207, %213 : vector<4x32xf32>
    %cst_86 = arith.constant 0.166666672 : f32
    %215 = vector.broadcast %cst_86 : f32 to vector<4x32xf32>
    %216 = arith.mulf %214, %215 : vector<4x32xf32>
    %217 = arith.truncf %216 : vector<4x32xf32> to vector<4x32xbf16>
    %c160 = arith.constant 160 : index
    %c0_87 = arith.constant 0 : index
    %218 = vector.load %arg6[%c160, %c0_87] : memref<192x256xbf16, #tpu.memory_space<vmem>>, vector<32x256xbf16>
    %cst_88 = arith.constant dense<0.000000e+00> : vector<4x256xf32>
    %219 = tpu.matmul %217, %218, %cst_88 {dimension_numbers = #tpu.dot_dimension_numbers<[1], [0], [0], [1], [0, 0, 1, 1], [], []>} : vector<4x32xbf16>, vector<32x256xbf16>, vector<4x256xf32> -> vector<4x256xf32>
    %220 = arith.addf %186, %219 : vector<4x256xf32>
    %c0_89 = arith.constant 0 : index
    %c0_90 = arith.constant 0 : index
    %221 = vector.load %arg7[%c0_89, %c0_90] : memref<1x256xf32, #tpu.memory_space<vmem>>, vector<1x256xf32>
    %222 = vector.broadcast %221 : vector<1x256xf32> to vector<4x256xf32>
    %223 = arith.mulf %220, %222 : vector<4x256xf32>
    %c0_91 = arith.constant 0 : index
    %c0_92 = arith.constant 0 : index
    %224 = vector.load %arg8[%c0_91, %c0_92] : memref<1x256xf32, #tpu.memory_space<vmem>>, vector<1x256xf32>
    %225 = vector.broadcast %224 : vector<1x256xf32> to vector<4x256xf32>
    %226 = arith.addf %223, %225 : vector<4x256xf32>
    %227 = arith.extf %1 : vector<4x256xbf16> to vector<4x256xf32>
    %228 = arith.addf %226, %227 : vector<4x256xf32>
    %229 = arith.truncf %228 : vector<4x256xf32> to vector<4x256xbf16>
    %c0_93 = arith.constant 0 : index
    %c0_94 = arith.constant 0 : index
    %230 = vector.load %arg9[%c0_93, %c0_94] : memref<256x384xbf16, #tpu.memory_space<vmem>>, vector<256x384xbf16>
    %cst_95 = arith.constant dense<0.000000e+00> : vector<4x384xf32>
    %231 = tpu.matmul %229, %230, %cst_95 {dimension_numbers = #tpu.dot_dimension_numbers<[1], [0], [0], [1], [0, 0, 1, 1], [], []>} : vector<4x256xbf16>, vector<256x384xbf16>, vector<4x384xf32> -> vector<4x384xf32>
    %c0_96 = arith.constant 0 : index
    %c0_97 = arith.constant 0 : index
    %232 = vector.load %arg10[%c0_96, %c0_97] : memref<1x384xf32, #tpu.memory_space<vmem>>, vector<1x384xf32>
    %233 = vector.broadcast %232 : vector<1x384xf32> to vector<4x384xf32>
    %234 = arith.mulf %231, %233 : vector<4x384xf32>
    %c0_98 = arith.constant 0 : index
    %c0_99 = arith.constant 0 : index
    %235 = vector.load %arg11[%c0_98, %c0_99] : memref<1x384xf32, #tpu.memory_space<vmem>>, vector<1x384xf32>
    %236 = vector.broadcast %235 : vector<1x384xf32> to vector<4x384xf32>
    %237 = arith.addf %234, %236 : vector<4x384xf32>
    %cst_100 = arith.constant 3.000000e+00 : f32
    %238 = vector.broadcast %cst_100 : f32 to vector<4x384xf32>
    %239 = arith.addf %237, %238 : vector<4x384xf32>
    %cst_101 = arith.constant 0.000000e+00 : f32
    %cst_102 = arith.constant 6.000000e+00 : f32
    %240 = vector.broadcast %cst_101 : f32 to vector<4x384xf32>
    %241 = arith.maximumf %240, %239 : vector<4x384xf32>
    %242 = vector.broadcast %cst_102 : f32 to vector<4x384xf32>
    %243 = arith.minimumf %242, %241 : vector<4x384xf32>
    %244 = arith.mulf %237, %243 : vector<4x384xf32>
    %cst_103 = arith.constant 0.166666672 : f32
    %245 = vector.broadcast %cst_103 : f32 to vector<4x384xf32>
    %246 = arith.mulf %244, %245 : vector<4x384xf32>
    %247 = arith.truncf %246 : vector<4x384xf32> to vector<4x384xbf16>
    %c0_104 = arith.constant 0 : index
    %c0_105 = arith.constant 0 : index
    %248 = vector.load %arg12[%c0_104, %c0_105] : memref<384x256xbf16, #tpu.memory_space<vmem>>, vector<384x256xbf16>
    %cst_106 = arith.constant dense<0.000000e+00> : vector<4x256xf32>
    %249 = tpu.matmul %247, %248, %cst_106 {dimension_numbers = #tpu.dot_dimension_numbers<[1], [0], [0], [1], [0, 0, 1, 1], [], []>} : vector<4x384xbf16>, vector<384x256xbf16>, vector<4x256xf32> -> vector<4x256xf32>
    %c0_107 = arith.constant 0 : index
    %c0_108 = arith.constant 0 : index
    %250 = vector.load %arg13[%c0_107, %c0_108] : memref<1x256xf32, #tpu.memory_space<vmem>>, vector<1x256xf32>
    %251 = vector.broadcast %250 : vector<1x256xf32> to vector<4x256xf32>
    %252 = arith.mulf %249, %251 : vector<4x256xf32>
    %c0_109 = arith.constant 0 : index
    %c0_110 = arith.constant 0 : index
    %253 = vector.load %arg14[%c0_109, %c0_110] : memref<1x256xf32, #tpu.memory_space<vmem>>, vector<1x256xf32>
    %254 = vector.broadcast %253 : vector<1x256xf32> to vector<4x256xf32>
    %255 = arith.addf %252, %254 : vector<4x256xf32>
    %256 = arith.addf %255, %228 : vector<4x256xf32>
    %257 = arith.truncf %256 : vector<4x256xf32> to vector<4x256xbf16>
    %c0_111 = arith.constant 0 : index
    %c0_112 = arith.constant 0 : index
    %c0_113 = arith.constant 0 : index
    %258 = vector.load %arg15[%c0_111, %c0_112, %c0_113] : memref<1x4x256xbf16, #tpu.memory_space<vmem>>, vector<1x4x256xbf16>
    %259 = vector.shape_cast %258 : vector<1x4x256xbf16> to vector<4x256xbf16>
    %260 = vector.shape_cast %257 : vector<4x256xbf16> to vector<1x4x256xbf16>
    tpu.vector_store %arg15[%c0_111, %c0_112, %c0_113], %260 {strides = array<i32>} : memref<1x4x256xbf16, #tpu.memory_space<vmem>>, vector<1x4x256xbf16>,
    return
  }
  func.func @transform_0(%arg0: i32) -> (i32, i32, i32) {
    %c0_i32 = arith.constant 0 : i32
    %c0_i32_0 = arith.constant 0 : i32
    %c0_i32_1 = arith.constant 0 : i32
    return %arg0, %c0_i32, %c0_i32_0 : i32, i32, i32
  }
  func.func @transform_1(%arg0: i32) -> (i32, i32) {
    %c0_i32 = arith.constant 0 : i32
    %c0_i32_0 = arith.constant 0 : i32
    %c0_i32_1 = arith.constant 0 : i32
    return %c0_i32, %c0_i32_0 : i32, i32
  }
  func.func @transform_2(%arg0: i32) -> (i32, i32) {
    %c0_i32 = arith.constant 0 : i32
    %c0_i32_0 = arith.constant 0 : i32
    %c0_i32_1 = arith.constant 0 : i32
    return %c0_i32, %c0_i32_0 : i32, i32
  }
  func.func @transform_3(%arg0: i32) -> (i32, i32) {
    %c0_i32 = arith.constant 0 : i32
    %c0_i32_0 = arith.constant 0 : i32
    %c0_i32_1 = arith.constant 0 : i32
    return %c0_i32, %c0_i32_0 : i32, i32
  }
  func.func @transform_4(%arg0: i32) -> (i32, i32, i32) {
    %c0_i32 = arith.constant 0 : i32
    %c0_i32_0 = arith.constant 0 : i32
    %c0_i32_1 = arith.constant 0 : i32
    %c0_i32_2 = arith.constant 0 : i32
    return %c0_i32, %c0_i32_0, %c0_i32_1 : i32, i32, i32
  }
  func.func @transform_5(%arg0: i32) -> (i32, i32) {
    %c0_i32 = arith.constant 0 : i32
    %c0_i32_0 = arith.constant 0 : i32
    %c0_i32_1 = arith.constant 0 : i32
    return %c0_i32, %c0_i32_0 : i32, i32
  }
  func.func @transform_6(%arg0: i32) -> (i32, i32) {
    %c0_i32 = arith.constant 0 : i32
    %c0_i32_0 = arith.constant 0 : i32
    %c0_i32_1 = arith.constant 0 : i32
    return %c0_i32, %c0_i32_0 : i32, i32
  }
  func.func @transform_7(%arg0: i32) -> (i32, i32) {
    %c0_i32 = arith.constant 0 : i32
    %c0_i32_0 = arith.constant 0 : i32
    %c0_i32_1 = arith.constant 0 : i32
    return %c0_i32, %c0_i32_0 : i32, i32
  }
  func.func @transform_8(%arg0: i32) -> (i32, i32) {
    %c0_i32 = arith.constant 0 : i32
    %c0_i32_0 = arith.constant 0 : i32
    %c0_i32_1 = arith.constant 0 : i32
    return %c0_i32, %c0_i32_0 : i32, i32
  }
  func.func @transform_9(%arg0: i32) -> (i32, i32) {
    %c0_i32 = arith.constant 0 : i32
    %c0_i32_0 = arith.constant 0 : i32
    %c0_i32_1 = arith.constant 0 : i32
    return %c0_i32, %c0_i32_0 : i32, i32
  }
  func.func @transform_10(%arg0: i32) -> (i32, i32) {
    %c0_i32 = arith.constant 0 : i32
    %c0_i32_0 = arith.constant 0 : i32
    %c0_i32_1 = arith.constant 0 : i32
    return %c0_i32, %c0_i32_0 : i32, i32
  }
  func.func @transform_11(%arg0: i32) -> (i32, i32) {
    %c0_i32 = arith.constant 0 : i32
    %c0_i32_0 = arith.constant 0 : i32
    %c0_i32_1 = arith.constant 0 : i32
    return %c0_i32, %c0_i32_0 : i32, i32
  }
  func.func @transform_12(%arg0: i32) -> (i32, i32) {
    %c0_i32 = arith.constant 0 : i32
    %c0_i32_0 = arith.constant 0 : i32
    %c0_i32_1 = arith.constant 0 : i32
    return %c0_i32, %c0_i32_0 : i32, i32
  }
  func.func @transform_13(%arg0: i32) -> (i32, i32) {
    %c0_i32 = arith.constant 0 : i32
    %c0_i32_0 = arith.constant 0 : i32
    %c0_i32_1 = arith.constant 0 : i32
    return %c0_i32, %c0_i32_0 : i32, i32
  }
  func.func @transform_14(%arg0: i32) -> (i32, i32, i32) {
    %c0_i32 = arith.constant 0 : i32
    %c0_i32_0 = arith.constant 0 : i32
    %c0_i32_1 = arith.constant 0 : i32
    return %arg0, %c0_i32, %c0_i32_0 : i32, i32, i32
  }
}

</mosaic_0001>

<bundles_post_ra>
// kernel: _lambda_.5
= control target key start
LH: loop header
LB: loop body
LE: loop exit
PB: predicated region body
PF: predicated region fallthrough
CT: control target
= control target key end

     0   :  { %s3790_s0 = inlined_call_operand.vmem [shape: bf16[2,64,128], index: 0, kind: input, shape index: {}]   ;;  %s3791_s1 = inlined_call_operand.vmem [shape: bf16[128,128], index: 1, kind: input, shape index: {}]   ;;  %s3792_s2 = inlined_call_operand.hbm [shape: f32[1,128], index: 2, kind: input, shape index: {}]   ;;  %s3793_s3 = inlined_call_operand.hbm [shape: f32[1,128], index: 3, kind: input, shape index: {}]   ;;  %s3794_s4 = inlined_call_operand.vmem [shape: f32[2,64,64], index: 4, kind: input, shape index: {}]   ;;  %s3795_s5 = inlined_call_operand.vmem [shape: bf16[64,128], index: 5, kind: input, shape index: {}]   ;;  %s3796_s6 = inlined_call_operand.hbm [shape: f32[1,128], index: 6, kind: input, shape index: {}]   ;;  %s3797_s7 = inlined_call_operand.hbm [shape: f32[1,128], index: 7, kind: input, shape index: {}]   ;;  %s3798_s8 = inlined_call_operand.vmem [shape: bf16[128,128], index: 8, kind: input, shape index: {}]   ;;  %s3799_s9 = inlined_call_operand.hbm [shape: f32[1,128], index: 9, kind: input, shape index: {}]   ;;  %s3800_s10 = inlined_call_operand.hbm [shape: f32[1,128], index: 10, kind: input, shape index: {}]   ;;  %s3801_s11 = inlined_call_operand.vmem [shape: bf16[128,128], index: 11, kind: input, shape index: {}]   ;;  %s3802_s12 = inlined_call_operand.hbm [shape: f32[1,128], index: 12, kind: input, shape index: {}]   ;;  %s3803_s13 = inlined_call_operand.hbm [shape: f32[1,128], index: 13, kind: input, shape index: {}]   ;;  %s3804_s14 = inlined_call_operand.vmem [shape: bf16[2,64,128], index: 14, kind: output, shape index: {}]  }
   0x1   :  { %3808 = sst [smem:[#allocation21_spill]] %s3804_s14 }
   0x2   :  { %19 = vsyncpa [#allocation3], 0 }
   0x3   :  { %20 = vsyncpa [#allocation5], 0 }
   0x4   :  { %21 = vsyncpa [#allocation8], 0 }
   0x5   :  { %22 = vsyncpa [#allocation11], 0 }
   0x6   :  { %23 = vsyncpa [#allocation14], 0  ;;  %s3187_s29 = smov 0  }
   0x7 LB: > { %3809 = sst [smem:[#allocation20_spill]] %s3097_s29  ;;  %s3099_s30 = smov [#allocation4]   ;;  %s3097_s29 = sphi %s3187_s29, %s29_s29  }
   0x8   : > { %s386_s15 = sshll.u32 %s3099_s30, 4  ;;  %s3193_s16 = sadd.s32 4294967295, %s3097_s29   ;;  %s3198_s15 = int_to_ptr.vmem [resolvable:$true] %s386_s15 }
   0x9   : > { %p2255_p0 = scmp.ge.s32.totalorder %s3097_s29, 1  ;;  %p359_p1 = scmp.lt.s32.totalorder %s3097_s29, 3 }
   0xa   : > { %p3806_p2 = scmp.eq.s32.totalorder %s3193_s16, 0  ;;  %s3100_s18 = smov [#allocation7]  }
   0xb   : > { %p3200_p3 = pnand %p2255_p0, %p359_p1  ;;  %s414_s19 = sshll.u32 %s3100_s18, 4  ;;  %s3206_s19 = int_to_ptr.vmem [resolvable:$true] %s414_s19 }
   0xc   : > { %s3101_s20 = smov [#allocation10]   ;;  %s3102_s23 = smov [#allocation2]  }
   0xd   : > { %s3810_s17 = scalar_select %p3200_p3, 1, 0 }
   0xe   : > { %p2681_p4 = pneg %p3200_p3  ;;  %s439_s21 = sshll.u32 %s3101_s20, 4  ;;  %s3214_s21 = int_to_ptr.vmem [resolvable:$true] %s439_s21 }
   0xf   : > { %s375_s24 = sshll.u32 %s3102_s23, 4  ;;  %s2847_s27 = scalar_lea.hbm %s3793_s3, 16  ;;  %s3216_s24 = int_to_ptr.vmem [resolvable:$true] %s375_s24 }
  0x10   : > { %p3210_p5 = pnand %p3806_p2, %p2681_p4  ;;  %p2848_p6 = scmp.ne.s32.totalorder %s3793_s3, %s2847_s27 }
  0x11   : > { %p2854_p10 = scmp.lt.u32.totalorder %s2847_s27, %s3793_s3 }
  0x12   : > { %p3226_p7 = pneg %p3210_p5 }
  0x14   : > { %p2850_p8 = pnand %p3226_p7, %p2848_p6 }
  0x16   : > { %p2851_p9 = pneg %p2850_p8 }
  0x18   : > { %p2856_p11 = pnand %p2854_p10, %p2851_p9 }
  0x1a   : > { %2859 = shalt.err (!%p2856_p11)
}
  0x1b   : > { %s2860_s25 = scalar_lea.vmem %s3198_s15, 16  ;;  %s2867_s26 = scalar_lea.vmem %s3198_s15, 32 }
  0x1c   : > { %p2861_p12 = scmp.ne.s32.totalorder %s3198_s15, %s2860_s25  ;;  %p2868_p1 = scmp.lt.s32.totalorder %s3198_s15, %s3198_s15 }
  0x1d   : > { %p2869_p4 = scmp.lt.s32.totalorder %s2867_s26, %s2860_s25 }
  0x1e   : > { %p2863_p13 = pnand %p2861_p12, %p3226_p7 }
  0x1f   : > { %p2870_p6 = por %p2869_p4, %p2868_p1 }
  0x20   : > { %p2864_p0 = pneg %p2863_p13 }
  0x22   : > { %p2871_p8 = pnand %p2870_p6, %p2864_p0 }
  0x24   : > { %2874 = shalt.err (!%p2871_p8)
}
  0x25   : > { %2687 = dma.hbm_to_vmem [thread:$0]  (!%p3210_p5), %s3793_s3, 16, %s3198_s15, [#allocation5]  }
  0x26   : > { %s2875_s23 = scalar_lea.hbm %s3797_s7, 16 }
  0x27   : > { %p2876_p9 = scmp.ne.s32.totalorder %s3797_s7, %s2875_s23  ;;  %p2882_p12 = scmp.lt.u32.totalorder %s2875_s23, %s3797_s7 }
  0x29   : > { %p2878_p10 = pnand %p2876_p9, %p3226_p7 }
  0x2b   : > { %p2879_p11 = pneg %p2878_p10 }
  0x2d   : > { %p2884_p13 = pnand %p2882_p12, %p2879_p11 }
  0x2f   : > { %2887 = shalt.err (!%p2884_p13)
}
  0x30   : > { %s2888_s15 = scalar_lea.vmem %s3206_s19, 16  ;;  %s2895_s14 = scalar_lea.vmem %s3206_s19, 32 }
  0x31   : > { %p2889_p0 = scmp.ne.s32.totalorder %s3206_s19, %s2888_s15  ;;  %p2896_p6 = scmp.lt.s32.totalorder %s3206_s19, %s3206_s19 }
  0x32   : > { %p2897_p8 = scmp.lt.s32.totalorder %s2895_s14, %s2888_s15 }
  0x33   : > { %p2891_p1 = pnand %p2889_p0, %p3226_p7 }
  0x34   : > { %p2898_p9 = por %p2897_p8, %p2896_p6 }
  0x35   : > { %p2892_p4 = pneg %p2891_p1 }
  0x37   : > { %p2899_p10 = pnand %p2898_p9, %p2892_p4 }
  0x39   : > { %2902 = shalt.err (!%p2899_p10)
}
  0x3a   : > { %2693 = dma.hbm_to_vmem [thread:$0]  (!%p3210_p5), %s3797_s7, 16, %s3206_s19, [#allocation8]  }
  0x3b   : > { %s2903_s20 = scalar_lea.hbm %s3800_s10, 16 }
  0x3c   : > { %p2904_p11 = scmp.ne.s32.totalorder %s3800_s10, %s2903_s20  ;;  %p2910_p0 = scmp.lt.u32.totalorder %s2903_s20, %s3800_s10 }
  0x3e   : > { %p2906_p12 = pnand %p2904_p11, %p3226_p7 }
  0x40   : > { %p2907_p13 = pneg %p2906_p12 }
  0x42   : > { %p2912_p1 = pnand %p2910_p0, %p2907_p13 }
  0x44   : > { %2915 = shalt.err (!%p2912_p1)
}
  0x45   : > { %s2916_s19 = scalar_lea.vmem %s3214_s21, 16  ;;  %s2923_s14 = scalar_lea.vmem %s3214_s21, 32 }
  0x46   : > { %p2917_p4 = scmp.ne.s32.totalorder %s3214_s21, %s2916_s19  ;;  %p2924_p9 = scmp.lt.s32.totalorder %s3214_s21, %s3214_s21 }
  0x47   : > { %p2925_p10 = scmp.lt.s32.totalorder %s2923_s14, %s2916_s19 }
  0x48   : > { %p2919_p6 = pnand %p2917_p4, %p3226_p7 }
  0x49   : > { %p2926_p11 = por %p2925_p10, %p2924_p9 }
  0x4a   : > { %p2920_p8 = pneg %p2919_p6 }
  0x4c   : > { %p2927_p12 = pnand %p2926_p11, %p2920_p8 }
  0x4e   : > { %2930 = shalt.err (!%p2927_p12)
}
  0x4f   : > { %2699 = dma.hbm_to_vmem [thread:$0]  (!%p3210_p5), %s3800_s10, 16, %s3214_s21, [#allocation11]  }
  0x50   : > { %s2931_s20 = scalar_lea.hbm %s3792_s2, 16 }
  0x51   : > { %p2932_p13 = scmp.ne.s32.totalorder %s3792_s2, %s2931_s20  ;;  %p2938_p4 = scmp.lt.u32.totalorder %s2931_s20, %s3792_s2 }
  0x53   : > { %p2934_p0 = pnand %p2932_p13, %p3226_p7 }
  0x55   : > { %p2935_p1 = pneg %p2934_p0 }
  0x57   : > { %p2940_p6 = pnand %p2938_p4, %p2935_p1 }
  0x59   : > { %2943 = shalt.err (!%p2940_p6)
}
  0x5a   : > { %s2944_s21 = scalar_lea.vmem %s3216_s24, 16  ;;  %s2951_s19 = scalar_lea.vmem %s3216_s24, 32 }
  0x5b   : > { %p2945_p8 = scmp.ne.s32.totalorder %s3216_s24, %s2944_s21  ;;  %p2952_p11 = scmp.lt.s32.totalorder %s3216_s24, %s3216_s24 }
  0x5c   : > { %p2953_p12 = scmp.lt.s32.totalorder %s2951_s19, %s2944_s21 }
  0x5d   : > { %p2947_p9 = pnand %p2945_p8, %p3226_p7 }
  0x5e   : > { %p2954_p13 = por %p2953_p12, %p2952_p11 }
  0x5f   : > { %p2948_p10 = pneg %p2947_p9 }
  0x61   : > { %p2955_p0 = pnand %p2954_p13, %p2948_p10 }
  0x63   : > { %2958 = shalt.err (!%p2955_p0)
}
  0x64   : > { %2684 = dma.hbm_to_vmem [thread:$0]  (!%p3210_p5), %s3792_s2, 16, %s3216_s24, [#allocation3]  }
  0x65   : > { %s3103_s27 = smov [#allocation6]   ;;  %s3104_s30 = smov [#allocation9]  }
  0x66   : > { %s403_s28 = sshll.u32 %s3103_s27, 4  ;;  %s428_s20 = sshll.u32 %s3104_s30, 4  ;;  %s404_s28 = int_to_ptr.vmem [resolvable:$true] %s403_s28  ;;  %s429_s20 = int_to_ptr.vmem [resolvable:$true] %s428_s20 }
  0x67   : > { %s2959_s26 = scalar_lea.hbm %s3796_s6, 16 }
  0x68   : > { %p2960_p1 = scmp.ne.s32.totalorder %s3796_s6, %s2959_s26  ;;  %p2966_p8 = scmp.lt.u32.totalorder %s2959_s26, %s3796_s6 }
  0x6a   : > { %p2962_p4 = pnand %p2960_p1, %p3226_p7 }
  0x6c   : > { %p2963_p6 = pneg %p2962_p4 }
  0x6e   : > { %p2968_p9 = pnand %p2966_p8, %p2963_p6 }
  0x70   : > { %2971 = shalt.err (!%p2968_p9)
}
  0x71   : > { %s2972_s24 = scalar_lea.vmem %s404_s28, 16  ;;  %s2979_s29 = scalar_lea.vmem %s404_s28, 32 }
  0x72   : > { %p2973_p10 = scmp.ne.s32.totalorder %s404_s28, %s2972_s24  ;;  %p2980_p13 = scmp.lt.s32.totalorder %s404_s28, %s404_s28 }
  0x73   : > { %p2981_p0 = scmp.lt.s32.totalorder %s2979_s29, %s2972_s24 }
  0x74   : > { %p2975_p11 = pnand %p2973_p10, %p3226_p7 }
  0x75   : > { %p2982_p2 = por %p2981_p0, %p2980_p13 }
  0x76   : > { %p2976_p12 = pneg %p2975_p11 }
  0x78   : > { %p2983_p3 = pnand %p2982_p2, %p2976_p12 }
  0x7a   : > { %2986 = shalt.err (!%p2983_p3)
}
  0x7b   : > { %2690 = dma.hbm_to_vmem [thread:$0]  (!%p3210_p5), %s3796_s6, 16, %s404_s28, [#allocation5]  }
  0x7c   : > { %s2987_s26 = scalar_lea.hbm %s3799_s9, 16 }
  0x7d   : > { %p2988_p1 = scmp.ne.s32.totalorder %s3799_s9, %s2987_s26  ;;  %p2994_p3 = scmp.lt.u32.totalorder %s2987_s26, %s3799_s9 }
  0x7f   : > { %p2990_p4 = pnand %p2988_p1, %p3226_p7 }
  0x81   : > { %p2991_p2 = pneg %p2990_p4 }
  0x83   : > { %p2996_p6 = pnand %p2994_p3, %p2991_p2 }
  0x85   : > { %2999 = shalt.err (!%p2996_p6)
}
  0x86   : > { %s3000_s24 = scalar_lea.vmem %s429_s20, 16  ;;  %s3007_s28 = scalar_lea.vmem %s429_s20, 32 }
  0x87   : > { %p3001_p8 = scmp.ne.s32.totalorder %s429_s20, %s3000_s24  ;;  %p3008_p11 = scmp.lt.s32.totalorder %s429_s20, %s429_s20 }
  0x88   : > { %p3009_p12 = scmp.lt.s32.totalorder %s3007_s28, %s3000_s24 }
  0x89   : > { %p3003_p9 = pnand %p3001_p8, %p3226_p7 }
  0x8a   : > { %p3010_p13 = por %p3009_p12, %p3008_p11 }
  0x8b   : > { %p3004_p10 = pneg %p3003_p9 }
  0x8d   : > { %p3011_p0 = pnand %p3010_p13, %p3004_p10 }
  0x8f   : > { %3014 = shalt.err (!%p3011_p0)
}
  0x90   : > { %2696 = dma.hbm_to_vmem [thread:$0]  (!%p3210_p5), %s3799_s9, 16, %s429_s20, [#allocation8]  }
  0x91   : > { %s3105_s30 = smov [#allocation12]   ;;  %s3106_s25 = smov [#allocation13]  }
  0x92   : > { %s453_s23 = sshll.u32 %s3105_s30, 4  ;;  %s464_s26 = sshll.u32 %s3106_s25, 4  ;;  %s454_s23 = int_to_ptr.vmem [resolvable:$true] %s453_s23  ;;  %s465_s26 = int_to_ptr.vmem [resolvable:$true] %s464_s26 }
  0x93   : > { %s3015_s19 = scalar_lea.hbm %s3802_s12, 16 }
  0x94   : > { %p3016_p1 = scmp.ne.s32.totalorder %s3802_s12, %s3015_s19  ;;  %p3022_p3 = scmp.lt.u32.totalorder %s3015_s19, %s3802_s12 }
  0x96   : > { %p3018_p4 = pnand %p3016_p1, %p3226_p7 }
  0x98   : > { %p3019_p2 = pneg %p3018_p4 }
  0x9a   : > { %p3024_p6 = pnand %p3022_p3, %p3019_p2 }
  0x9c   : > { %3027 = shalt.err (!%p3024_p6)
}
  0x9d   : > { %s3028_s20 = scalar_lea.vmem %s454_s23, 16  ;;  %s3035_s27 = scalar_lea.vmem %s454_s23, 32 }
  0x9e   : > { %p3029_p8 = scmp.ne.s32.totalorder %s454_s23, %s3028_s20  ;;  %p3036_p11 = scmp.lt.s32.totalorder %s454_s23, %s454_s23 }
  0x9f   : > { %p3037_p12 = scmp.lt.s32.totalorder %s3035_s27, %s3028_s20 }
  0xa0   : > { %p3031_p9 = pnand %p3029_p8, %p3226_p7 }
  0xa1   : > { %p3038_p13 = por %p3037_p12, %p3036_p11 }
  0xa2   : > { %p3032_p10 = pneg %p3031_p9 }
  0xa4   : > { %p3039_p0 = pnand %p3038_p13, %p3032_p10 }
  0xa6   : > { %3042 = shalt.err (!%p3039_p0)
}
  0xa7   : > { %2702 = dma.hbm_to_vmem [thread:$0]  (!%p3210_p5), %s3802_s12, 16, %s454_s23, [#allocation11]  }
  0xa8   : > { %s3043_s19 = scalar_lea.hbm %s3803_s13, 16 }
  0xa9   : > { %p3044_p1 = scmp.ne.s32.totalorder %s3803_s13, %s3043_s19  ;;  %p3050_p3 = scmp.lt.u32.totalorder %s3043_s19, %s3803_s13 }
  0xab   : > { %p3046_p4 = pnand %p3044_p1, %p3226_p7 }
  0xad   : > { %p3047_p2 = pneg %p3046_p4 }
  0xaf   : > { %p3052_p6 = pnand %p3050_p3, %p3047_p2 }
  0xb1   : > { %3055 = shalt.err (!%p3052_p6)
}
  0xb2   : > { %s3056_s20 = scalar_lea.vmem %s465_s26, 16  ;;  %s3063_s23 = scalar_lea.vmem %s465_s26, 32 }
  0xb3   : > { %p3057_p8 = scmp.ne.s32.totalorder %s465_s26, %s3056_s20  ;;  %p3064_p11 = scmp.lt.s32.totalorder %s465_s26, %s465_s26 }
  0xb4   : > { %p3065_p12 = scmp.lt.s32.totalorder %s3063_s23, %s3056_s20 }
  0xb5   : > { %p3059_p9 = pnand %p3057_p8, %p3226_p7 }
  0xb6   : > { %p3066_p13 = por %p3065_p12, %p3064_p11 }
  0xb7   : > { %p3060_p10 = pneg %p3059_p9 }
  0xb9   : > { %p3067_p0 = pnand %p3066_p13, %p3060_p10 }
  0xbb   : > { %3070 = shalt.err (!%p3067_p0)
}
  0xbc   : > { %2705 = dma.hbm_to_vmem [thread:$0]  (!%p3210_p5), %s3803_s13, 16, %s465_s26, [#allocation14]  }
  0xbd   : > { %p3813_p1 = scmp.ne.s32.totalorder %s3810_s17, 0 }
  0xbe   : > { %p3814_p4 = scmp.eq.s32.totalorder (!%p3813_p1), %s3193_s16, 0 }
  0xbf   : > { %485 = sbr.rel (%p3813_p1) target bundleno = 2696 (0xa88), region = 76 }
  0xc6   : > { %3076 = dma.done.wait (%p3814_p4), [#allocation3], 16   ;;  %p3815_p7 = pmov %p3814_p4 }
  0xc7   : > { %p3816_p2 = pmov %p3814_p4 }
  0xc8   : > { %3078 = vsyncadd (%p3815_p7), [#allocation3], 4294967280 }
  0xc9   : > { %3080 = dma.done.wait (%p3816_p2), [#allocation5], 32   ;;  %p3817_p3 = pmov %p3816_p2 }
  0xca   : > { %p3818_p6 = pmov %p3816_p2 }
  0xcb   : > { %3082 = vsyncadd (%p3817_p3), [#allocation5], 4294967264 }
  0xcc   : > { %3084 = dma.done.wait (%p3818_p6), [#allocation8], 32   ;;  %p3819_p5 = pmov %p3816_p2 }
  0xcd   : > { %p3820_p8 = pmov %p3816_p2 }
  0xce   : > { %3086 = vsyncadd (%p3819_p5), [#allocation8], 4294967264 }
  0xcf   : > { %3088 = dma.done.wait (%p3820_p8), [#allocation11], 32   ;;  %p3821_p9 = pmov %p3816_p2 }
  0xd0   : > { %p3822_p10 = pmov %p3816_p2 }
  0xd1   : > { %3090 = vsyncadd (%p3821_p9), [#allocation11], 4294967264 }
  0xd2   : > { %3092 = dma.done.wait (%p3822_p10), [#allocation14], 16   ;;  %p3823_p11 = pmov %p3816_p2 }
  0xd3   : > { %p559_p12 = scmp.lt.s32.totalorder %s3193_s16, 1  ;;  %v2743_v0 = vld [vmem:[%s3791_s1] sm:$0xff]   ;;  %v2744_v1 = vld [vmem:[%s3791_s1 + $0x8] sm:$0xff]   ;;  %v2745_v2 = vld [vmem:[%s3791_s1 + $0x10] sm:$0xff]   ;;  %vm777_vm0 = vcmask 130048   ;;  %s3107_s15 = smov 96  }
  0xd4   : > { %3094 = vsyncadd (%p3823_p11), [#allocation14], 4294967280  ;;  %2473 = vmatprep.subr.bf16.mxu0 %v2743_v0  ;;  %v2746_v3 = vld [vmem:[%s3791_s1 + $0x18] sm:$0xff]   ;;  %v2747_v5 = vld [vmem:[%s3791_s1 + $0x20] sm:$0xff]   ;;  %vm891_vm1 = vcmask 523264   ;;  %s3108_s14 = smov 64  }
  0xd5   : > { %s3827_s16 = smov (!%p559_p12, %s3193_s16), 1  ;;  %2474 = vmatpush3.bf16.msra.mxu0 %v2743_v0  ;;  %v2748_v6 = vld [vmem:[%s3791_s1 + $0x28] sm:$0xff]   ;;  %v2749_v7 = vld [vmem:[%s3791_s1 + $0x30] sm:$0xff]   ;;  %v2750_v8 = vld [vmem:[%s3791_s1 + $0x38] sm:$0xff]   ;;  %s3109_s28 = smov 80   ;;  %vm1492_vm2 = vcmask 261120  }
  0xd6   : > { %s2360_s25 = sshll.u32 %s3827_s16, 5  ;;  %2475 = vmatprep.subr.bf16.mxu0 %v2744_v1  ;;  %v2290_v12 = vld [vmem:[#allocation2] ss:$0 sm:$0xff]  ;;  %v2291_v16 = vld [vmem:[#allocation4] ss:$0 sm:$0xff]  ;;  %v877_v51 = vld [vmem:[%s3794_s4 + $0x10] sm:$0xff] }
  0xd7   : > { %s3433_s24 = scalar_lea.vmem %s3790_s0, %s2360_s25  ;;  %v875_v56 = vld [vmem:[%s3794_s4] sm:$0xff]  ;;  %v876_v59 = vld [vmem:[%s3794_s4 + $0x8] sm:$0xff]  ;;  %s3110_s29 = smov 112  }
  0xd8   : > { %v570_v4 = vld [vmem:[%s3433_s24] sm:$0xff]   ;;  %v572_v9 = vld [vmem:[%s3433_s24 + $0x8] sm:$0xff]   ;;  %v574_v10 = vld [vmem:[%s3433_s24 + $0x10] sm:$0xff]   ;;  %s3111_s27 = smov 32  }
  0xd9   : > { %2476 = vmatpush3.bf16.msra.mxu0 %v2744_v1  ;;  %2489 = vmatprep.mubr.bf16.mxu0 %v570_v4  ;;  %v576_v11 = vld [vmem:[%s3433_s24 + $0x18] sm:$0xff]   ;;  %v881_v4 = vld [vmem:[%s3794_s4 + $0x30] sm:$0xff] }
  0xda   : > { %2477 = vmatprep.subr.bf16.mxu0 %v2745_v2  ;;  %v878_v1 = vld [vmem:[%s3794_s4 + $0x18] sm:$0xff] }
  0xdd   : > { %2478 = vmatpush3.bf16.msra.mxu0 %v2745_v2 }
  0xde   : > { %2479 = vmatprep.subr.bf16.mxu0 %v2746_v3 }
  0xe1   : > { %2480 = vmatpush3.bf16.msra.mxu0 %v2746_v3 }
  0xe2   : > { %2481 = vmatprep.subr.bf16.mxu0 %v2747_v5 }
  0xe5   : > { %2482 = vmatpush3.bf16.msra.mxu0 %v2747_v5 }
  0xe6   : > { %2483 = vmatprep.subr.bf16.mxu0 %v2748_v6 }
  0xe9   : > { %2484 = vmatpush3.bf16.msra.mxu0 %v2748_v6 }
  0xea   : > { %2485 = vmatprep.subr.bf16.mxu0 %v2749_v7 }
  0xed   : > { %2486 = vmatpush3.bf16.msra.mxu0 %v2749_v7 }
  0xee   : > { %2487 = vmatprep.subr.bf16.mxu0 %v2750_v8 }
  0xf1   : > { %2488 = vmatpush3.bf16.msra.mxu0 %v2750_v8 }
  0xf4   : > { %2490 = vmatmul.mubr.bf16.vlgmr.msra.gmra.mrb[0].mxu0 %v572_v9 }
  0xf5   : > { %2493 = vmatprep.mubr.bf16.mxu0 %v574_v10 }
  0xfc   : > { %2494 = vmatmul.mubr.bf16.gmra.mrb[4].mxu0 %v576_v11  ;;  %v879_v11 = vld [vmem:[%s3794_s4 + $0x20] sm:$0xff] }
 0x1c7   : > { %v2491_v13 = vpop.f32.mrb[0].mxu0 }
 0x1c8   : > { %v740_v14 = vmul.f32 %v2491_v13, %v2290_v12  ;;  %v700_v15 = vpop.f32.mrb[1].mxu0 }
 0x1c9   : > { %v738_v17 = vmul.f32 %v2290_v12, %v700_v15  ;;  %v2492_v18 = vpop.f32.mrb[2].mxu0 }
 0x1ca   : > { %v741_v19 = vmul.f32 %v2492_v18, %v2290_v12  ;;  %v703_v20 = vpop.f32.mrb[3].mxu0  ;;  %v755_v22 = vadd.f32 %v2291_v16, %v740_v14  ;;  %v880_v14 = vld [vmem:[%s3794_s4 + $0x28] sm:$0xff] }
 0x1cb   : > { %v739_v21 = vmul.f32 %v2290_v12, %v703_v20  ;;  %v753_v24 = vadd.f32 %v2291_v16, %v738_v17 }
 0x1cc   : > { %v756_v23 = vadd.f32 %v2291_v16, %v741_v19 }
 0x1cd   : > { %v754_v25 = vadd.f32 %v2291_v16, %v739_v21  ;;  %v882_v21 = vld [vmem:[%s3794_s4 + $0x38] sm:$0xff] }
 0x1ce   : > { %v3454_v26 = vpack.c.bf16 %v756_v23, %v755_v22 }
 0x1cf   : > { %v3456_v27 = vpack.c.bf16 %v754_v25, %v753_v24  ;;  %v2495_v28 = vpop.f32.mrb[4].mxu0 }
 0x1d0   : > { %v744_v29 = vmul.f32 %v2495_v28, %v2290_v12  ;;  %v716_v30 = vpop.f32.mrb[5].mxu0 }
 0x1d1   : > { %769 = vrot.lane.b32.xlu0 %v3456_v27, %s3107_s15  ;;  %v742_v31 = vmul.f32 %v2290_v12, %v716_v30  ;;  %2505 = vmatprep.mubr.msk.bf16.mxu1 %vm777_vm0, %v3456_v27  ;;  %v2496_v32 = vpop.f32.mrb[6].mxu0 }
 0x1d2   : > { %v759_v33 = vadd.f32 %v2291_v16, %v744_v29  ;;  %v745_v34 = vmul.f32 %v2496_v32, %v2290_v12  ;;  %v719_v35 = vpop.f32.mrb[7].mxu0 }
 0x1d3   : > { %v757_v36 = vadd.f32 %v2291_v16, %v742_v31  ;;  %v743_v37 = vmul.f32 %v2290_v12, %v719_v35 }
 0x1d4   : > { %v760_v38 = vadd.f32 %v2291_v16, %v745_v34 }
 0x1d5   : > { %v758_v39 = vadd.f32 %v2291_v16, %v743_v37  ;;  %771 = vrot.lane.b32.xlu0 %v3454_v26, %s3107_s15 }
 0x1d6   : > { %v3462_v40 = vpack.c.bf16 %v760_v38, %v759_v33 }
 0x1d7   : > { %v3464_v41 = vpack.c.bf16 %v758_v39, %v757_v36 }
 0x1d9   : > { %773 = vrot.lane.b32.xlu1 %v3464_v41, %s3107_s15 }
 0x1dd   : > { %775 = vrot.lane.b32.xlu1 %v3462_v40, %s3107_s15 }
 0x243   : > { %v770_v42 = vpop.permute.xlu0 %769 }
 0x244   : > { %2641 = vmatprep.subr.msk.bf16.mxu1 %vm777_vm0, %v770_v42  ;;  %v791_v43 = vsel %vm777_vm0, %v770_v42, 0 }
 0x245   : > { %2498 = vmatpush3.bf16.xpose.msra.mxu1 %v791_v43 }
 0x247   : > { %v772_v44 = vpop.permute.xlu0 %771 }
 0x248   : > { %2642 = vmatprep.subr.msk.bf16.mxu1 %vm777_vm0, %v772_v44  ;;  %v794_v45 = vsel %vm777_vm0, %v772_v44, 0 }
 0x24b   : > { %v774_v46 = vpop.permute.xlu1 %773 }
 0x24c   : > { %v797_v47 = vsel %vm777_vm0, %v774_v46, 0 }
 0x24d   : > { %2500 = vmatpush3.bf16.xpose.msra.mxu1 %v794_v45 }
 0x24e   : > { %2643 = vmatprep.subr.msk.bf16.mxu1 %vm777_vm0, %v774_v46 }
 0x24f   : > { %v776_v48 = vpop.permute.xlu1 %775 }
 0x250   : > { %v800_v49 = vsel %vm777_vm0, %v776_v48, 0 }
 0x255   : > { %2502 = vmatpush3.bf16.xpose.msra.mxu1 %v797_v47 }
 0x256   : > { %2644 = vmatprep.subr.msk.bf16.mxu1 %vm777_vm0, %v776_v48 }
 0x25d   : > { %2504 = vmatpush3.bf16.xpose.msra.mxu1 %v800_v49 }
 0x264   : > { %2506 = vmatmul.mubr.msk.bf16.vlgmr.msra.gmra.mrb[0].mxu1 %vm777_vm0, %v3454_v26 }
 0x265   : > { %2509 = vmatprep.mubr.msk.bf16.mxu1 %vm777_vm0, %v3464_v41 }
 0x26c   : > { %2510 = vmatmul.mubr.msk.bf16.gmra.mrb[4].mxu1 %vm777_vm0, %v3462_v40 }
 0x337   : > { %v2507_v50 = vpop.f32.mrb[0].mxu1 }
 0x338   : > { %v869_v52 = vmul.f32 0.25, %v2507_v50  ;;  %v836_v53 = vpop.f32.mrb[1].mxu1 }
 0x339   : > { %v867_v54 = vmul.f32 0.25, %v836_v53  ;;  %v2508_v55 = vpop.f32.mrb[2].mxu1 }
 0x33a   : > { %v839_v57 = vpop.f32.mrb[3].mxu1  ;;  %v885_v58 = vadd.f32 %v877_v51, %v869_v52  ;;  %v870_v61 = vmul.f32 0.25, %v2508_v55 }
 0x33b   : > { %v868_v60 = vmul.f32 0.25, %v839_v57  ;;  %v883_v63 = vadd.f32 %v875_v56, %v867_v54 }
 0x33c   : > { %v898_v62 = vsel %vm891_vm1, %v885_v58, -inf  ;;  %v886_v8 = vadd.f32 %v878_v1, %v870_v61 }
 0x33d   : > { %899 = vmax.xlane.f32.xlu0 %v898_v62  ;;  %v884_v0 = vadd.f32 %v876_v59, %v868_v60  ;;  %v892_v7 = vsel %vm891_vm1, %v883_v63, -inf }
 0x33e   : > { %v901_v17 = vsel %vm891_vm1, %v886_v8, -inf }
 0x33f   : > { %v2511_v2 = vpop.f32.mrb[4].mxu1  ;;  %v895_v3 = vsel %vm891_vm1, %v884_v0, -inf }
 0x340   : > { %v873_v5 = vmul.f32 0.25, %v2511_v2  ;;  %896 = vmax.xlane.f32.xlu1 %v895_v3  ;;  %v852_v6 = vpop.f32.mrb[5].mxu1 }
 0x341   : > { %v871_v9 = vmul.f32 0.25, %v852_v6  ;;  %893 = vmax.xlane.f32.xlu0 %v892_v7  ;;  %v2512_v10 = vpop.f32.mrb[6].mxu1 }
 0x342   : > { %v855_v12 = vpop.f32.mrb[7].mxu1  ;;  %v889_v13 = vadd.f32 %v881_v4, %v873_v5  ;;  %v874_v16 = vmul.f32 0.25, %v2512_v10 }
 0x343   : > { %v872_v15 = vmul.f32 0.25, %v855_v12  ;;  %v887_v19 = vadd.f32 %v879_v11, %v871_v9 }
 0x344   : > { %v910_v18 = vsel %vm891_vm1, %v889_v13, -inf  ;;  %v890_v24 = vadd.f32 %v882_v21, %v874_v16 }
 0x345   : > { %902 = vmax.xlane.f32.xlu0 %v901_v17  ;;  %911 = vmax.xlane.f32.xlu1 %v910_v18  ;;  %v3508_v20 = vadd.f32 %v880_v14, %v872_v15  ;;  %v904_v23 = vsel %vm891_vm1, %v887_v19, -inf }
 0x346   : > { %v913_v25 = vsel %vm891_vm1, %v890_v24, -inf }
 0x347   : > { %v907_v22 = vsel %vm891_vm1, %v3508_v20, -inf }
 0x349   : > { %905 = vmax.xlane.f32.xlu1 %v904_v23  ;;  %908 = vmax.xlane.f32.xlu0 %v907_v22 }
 0x34d   : > { %914 = vmax.xlane.f32.xlu0 %v913_v25 }
 0x35a   : > { %984 = vrot.lane.b32.xlu1 %v3456_v27, %s3108_s14 }
 0x35e   : > { %988 = vrot.lane.b32.xlu1 %v3464_v41, %s3108_s14 }
 0x362   : > { %990 = vrot.lane.b32.xlu1 %v3462_v40, %s3108_s14 }
 0x363   : > { %986 = vrot.lane.b32.xlu0 %v3454_v26, %s3108_s14 }
 0x366   : > { %1129 = vrot.lane.b32.xlu1 %v3456_v27, %s3109_s28 }
 0x3ca   : > { %v900_v28 = vpop.xlane.xlu0 %899 }
 0x3cb   : > { %v918_v29 = vsub.f32 %v885_v58, %v900_v28 }
 0x3cd   : > { %v928_v30 = vmul.f32 1.442695, %v918_v29  ;;  %v897_v31 = vpop.xlane.xlu1 %896 }
 0x3ce   : > { %v894_v32 = vpop.xlane.xlu0 %893  ;;  %v917_v34 = vsub.f32 %v884_v0, %v897_v31 }
 0x3cf   : > { %2779 = vpow2.f32 %v928_v30  ;;  %v916_v33 = vsub.f32 %v883_v63, %v894_v32 }
 0x3d0   : > { %v926_v39 = vmul.f32 1.442695, %v917_v34 }
 0x3d1   : > { %v924_v35 = vmul.f32 1.442695, %v916_v33 }
 0x3d2   : > { %v903_v36 = vpop.xlane.xlu0 %902  ;;  %v912_v37 = vpop.xlane.xlu1 %911 }
 0x3d3   : > { %2781 = vpow2.f32 %v924_v35  ;;  %v919_v38 = vsub.f32 %v886_v8, %v903_v36  ;;  %v922_v43 = vsub.f32 %v889_v13, %v912_v37 }
 0x3d5   : > { %v930_v42 = vmul.f32 1.442695, %v919_v38  ;;  %v936_v47 = vmul.f32 1.442695, %v922_v43 }
 0x3d6   : > { %v906_v44 = vpop.xlane.xlu1 %905  ;;  %v909_v45 = vpop.xlane.xlu0 %908 }
 0x3d7   : > { %2783 = vpow2.f32 %v930_v42  ;;  %v920_v48 = vsub.f32 %v887_v19, %v906_v44  ;;  %v921_v7 = vsub.f32 %v3508_v20, %v909_v45 }
 0x3d8   : > { %2785 = vpow2.f32 %v926_v39 }
 0x3d9   : > { %v3523_v46 = vpop.eup %2779  ;;  %2787 = vpow2.f32 %v936_v47  ;;  %v932_v53 = vmul.f32 1.442695, %v920_v48  ;;  %v934_v8 = vmul.f32 1.442695, %v921_v7 }
 0x3da   : > { %v985_v49 = vpop.permute.xlu1 %984  ;;  %v915_v50 = vpop.xlane.xlu0 %914  ;;  %v946_v51 = vsel %vm891_vm1, %v3523_v46, 0.0 }
 0x3db   : > { %947 = vadd.xlane.f32.xlu1 %v946_v51  ;;  %2513 = vmatprep.subr.bf16.mxu1 %v985_v49  ;;  %v923_v54 = vsub.f32 %v890_v24, %v915_v50  ;;  %2789 = vpow2.f32 %v932_v53 }
 0x3dc   : > { %2514 = vmatpush3.bf16.msra.mxu1 %v985_v49 }
 0x3dd   : > { %v3527_v52 = vpop.eup %2781  ;;  %v938_v59 = vmul.f32 1.442695, %v923_v54 }
 0x3de   : > { %v989_v55 = vpop.permute.xlu1 %988  ;;  %v987_v56 = vpop.permute.xlu0 %986  ;;  %v940_v57 = vsel %vm891_vm1, %v3527_v52, 0.0 }
 0x3df   : > { %941 = vadd.xlane.f32.xlu1 %v940_v57  ;;  %2515 = vmatprep.subr.bf16.mxu1 %v987_v56  ;;  %2791 = vpow2.f32 %v938_v59 }
 0x3e0   : > { %2516 = vmatpush3.bf16.msra.mxu1 %v987_v56  ;;  %2793 = vpow2.f32 %v934_v8 }
 0x3e1   : > { %v2784_v58 = vpop.eup %2783  ;;  %2517 = vmatprep.subr.bf16.mxu1 %v989_v55 }
 0x3e2   : > { %v991_v60 = vpop.permute.xlu1 %990  ;;  %v949_v61 = vsel %vm891_vm1, %v2784_v58, 0.0  ;;  %v2786_v62 = vpop.eup %2785 }
 0x3e3   : > { %950 = vadd.xlane.f32.xlu0 %v949_v61  ;;  %v943_v63 = vsel %vm891_vm1, %v2786_v62, 0.0  ;;  %v3533_v0 = vpop.eup %2787 }
 0x3e4   : > { %2518 = vmatpush3.bf16.msra.mxu1 %v989_v55  ;;  %v958_v2 = vsel %vm891_vm1, %v3533_v0, 0.0 }
 0x3e5   : > { %2519 = vmatprep.subr.bf16.mxu1 %v991_v60  ;;  %v3538_v3 = vpop.eup %2789 }
 0x3e6   : > { %v1130_v1 = vpop.permute.xlu1 %1129  ;;  %v952_v4 = vsel %vm891_vm1, %v3538_v3, 0.0 }
 0x3e7   : > { %944 = vadd.xlane.f32.xlu0 %v943_v63  ;;  %v1150_v31 = vsel %vm777_vm0, %v1130_v1, 0 }
 0x3e8   : > { %2520 = vmatpush3.bf16.msra.mxu1 %v991_v60 }
 0x3e9   : > { %2645 = vmatprep.subr.msk.bf16.mxu1 %vm777_vm0, %v1130_v1  ;;  %v3542_v5 = vpop.eup %2791 }
 0x3ea   : > { %v961_v6 = vsel %vm891_vm1, %v3542_v5, 0.0  ;;  %v2794_v9 = vpop.eup %2793 }
 0x3eb   : > { %959 = vadd.xlane.f32.xlu0 %v958_v2  ;;  %v955_v10 = vsel %vm891_vm1, %v2794_v9, 0.0 }
 0x3ef   : > { %953 = vadd.xlane.f32.xlu0 %v952_v4 }
 0x3f0   : > { %1133 = vrot.lane.b32.xlu1 %v3464_v41, %s3109_s28 }
 0x3f3   : > { %962 = vadd.xlane.f32.xlu0 %v961_v6 }
 0x409   : > { %1131 = vrot.lane.b32.xlu0 %v3454_v26, %s3109_s28 }
 0x40d   : > { %1121 = vrot.lane.b32.xlu0 %v3456_v27, %s3110_s29 }
 0x411   : > { %1125 = vrot.lane.b32.xlu0 %v3464_v41, %s3110_s29 }
 0x414   : > { %956 = vadd.xlane.f32.xlu1 %v955_v10 }
 0x425   : > { %1135 = vrot.lane.b32.xlu1 %v3462_v40, %s3109_s28 }
 0x429   : > { %1123 = vrot.lane.b32.xlu1 %v3454_v26, %s3110_s29 }
 0x42d   : > { %1127 = vrot.lane.b32.xlu1 %v3462_v40, %s3110_s29 }
 0x468   : > { %v948_v11 = vpop.xlane.xlu1 %947 }
 0x46c   : > { %v942_v12 = vpop.xlane.xlu1 %941 }
 0x470   : > { %v951_v13 = vpop.xlane.xlu0 %950  ;;  %v1134_v33 = vpop.permute.xlu1 %1133 }
 0x471   : > { %2795 = vrcp.f32 %v951_v13  ;;  %v1156_v34 = vsel %vm777_vm0, %v1134_v33, 0 }
 0x472   : > { %2797 = vrcp.f32 %v942_v12 }
 0x473   : > { %2799 = vrcp.f32 %v948_v11 }
 0x474   : > { %v945_v14 = vpop.xlane.xlu0 %944 }
 0x475   : > { %2801 = vrcp.f32 %v945_v14 }
 0x478   : > { %v960_v15 = vpop.xlane.xlu0 %959 }
 0x47b   : > { %v2796_v16 = vpop.eup %2795 }
 0x47c   : > { %v954_v17 = vpop.xlane.xlu0 %953  ;;  %v2798_v18 = vpop.eup %2797  ;;  %v975_v21 = vmul.f32 %v2796_v16, %v2784_v58 }
 0x47d   : > { %v2800_v19 = vpop.eup %2799  ;;  %v972_v23 = vmul.f32 %v2798_v18, %v3527_v52 }
 0x47e   : > { %v974_v25 = vmul.f32 %v2800_v19, %v3523_v46 }
 0x47f   : > { %v2802_v20 = vpop.eup %2801 }
 0x480   : > { %v963_v22 = vpop.xlane.xlu0 %962  ;;  %v973_v24 = vmul.f32 %v2802_v20, %v2786_v62  ;;  %v981_v29 = vpack.c.bf16 %v975_v21, %v974_v25 }
 0x481   : > { %2803 = vrcp.f32 %v963_v22 }
 0x482   : > { %v980_v28 = vpack.c.bf16 %v973_v24, %v972_v23  ;;  %2805 = vrcp.f32 %v954_v17 }
 0x483   : > { %2807 = vrcp.f32 %v960_v15 }
 0x484   : > { %2521 = vmatprep.mubr.msk.bf16.mxu1 %vm891_vm1, %v980_v28  ;;  %v1132_v30 = vpop.permute.xlu0 %1131 }
 0x485   : > { %2522 = vmatmul.mubr.msk.bf16.vlgmr.msra.gmra.mrb[8].mxu1 %vm891_vm1, %v981_v29  ;;  %v1153_v32 = vsel %vm777_vm0, %v1132_v30, 0 }
 0x486   : > { %2530 = vmatpush3.bf16.xpose.msra.mxu1 %v1150_v31 }
 0x487   : > { %2646 = vmatprep.subr.msk.bf16.mxu1 %vm777_vm0, %v1132_v30 }
 0x488   : > { %v1122_v50 = vpop.permute.xlu0 %1121 }
 0x48b   : > { %v2804_v38 = vpop.eup %2803 }
 0x48c   : > { %v2806_v39 = vpop.eup %2805  ;;  %v979_v44 = vmul.f32 %v2804_v38, %v3542_v5  ;;  %v1126_v52 = vpop.permute.xlu0 %1125 }
 0x48d   : > { %v2808_v42 = vpop.eup %2807  ;;  %v976_v45 = vmul.f32 %v2806_v39, %v3538_v3  ;;  %v2304_v39 = vld [vmem:[%s3794_s4 + $0x40] sm:$0xff] }
 0x48e   : > { %2532 = vmatpush3.bf16.xpose.msra.mxu1 %v1153_v32  ;;  %v978_v47 = vmul.f32 %v2808_v42, %v3533_v0 }
 0x48f   : > { %2647 = vmatprep.subr.msk.bf16.mxu1 %vm777_vm0, %v1134_v33 }
 0x490   : > { %v983_v49 = vpack.c.bf16 %v979_v44, %v978_v47 }
 0x496   : > { %2534 = vmatpush3.bf16.xpose.msra.mxu1 %v1156_v34 }
 0x4a1   : > { %v957_v35 = vpop.xlane.xlu1 %956 }
 0x4a2   : > { %2809 = vrcp.f32 %v957_v35 }
 0x4a5   : > { %v1136_v36 = vpop.permute.xlu1 %1135 }
 0x4a6   : > { %v1159_v37 = vsel %vm777_vm0, %v1136_v36, 0  ;;  %2648 = vmatprep.subr.msk.bf16.mxu1 %vm777_vm0, %v1136_v36 }
 0x4a7   : > { %2536 = vmatpush3.bf16.xpose.msra.mxu1 %v1159_v37 }
 0x4a9   : > { %v1124_v51 = vpop.permute.xlu1 %1123 }
 0x4ac   : > { %v2810_v43 = vpop.eup %2809 }
 0x4ad   : > { %v977_v46 = vmul.f32 %v2810_v43, %v2794_v9  ;;  %v1128_v53 = vpop.permute.xlu1 %1127 }
 0x4af   : > { %v982_v48 = vpack.c.bf16 %v977_v46, %v976_v45  ;;  %v2306_v46 = vld [vmem:[%s3794_s4 + $0x50] sm:$0xff] }
 0x4b1   : > { %2525 = vmatprep.mubr.msk.bf16.mxu1 %vm891_vm1, %v982_v48 }
 0x4b2   : > { %2526 = vmatmul.mubr.msk.bf16.gmra.mrb[12].mxu1 %vm891_vm1, %v983_v49 }
 0x4b3   : > { %2537 = vmatprep.mubr.msk.bf16.mxu1 %vm777_vm0, %v1122_v50  ;;  %v2305_v50 = vld [vmem:[%s3794_s4 + $0x48] sm:$0xff] }
 0x4ba   : > { %2538 = vmatmul.mubr.msk.bf16.vlgmr.msra.gmra.mrb[16].mxu1 %vm777_vm0, %v1124_v51 }
 0x4bb   : > { %2541 = vmatprep.mubr.msk.bf16.mxu1 %vm777_vm0, %v1126_v52 }
 0x4c2   : > { %2542 = vmatmul.mubr.msk.bf16.gmra.mrb[20].mxu1 %vm777_vm0, %v1128_v53 }
 0x558   : > { %v2523_v54 = vpop.f32.mrb[8].mxu1 }
 0x559   : > { %v1075_v55 = vadd.f32 3.0, %v2523_v54  ;;  %v1042_v56 = vpop.f32.mrb[9].mxu1 }
 0x55a   : > { %v1073_v57 = vadd.f32 3.0, %v1042_v56  ;;  %v2524_v58 = vpop.f32.mrb[10].mxu1 }
 0x55b   : > { %v1083_v59 = vmax.f32 %v1075_v55, 0.0  ;;  %v1076_v60 = vadd.f32 3.0, %v2524_v58  ;;  %v1045_v61 = vpop.f32.mrb[11].mxu1 }
 0x55c   : > { %v1081_v62 = vmax.f32 %v1073_v57, 0.0  ;;  %v1074_v63 = vadd.f32 3.0, %v1045_v61 }
 0x55d   : > { %v1091_v0 = vmin.f32 %v1083_v59, 6.0  ;;  %v1084_v1 = vmax.f32 %v1076_v60, 0.0 }
 0x55e   : > { %v1089_v2 = vmin.f32 %v1081_v62, 6.0  ;;  %v1082_v3 = vmax.f32 %v1074_v63, 0.0 }
 0x55f   : > { %v1099_v4 = vmul.f32 %v2523_v54, %v1091_v0  ;;  %v1092_v5 = vmin.f32 %v1084_v1, 6.0 }
 0x560   : > { %v1097_v6 = vmul.f32 %v1089_v2, %v1042_v56  ;;  %v1090_v7 = vmin.f32 %v1082_v3, 6.0  ;;  %v2308_v2 = vld [vmem:[%s3794_s4 + $0x60] sm:$0xff] }
 0x561   : > { %v1100_v8 = vmul.f32 %v2524_v58, %v1092_v5  ;;  %v3578_v10 = vmul.f32 0.16666667, %v1099_v4 }
 0x562   : > { %v1098_v9 = vmul.f32 %v1090_v7, %v1045_v61  ;;  %v3582_v12 = vmul.f32 0.16666667, %v1097_v6  ;;  %v2307_v61 = vld [vmem:[%s3794_s4 + $0x58] sm:$0xff] }
 0x563   : > { %v3580_v11 = vmul.f32 0.16666667, %v1100_v8  ;;  %v2310_v8 = vld [vmem:[%s3794_s4 + $0x70] sm:$0xff] }
 0x564   : > { %v3584_v13 = vmul.f32 0.16666667, %v1098_v9  ;;  %v2309_v9 = vld [vmem:[%s3794_s4 + $0x68] sm:$0xff] }
 0x565   : > { %v1114_v14 = vpack.c.bf16 %v3580_v11, %v3578_v10  ;;  %v2765_v10 = vld [vmem:[%s3798_s8 + $0x30] sm:$0xff]   ;;  %v2766_v11 = vld [vmem:[%s3798_s8 + $0x38] sm:$0xff]  }
 0x566   : > { %v1113_v15 = vpack.c.bf16 %v3584_v13, %v3582_v12  ;;  %v2764_v12 = vld [vmem:[%s3798_s8 + $0x28] sm:$0xff]   ;;  %v2767_v13 = vld [vmem:[%s3801_s11] sm:$0xff]  }
 0x585   : > { %v2527_v16 = vpop.f32.mrb[12].mxu1 }
 0x586   : > { %v1079_v17 = vadd.f32 3.0, %v2527_v16  ;;  %v1058_v18 = vpop.f32.mrb[13].mxu1 }
 0x587   : > { %v1077_v19 = vadd.f32 3.0, %v1058_v18  ;;  %v2528_v20 = vpop.f32.mrb[14].mxu1 }
 0x588   : > { %v1087_v21 = vmax.f32 %v1079_v17, 0.0  ;;  %v1080_v22 = vadd.f32 3.0, %v2528_v20  ;;  %v1061_v23 = vpop.f32.mrb[15].mxu1 }
 0x589   : > { %v1085_v24 = vmax.f32 %v1077_v19, 0.0  ;;  %v1078_v25 = vadd.f32 3.0, %v1061_v23 }
 0x58a   : > { %v1095_v28 = vmin.f32 %v1087_v21, 6.0  ;;  %v1088_v29 = vmax.f32 %v1080_v22, 0.0 }
 0x58b   : > { %v1093_v30 = vmin.f32 %v1085_v24, 6.0  ;;  %v1086_v31 = vmax.f32 %v1078_v25, 0.0 }
 0x58c   : > { %v1103_v32 = vmul.f32 %v2527_v16, %v1095_v28  ;;  %v1096_v33 = vmin.f32 %v1088_v29, 6.0 }
 0x58d   : > { %v1101_v34 = vmul.f32 %v1093_v30, %v1058_v18  ;;  %v1094_v35 = vmin.f32 %v1086_v31, 6.0  ;;  %v2539_v36 = vpop.f32.mrb[16].mxu1 }
 0x58e   : > { %v1104_v37 = vmul.f32 %v2528_v20, %v1096_v33  ;;  %v1195_v38 = vpop.f32.mrb[17].mxu1  ;;  %v1228_v43 = vmul.f32 0.25, %v2539_v36  ;;  %v3596_v47 = vmul.f32 0.16666667, %v1103_v32 }
 0x58f   : > { %v1102_v42 = vmul.f32 %v1094_v35, %v1061_v23  ;;  %v1226_v44 = vmul.f32 0.25, %v1195_v38  ;;  %v2540_v45 = vpop.f32.mrb[18].mxu1  ;;  %v3603_v51 = vmul.f32 0.16666667, %v1101_v34  ;;  %v2311_v23 = vld [vmem:[%s3794_s4 + $0x78] sm:$0xff] }
 0x590   : > { %v3598_v48 = vmul.f32 0.16666667, %v1104_v37  ;;  %v1198_v49 = vpop.f32.mrb[19].mxu1  ;;  %v1229_v56 = vmul.f32 0.25, %v2540_v45  ;;  %v1245_v60 = vadd.f32 %v2306_v46, %v1228_v43 }
 0x591   : > { %v3605_v52 = vmul.f32 0.16666667, %v1102_v42  ;;  %v1227_v53 = vmul.f32 0.25, %v1198_v49  ;;  %v1243_v54 = vadd.f32 %v2304_v39, %v1226_v44 }
 0x592   : > { %v1116_v55 = vpack.c.bf16 %v3598_v48, %v3596_v47  ;;  %v1246_v1 = vadd.f32 %v2307_v61, %v1229_v56  ;;  %v1257_v6 = vsel %vm891_vm1, %v1245_v60, -inf  ;;  %v2328_v47 = vld [vmem:[#allocation6] ss:$0 sm:$0xff] }
 0x593   : > { %v1115_v57 = vpack.c.bf16 %v3605_v52, %v3603_v51  ;;  %v1251_v58 = vsel %vm891_vm1, %v1243_v54, -inf  ;;  %v1244_v59 = vadd.f32 %v2305_v50, %v1227_v53  ;;  %v2329_v51 = vld [vmem:[#allocation7] ss:$0 sm:$0xff]  ;;  %v2843_v52 = vld [vmem:[%s3433_s24 + $0x8] sm:$0xff]  }
 0x594   : > { %1252 = vmax.xlane.f32.xlu0 %v1251_v58  ;;  %v1260_v18 = vsel %vm891_vm1, %v1246_v1, -inf }
 0x595   : > { %v2543_v62 = vpop.f32.mrb[20].mxu1  ;;  %v1254_v63 = vsel %vm891_vm1, %v1244_v59, -inf }
 0x596   : > { %1255 = vmax.xlane.f32.xlu1 %v1254_v63  ;;  %v1211_v0 = vpop.f32.mrb[21].mxu1  ;;  %v1232_v3 = vmul.f32 0.25, %v2543_v62 }
 0x597   : > { %v1230_v4 = vmul.f32 0.25, %v1211_v0  ;;  %v2544_v5 = vpop.f32.mrb[22].mxu1 }
 0x598   : > { %1258 = vmax.xlane.f32.xlu0 %v1257_v6  ;;  %v1214_v7 = vpop.f32.mrb[23].mxu1  ;;  %v1233_v19 = vmul.f32 0.25, %v2544_v5  ;;  %v1249_v21 = vadd.f32 %v2310_v8, %v1232_v3 }
 0x599   : > { %v1231_v16 = vmul.f32 0.25, %v1214_v7  ;;  %v1247_v17 = vadd.f32 %v2308_v2, %v1230_v4 }
 0x59a   : > { %v1269_v24 = vsel %vm891_vm1, %v1249_v21, -inf  ;;  %v1250_v28 = vadd.f32 %v2311_v23, %v1233_v19 }
 0x59b   : > { %v1263_v20 = vsel %vm891_vm1, %v1247_v17, -inf  ;;  %v1248_v22 = vadd.f32 %v2309_v9, %v1231_v16 }
 0x59c   : > { %1261 = vmax.xlane.f32.xlu0 %v1260_v18  ;;  %1264 = vmax.xlane.f32.xlu1 %v1263_v20  ;;  %v1272_v29 = vsel %vm891_vm1, %v1250_v28, -inf }
 0x59d   : > { %v1266_v25 = vsel %vm891_vm1, %v1248_v22, -inf }
 0x5a0   : > { %1270 = vmax.xlane.f32.xlu1 %v1269_v24  ;;  %1267 = vmax.xlane.f32.xlu0 %v1266_v25 }
 0x5a4   : > { %1273 = vmax.xlane.f32.xlu0 %v1272_v29 }
 0x5b1   : > { %1343 = vrot.lane.b32.xlu1 %v3456_v27, %s3111_s27 }
 0x621   : > { %v1253_v30 = vpop.xlane.xlu0 %1252 }
 0x622   : > { %v1275_v31 = vsub.f32 %v1243_v54, %v1253_v30 }
 0x623   : > { %v1256_v32 = vpop.xlane.xlu1 %1255 }
 0x624   : > { %v1283_v35 = vmul.f32 1.442695, %v1275_v31  ;;  %v1276_v37 = vsub.f32 %v1244_v59, %v1256_v32 }
 0x625   : > { %v1259_v33 = vpop.xlane.xlu0 %1258 }
 0x626   : > { %v1277_v34 = vsub.f32 %v1245_v60, %v1259_v33  ;;  %v1285_v45 = vmul.f32 1.442695, %v1276_v37 }
 0x628   : > { %v1287_v36 = vmul.f32 1.442695, %v1277_v34 }
 0x629   : > { %v1265_v38 = vpop.xlane.xlu1 %1264  ;;  %v1262_v39 = vpop.xlane.xlu0 %1261 }
 0x62a   : > { %2811 = vpow2.f32 %v1287_v36  ;;  %v1278_v42 = vsub.f32 %v1246_v1, %v1262_v39  ;;  %v1279_v43 = vsub.f32 %v1247_v17, %v1265_v38 }
 0x62b   : > { %2813 = vpow2.f32 %v1283_v35 }
 0x62c   : > { %v1289_v44 = vmul.f32 1.442695, %v1278_v42  ;;  %v1291_v27 = vmul.f32 1.442695, %v1279_v43 }
 0x62d   : > { %v1271_v46 = vpop.xlane.xlu1 %1270  ;;  %v1268_v49 = vpop.xlane.xlu0 %1267 }
 0x62e   : > { %v1281_v50 = vsub.f32 %v1249_v21, %v1271_v46  ;;  %2815 = vpow2.f32 %v1289_v44  ;;  %v1280_v54 = vsub.f32 %v1248_v22, %v1268_v49 }
 0x62f   : > { %2817 = vpow2.f32 %v1285_v45 }
 0x630   : > { %v1295_v53 = vmul.f32 1.442695, %v1281_v50  ;;  %v1293_v62 = vmul.f32 1.442695, %v1280_v54 }
 0x631   : > { %v1344_v56 = vpop.permute.xlu1 %1343  ;;  %v1274_v58 = vpop.xlane.xlu0 %1273 }
 0x632   : > { %2819 = vpow2.f32 %v1295_v53  ;;  %v1282_v59 = vsub.f32 %v1250_v28, %v1274_v58  ;;  %2545 = vmatprep.subr.bf16.mxu0 %v1344_v56  ;;  %v2756_v58 = vld [vmem:[%s3795_s5 + $0x18] sm:$0xff]  }
 0x633   : > { %2546 = vmatpush3.bf16.msra.mxu0 %v1344_v56  ;;  %2821 = vpow2.f32 %v1291_v27  ;;  %v2755_v56 = vld [vmem:[%s3795_s5 + $0x10] sm:$0xff]  }
 0x634   : > { %v3636_v60 = vpop.eup %2811  ;;  %v1297_v61 = vmul.f32 1.442695, %v1282_v59  ;;  %v3671_v59 = vld [vmem:[%s3795_s5] sm:$0xff]  }
 0x635   : > { %v1305_v63 = vsel %vm891_vm1, %v3636_v60, 0.0  ;;  %v2814_v0 = vpop.eup %2813 }
 0x636   : > { %2823 = vpow2.f32 %v1297_v61  ;;  %1306 = vadd.xlane.f32.xlu1 %v1305_v63  ;;  %v1299_v2 = vsel %vm891_vm1, %v2814_v0, 0.0  ;;  %v2760_v61 = vld [vmem:[%s3798_s8 + $0x8] sm:$0xff]   ;;  %v2762_v63 = vld [vmem:[%s3798_s8 + $0x18] sm:$0xff]  }
 0x637   : > { %2825 = vpow2.f32 %v1293_v62  ;;  %v2761_v62 = vld [vmem:[%s3798_s8 + $0x10] sm:$0xff]  }
 0x638   : > { %v2816_v1 = vpop.eup %2815 }
 0x639   : > { %v1308_v3 = vsel %vm891_vm1, %v2816_v1, 0.0  ;;  %v2818_v4 = vpop.eup %2817 }
 0x63a   : > { %1300 = vadd.xlane.f32.xlu1 %v1299_v2  ;;  %1309 = vadd.xlane.f32.xlu0 %v1308_v3  ;;  %v1302_v8 = vsel %vm891_vm1, %v2818_v4, 0.0 }
 0x63c   : > { %v3642_v5 = vpop.eup %2819 }
 0x63d   : > { %v1317_v6 = vsel %vm891_vm1, %v3642_v5, 0.0  ;;  %v2822_v7 = vpop.eup %2821 }
 0x63e   : > { %1318 = vadd.xlane.f32.xlu1 %v1317_v6  ;;  %1303 = vadd.xlane.f32.xlu0 %v1302_v8  ;;  %v1311_v16 = vsel %vm891_vm1, %v2822_v7, 0.0 }
 0x640   : > { %v2824_v9 = vpop.eup %2823 }
 0x641   : > { %v1320_v17 = vsel %vm891_vm1, %v2824_v9, 0.0  ;;  %v2826_v18 = vpop.eup %2825 }
 0x642   : > { %1312 = vadd.xlane.f32.xlu1 %v1311_v16  ;;  %1321 = vadd.xlane.f32.xlu0 %v1320_v17  ;;  %v1314_v19 = vsel %vm891_vm1, %v2826_v18, 0.0 }
 0x646   : > { %1315 = vadd.xlane.f32.xlu0 %v1314_v19 }
 0x653   : > { %1347 = vrot.lane.b32.xlu1 %v3464_v41, %s3111_s27 }
 0x657   : > { %1349 = vrot.lane.b32.xlu1 %v3462_v40, %s3111_s27 }
 0x65c   : > { %1345 = vrot.lane.b32.xlu0 %v3454_v26, %s3111_s27  ;;  %s3824_s27 = sld [smem:[#allocation21_spill]] }
 0x662   : > { %s568_s30 = scalar_lea.vmem %s3824_s27, %s2360_s25 }
 0x6c3   : > { %v1307_v20 = vpop.xlane.xlu1 %1306 }
 0x6c7   : > { %v1301_v21 = vpop.xlane.xlu1 %1300  ;;  %v1310_v22 = vpop.xlane.xlu0 %1309 }
 0x6c8   : > { %2827 = vrcp.f32 %v1301_v21 }
 0x6cb   : > { %v1319_v23 = vpop.xlane.xlu1 %1318  ;;  %v1304_v24 = vpop.xlane.xlu0 %1303 }
 0x6cc   : > { %2829 = vrcp.f32 %v1304_v24 }
 0x6cd   : > { %2831 = vrcp.f32 %v1310_v22 }
 0x6ce   : > { %2833 = vrcp.f32 %v1307_v20 }
 0x6cf   : > { %v1322_v25 = vpop.xlane.xlu0 %1321  ;;  %v1313_v28 = vpop.xlane.xlu1 %1312 }
 0x6d0   : > { %2835 = vrcp.f32 %v1313_v28 }
 0x6d2   : > { %v2828_v41 = vpop.eup %2827 }
 0x6d3   : > { %v1316_v29 = vpop.xlane.xlu0 %1315  ;;  %v1348_v40 = vpop.permute.xlu1 %1347  ;;  %v1331_v32 = vmul.f32 %v2828_v41, %v2814_v0  ;;  %v2763_v0 = vld [vmem:[%s3798_s8 + $0x20] sm:$0xff]  }
 0x6d4   : > { %2837 = vrcp.f32 %v1316_v29 }
 0x6d5   : > { %2839 = vrcp.f32 %v1322_v25 }
 0x6d6   : > { %v2830_v30 = vpop.eup %2829  ;;  %2841 = vrcp.f32 %v1319_v23 }
 0x6d7   : > { %v1346_v31 = vpop.permute.xlu0 %1345  ;;  %v1332_v26 = vmul.f32 %v2830_v30, %v2818_v4  ;;  %v2832_v34 = vpop.eup %2831 }
 0x6d8   : > { %2547 = vmatprep.subr.bf16.mxu0 %v1346_v31  ;;  %v2834_v35 = vpop.eup %2833  ;;  %v1350_v37 = vpop.permute.xlu1 %1349  ;;  %v1334_v39 = vmul.f32 %v2832_v34, %v2816_v1 }
 0x6d9   : > { %2548 = vmatpush3.bf16.msra.mxu0 %v1346_v31  ;;  %v1339_v33 = vpack.c.bf16 %v1332_v26, %v1331_v32  ;;  %v1333_v43 = vmul.f32 %v2834_v35, %v3636_v60  ;;  %v2759_v60 = vld [vmem:[%s3798_s8] sm:$0xff]  }
 0x6da   : > { %2549 = vmatprep.subr.bf16.mxu0 %v1348_v40  ;;  %v2836_v36 = vpop.eup %2835  ;;  %2585 = vmatprep.subr.bf16.mxu1 %v2759_v60 }
 0x6db   : > { %2553 = vmatprep.mubr.msk.bf16.mxu0 %vm891_vm1, %v1339_v33  ;;  %v1335_v44 = vmul.f32 %v2836_v36, %v2822_v7  ;;  %v1340_v45 = vpack.c.bf16 %v1334_v39, %v1333_v43  ;;  %2586 = vmatpush3.bf16.msra.mxu1 %v2759_v60 }
 0x6dc   : > { %2587 = vmatprep.subr.bf16.mxu1 %v2760_v61 }
 0x6dd   : > { %2550 = vmatpush3.bf16.msra.mxu0 %v1348_v40 }
 0x6de   : > { %v2838_v38 = vpop.eup %2837  ;;  %2551 = vmatprep.subr.bf16.mxu0 %v1350_v37 }
 0x6df   : > { %v1336_v42 = vmul.f32 %v2838_v38, %v2826_v18  ;;  %v2840_v46 = vpop.eup %2839  ;;  %2588 = vmatpush3.bf16.msra.mxu1 %v2760_v61 }
 0x6e0   : > { %v2842_v50 = vpop.eup %2841  ;;  %v1338_v27 = vmul.f32 %v2840_v46, %v2824_v9  ;;  %2589 = vmatprep.subr.bf16.mxu1 %v2761_v62 }
 0x6e1   : > { %2552 = vmatpush3.bf16.msra.mxu0 %v1350_v37  ;;  %v1341_v49 = vpack.c.bf16 %v1336_v42, %v1335_v44  ;;  %v1337_v53 = vmul.f32 %v2842_v50, %v3642_v5 }
 0x6e2   : > { %2561 = vmatprep.subr.bf16.mxu0 %v2755_v56 }
 0x6e3   : > { %v1342_v54 = vpack.c.bf16 %v1338_v27, %v1337_v53  ;;  %2590 = vmatpush3.bf16.msra.mxu1 %v2761_v62  ;;  %v2758_v53 = vld [vmem:[%s3795_s5 + $0x8] sm:$0xff]  }
 0x6e4   : > { %2554 = vmatmul.mubr.msk.bf16.vlgmr.msra.gmra.mrb[8].mxu0 %vm891_vm1, %v1340_v45  ;;  %2591 = vmatprep.subr.bf16.mxu1 %v2762_v63 }
 0x6e5   : > { %2557 = vmatprep.mubr.msk.bf16.mxu0 %vm891_vm1, %v1341_v49  ;;  %2562 = vmatpush3.bf16.msra.mxu0 %v2755_v56 }
 0x6e6   : > { %2563 = vmatprep.subr.bf16.mxu0 %v2756_v58 }
 0x6e7   : > { %2592 = vmatpush3.bf16.msra.mxu1 %v2762_v63 }
 0x6e8   : > { %2593 = vmatprep.subr.bf16.mxu1 %v2763_v0 }
 0x6e9   : > { %2564 = vmatpush3.bf16.msra.mxu0 %v2756_v58 }
 0x6ea   : > { %2573 = vmatprep.subr.bf16.mxu0 %v3671_v59 }
 0x6eb   : > { %2594 = vmatpush3.bf16.msra.mxu1 %v2763_v0 }
 0x6ec   : > { %2558 = vmatmul.mubr.msk.bf16.gmra.mrb[12].mxu0 %vm891_vm1, %v1342_v54  ;;  %2595 = vmatprep.subr.bf16.mxu1 %v2764_v12 }
 0x6ef   : > { %2596 = vmatpush3.bf16.msra.mxu1 %v2764_v12 }
 0x6f0   : > { %2597 = vmatprep.subr.bf16.mxu1 %v2765_v10 }
 0x6f3   : > { %2598 = vmatpush3.bf16.msra.mxu1 %v2765_v10 }
 0x6f4   : > { %2599 = vmatprep.subr.bf16.mxu1 %v2766_v11 }
 0x6f7   : > { %2600 = vmatpush3.bf16.msra.mxu1 %v2766_v11 }
 0x7b7   : > { %v2555_v1 = vpop.f32.mrb[8].mxu0 }
 0x7b8   : > { %v1434_v2 = vadd.f32 3.0, %v2555_v1  ;;  %v1401_v3 = vpop.f32.mrb[9].mxu0 }
 0x7b9   : > { %v1432_v4 = vadd.f32 3.0, %v1401_v3  ;;  %v2556_v5 = vpop.f32.mrb[10].mxu0 }
 0x7ba   : > { %v1442_v6 = vmax.f32 %v1434_v2, 0.0  ;;  %v1435_v7 = vadd.f32 3.0, %v2556_v5  ;;  %v1404_v8 = vpop.f32.mrb[11].mxu0 }
 0x7bb   : > { %v1440_v9 = vmax.f32 %v1432_v4, 0.0  ;;  %v1433_v16 = vadd.f32 3.0, %v1404_v8 }
 0x7bc   : > { %v1450_v17 = vmin.f32 %v1442_v6, 6.0  ;;  %v1443_v18 = vmax.f32 %v1435_v7, 0.0  ;;  %v1692_v7 = vunpack.c.h.bf16 %v2843_v52 }
 0x7bd   : > { %v1448_v19 = vmin.f32 %v1440_v9, 6.0  ;;  %v1441_v20 = vmax.f32 %v1433_v16, 0.0 }
 0x7be   : > { %v1458_v21 = vmul.f32 %v2555_v1, %v1450_v17  ;;  %v1451_v22 = vmin.f32 %v1443_v18, 6.0 }
 0x7bf   : > { %v1456_v23 = vmul.f32 %v1448_v19, %v1401_v3  ;;  %v1449_v24 = vmin.f32 %v1441_v20, 6.0  ;;  %v2559_v25 = vpop.f32.mrb[12].mxu0  ;;  %v2844_v3 = vld [vmem:[%s3433_s24] sm:$0xff]  }
 0x7c0   : > { %v1459_v28 = vmul.f32 %v2556_v5, %v1451_v22  ;;  %v1438_v29 = vadd.f32 3.0, %v2559_v25  ;;  %v1417_v41 = vpop.f32.mrb[13].mxu0  ;;  %v1466_v30 = vmul.f32 0.16666667, %v1458_v21  ;;  %v1689_v4 = vunpack.c.l.bf16 %v2844_v3 }
 0x7c1   : > { %v1457_v40 = vmul.f32 %v1449_v24, %v1404_v8  ;;  %v1436_v31 = vadd.f32 3.0, %v1417_v41  ;;  %v2560_v32 = vpop.f32.mrb[14].mxu0  ;;  %v1464_v36 = vmul.f32 0.16666667, %v1456_v23  ;;  %v1690_v17 = vunpack.c.h.bf16 %v2844_v3 }
 0x7c2   : > { %v1467_v26 = vmul.f32 0.16666667, %v1459_v28  ;;  %v1446_v33 = vmax.f32 %v1438_v29, 0.0  ;;  %v1439_v34 = vadd.f32 3.0, %v2560_v32  ;;  %v1420_v35 = vpop.f32.mrb[15].mxu0  ;;  %v2845_v29 = vld [vmem:[%s3433_s24 + $0x18] sm:$0xff]  }
 0x7c3   : > { %v1465_v37 = vmul.f32 0.16666667, %v1457_v40  ;;  %v1444_v38 = vmax.f32 %v1436_v31, 0.0  ;;  %v1437_v39 = vadd.f32 3.0, %v1420_v35  ;;  %v2846_v31 = vld [vmem:[%s3433_s24 + $0x10] sm:$0xff]  }
 0x7c4   : > { %v1473_v42 = vpack.c.bf16 %v1467_v26, %v1466_v30  ;;  %v1454_v43 = vmin.f32 %v1446_v33, 6.0  ;;  %v1447_v44 = vmax.f32 %v1439_v34, 0.0 }
 0x7c5   : > { %v1472_v45 = vpack.c.bf16 %v1465_v37, %v1464_v36  ;;  %v1452_v46 = vmin.f32 %v1444_v38, 6.0  ;;  %v1445_v49 = vmax.f32 %v1437_v39, 0.0 }
 0x7c6   : > { %v1462_v50 = vmul.f32 %v2559_v25, %v1454_v43  ;;  %v1455_v27 = vmin.f32 %v1447_v44, 6.0 }
 0x7c7   : > { %v1460_v54 = vmul.f32 %v1452_v46, %v1417_v41  ;;  %v1453_v56 = vmin.f32 %v1445_v49, 6.0  ;;  %2565 = vmatprep.mubr.msk.bf16.mxu0 %vm1492_vm2, %v1472_v45  ;;  %v1695_v41 = vunpack.c.l.bf16 %v2845_v29 }
 0x7c8   : > { %v1463_v58 = vmul.f32 %v2560_v32, %v1455_v27  ;;  %2566 = vmatmul.mubr.msk.bf16.vlgmr.msra.gmra.mrb[16].mxu0 %vm1492_vm2, %v1473_v42  ;;  %v1470_v61 = vmul.f32 0.16666667, %v1462_v50  ;;  %v1693_v32 = vunpack.c.l.bf16 %v2846_v31  ;;  %v1694_v42 = vunpack.c.h.bf16 %v2846_v31 }
 0x7c9   : > { %v1461_v60 = vmul.f32 %v1453_v56, %v1420_v35  ;;  %2574 = vmatpush3.bf16.msra.mxu0 %v3671_v59  ;;  %v1468_v63 = vmul.f32 0.16666667, %v1460_v54  ;;  %v1696_v35 = vunpack.c.h.bf16 %v2845_v29 }
 0x7ca   : > { %v1471_v62 = vmul.f32 0.16666667, %v1463_v58  ;;  %2575 = vmatprep.subr.bf16.mxu0 %v2758_v53  ;;  %v2770_v58 = vld [vmem:[%s3801_s11 + $0x18] sm:$0xff]  }
 0x7cb   : > { %v1469_v0 = vmul.f32 0.16666667, %v1461_v60  ;;  %v2771_v60 = vld [vmem:[%s3801_s11 + $0x20] sm:$0xff]  }
 0x7cc   : > { %v1475_v1 = vpack.c.bf16 %v1471_v62, %v1470_v61  ;;  %v2772_v61 = vld [vmem:[%s3801_s11 + $0x28] sm:$0xff]   ;;  %v2773_v62 = vld [vmem:[%s3801_s11 + $0x30] sm:$0xff]  }
 0x7cd   : > { %v1474_v2 = vpack.c.bf16 %v1469_v0, %v1468_v63  ;;  %2576 = vmatpush3.bf16.msra.mxu0 %v2758_v53  ;;  %v2774_v63 = vld [vmem:[%s3801_s11 + $0x38] sm:$0xff]   ;;  %v2338_v0 = vld [vmem:[#allocation9] ss:$0 sm:$0xff] }
 0x7ce   : > { %2609 = vmatprep.subr.bf16.mxu0 %v2767_v13 }
 0x7cf   : > { %2569 = vmatprep.mubr.msk.bf16.mxu0 %vm1492_vm2, %v1474_v2  ;;  %v2339_v2 = vld [vmem:[#allocation10] ss:$0 sm:$0xff] }
 0x7d0   : > { %2570 = vmatmul.mubr.msk.bf16.gmra.mrb[20].mxu0 %vm1492_vm2, %v1475_v1 }
 0x7d1   : > { %2577 = vmatprep.mubr.msk.bf16.mxu0 %vm1492_vm2, %v1113_v15  ;;  %v2769_v15 = vld [vmem:[%s3801_s11 + $0x10] sm:$0xff]  }
 0x7d8   : > { %2578 = vmatmul.mubr.msk.bf16.vlgmr.msra.gmra.mrb[16].mxu0 %vm1492_vm2, %v1114_v14  ;;  %v2768_v14 = vld [vmem:[%s3801_s11 + $0x8] sm:$0xff]  }
 0x7d9   : > { %2581 = vmatprep.mubr.msk.bf16.mxu0 %vm1492_vm2, %v1115_v57  ;;  %2610 = vmatpush3.bf16.msra.mxu0 %v2767_v13 }
 0x7da   : > { %2611 = vmatprep.subr.bf16.mxu0 %v2768_v14 }
 0x7dd   : > { %2612 = vmatpush3.bf16.msra.mxu0 %v2768_v14 }
 0x7de   : > { %2613 = vmatprep.subr.bf16.mxu0 %v2769_v15 }
 0x7e0   : > { %2582 = vmatmul.mubr.msk.bf16.gmra.mrb[20].mxu0 %vm1492_vm2, %v1116_v55  ;;  %v1691_v55 = vunpack.c.l.bf16 %v2843_v52 }
 0x7e1   : > { %2614 = vmatpush3.bf16.msra.mxu0 %v2769_v15 }
 0x7e2   : > { %2615 = vmatprep.subr.bf16.mxu0 %v2770_v58 }
 0x7e5   : > { %2616 = vmatpush3.bf16.msra.mxu0 %v2770_v58 }
 0x7e6   : > { %2617 = vmatprep.subr.bf16.mxu0 %v2771_v60 }
 0x7e9   : > { %2618 = vmatpush3.bf16.msra.mxu0 %v2771_v60 }
 0x7ea   : > { %2619 = vmatprep.subr.bf16.mxu0 %v2772_v61 }
 0x7ed   : > { %2620 = vmatpush3.bf16.msra.mxu0 %v2772_v61 }
 0x7ee   : > { %2621 = vmatprep.subr.bf16.mxu0 %v2773_v62 }
 0x7f1   : > { %2622 = vmatpush3.bf16.msra.mxu0 %v2773_v62 }
 0x7f2   : > { %2623 = vmatprep.subr.bf16.mxu0 %v2774_v63 }
 0x7f5   : > { %2624 = vmatpush3.bf16.msra.mxu0 %v2774_v63 }
 0x8ab   : > { %v2579_v48 = vpop.f32.mrb[16].mxu0 }
 0x8ac   : > { %v1668_v57 = vmul.f32 %v2579_v48, %v2328_v47  ;;  %v1628_v59 = vpop.f32.mrb[17].mxu0 }
 0x8ad   : > { %v1666_v5 = vmul.f32 %v2328_v47, %v1628_v59  ;;  %v2580_v6 = vpop.f32.mrb[18].mxu0 }
 0x8ae   : > { %v1683_v8 = vadd.f32 %v2329_v51, %v1668_v57  ;;  %v1669_v9 = vmul.f32 %v2580_v6, %v2328_v47  ;;  %v1631_v16 = vpop.f32.mrb[19].mxu0 }
 0x8af   : > { %v1681_v18 = vadd.f32 %v2329_v51, %v1666_v5  ;;  %v1667_v19 = vmul.f32 %v2328_v47, %v1631_v16 }
 0x8b0   : > { %v3733_v20 = vadd.f32 %v1691_v55, %v1683_v8  ;;  %v1684_v21 = vadd.f32 %v2329_v51, %v1669_v9 }
 0x8b1   : > { %v3735_v22 = vadd.f32 %v1689_v4, %v1681_v18  ;;  %v1682_v23 = vadd.f32 %v2329_v51, %v1667_v19 }
 0x8b2   : > { %v3737_v24 = vadd.f32 %v1692_v7, %v1684_v21 }
 0x8b3   : > { %v3739_v25 = vadd.f32 %v1690_v17, %v1682_v23  ;;  %v2583_v28 = vpop.f32.mrb[20].mxu0 }
 0x8b4   : > { %v1672_v30 = vmul.f32 %v2583_v28, %v2328_v47  ;;  %v1644_v40 = vpop.f32.mrb[21].mxu0  ;;  %v1706_v36 = vpack.c.bf16 %v3737_v24, %v3733_v20 }
 0x8b5   : > { %v1670_v26 = vmul.f32 %v2328_v47, %v1644_v40  ;;  %v2584_v33 = vpop.f32.mrb[22].mxu0  ;;  %v1705_v34 = vpack.c.bf16 %v3739_v25, %v3735_v22 }
 0x8b6   : > { %v1687_v37 = vadd.f32 %v2329_v51, %v1672_v30  ;;  %v1673_v38 = vmul.f32 %v2584_v33, %v2328_v47  ;;  %v1647_v39 = vpop.f32.mrb[23].mxu0 }
 0x8b7   : > { %v1685_v43 = vadd.f32 %v2329_v51, %v1670_v26  ;;  %v1671_v44 = vmul.f32 %v2328_v47, %v1647_v39  ;;  %2601 = vmatprep.mubr.bf16.mxu1 %v1705_v34 }
 0x8b8   : > { %v3747_v45 = vadd.f32 %v1695_v41, %v1687_v37  ;;  %v1688_v46 = vadd.f32 %v2329_v51, %v1673_v38  ;;  %2602 = vmatmul.mubr.bf16.vlgmr.msra.gmra.mrb[24].mxu1 %v1706_v36 }
 0x8b9   : > { %v3749_v49 = vadd.f32 %v1693_v32, %v1685_v43  ;;  %v1686_v50 = vadd.f32 %v2329_v51, %v1671_v44 }
 0x8ba   : > { %v3751_v27 = vadd.f32 %v1696_v35, %v1688_v46 }
 0x8bb   : > { %v3753_v53 = vadd.f32 %v1694_v42, %v1686_v50 }
 0x8bc   : > { %v1708_v56 = vpack.c.bf16 %v3751_v27, %v3747_v45 }
 0x8bd   : > { %v1707_v54 = vpack.c.bf16 %v3753_v53, %v3749_v49 }
 0x8bf   : > { %2605 = vmatprep.mubr.bf16.mxu1 %v1707_v54 }
 0x8c0   : > { %2606 = vmatmul.mubr.bf16.gmra.mrb[28].mxu1 %v1708_v56 }
 0x98b   : > { %v2603_v1 = vpop.f32.mrb[24].mxu1 }
 0x98c   : > { %v1847_v12 = vmul.f32 %v2603_v1, %v2338_v0  ;;  %v1807_v10 = vpop.f32.mrb[25].mxu1 }
 0x98d   : > { %v1845_v11 = vmul.f32 %v2338_v0, %v1807_v10  ;;  %v2604_v13 = vpop.f32.mrb[26].mxu1 }
 0x98e   : > { %v1862_v14 = vadd.f32 %v2339_v2, %v1847_v12  ;;  %v1848_v15 = vmul.f32 %v2604_v13, %v2338_v0  ;;  %v1810_v47 = vpop.f32.mrb[27].mxu1 }
 0x98f   : > { %v1860_v48 = vadd.f32 %v2339_v2, %v1845_v11  ;;  %v1846_v51 = vmul.f32 %v2338_v0, %v1810_v47 }
 0x990   : > { %v1870_v52 = vadd.f32 3.0, %v1862_v14  ;;  %v1863_v55 = vadd.f32 %v2339_v2, %v1848_v15 }
 0x991   : > { %v1868_v57 = vadd.f32 3.0, %v1860_v48  ;;  %v1861_v59 = vadd.f32 %v2339_v2, %v1846_v51 }
 0x992   : > { %v1878_v3 = vmax.f32 %v1870_v52, 0.0  ;;  %v1871_v4 = vadd.f32 3.0, %v1863_v55 }
 0x993   : > { %v1876_v5 = vmax.f32 %v1868_v57, 0.0  ;;  %v1869_v6 = vadd.f32 3.0, %v1861_v59  ;;  %v2607_v7 = vpop.f32.mrb[28].mxu1  ;;  %v2348_v57 = vld [vmem:[#allocation12] ss:$0 sm:$0xff] }
 0x994   : > { %v1886_v8 = vmin.f32 %v1878_v3, 6.0  ;;  %v1879_v9 = vmax.f32 %v1871_v4, 0.0  ;;  %v1851_v16 = vmul.f32 %v2607_v7, %v2338_v0  ;;  %v1823_v17 = vpop.f32.mrb[29].mxu1  ;;  %v2349_v3 = vld [vmem:[#allocation13] ss:$0 sm:$0xff] }
 0x995   : > { %v1884_v18 = vmin.f32 %v1876_v5, 6.0  ;;  %v1877_v19 = vmax.f32 %v1869_v6, 0.0  ;;  %v1849_v21 = vmul.f32 %v2338_v0, %v1823_v17  ;;  %v2608_v23 = vpop.f32.mrb[30].mxu1 }
 0x996   : > { %v1894_v28 = vmul.f32 %v1886_v8, %v1862_v14  ;;  %v1887_v29 = vmin.f32 %v1879_v9, 6.0  ;;  %v1866_v41 = vadd.f32 %v2339_v2, %v1851_v16  ;;  %v1852_v30 = vmul.f32 %v2608_v23, %v2338_v0  ;;  %v1826_v40 = vpop.f32.mrb[31].mxu1 }
 0x997   : > { %v1892_v31 = vmul.f32 %v1884_v18, %v1860_v48  ;;  %v1885_v32 = vmin.f32 %v1877_v19, 6.0  ;;  %v1864_v26 = vadd.f32 %v2339_v2, %v1849_v21  ;;  %v1850_v33 = vmul.f32 %v2338_v0, %v1826_v40 }
 0x998   : > { %v1895_v34 = vmul.f32 %v1887_v29, %v1863_v55  ;;  %v1874_v35 = vadd.f32 3.0, %v1866_v41  ;;  %v1867_v36 = vadd.f32 %v2339_v2, %v1852_v30  ;;  %v1902_v42 = vmul.f32 0.16666667, %v1894_v28 }
 0x999   : > { %v1893_v37 = vmul.f32 %v1885_v32, %v1861_v59  ;;  %v1872_v38 = vadd.f32 3.0, %v1864_v26  ;;  %v1865_v39 = vadd.f32 %v2339_v2, %v1850_v33  ;;  %v1900_v50 = vmul.f32 0.16666667, %v1892_v31 }
 0x99a   : > { %v1903_v43 = vmul.f32 0.16666667, %v1895_v34  ;;  %v1882_v44 = vmax.f32 %v1874_v35, 0.0  ;;  %v1875_v46 = vadd.f32 3.0, %v1867_v36 }
 0x99b   : > { %v1901_v54 = vmul.f32 0.16666667, %v1893_v37  ;;  %v1880_v56 = vmax.f32 %v1872_v38, 0.0  ;;  %v1873_v58 = vadd.f32 3.0, %v1865_v39 }
 0x99c   : > { %v1909_v60 = vpack.c.bf16 %v1903_v43, %v1902_v42  ;;  %v1890_v61 = vmin.f32 %v1882_v44, 6.0  ;;  %v1883_v62 = vmax.f32 %v1875_v46, 0.0 }
 0x99d   : > { %v1888_v63 = vmin.f32 %v1880_v56, 6.0  ;;  %v1881_v1 = vmax.f32 %v1873_v58, 0.0  ;;  %v1908_v0 = vpack.c.bf16 %v1901_v54, %v1900_v50 }
 0x99e   : > { %v1898_v12 = vmul.f32 %v1890_v61, %v1866_v41  ;;  %v1891_v10 = vmin.f32 %v1883_v62, 6.0 }
 0x99f   : > { %v1896_v11 = vmul.f32 %v1888_v63, %v1864_v26  ;;  %v1889_v13 = vmin.f32 %v1881_v1, 6.0  ;;  %2625 = vmatprep.mubr.bf16.mxu0 %v1908_v0 }
 0x9a0   : > { %v1899_v2 = vmul.f32 %v1891_v10, %v1867_v36  ;;  %2626 = vmatmul.mubr.bf16.vlgmr.msra.gmra.mrb[24].mxu0 %v1909_v60  ;;  %v1906_v15 = vmul.f32 0.16666667, %v1898_v12 }
 0x9a1   : > { %v1897_v14 = vmul.f32 %v1889_v13, %v1865_v39  ;;  %v1904_v48 = vmul.f32 0.16666667, %v1896_v11 }
 0x9a2   : > { %v1907_v47 = vmul.f32 0.16666667, %v1899_v2 }
 0x9a3   : > { %v1905_v51 = vmul.f32 0.16666667, %v1897_v14 }
 0x9a4   : > { %v1911_v52 = vpack.c.bf16 %v1907_v47, %v1906_v15 }
 0x9a5   : > { %v1910_v55 = vpack.c.bf16 %v1905_v51, %v1904_v48 }
 0x9a7   : > { %2629 = vmatprep.mubr.bf16.mxu0 %v1910_v55 }
 0x9a8   : > { %2630 = vmatmul.mubr.bf16.gmra.mrb[28].mxu0 %v1911_v52 }
 0xa73   : > { %v2627_v59 = vpop.f32.mrb[24].mxu0 }
 0xa74   : > { %v2050_v4 = vmul.f32 %v2627_v59, %v2348_v57  ;;  %v2010_v5 = vpop.f32.mrb[25].mxu0 }
 0xa75   : > { %v2048_v6 = vmul.f32 %v2348_v57, %v2010_v5  ;;  %v2628_v7 = vpop.f32.mrb[26].mxu0 }
 0xa76   : > { %v2065_v8 = vadd.f32 %v2349_v3, %v2050_v4  ;;  %v2051_v9 = vmul.f32 %v2628_v7, %v2348_v57  ;;  %v2013_v16 = vpop.f32.mrb[27].mxu0 }
 0xa77   : > { %v2063_v17 = vadd.f32 %v2349_v3, %v2048_v6  ;;  %v2049_v18 = vmul.f32 %v2348_v57, %v2013_v16 }
 0xa78   : > { %v2066_v19 = vadd.f32 %v2349_v3, %v2051_v9  ;;  %v2073_v23 = vadd.f32 %v2065_v8, %v3733_v20 }
 0xa79   : > { %v2064_v21 = vadd.f32 %v2349_v3, %v2049_v18  ;;  %v2071_v29 = vadd.f32 %v2063_v17, %v3735_v22 }
 0xa7a   : > { %v2074_v28 = vadd.f32 %v2066_v19, %v3737_v24 }
 0xa7b   : > { %v2072_v41 = vadd.f32 %v2064_v21, %v3739_v25  ;;  %v2631_v30 = vpop.f32.mrb[28].mxu0 }
 0xa7c   : > { %v2378_v40 = vpack.c.bf16 %v2074_v28, %v2073_v23  ;;  %v2054_v31 = vmul.f32 %v2631_v30, %v2348_v57  ;;  %v2026_v32 = vpop.f32.mrb[29].mxu0 }
 0xa7d   : > { %v2373_v26 = vpack.c.bf16 %v2072_v41, %v2071_v29  ;;  %v2052_v33 = vmul.f32 %v2348_v57, %v2026_v32  ;;  %v2632_v34 = vpop.f32.mrb[30].mxu0 }
 0xa7e   : > { %2390 = vst [vmem:[%s568_s30 + $0x8] sm:$0xff] %v2378_v40   ;;  %v2069_v20 = vadd.f32 %v2349_v3, %v2054_v31  ;;  %v2055_v35 = vmul.f32 %v2632_v34, %v2348_v57  ;;  %v2029_v24 = vpop.f32.mrb[31].mxu0 }
 0xa7f   : > { %2374 = vst [vmem:[%s568_s30] sm:$0xff] %v2373_v26   ;;  %v2067_v22 = vadd.f32 %v2349_v3, %v2052_v33  ;;  %v2053_v36 = vmul.f32 %v2348_v57, %v2029_v24 }
 0xa80   : > { %v2070_v37 = vadd.f32 %v2349_v3, %v2055_v35  ;;  %v2077_v39 = vadd.f32 %v2069_v20, %v3747_v45 }
 0xa81   : > { %v2068_v38 = vadd.f32 %v2349_v3, %v2053_v36  ;;  %v2075_v42 = vadd.f32 %v2067_v22, %v3749_v49 }
 0xa82   : > { %v2078_v25 = vadd.f32 %v2070_v37, %v3751_v27 }
 0xa83   : > { %v2076_v43 = vadd.f32 %v2068_v38, %v3753_v53 }
 0xa84   : > { %v2388_v44 = vpack.c.bf16 %v2078_v25, %v2077_v39 }
 0xa85   : > { %v2383_v46 = vpack.c.bf16 %v2076_v43, %v2075_v42 }
 0xa86   : > { %2392 = vst [vmem:[%s568_s30 + $0x18] sm:$0xff] %v2388_v44  }
 0xa87   : > { %2391 = vst [vmem:[%s568_s30 + $0x10] sm:$0xff] %v2383_v46  }
 0xa88 PF: > { %s3825_s16 = sld [smem:[#allocation20_spill]] }
 0xa8e   : > { %s29_s29 = sadd.s32 1, %s3825_s16  }
 0xa8f   : > { %p26_p13 = scmp.ge.s32.totalorder %s29_s29, 4  }
 0xa91   :  { %28 = sbr.rel (!%p26_p13) target bundleno = 7 (0x7), region = 140 }
 0xa98   :  { %2140 = vsyncpa [#allocation3], 1 }
 0xa99   :  { %2142 = vsyncpa [#allocation3 + $0x1], 1 }
 0xa9a   :  { %2143 = vsyncpa [#allocation5], 1 }
 0xa9b   :  { %2144 = vsyncpa [#allocation8], 1 }
 0xa9c   :  { %2145 = vsyncpa [#allocation11], 1 }
 0xa9d   :  { %2146 = vsyncpa [#allocation14], 1 }

// kernel: _lambda_.6
= control target key start
LH: loop header
LB: loop body
LE: loop exit
PB: predicated region body
PF: predicated region fallthrough
CT: control target
= control target key end

     0   :  { %s3262_s27 = smov 0   ;;  %s3925_s0 = inlined_call_operand.vmem [shape: bf16[2,64,128], index: 0, kind: input, shape index: {}]   ;;  %s3926_s1 = inlined_call_operand.vmem [shape: bf16[2,16,128], index: 1, kind: input, shape index: {}]   ;;  %s3927_s2 = inlined_call_operand.vmem [shape: bf16[128,320], index: 2, kind: input, shape index: {}]   ;;  %s3928_s3 = inlined_call_operand.vmem [shape: f32[1,320], index: 3, kind: input, shape index: {}]   ;;  %s3929_s4 = inlined_call_operand.vmem [shape: f32[1,320], index: 4, kind: input, shape index: {}]   ;;  %s3930_s5 = inlined_call_operand.vmem [shape: bf16[128,64], index: 5, kind: input, shape index: {}]   ;;  %s3931_s6 = inlined_call_operand.vmem [shape: f32[1,64], index: 6, kind: input, shape index: {}]   ;;  %s3932_s7 = inlined_call_operand.vmem [shape: f32[1,64], index: 7, kind: input, shape index: {}]   ;;  %s3933_s8 = inlined_call_operand.vmem [shape: f32[4,16,64], index: 8, kind: input, shape index: {}]   ;;  %s3934_s9 = inlined_call_operand.vmem [shape: bf16[256,128], index: 9, kind: input, shape index: {}]   ;;  %s3935_s10 = inlined_call_operand.vmem [shape: f32[1,128], index: 10, kind: input, shape index: {}]   ;;  %s3936_s11 = inlined_call_operand.vmem [shape: f32[1,128], index: 11, kind: input, shape index: {}]   ;;  %s3937_s12 = inlined_call_operand.vmem [shape: bf16[128,256], index: 12, kind: input, shape index: {}]   ;;  %s3938_s13 = inlined_call_operand.vmem [shape: f32[1,256], index: 13, kind: input, shape index: {}]   ;;  %s3939_s14 = inlined_call_operand.vmem [shape: f32[1,256], index: 14, kind: input, shape index: {}]   ;;  %s3940_s15 = inlined_call_operand.vmem [shape: bf16[256,128], index: 15, kind: input, shape index: {}]   ;;  %s3941_s16 = inlined_call_operand.vmem [shape: f32[1,128], index: 16, kind: input, shape index: {}]   ;;  %s3942_s17 = inlined_call_operand.vmem [shape: f32[1,128], index: 17, kind: input, shape index: {}]   ;;  %s3943_s18 = inlined_call_operand.vmem [shape: bf16[2,16,128], index: 18, kind: output, shape index: {}]  }
   0x1   :  { %3946 = sst [smem:[#allocation3_spill]] %s3925_s0 }
   0x2   :  { %3947 = sst [smem:[#allocation4_spill]] %s3926_s1 }
   0x3   :  { %3948 = sst [smem:[#allocation5_spill]] %s3927_s2 }
   0x4   :  { %3949 = sst [smem:[#allocation6_spill]] %s3943_s18 }
   0x5 LB: > { %3950 = sst [smem:[#allocation2_spill]] %s3158_s27  ;;  %s2567_s28 = sadd.s32 4294967295, %s3158_s27   ;;  %s3158_s27 = sphi %s3262_s27, %s28_s27  }
   0x6   : > { %p2571_p0 = scmp.ge.s32.totalorder %s3158_s27, 1  ;;  %p522_p1 = scmp.lt.s32.totalorder %s3158_s27, 3 }
   0x8   : > { %p523_p2 = pnand %p2571_p0, %p522_p1 }
   0x9   : > { %s3951_s0 = sld [smem:[#allocation5_spill]] (!%p523_p2)  ;;  %p581_p3 = scmp.lt.s32.totalorder (!%p523_p2), %s2567_s28, 1  ;;  %v3160_v2 = vmov (!%p523_p2), 0   ;;  %v3044_v21 = vld [vmem:[%s3930_s5] sm:$0xff] (!%p523_p2)   ;;  %v3161_v23 = vmov (!%p523_p2), 0.0   ;;  %v3045_v24 = vld [vmem:[%s3930_s5 + $0x8] sm:$0xff] (!%p523_p2)   ;;  %v929_v39 = vlaneseq (!%p523_p2) }
   0xa   : > { %526 = sbr.rel (%p523_p2) target bundleno = 2865 (0xb31), region = 92  ;;  %821 = vmatprep.mubr.bf16.mxu0 (!%p523_p2), %v3160_v2  ;;  %s3952_s21 = sld [smem:[#allocation3_spill]] (!%p523_p2)  ;;  %v3047_v27 = vld [vmem:[%s3930_s5 + $0x10] sm:$0xff] (!%p523_p2)   ;;  %v3048_v29 = vld [vmem:[%s3930_s5 + $0x18] sm:$0xff] (!%p523_p2)   ;;  %v3050_v32 = vld [vmem:[%s3930_s5 + $0x20] sm:$0xff] (!%p523_p2)   ;;  %vm3162_vm0 = vmmov (!%p523_p2), 0  }
   0xb   : > { %s3953_s29 = sld [smem:[#allocation4_spill]] (!%p523_p2)  ;;  %v3051_v33 = vld [vmem:[%s3930_s5 + $0x28] sm:$0xff] (!%p523_p2)   ;;  %v3053_v35 = vld [vmem:[%s3930_s5 + $0x30] sm:$0xff] (!%p523_p2)   ;;  %v3054_v36 = vld [vmem:[%s3930_s5 + $0x38] sm:$0xff] (!%p523_p2)   ;;  %v3407_v40 = vshrl.u32 (!%p523_p2), %v929_v39, 7  ;;  %vm1153_vm1 = vcmask (!%p523_p2), 130048  }
   0xc   : > { %v3415_v42 = vld [vmem:[%s3928_s3] sm:$0x7] (!%p523_p2)  ;;  %s3163_s23 = smov (!%p523_p2), 64   ;;  %vm1216_vm2 = vcmask (!%p523_p2), 523264   ;;  %s3165_s20 = smov (!%p523_p2), 96  }
   0xd   : > { %v3410_v41 = vsub.s32 (!%p523_p2), 0, %v3407_v40  ;;  %v3418_v43 = vsub.s32 (!%p523_p2), 1, %v3407_v40  ;;  %v3427_v45 = vld [vmem:[%s3929_s4] sm:$0x7] (!%p523_p2)  ;;  %s3166_s18 = smov (!%p523_p2), 80  }
   0xf   : > { %v3019_v0 = vld [vmem:[%s3951_s0 + $0x4] ss:$12 sps:$4 sm:$0xff] (!%p523_p2)   ;;  %v3021_v1 = vld [vmem:[%s3951_s0] ss:$12 sps:$4 sm:$0xff] (!%p523_p2)   ;;  %v3022_v3 = vld [vmem:[%s3951_s0 + $0x1c] ss:$12 sps:$4 sm:$0xff] (!%p523_p2)   ;;  %v3422_v44 = vrot.slane (!%p523_p2), %v3415_v42, %v3410_v41  ;;  %v3431_v46 = vrot.slane (!%p523_p2), %v3415_v42, %v3418_v43  ;;  %v3436_v49 = vrot.slane (!%p523_p2), %v3427_v45, %v3410_v41  ;;  %v3441_v52 = vrot.slane (!%p523_p2), %v3427_v45, %v3418_v43 }
  0x10   : > { %789 = vmatprep.subr.bf16.mxu0 (!%p523_p2), %v3019_v0  ;;  %v3024_v4 = vld [vmem:[%s3951_s0 + $0x18] ss:$12 sps:$4 sm:$0xff] (!%p523_p2)   ;;  %v3025_v5 = vld [vmem:[%s3951_s0 + $0x34] ss:$12 sps:$4 sm:$0xff] (!%p523_p2)   ;;  %v3027_v6 = vld [vmem:[%s3951_s0 + $0x30] ss:$12 sps:$4 sm:$0xff] (!%p523_p2)  }
  0x11   : > { %s3957_s28 = smov (!%p581_p3, %s2567_s28), 1  ;;  %790 = vmatpush1.bf16.msra.mxu0 %v3021_v1  ;;  %v3028_v7 = vld [vmem:[%s3951_s0 + $0x4c] ss:$12 sps:$4 sm:$0xff]   ;;  %v3030_v8 = vld [vmem:[%s3951_s0 + $0x48] ss:$12 sps:$4 sm:$0xff]  }
  0x12   : > { %791 = vmatprep.subr.bf16.mxu0 %v3022_v3  ;;  %s2691_s25 = sshll.u32 %s3957_s28, 5  ;;  %v3031_v10 = vld [vmem:[%s3951_s0 + $0x64] ss:$12 sps:$4 sm:$0xff]   ;;  %v3033_v11 = vld [vmem:[%s3951_s0 + $0x60] ss:$12 sps:$4 sm:$0xff]   ;;  %s2692_s1 = sshll.u32 %s3957_s28, 3 }
  0x13   : > { %s3298_s22 = scalar_lea.vmem %s3952_s21, %s2691_s25  ;;  %v3034_v12 = vld [vmem:[%s3951_s0 + $0x7c] ss:$12 sps:$4 sm:$0xff]   ;;  %v3036_v13 = vld [vmem:[%s3951_s0 + $0x78] ss:$12 sps:$4 sm:$0xff]   ;;  %v3037_v14 = vld [vmem:[%s3951_s0 + $0x94] ss:$12 sps:$4 sm:$0xff]   ;;  %s3325_s30 = scalar_lea.vmem %s3953_s29, %s2692_s1 }
  0x14   : > { %v3043_v9 = vld [vmem:[%s3298_s22] sm:$0xff]   ;;  %v3039_v15 = vld [vmem:[%s3951_s0 + $0x90] ss:$12 sps:$4 sm:$0xff]   ;;  %v3040_v16 = vld [vmem:[%s3951_s0 + $0xac] ss:$12 sps:$4 sm:$0xff]   ;;  %s3954_s29 = sld [smem:[#allocation6_spill]] }
  0x15   : > { %792 = vmatpush1.bf16.msra.mxu0 %v3024_v4  ;;  %2820 = vmatprep.mubr.bf16.mxu1 %v3043_v9  ;;  %v3056_v17 = vld [vmem:[%s3951_s0 + $0x8] ss:$12 sps:$4 sm:$0xff]   ;;  %v3057_v18 = vld [vmem:[%s3951_s0 + $0x20] ss:$12 sps:$4 sm:$0xff]   ;;  %v3058_v20 = vld [vmem:[%s3951_s0 + $0x38] ss:$12 sps:$4 sm:$0xff]  }
  0x16   : > { %793 = vmatprep.subr.bf16.mxu0 %v3025_v5  ;;  %2804 = vmatprep.subr.bf16.mxu1 %v3056_v17  ;;  %v3042_v19 = vld [vmem:[%s3951_s0 + $0xa8] ss:$12 sps:$4 sm:$0xff]   ;;  %v3059_v22 = vld [vmem:[%s3951_s0 + $0x50] ss:$12 sps:$4 sm:$0xff]   ;;  %v3061_v28 = vld [vmem:[%s3951_s0 + $0x80] ss:$12 sps:$4 sm:$0xff]  }
  0x17   : > { %2805 = vmatpush3.bf16.msra.mxu1 %v3056_v17  ;;  %v3060_v25 = vld [vmem:[%s3951_s0 + $0x68] ss:$12 sps:$4 sm:$0xff]   ;;  %v3062_v30 = vld [vmem:[%s3951_s0 + $0x98] ss:$12 sps:$4 sm:$0xff]   ;;  %v3063_v38 = vld [vmem:[%s3951_s0 + $0xb0] ss:$12 sps:$4 sm:$0xff]  }
  0x18   : > { %2806 = vmatprep.subr.bf16.mxu1 %v3057_v18  ;;  %v3046_v26 = vld [vmem:[%s3298_s22 + $0x8] sm:$0xff]   ;;  %v3049_v31 = vld [vmem:[%s3298_s22 + $0x10] sm:$0xff]   ;;  %v3052_v34 = vld [vmem:[%s3298_s22 + $0x18] sm:$0xff]  }
  0x19   : > { %794 = vmatpush1.bf16.msra.mxu0 %v3027_v6  ;;  %v3055_v37 = vld [vmem:[%s3325_s30] sm:$0xff]   ;;  %s3164_s30 = smov 112  }
  0x1a   : > { %795 = vmatprep.subr.bf16.mxu0 %v3028_v7  ;;  %s595_s25 = scalar_lea.vmem %s3954_s29, %s2692_s1 }
  0x1b   : > { %2807 = vmatpush3.bf16.msra.mxu1 %v3057_v18 }
  0x1c   : > { %2808 = vmatprep.subr.bf16.mxu1 %v3058_v20 }
  0x1d   : > { %796 = vmatpush1.bf16.msra.mxu0 %v3030_v8 }
  0x1e   : > { %797 = vmatprep.subr.bf16.mxu0 %v3031_v10 }
  0x1f   : > { %2809 = vmatpush3.bf16.msra.mxu1 %v3058_v20 }
  0x20   : > { %2810 = vmatprep.subr.bf16.mxu1 %v3059_v22 }
  0x21   : > { %798 = vmatpush1.bf16.msra.mxu0 %v3033_v11 }
  0x22   : > { %799 = vmatprep.subr.bf16.mxu0 %v3034_v12 }
  0x23   : > { %2811 = vmatpush3.bf16.msra.mxu1 %v3059_v22 }
  0x24   : > { %2812 = vmatprep.subr.bf16.mxu1 %v3060_v25 }
  0x25   : > { %800 = vmatpush1.bf16.msra.mxu0 %v3036_v13 }
  0x26   : > { %801 = vmatprep.subr.bf16.mxu0 %v3037_v14 }
  0x27   : > { %2813 = vmatpush3.bf16.msra.mxu1 %v3060_v25 }
  0x28   : > { %2814 = vmatprep.subr.bf16.mxu1 %v3061_v28 }
  0x29   : > { %802 = vmatpush1.bf16.msra.mxu0 %v3039_v15 }
  0x2a   : > { %803 = vmatprep.subr.bf16.mxu0 %v3040_v16 }
  0x2b   : > { %2815 = vmatpush3.bf16.msra.mxu1 %v3061_v28 }
  0x2c   : > { %2816 = vmatprep.subr.bf16.mxu1 %v3062_v30 }
  0x2d   : > { %804 = vmatpush1.bf16.msra.mxu0 %v3042_v19 }
  0x2e   : > { %2828 = vmatprep.subr.bf16.mxu0 %v3161_v23 }
  0x2f   : > { %2817 = vmatpush3.bf16.msra.mxu1 %v3062_v30 }
  0x30   : > { %822 = vmatmul.mubr.bf16.vlgmr.msra.gmra.mrb[0].mxu0 %v3043_v9  ;;  %2818 = vmatprep.subr.bf16.mxu1 %v3063_v38 }
  0x31   : > { %2829 = vmatpush3.bf16.msra.mxu0 %v3044_v21  ;;  %831 = vmatprep.mubr.bf16.mxu0 %v3160_v2 }
  0x32   : > { %2830 = vmatprep.subr.bf16.mxu0 %v3161_v23 }
  0x33   : > { %2819 = vmatpush3.bf16.msra.mxu1 %v3063_v38 }
  0x34   : > { %2848 = vmatprep.subr.bf16.mxu1 %v3161_v23 }
  0x35   : > { %2831 = vmatpush3.bf16.msra.mxu0 %v3045_v24 }
  0x36   : > { %2832 = vmatprep.subr.bf16.mxu0 %v3161_v23  ;;  %2821 = vmatmul.mubr.bf16.vlgmr.msra.gmra.mrb[0].mxu1 %v3046_v26 }
  0x37   : > { %2824 = vmatprep.mubr.bf16.mxu1 %v3049_v31 }
  0x38   : > { %832 = vmatmul.mubr.bf16.gmra.mrb[4].mxu0 %v3046_v26 }
  0x39   : > { %2833 = vmatpush3.bf16.msra.mxu0 %v3047_v27  ;;  %841 = vmatprep.mubr.bf16.mxu0 %v3160_v2 }
  0x3a   : > { %2834 = vmatprep.subr.bf16.mxu0 %v3161_v23 }
  0x3d   : > { %2835 = vmatpush3.bf16.msra.mxu0 %v3048_v29 }
  0x3e   : > { %2836 = vmatprep.subr.bf16.mxu0 %v3161_v23  ;;  %2825 = vmatmul.mubr.bf16.gmra.mrb[4].mxu1 %v3052_v34 }
  0x3f   : > { %2856 = vmatprep.mubr.msk.bf16.mxu1 %vm3162_vm0, %v3161_v23 }
  0x40   : > { %842 = vmatmul.mubr.bf16.gmra.mrb[8].mxu0 %v3049_v31 }
  0x41   : > { %2837 = vmatpush3.bf16.msra.mxu0 %v3050_v32  ;;  %851 = vmatprep.mubr.bf16.mxu0 %v3160_v2 }
  0x42   : > { %2838 = vmatprep.subr.bf16.mxu0 %v3161_v23 }
  0x45   : > { %2839 = vmatpush3.bf16.msra.mxu0 %v3051_v33 }
  0x46   : > { %2840 = vmatprep.subr.bf16.mxu0 %v3161_v23 }
  0x48   : > { %852 = vmatmul.mubr.bf16.gmra.mrb[12].mxu0 %v3052_v34 }
  0x49   : > { %2841 = vmatpush3.bf16.msra.mxu0 %v3053_v35  ;;  %2844 = vmatprep.mubr.msk.bf16.mxu0 %vm3162_vm0, %v3161_v23 }
  0x4a   : > { %2842 = vmatprep.subr.bf16.mxu0 %v3161_v23 }
  0x4d   : > { %2843 = vmatpush3.bf16.msra.mxu0 %v3054_v36 }
  0x4e   : > { %2884 = vmatprep.subr.bf16.mxu0 %v3161_v23 }
  0x50   : > { %2845 = vmatmul.mubr.bf16.vlgmr.msra.gmra.mrb[16].mxu0 %v3055_v37 }
  0x51   : > { %2892 = vmatprep.mubr.msk.bf16.mxu0 %vm3162_vm0, %v3161_v23 }
 0x103   : > { %v823_v47 = vpop.f32.mrb[0].mxu0 }
 0x104   : > { %v944_v48 = vmul.f32 %v3422_v44, %v823_v47  ;;  %v825_v50 = vpop.f32.mrb[1].mxu0 }
 0x105   : > { %v945_v51 = vmul.f32 %v3431_v46, %v825_v50  ;;  %v827_v53 = vpop.f32.mrb[2].mxu0 }
 0x106   : > { %v947_v54 = vmul.f32 %v3422_v44, %v827_v53  ;;  %v829_v55 = vpop.f32.mrb[3].mxu0  ;;  %v985_v57 = vadd.f32 %v3436_v49, %v944_v48  ;;  %v2615_v53 = vld [vmem:[%s3931_s6] ss:$0 sm:$0xff] }
 0x107   : > { %v948_v56 = vmul.f32 %v3431_v46, %v829_v55  ;;  %v986_v59 = vadd.f32 %v3441_v52, %v945_v51 }
 0x108   : > { %v988_v58 = vadd.f32 %v3436_v49, %v947_v54 }
 0x109   : > { %v989_v60 = vadd.f32 %v3441_v52, %v948_v56 }
 0x10a   : > { %v3449_v61 = vpack.c.bf16 %v988_v58, %v985_v57 }
 0x10b   : > { %v3451_v62 = vpack.c.bf16 %v989_v60, %v986_v59  ;;  %v833_v63 = vpop.f32.mrb[4].mxu0 }
 0x10c   : > { %v950_v0 = vmul.f32 %v3422_v44, %v833_v63  ;;  %v835_v1 = vpop.f32.mrb[5].mxu0  ;;  %v1158_v3 = vsel %vm1153_vm1, %v3449_v61, 0 }
 0x10d   : > { %v951_v4 = vmul.f32 %v3431_v46, %v835_v1  ;;  %v837_v5 = vpop.f32.mrb[6].mxu0  ;;  %2849 = vmatpush3.bf16.xpose.msra.mxu1 %v1158_v3  ;;  %2885 = vmatpush3.bf16.msra.mxu0 %v3451_v62  ;;  %v939_v1 = vsub.s32 2, %v3407_v40 }
 0x10e   : > { %v953_v6 = vmul.f32 %v3422_v44, %v837_v5  ;;  %v839_v7 = vpop.f32.mrb[7].mxu0  ;;  %2850 = vmatprep.subr.bf16.mxu1 %v3161_v23  ;;  %2886 = vmatprep.subr.bf16.mxu0 %v3161_v23  ;;  %v991_v9 = vadd.f32 %v3436_v49, %v950_v0  ;;  %v2822_v5 = vpop.f32.mrb[0].mxu1 }
 0x10f   : > { %v954_v8 = vmul.f32 %v3431_v46, %v839_v7  ;;  %v992_v11 = vadd.f32 %v3441_v52, %v951_v4  ;;  %v940_v3 = vrot.slane %v3415_v42, %v939_v1  ;;  %v981_v4 = vrot.slane %v3427_v45, %v939_v1  ;;  %v896_v7 = vpop.f32.mrb[1].mxu1 }
 0x110   : > { %v994_v10 = vadd.f32 %v3436_v49, %v953_v6 }
 0x111   : > { %v995_v12 = vadd.f32 %v3441_v52, %v954_v8  ;;  %v952_v6 = vmul.f32 %v2822_v5, %v940_v3  ;;  %v946_v8 = vmul.f32 %v940_v3, %v896_v7 }
 0x112   : > { %v3466_v13 = vpack.c.bf16 %v994_v10, %v991_v9  ;;  %v2823_v9 = vpop.f32.mrb[2].mxu1 }
 0x113   : > { %v3468_v14 = vpack.c.bf16 %v995_v12, %v992_v11  ;;  %v843_v15 = vpop.f32.mrb[8].mxu0  ;;  %v3530_v10 = vadd.f32 %v981_v4, %v952_v6  ;;  %v955_v11 = vmul.f32 %v2823_v9, %v940_v3  ;;  %v899_v12 = vpop.f32.mrb[3].mxu1 }
 0x114   : > { %v956_v16 = vmul.f32 %v3422_v44, %v843_v15  ;;  %1246 = vrot.lane.b32.xlu1 %v3466_v13, %s3163_s23  ;;  %v845_v17 = vpop.f32.mrb[9].mxu0  ;;  %v1161_v18 = vsel %vm1153_vm1, %v3466_v13, 0  ;;  %v3532_v15 = vadd.f32 %v981_v4, %v946_v8  ;;  %v2826_v45 = vpop.f32.mrb[4].mxu1 }
 0x115   : > { %v957_v19 = vmul.f32 %v3431_v46, %v845_v17  ;;  %v847_v20 = vpop.f32.mrb[10].mxu0  ;;  %2851 = vmatpush3.bf16.xpose.msra.mxu1 %v1161_v18  ;;  %2887 = vmatpush3.bf16.msra.mxu0 %v3468_v14  ;;  %v3534_v17 = vadd.f32 %v981_v4, %v955_v11 }
 0x116   : > { %v959_v21 = vmul.f32 %v3422_v44, %v847_v20  ;;  %v849_v22 = vpop.f32.mrb[11].mxu0  ;;  %2852 = vmatprep.subr.bf16.mxu1 %v3161_v23  ;;  %2888 = vmatprep.subr.bf16.mxu0 %v3161_v23  ;;  %v997_v25 = vadd.f32 %v3436_v49, %v956_v16  ;;  %v949_v16 = vmul.f32 %v940_v3, %v899_v12  ;;  %v912_v20 = vpop.f32.mrb[5].mxu1 }
 0x117   : > { %v960_v24 = vmul.f32 %v3431_v46, %v849_v22  ;;  %v998_v27 = vadd.f32 %v3441_v52, %v957_v19  ;;  %v1016_v40 = vpack.c.bf16 %v3534_v17, %v3530_v10  ;;  %v964_v19 = vmul.f32 %v2826_v45, %v940_v3  ;;  %v2827_v22 = vpop.f32.mrb[6].mxu1 }
 0x118   : > { %v1000_v26 = vadd.f32 %v3436_v49, %v959_v21  ;;  %v3536_v18 = vadd.f32 %v981_v4, %v949_v16  ;;  %v958_v21 = vmul.f32 %v940_v3, %v912_v20 }
 0x119   : > { %v1001_v28 = vadd.f32 %v3441_v52, %v960_v24  ;;  %v3542_v24 = vadd.f32 %v981_v4, %v964_v19 }
 0x11a   : > { %v3485_v29 = vpack.c.bf16 %v1000_v26, %v997_v25  ;;  %v1014_v42 = vpack.c.bf16 %v3536_v18, %v3532_v15  ;;  %v967_v25 = vmul.f32 %v2827_v22, %v940_v3  ;;  %v915_v26 = vpop.f32.mrb[7].mxu1 }
 0x11b   : > { %v3487_v30 = vpack.c.bf16 %v1001_v28, %v998_v27  ;;  %v853_v31 = vpop.f32.mrb[12].mxu0  ;;  %v3544_v27 = vadd.f32 %v981_v4, %v958_v21  ;;  %v961_v28 = vmul.f32 %v940_v3, %v915_v26 }
 0x11c   : > { %v962_v32 = vmul.f32 %v3422_v44, %v853_v31  ;;  %1248 = vrot.lane.b32.xlu1 %v3485_v29, %s3163_s23  ;;  %v855_v33 = vpop.f32.mrb[13].mxu0  ;;  %v1164_v34 = vsel %vm1153_vm1, %v3485_v29, 0  ;;  %v3546_v31 = vadd.f32 %v981_v4, %v967_v25 }
 0x11d   : > { %v963_v35 = vmul.f32 %v3431_v46, %v855_v33  ;;  %v857_v36 = vpop.f32.mrb[14].mxu0  ;;  %2853 = vmatpush3.bf16.xpose.msra.mxu1 %v1164_v34  ;;  %2889 = vmatpush3.bf16.msra.mxu0 %v3487_v30 }
 0x11e   : > { %v965_v37 = vmul.f32 %v3422_v44, %v857_v36  ;;  %v859_v38 = vpop.f32.mrb[15].mxu0  ;;  %2854 = vmatprep.subr.bf16.mxu1 %v3161_v23  ;;  %2890 = vmatprep.subr.bf16.mxu0 %v3161_v23  ;;  %v1003_v47 = vadd.f32 %v3436_v49, %v962_v32  ;;  %v3548_v32 = vadd.f32 %v981_v4, %v961_v28  ;;  %v1212_v36 = vld [vmem:[%s3933_s8] sm:$0xff] }
 0x11f   : > { %v966_v39 = vmul.f32 %v3431_v46, %v859_v38  ;;  %v1004_v50 = vadd.f32 %v3441_v52, %v963_v35  ;;  %v1020_v33 = vpack.c.bf16 %v3546_v31, %v3542_v24  ;;  %v3076_v24 = vld [vmem:[%s3934_s9 + $0x60] sm:$0xff]   ;;  %v3078_v31 = vld [vmem:[%s3934_s9 + $0x70] sm:$0xff]  }
 0x120   : > { %v1006_v48 = vadd.f32 %v3436_v49, %v965_v37  ;;  %v1018_v34 = vpack.c.bf16 %v3548_v32, %v3544_v27  ;;  %v3077_v27 = vld [vmem:[%s3934_s9 + $0x68] sm:$0xff]   ;;  %v3079_v32 = vld [vmem:[%s3934_s9 + $0x78] sm:$0xff]  }
 0x121   : > { %v1007_v51 = vadd.f32 %v3441_v52, %v966_v39  ;;  %v2616_v52 = vld [vmem:[%s3932_s7] ss:$0 sm:$0xff] }
 0x122   : > { %v3507_v44 = vpack.c.bf16 %v1006_v48, %v1003_v47  ;;  %v1213_v47 = vld [vmem:[%s3933_s8 + $0x8] sm:$0xff] }
 0x123   : > { %v3509_v54 = vpack.c.bf16 %v1007_v51, %v1004_v50  ;;  %v1127_v55 = vpop.f32.mrb[16].mxu0 }
 0x124   : > { %v1141_v56 = vmul.f32 %v2615_v53, %v1127_v55  ;;  %1250 = vrot.lane.b32.xlu1 %v3507_v44, %s3163_s23  ;;  %v2846_v46 = vpop.f32.mrb[17].mxu0  ;;  %v1167_v49 = vsel %vm1153_vm1, %v3507_v44, 0 }
 0x125   : > { %v1130_v57 = vpop.f32.mrb[18].mxu0  ;;  %2855 = vmatpush3.bf16.xpose.msra.mxu1 %v1167_v49  ;;  %2891 = vmatpush3.bf16.msra.mxu0 %v3509_v54 }
 0x126   : > { %v1142_v58 = vmul.f32 %v2615_v53, %v1130_v57  ;;  %v2847_v59 = vpop.f32.mrb[19].mxu0  ;;  %2860 = vmatprep.subr.bf16.mxu1 %v3161_v23  ;;  %2896 = vmatprep.subr.bf16.mxu0 %v3161_v23  ;;  %v1150_v60 = vadd.f32 %v2616_v52, %v1141_v56 }
 0x128   : > { %v1151_v63 = vadd.f32 %v2616_v52, %v1142_v58 }
 0x12a   : > { %v3521_v0 = vpack.c.bf16 %v1151_v63, %v1150_v60 }
 0x12c   : > { %2857 = vmatmul.mubr.msk.bf16.vlgmr.msra.gmra.mrb[8].mxu1 %vm1153_vm1, %v3521_v0 }
 0x12d   : > { %2868 = vmatprep.mubr.msk.bf16.mxu1 %vm3162_vm0, %v3161_v23 }
 0x186   : > { %v1247_v63 = vpop.permute.xlu1 %1246 }
 0x18e   : > { %v1249_v3 = vpop.permute.xlu1 %1248 }
 0x196   : > { %v1251_v6 = vpop.permute.xlu1 %1250 }
 0x1ff   : > { %v1203_v35 = vpop.f32.mrb[8].mxu1 }
 0x200   : > { %v1210_v37 = vmul.f32 0.25, %v1203_v35  ;;  %v2858_v38 = vpop.f32.mrb[9].mxu1 }
 0x201   : > { %v1206_v39 = vpop.f32.mrb[10].mxu1 }
 0x202   : > { %v1211_v48 = vmul.f32 0.25, %v1206_v39  ;;  %v2859_v50 = vpop.f32.mrb[11].mxu1  ;;  %v1214_v51 = vadd.f32 %v1212_v36, %v1210_v37 }
 0x204   : > { %v1217_v53 = vsel %vm1216_vm2, %v1214_v51, -inf  ;;  %v1215_v55 = vadd.f32 %v1213_v47, %v1211_v48 }
 0x205   : > { %1218 = vmax.xlane.f32.xlu0 %v1217_v53 }
 0x206   : > { %v1220_v56 = vsel %vm1216_vm2, %v1215_v55, -inf }
 0x209   : > { %1221 = vmax.xlane.f32.xlu0 %v1220_v56 }
 0x21f   : > { %1244 = vrot.lane.b32.xlu0 %v3449_v61, %s3163_s23 }
 0x223   : > { %1322 = vrot.lane.b32.xlu0 %v3449_v61, %s3164_s30 }
 0x227   : > { %1326 = vrot.lane.b32.xlu0 %v3485_v29, %s3164_s30 }
 0x22b   : > { %1320 = vrot.lane.b32.xlu0 %v3521_v0, %s3164_s30 }
 0x22f   : > { %1619 = vrot.lane.b32.xlu0 %v3466_v13, %s3165_s20 }
 0x233   : > { %1623 = vrot.lane.b32.xlu0 %v3507_v44, %s3165_s20 }
 0x292   : > { %v1219_v46 = vpop.xlane.xlu0 %1218 }
 0x293   : > { %v1223_v49 = vsub.f32 %v1214_v51, %v1219_v46 }
 0x295   : > { %v1225_v52 = vmul.f32 1.442695, %v1223_v49 }
 0x296   : > { %v1222_v57 = vpop.xlane.xlu0 %1221 }
 0x297   : > { %3120 = vpow2.f32 %v1225_v52  ;;  %v1224_v58 = vsub.f32 %v1215_v55, %v1222_v57 }
 0x299   : > { %v1227_v59 = vmul.f32 1.442695, %v1224_v58 }
 0x29a   : > { %v1245_v60 = vpop.permute.xlu0 %1244 }
 0x29b   : > { %3122 = vpow2.f32 %v1227_v59  ;;  %2861 = vmatpush3.bf16.msra.mxu1 %v1245_v60 }
 0x29c   : > { %2862 = vmatprep.subr.bf16.mxu1 %v3161_v23 }
 0x29e   : > { %v1323_v19 = vpop.permute.xlu0 %1322 }
 0x29f   : > { %2863 = vmatpush3.bf16.msra.mxu1 %v1247_v63  ;;  %v1334_v21 = vsel %vm1153_vm1, %v1323_v19, 0  ;;  %v2621_v19 = vld [vmem:[%s3933_s8 + $0x18] sm:$0xff] }
 0x2a0   : > { %2864 = vmatprep.subr.bf16.mxu1 %v3161_v23 }
 0x2a1   : > { %v3121_v1 = vpop.eup %3120 }
 0x2a2   : > { %v1229_v4 = vsel %vm1216_vm2, %v3121_v1, 0.0  ;;  %v1327_v26 = vpop.permute.xlu0 %1326 }
 0x2a3   : > { %1230 = vadd.xlane.f32.xlu1 %v1229_v4  ;;  %2865 = vmatpush3.bf16.msra.mxu1 %v1249_v3  ;;  %v1340_v28 = vsel %vm1153_vm1, %v1327_v26, 0 }
 0x2a4   : > { %2866 = vmatprep.subr.bf16.mxu1 %v3161_v23 }
 0x2a5   : > { %v3123_v5 = vpop.eup %3122 }
 0x2a6   : > { %v1232_v7 = vsel %vm1216_vm2, %v3123_v5, 0.0  ;;  %v1321_v38 = vpop.permute.xlu0 %1320 }
 0x2a7   : > { %1233 = vadd.xlane.f32.xlu1 %v1232_v7  ;;  %2867 = vmatpush3.bf16.msra.mxu1 %v1251_v6 }
 0x2a8   : > { %2872 = vmatprep.subr.bf16.mxu1 %v3161_v23 }
 0x2aa   : > { %v1620_v47 = vpop.permute.xlu0 %1619 }
 0x2ab   : > { %v1632_v48 = vsel %vm1153_vm1, %v1620_v47, 0  ;;  %v2634_v47 = vld [vmem:[%s3933_s8 + $0x20] sm:$0xff] }
 0x2ae   : > { %v1624_v53 = vpop.permute.xlu0 %1623 }
 0x2af   : > { %v1638_v55 = vsel %vm1153_vm1, %v1624_v53, 0 }
 0x2b8   : > { %1324 = vrot.lane.b32.xlu1 %v3466_v13, %s3164_s30 }
 0x2bc   : > { %1328 = vrot.lane.b32.xlu1 %v3507_v44, %s3164_s30 }
 0x2c0   : > { %1617 = vrot.lane.b32.xlu1 %v3449_v61, %s3165_s20 }
 0x2c4   : > { %1621 = vrot.lane.b32.xlu1 %v3485_v29, %s3165_s20 }
 0x2c8   : > { %1615 = vrot.lane.b32.xlu1 %v3521_v0, %s3165_s20 }
 0x330   : > { %v1231_v8 = vpop.xlane.xlu1 %1230 }
 0x331   : > { %3124 = vrcp.f32 %v1231_v8 }
 0x334   : > { %v1234_v9 = vpop.xlane.xlu1 %1233 }
 0x335   : > { %3126 = vrcp.f32 %v1234_v9 }
 0x338   : > { %v1325_v22 = vpop.permute.xlu1 %1324 }
 0x339   : > { %v1337_v25 = vsel %vm1153_vm1, %v1325_v22, 0 }
 0x33b   : > { %v3125_v11 = vpop.eup %3124 }
 0x33c   : > { %v1237_v16 = vmul.f32 %v3125_v11, %v3121_v1  ;;  %v1329_v35 = vpop.permute.xlu1 %1328  ;;  %v2620_v11 = vld [vmem:[%s3933_s8 + $0x10] sm:$0xff] }
 0x33d   : > { %v1343_v36 = vsel %vm1153_vm1, %v1329_v35, 0 }
 0x33f   : > { %v3127_v12 = vpop.eup %3126 }
 0x340   : > { %v1238_v45 = vmul.f32 %v3127_v12, %v3123_v5  ;;  %v1618_v37 = vpop.permute.xlu1 %1617 }
 0x341   : > { %v1629_v39 = vsel %vm1153_vm1, %v1618_v37, 0 }
 0x342   : > { %v1239_v20 = vpack.c.bf16 %v1238_v45, %v1237_v16 }
 0x344   : > { %2869 = vmatmul.mubr.msk.bf16.vlgmr.msra.gmra.mrb[12].mxu1 %vm1216_vm2, %v1239_v20  ;;  %v1622_v50 = vpop.permute.xlu1 %1621 }
 0x345   : > { %2873 = vmatpush3.bf16.xpose.msra.mxu1 %v1334_v21  ;;  %2880 = vmatprep.mubr.msk.bf16.mxu1 %vm3162_vm0, %v3161_v23  ;;  %v1635_v51 = vsel %vm1153_vm1, %v1622_v50, 0 }
 0x346   : > { %2874 = vmatprep.subr.bf16.mxu1 %v3161_v23 }
 0x348   : > { %v1616_v56 = vpop.permute.xlu1 %1615 }
 0x34d   : > { %2875 = vmatpush3.bf16.xpose.msra.mxu1 %v1337_v25 }
 0x34e   : > { %2876 = vmatprep.subr.bf16.mxu1 %v3161_v23 }
 0x355   : > { %2877 = vmatpush3.bf16.xpose.msra.mxu1 %v1340_v28 }
 0x356   : > { %2878 = vmatprep.subr.bf16.mxu1 %v3161_v23 }
 0x35d   : > { %2879 = vmatpush3.bf16.xpose.msra.mxu1 %v1343_v36 }
 0x35e   : > { %2920 = vmatprep.subr.bf16.mxu1 %v3161_v23 }
 0x364   : > { %2881 = vmatmul.mubr.msk.bf16.vlgmr.msra.gmra.mrb[16].mxu1 %vm1153_vm1, %v1321_v38 }
 0x365   : > { %2921 = vmatpush3.bf16.xpose.msra.mxu1 %v1629_v39  ;;  %2928 = vmatprep.mubr.msk.bf16.mxu1 %vm3162_vm0, %v3161_v23 }
 0x366   : > { %2922 = vmatprep.subr.bf16.mxu1 %v3161_v23 }
 0x36d   : > { %2923 = vmatpush3.bf16.xpose.msra.mxu1 %v1632_v48 }
 0x36e   : > { %2924 = vmatprep.subr.bf16.mxu1 %v3161_v23 }
 0x375   : > { %2925 = vmatpush3.bf16.xpose.msra.mxu1 %v1635_v51 }
 0x376   : > { %2926 = vmatprep.subr.bf16.mxu1 %v3161_v23 }
 0x37d   : > { %2927 = vmatpush3.bf16.xpose.msra.mxu1 %v1638_v55 }
 0x37e   : > { %2956 = vmatprep.subr.bf16.mxu1 %v3161_v23 }
 0x384   : > { %2929 = vmatmul.mubr.msk.bf16.vlgmr.msra.gmra.mrb[20].mxu1 %vm1153_vm1, %v1616_v56 }
 0x385   : > { %2964 = vmatprep.mubr.msk.bf16.mxu1 %vm3162_vm0, %v3161_v23 }
 0x417   : > { %v1293_v46 = vpop.f32.mrb[12].mxu1 }
 0x418   : > { %v1300_v49 = vadd.f32 3.0, %v1293_v46  ;;  %v2870_v52 = vpop.f32.mrb[13].mxu1 }
 0x419   : > { %v1296_v57 = vpop.f32.mrb[14].mxu1 }
 0x41a   : > { %v1302_v58 = vmax.f32 %v1300_v49, 0.0  ;;  %v1301_v59 = vadd.f32 3.0, %v1296_v57  ;;  %v2871_v60 = vpop.f32.mrb[15].mxu1 }
 0x41c   : > { %v1304_v63 = vmin.f32 %v1302_v58, 6.0  ;;  %v1303_v1 = vmax.f32 %v1301_v59, 0.0 }
 0x41e   : > { %v1306_v3 = vmul.f32 %v1304_v63, %v1293_v46  ;;  %v1305_v4 = vmin.f32 %v1303_v1, 6.0  ;;  %v2635_v63 = vld [vmem:[%s3933_s8 + $0x28] sm:$0xff] }
 0x420   : > { %v1307_v5 = vmul.f32 %v1305_v4, %v1296_v57  ;;  %v3615_v6 = vmul.f32 0.16666667, %v1306_v3 }
 0x422   : > { %v3617_v7 = vmul.f32 0.16666667, %v1307_v5 }
 0x424   : > { %v1310_v8 = vpack.c.bf16 %v3617_v7, %v3615_v6 }
 0x437   : > { %v1379_v9 = vpop.f32.mrb[16].mxu1 }
 0x438   : > { %v1386_v12 = vmul.f32 0.25, %v1379_v9  ;;  %v2882_v16 = vpop.f32.mrb[17].mxu1 }
 0x439   : > { %v1382_v45 = vpop.f32.mrb[18].mxu1 }
 0x43a   : > { %v1387_v20 = vmul.f32 0.25, %v1382_v45  ;;  %v2883_v21 = vpop.f32.mrb[19].mxu1  ;;  %v1391_v22 = vadd.f32 %v2620_v11, %v1386_v12 }
 0x43c   : > { %v1393_v25 = vsel %vm1216_vm2, %v1391_v22, -inf  ;;  %v1392_v26 = vadd.f32 %v2621_v19, %v1387_v20 }
 0x43d   : > { %1394 = vmax.xlane.f32.xlu0 %v1393_v25 }
 0x43e   : > { %v1396_v28 = vsel %vm1216_vm2, %v1392_v26, -inf }
 0x43f   : > { %1397 = vmax.xlane.f32.xlu1 %v1396_v28 }
 0x450   : > { %1864 = vrot.lane.b32.xlu1 %v3466_v13, %s3166_s18 }
 0x454   : > { %1866 = vrot.lane.b32.xlu1 %v3485_v29, %s3166_s18 }
 0x457   : > { %v1674_v35 = vpop.f32.mrb[20].mxu1 }
 0x458   : > { %1868 = vrot.lane.b32.xlu1 %v3507_v44, %s3166_s18  ;;  %v2930_v36 = vpop.f32.mrb[21].mxu1  ;;  %v1681_v39 = vmul.f32 0.25, %v1674_v35 }
 0x459   : > { %v1677_v37 = vpop.f32.mrb[22].mxu1 }
 0x45a   : > { %v2931_v38 = vpop.f32.mrb[23].mxu1  ;;  %v1686_v48 = vadd.f32 %v2634_v47, %v1681_v39  ;;  %v1682_v60 = vmul.f32 0.25, %v1677_v37  ;;  %v3064_v39 = vld [vmem:[%s3934_s9 + $0x20] sm:$0xff]   ;;  %v3066_v47 = vld [vmem:[%s3934_s9 + $0x30] sm:$0xff]  }
 0x45c   : > { %v1688_v50 = vsel %vm1216_vm2, %v1686_v48, -inf  ;;  %v1687_v1 = vadd.f32 %v2635_v63, %v1682_v60 }
 0x45e   : > { %v1691_v3 = vsel %vm1216_vm2, %v1687_v1, -inf }
 0x47c   : > { %1689 = vmax.xlane.f32.xlu1 %v1688_v50 }
 0x48d   : > { %1715 = vrot.lane.b32.xlu1 %v3451_v62, %s3163_s23 }
 0x491   : > { %1719 = vrot.lane.b32.xlu1 %v3487_v30, %s3163_s23 }
 0x495   : > { %1721 = vrot.lane.b32.xlu1 %v3509_v54, %s3163_s23 }
 0x4ca   : > { %v1395_v13 = vpop.xlane.xlu0 %1394 }
 0x4cb   : > { %v1399_v29 = vsub.f32 %v1391_v22, %v1395_v13 }
 0x4cc   : > { %v1398_v44 = vpop.xlane.xlu1 %1397 }
 0x4cd   : > { %v1401_v51 = vmul.f32 1.442695, %v1399_v29  ;;  %v1400_v53 = vsub.f32 %v1392_v26, %v1398_v44 }
 0x4cf   : > { %3128 = vpow2.f32 %v1401_v51  ;;  %v1403_v55 = vmul.f32 1.442695, %v1400_v53 }
 0x4d0   : > { %v1865_v30 = vpop.permute.xlu1 %1864 }
 0x4d1   : > { %3130 = vpow2.f32 %v1403_v55  ;;  %v1877_v20 = vsel %vm1153_vm1, %v1865_v30, 0 }
 0x4d4   : > { %v1867_v54 = vpop.permute.xlu1 %1866 }
 0x4d5   : > { %v1880_v22 = vsel %vm1153_vm1, %v1867_v54, 0 }
 0x4d8   : > { %v1869_v52 = vpop.permute.xlu1 %1868 }
 0x4d9   : > { %v3129_v56 = vpop.eup %3128  ;;  %v1883_v25 = vsel %vm1153_vm1, %v1869_v52, 0  ;;  %v3068_v52 = vld [vmem:[%s3934_s9] sm:$0xff]  }
 0x4da   : > { %v1405_v46 = vsel %vm1216_vm2, %v3129_v56, 0.0 }
 0x4db   : > { %v3131_v49 = vpop.eup %3130  ;;  %1406 = vadd.xlane.f32.xlu0 %v1405_v46 }
 0x4dc   : > { %v1408_v62 = vsel %vm1216_vm2, %v3131_v49, 0.0 }
 0x4df   : > { %1409 = vadd.xlane.f32.xlu0 %v1408_v62 }
 0x4f5   : > { %1862 = vrot.lane.b32.xlu0 %v3449_v61, %s3166_s18 }
 0x4f9   : > { %1860 = vrot.lane.b32.xlu0 %v3521_v0, %s3166_s18 }
 0x509   : > { %v1690_v57 = vpop.xlane.xlu1 %1689 }
 0x50a   : > { %v1694_v58 = vsub.f32 %v1686_v48, %v1690_v57 }
 0x50c   : > { %v1696_v59 = vmul.f32 1.442695, %v1694_v58  ;;  %v3069_v58 = vld [vmem:[%s3934_s9 + $0x8] sm:$0xff]  }
 0x50e   : > { %3132 = vpow2.f32 %v1696_v59  ;;  %v3070_v59 = vld [vmem:[%s3934_s9 + $0x10] sm:$0xff]  }
 0x518   : > { %v3655_v4 = vpop.eup %3132  ;;  %1692 = vmax.xlane.f32.xlu0 %v1691_v3 }
 0x519   : > { %v1700_v61 = vsel %vm1216_vm2, %v3655_v4, 0.0 }
 0x51c   : > { %1701 = vadd.xlane.f32.xlu0 %v1700_v61 }
 0x568   : > { %v1407_v0 = vpop.xlane.xlu0 %1406 }
 0x569   : > { %3134 = vrcp.f32 %v1407_v0 }
 0x56c   : > { %v1410_v5 = vpop.xlane.xlu0 %1409 }
 0x56d   : > { %3136 = vrcp.f32 %v1410_v5  ;;  %v2644_v5 = vld [vmem:[%s3933_s8 + $0x38] sm:$0xff] }
 0x570   : > { %v1863_v9 = vpop.permute.xlu0 %1862 }
 0x571   : > { %v1874_v11 = vsel %vm1153_vm1, %v1863_v9, 0 }
 0x572   : > { %2957 = vmatpush3.bf16.xpose.msra.mxu1 %v1874_v11 }
 0x573   : > { %2958 = vmatprep.subr.bf16.mxu1 %v3161_v23  ;;  %v3135_v12 = vpop.eup %3134 }
 0x574   : > { %v1413_v45 = vmul.f32 %v3135_v12, %v3129_v56  ;;  %v1861_v26 = vpop.permute.xlu0 %1860 }
 0x577   : > { %v3137_v16 = vpop.eup %3136 }
 0x578   : > { %v1414_v19 = vmul.f32 %v3137_v16, %v3131_v49  ;;  %v3071_v16 = vld [vmem:[%s3934_s9 + $0x18] sm:$0xff]  }
 0x57a   : > { %2959 = vmatpush3.bf16.xpose.msra.mxu1 %v1877_v20  ;;  %v1415_v21 = vpack.c.bf16 %v1414_v19, %v1413_v45 }
 0x57b   : > { %2960 = vmatprep.subr.bf16.mxu1 %v3161_v23 }
 0x57c   : > { %2893 = vmatmul.mubr.msk.bf16.vlgmr.msra.gmra.mrb[20].mxu0 %vm1216_vm2, %v1415_v21 }
 0x57d   : > { %2904 = vmatprep.mubr.msk.bf16.mxu0 %vm3162_vm0, %v3161_v23  ;;  %2897 = vmatpush3.bf16.msra.mxu0 %v3064_v39  ;;  %v3075_v39 = vld [vmem:[%s3934_s9 + $0x58] sm:$0xff]  }
 0x57e   : > { %2898 = vmatprep.subr.bf16.mxu0 %v3161_v23 }
 0x582   : > { %2961 = vmatpush3.bf16.xpose.msra.mxu1 %v1880_v22  ;;  %v1716_v22 = vpop.permute.xlu1 %1715 }
 0x583   : > { %2962 = vmatprep.subr.bf16.mxu1 %v3161_v23 }
 0x58a   : > { %2963 = vmatpush3.bf16.xpose.msra.mxu1 %v1883_v25 }
 0x591   : > { %2965 = vmatmul.mubr.msk.bf16.vlgmr.msra.gmra.mrb[24].mxu1 %vm1153_vm1, %v1861_v26  ;;  %v1720_v26 = vpop.permute.xlu1 %1719 }
 0x592   : > { %2236 = vmatprep.mubr.bf16.mxu1 %v3160_v2  ;;  %v3065_v2 = vld [vmem:[%s3934_s9 + $0x28] sm:$0xff]  }
 0x593   : > { %2899 = vmatpush3.bf16.msra.mxu0 %v3065_v2 }
 0x594   : > { %2900 = vmatprep.subr.bf16.mxu0 %v3161_v23 }
 0x595   : > { %v1722_v6 = vpop.permute.xlu1 %1721 }
 0x597   : > { %2901 = vmatpush3.bf16.msra.mxu0 %v3066_v47 }
 0x598   : > { %2902 = vmatprep.subr.bf16.mxu0 %v3161_v23 }
 0x5a5   : > { %v1693_v28 = vpop.xlane.xlu0 %1692 }
 0x5a6   : > { %v1695_v35 = vsub.f32 %v1687_v1, %v1693_v28  ;;  %v2643_v1 = vld [vmem:[%s3933_s8 + $0x30] sm:$0xff] }
 0x5a8   : > { %v1698_v36 = vmul.f32 1.442695, %v1695_v35 }
 0x5a9   : > { %v1702_v60 = vpop.xlane.xlu0 %1701 }
 0x5aa   : > { %3138 = vpow2.f32 %v1698_v36 }
 0x5b4   : > { %v3671_v37 = vpop.eup %3138 }
 0x5b5   : > { %v1703_v38 = vsel %vm1216_vm2, %v3671_v37, 0.0 }
 0x5b6   : > { %1704 = vadd.xlane.f32.xlu0 %v1703_v38  ;;  %v3072_v38 = vld [vmem:[%s3934_s9 + $0x40] sm:$0xff]  }
 0x5cc   : > { %1717 = vrot.lane.b32.xlu0 %v3468_v14, %s3163_s23  ;;  %v3067_v14 = vld [vmem:[%s3934_s9 + $0x38] sm:$0xff]  }
 0x5cd   : > { %2903 = vmatpush3.bf16.msra.mxu0 %v3067_v14 }
 0x5ce   : > { %2908 = vmatprep.subr.bf16.mxu0 %v3161_v23 }
 0x643   : > { %v1705_v45 = vpop.xlane.xlu0 %1704 }
 0x644   : > { %3140 = vrcp.f32 %v1705_v45  ;;  %v3092_v45 = vld [vmem:[%s3937_s12 + $0x40] ss:$8 sps:$4 sm:$0xff]  }
 0x645   : > { %3142 = vrcp.f32 %v1702_v60 }
 0x647   : > { %v1718_v25 = vpop.permute.xlu0 %1717 }
 0x64e   : > { %v3141_v28 = vpop.eup %3140 }
 0x64f   : > { %v1453_v48 = vpop.f32.mrb[20].mxu0  ;;  %v3143_v35 = vpop.eup %3142  ;;  %v1709_v36 = vmul.f32 %v3141_v28, %v3671_v37  ;;  %v3074_v37 = vld [vmem:[%s3934_s9 + $0x50] sm:$0xff]  }
 0x650   : > { %v1460_v50 = vadd.f32 3.0, %v1453_v48  ;;  %v2894_v13 = vpop.f32.mrb[21].mxu0  ;;  %v1708_v7 = vmul.f32 %v3143_v35, %v3655_v4  ;;  %v3073_v4 = vld [vmem:[%s3934_s9 + $0x48] sm:$0xff]  }
 0x651   : > { %v1456_v29 = vpop.f32.mrb[22].mxu0 }
 0x652   : > { %v1462_v44 = vmax.f32 %v1460_v50, 0.0  ;;  %v1461_v51 = vadd.f32 3.0, %v1456_v29  ;;  %v2895_v53 = vpop.f32.mrb[23].mxu0 }
 0x654   : > { %v1464_v55 = vmin.f32 %v1462_v44, 6.0  ;;  %v1463_v56 = vmax.f32 %v1461_v51, 0.0 }
 0x656   : > { %v1466_v46 = vmul.f32 %v1464_v55, %v1453_v48  ;;  %v1465_v49 = vmin.f32 %v1463_v56, 6.0 }
 0x658   : > { %v1467_v62 = vmul.f32 %v1465_v49, %v1456_v29  ;;  %v1468_v30 = vmul.f32 0.16666667, %v1466_v46 }
 0x65a   : > { %v1469_v54 = vmul.f32 0.16666667, %v1467_v62 }
 0x65c   : > { %v1470_v57 = vpack.c.bf16 %v1469_v54, %v1468_v30 }
 0x65e   : > { %2905 = vmatmul.mubr.msk.bf16.vlgmr.msra.gmra.mrb[24].mxu0 %vm1216_vm2, %v1470_v57 }
 0x65f   : > { %2909 = vmatpush3.bf16.msra.mxu0 %v3068_v52  ;;  %2916 = vmatprep.mubr.msk.bf16.mxu0 %vm3162_vm0, %v3161_v23 }
 0x660   : > { %2910 = vmatprep.subr.bf16.mxu0 %v3161_v23 }
 0x663   : > { %2911 = vmatpush3.bf16.msra.mxu0 %v3069_v58 }
 0x664   : > { %v1919_v63 = vpop.f32.mrb[24].mxu1  ;;  %2912 = vmatprep.subr.bf16.mxu0 %v3161_v23 }
 0x665   : > { %v1926_v3 = vmul.f32 0.25, %v1919_v63  ;;  %v2966_v61 = vpop.f32.mrb[25].mxu1 }
 0x666   : > { %v1922_v0 = vpop.f32.mrb[26].mxu1 }
 0x667   : > { %2913 = vmatpush3.bf16.msra.mxu0 %v3070_v59  ;;  %v1927_v9 = vmul.f32 0.25, %v1922_v0  ;;  %v2967_v11 = vpop.f32.mrb[27].mxu1  ;;  %v1931_v12 = vadd.f32 %v2643_v1, %v1926_v3  ;;  %v3085_v0 = vld [vmem:[%s3937_s12 + $0x14] ss:$8 sps:$4 sm:$0xff]  }
 0x668   : > { %2914 = vmatprep.subr.bf16.mxu0 %v3161_v23  ;;  %v3091_v11 = vld [vmem:[%s3937_s12 + $0x34] ss:$8 sps:$4 sm:$0xff]  }
 0x669   : > { %v1933_v19 = vsel %vm1216_vm2, %v1931_v12, -inf  ;;  %v1932_v20 = vadd.f32 %v2644_v5, %v1927_v9  ;;  %v3088_v5 = vld [vmem:[%s3937_s12 + $0x24] ss:$8 sps:$4 sm:$0xff]   ;;  %v3086_v9 = vld [vmem:[%s3937_s12 + $0x20] ss:$8 sps:$4 sm:$0xff]  }
 0x66a   : > { %1934 = vmax.xlane.f32.xlu1 %v1933_v19  ;;  %v3097_v19 = vld [vmem:[%s3937_s12 + $0x54] ss:$8 sps:$4 sm:$0xff]  }
 0x66b   : > { %2915 = vmatpush3.bf16.msra.mxu0 %v3071_v16  ;;  %v1936_v21 = vsel %vm1216_vm2, %v1932_v20, -inf  ;;  %v3094_v16 = vld [vmem:[%s3937_s12 + $0x44] ss:$8 sps:$4 sm:$0xff]  }
 0x66c   : > { %1937 = vmax.xlane.f32.xlu0 %v1936_v21  ;;  %2932 = vmatprep.subr.bf16.mxu0 %v3161_v23 }
 0x66e   : > { %2917 = vmatmul.mubr.msk.bf16.vlgmr.msra.gmra.mrb[24].mxu0 %vm1216_vm2, %v1310_v8  ;;  %v1710_v8 = vpack.c.bf16 %v1709_v36, %v1708_v7 }
 0x66f   : > { %2933 = vmatpush3.bf16.msra.mxu0 %v1716_v22  ;;  %2940 = vmatprep.mubr.msk.bf16.mxu0 %vm3162_vm0, %v3161_v23 }
 0x670   : > { %2934 = vmatprep.subr.bf16.mxu0 %v3161_v23 }
 0x673   : > { %2935 = vmatpush3.bf16.msra.mxu0 %v1718_v25 }
 0x674   : > { %2936 = vmatprep.subr.bf16.mxu0 %v3161_v23 }
 0x677   : > { %2937 = vmatpush3.bf16.msra.mxu0 %v1720_v26 }
 0x678   : > { %2938 = vmatprep.subr.bf16.mxu0 %v3161_v23 }
 0x67b   : > { %2939 = vmatpush3.bf16.msra.mxu0 %v1722_v6 }
 0x67c   : > { %2944 = vmatprep.subr.bf16.mxu0 %v3161_v23 }
 0x67e   : > { %2941 = vmatmul.mubr.msk.bf16.vlgmr.msra.gmra.mrb[28].mxu0 %vm1216_vm2, %v1710_v8 }
 0x67f   : > { %2952 = vmatprep.mubr.msk.bf16.mxu0 %vm3162_vm0, %v3161_v23  ;;  %2945 = vmatpush3.bf16.msra.mxu0 %v3072_v38 }
 0x680   : > { %2946 = vmatprep.subr.bf16.mxu0 %v3161_v23 }
 0x683   : > { %2947 = vmatpush3.bf16.msra.mxu0 %v3073_v4 }
 0x684   : > { %2948 = vmatprep.subr.bf16.mxu0 %v3161_v23 }
 0x687   : > { %2949 = vmatpush3.bf16.msra.mxu0 %v3074_v37 }
 0x688   : > { %2950 = vmatprep.subr.bf16.mxu0 %v3161_v23 }
 0x68b   : > { %2951 = vmatpush3.bf16.msra.mxu0 %v3075_v39 }
 0x68c   : > { %2968 = vmatprep.subr.bf16.mxu0 %v3161_v23 }
 0x6f7   : > { %v1935_v2 = vpop.xlane.xlu1 %1934 }
 0x6f8   : > { %v1939_v47 = vsub.f32 %v1931_v12, %v1935_v2  ;;  %v3089_v12 = vld [vmem:[%s3937_s12 + $0x30] ss:$8 sps:$4 sm:$0xff]  }
 0x6f9   : > { %v1938_v14 = vpop.xlane.xlu0 %1937 }
 0x6fa   : > { %v1941_v48 = vmul.f32 1.442695, %v1939_v47  ;;  %v1940_v50 = vsub.f32 %v1932_v20, %v1938_v14  ;;  %v3095_v20 = vld [vmem:[%s3937_s12 + $0x50] ss:$8 sps:$4 sm:$0xff]   ;;  %v3100_v47 = vld [vmem:[%s3937_s12 + $0x64] ss:$8 sps:$4 sm:$0xff]  }
 0x6fb   : > { %v3098_v14 = vld [vmem:[%s3937_s12 + $0x60] ss:$8 sps:$4 sm:$0xff]  }
 0x6fc   : > { %3144 = vpow2.f32 %v1941_v48  ;;  %v1943_v13 = vmul.f32 1.442695, %v1940_v50  ;;  %v3103_v48 = vld [vmem:[%s3937_s12 + $0x74] ss:$8 sps:$4 sm:$0xff]   ;;  %v3101_v50 = vld [vmem:[%s3937_s12 + $0x70] ss:$8 sps:$4 sm:$0xff]  }
 0x6fe   : > { %3146 = vpow2.f32 %v1943_v13  ;;  %v3104_v13 = vld [vmem:[%s3940_s15 + $0x40] sm:$0xff]  }
 0x706   : > { %v3145_v29 = vpop.eup %3144 }
 0x707   : > { %v1945_v44 = vsel %vm1216_vm2, %v3145_v29, 0.0 }
 0x708   : > { %v3147_v51 = vpop.eup %3146  ;;  %1946 = vadd.xlane.f32.xlu0 %v1945_v44  ;;  %v3106_v44 = vld [vmem:[%s3940_s15 + $0x48] sm:$0xff]  }
 0x709   : > { %v1948_v53 = vsel %vm1216_vm2, %v3147_v51, 0.0 }
 0x70c   : > { %1949 = vadd.xlane.f32.xlu0 %v1948_v53  ;;  %v3108_v53 = vld [vmem:[%s3940_s15 + $0x50] sm:$0xff]  }
 0x751   : > { %v1764_v55 = vpop.f32.mrb[28].mxu0 }
 0x752   : > { %v1771_v56 = vadd.f32 3.0, %v1764_v55  ;;  %v2942_v46 = vpop.f32.mrb[29].mxu0 }
 0x753   : > { %v1767_v49 = vpop.f32.mrb[30].mxu0 }
 0x754   : > { %v1773_v62 = vmax.f32 %v1771_v56, 0.0  ;;  %v1772_v30 = vadd.f32 3.0, %v1767_v49  ;;  %v2943_v54 = vpop.f32.mrb[31].mxu0  ;;  %v2651_v56 = vld [vmem:[%s3935_s10] ss:$0 sm:$0xff] }
 0x756   : > { %v1775_v52 = vmin.f32 %v1773_v62, 6.0  ;;  %v1774_v57 = vmax.f32 %v1772_v30, 0.0  ;;  %v2652_v30 = vld [vmem:[%s3936_s11] ss:$0 sm:$0xff] }
 0x758   : > { %v1777_v58 = vmul.f32 %v1775_v52, %v1764_v55  ;;  %v1776_v59 = vmin.f32 %v1774_v57, 6.0  ;;  %v3109_v55 = vld [vmem:[%s3940_s15 + $0x10] sm:$0xff]  }
 0x75a   : > { %v1778_v60 = vmul.f32 %v1776_v59, %v1767_v49  ;;  %v1779_v63 = vmul.f32 0.16666667, %v1777_v58 }
 0x75c   : > { %v1780_v1 = vmul.f32 0.16666667, %v1778_v60 }
 0x75e   : > { %v1781_v3 = vpack.c.bf16 %v1780_v1, %v1779_v63  ;;  %v3110_v63 = vld [vmem:[%s3940_s15 + $0x58] sm:$0xff]  }
 0x75f   : > { %v3111_v1 = vld [vmem:[%s3940_s15 + $0x18] sm:$0xff]  }
 0x760   : > { %2953 = vmatmul.mubr.msk.bf16.vlgmr.msra.gmra.mrb[24].mxu0 %vm1216_vm2, %v1781_v3  ;;  %v3112_v3 = vld [vmem:[%s3940_s15 + $0x60] sm:$0xff]  }
 0x761   : > { %2969 = vmatpush3.bf16.msra.mxu0 %v1014_v42  ;;  %2976 = vmatprep.mubr.msk.bf16.mxu0 %vm3162_vm0, %v3161_v23 }
 0x762   : > { %2970 = vmatprep.subr.bf16.mxu0 %v3161_v23 }
 0x765   : > { %2971 = vmatpush3.bf16.msra.mxu0 %v1016_v40 }
 0x766   : > { %2972 = vmatprep.subr.bf16.mxu0 %v3161_v23 }
 0x769   : > { %2973 = vmatpush3.bf16.msra.mxu0 %v1018_v34  ;;  %v3082_v34 = vld [vmem:[%s3937_s12 + $0x4] ss:$8 sps:$4 sm:$0xff]  }
 0x76a   : > { %2974 = vmatprep.subr.bf16.mxu0 %v3161_v23  ;;  %2204 = vmatprep.subr.bf16.mxu1 %v3082_v34 }
 0x76d   : > { %2975 = vmatpush3.bf16.msra.mxu0 %v1020_v33  ;;  %v3080_v33 = vld [vmem:[%s3937_s12] ss:$8 sps:$4 sm:$0xff]  }
 0x76e   : > { %2980 = vmatprep.subr.bf16.mxu0 %v3161_v23  ;;  %2205 = vmatpush1.bf16.msra.mxu1 %v3080_v33 }
 0x76f   : > { %2206 = vmatprep.subr.bf16.mxu1 %v3085_v0 }
 0x795   : > { %v1947_v15 = vpop.xlane.xlu0 %1946 }
 0x796   : > { %3148 = vrcp.f32 %v1947_v15  ;;  %v3113_v15 = vld [vmem:[%s3940_s15 + $0x20] sm:$0xff]  }
 0x799   : > { %v1950_v18 = vpop.xlane.xlu0 %1949 }
 0x79a   : > { %3150 = vrcp.f32 %v1950_v18  ;;  %v3114_v18 = vld [vmem:[%s3940_s15 + $0x68] sm:$0xff]  }
 0x7a0   : > { %v3149_v10 = vpop.eup %3148 }
 0x7a1   : > { %v1953_v40 = vmul.f32 %v3149_v10, %v3145_v29  ;;  %v3105_v29 = vld [vmem:[%s3940_s15] sm:$0xff]   ;;  %v3115_v10 = vld [vmem:[%s3940_s15 + $0x28] sm:$0xff]  }
 0x7a4   : > { %v3151_v17 = vpop.eup %3150 }
 0x7a5   : > { %v1954_v42 = vmul.f32 %v3151_v17, %v3147_v51  ;;  %v3107_v51 = vld [vmem:[%s3940_s15 + $0x8] sm:$0xff]   ;;  %v3116_v17 = vld [vmem:[%s3940_s15 + $0x70] sm:$0xff]  }
 0x7a7   : > { %v1955_v61 = vpack.c.bf16 %v1954_v42, %v1953_v40  ;;  %v3117_v40 = vld [vmem:[%s3940_s15 + $0x30] sm:$0xff]   ;;  %v3118_v42 = vld [vmem:[%s3940_s15 + $0x78] sm:$0xff]  }
 0x7a9   : > { %2977 = vmatmul.mubr.msk.bf16.vlgmr.msra.gmra.mrb[32].mxu0 %vm1216_vm2, %v1955_v61  ;;  %v3119_v61 = vld [vmem:[%s3940_s15 + $0x38] sm:$0xff]  }
 0x7aa   : > { %2988 = vmatprep.mubr.msk.bf16.mxu0 %vm3162_vm0, %v3161_v23  ;;  %2981 = vmatpush3.bf16.msra.mxu0 %v3076_v24  ;;  %v2247_v24 = vld [vmem:[%s3938_s13] sm:$0x3] }
 0x7ab   : > { %2982 = vmatprep.subr.bf16.mxu0 %v3161_v23 }
 0x7ae   : > { %2983 = vmatpush3.bf16.msra.mxu0 %v3077_v27  ;;  %v2263_v27 = vld [vmem:[%s3939_s14] sm:$0x3] }
 0x7af   : > { %2984 = vmatprep.subr.bf16.mxu0 %v3161_v23  ;;  %v2268_v33 = vrot.slane %v2263_v27, %v3410_v41  ;;  %v2272_v0 = vrot.slane %v2263_v27, %v3418_v43 }
 0x7b2   : > { %2985 = vmatpush3.bf16.msra.mxu0 %v3078_v31  ;;  %v2252_v31 = vrot.slane %v2247_v24, %v3410_v41 }
 0x7b3   : > { %2986 = vmatprep.subr.bf16.mxu0 %v3161_v23  ;;  %v3083_v23 = vld [vmem:[%s3937_s12 + $0x10] ss:$8 sps:$4 sm:$0xff]  }
 0x7b4   : > { %2207 = vmatpush1.bf16.msra.mxu1 %v3083_v23 }
 0x7b5   : > { %2208 = vmatprep.subr.bf16.mxu1 %v3088_v5 }
 0x7b6   : > { %2987 = vmatpush3.bf16.msra.mxu0 %v3079_v32  ;;  %v2256_v32 = vrot.slane %v2247_v24, %v3418_v43 }
 0x7b7   : > { %2782 = vmatprep.subr.bf16.mxu0 %v3104_v13 }
 0x7b8   : > { %2209 = vmatpush1.bf16.msra.mxu1 %v3086_v9 }
 0x7b9   : > { %2210 = vmatprep.subr.bf16.mxu1 %v3091_v11 }
 0x7bc   : > { %2211 = vmatpush1.bf16.msra.mxu1 %v3089_v12 }
 0x7bd   : > { %2212 = vmatprep.subr.bf16.mxu1 %v3094_v16 }
 0x7c0   : > { %2213 = vmatpush1.bf16.msra.mxu1 %v3092_v45 }
 0x7c1   : > { %2214 = vmatprep.subr.bf16.mxu1 %v3097_v19 }
 0x7c4   : > { %2215 = vmatpush1.bf16.msra.mxu1 %v3095_v20 }
 0x7c5   : > { %2216 = vmatprep.subr.bf16.mxu1 %v3100_v47 }
 0x7c8   : > { %2217 = vmatpush1.bf16.msra.mxu1 %v3098_v14 }
 0x7c9   : > { %2218 = vmatprep.subr.bf16.mxu1 %v3103_v48 }
 0x7cc   : > { %2219 = vmatpush1.bf16.msra.mxu1 %v3101_v50 }
 0x87c   : > { %v1993_v21 = vpop.f32.mrb[32].mxu0 }
 0x87d   : > { %v2000_v22 = vadd.f32 3.0, %v1993_v21  ;;  %v2978_v25 = vpop.f32.mrb[33].mxu0 }
 0x87e   : > { %v1996_v26 = vpop.f32.mrb[34].mxu0 }
 0x87f   : > { %v2002_v28 = vmax.f32 %v2000_v22, 0.0  ;;  %v2001_v35 = vadd.f32 3.0, %v1996_v26  ;;  %v2979_v36 = vpop.f32.mrb[35].mxu0 }
 0x881   : > { %v2004_v6 = vmin.f32 %v2002_v28, 6.0  ;;  %v2003_v7 = vmax.f32 %v2001_v35, 0.0 }
 0x883   : > { %v2006_v8 = vmul.f32 %v2004_v6, %v1993_v21  ;;  %v2005_v38 = vmin.f32 %v2003_v7, 6.0 }
 0x885   : > { %v2007_v4 = vmul.f32 %v2005_v38, %v1996_v26  ;;  %v2008_v37 = vmul.f32 0.16666667, %v2006_v8 }
 0x887   : > { %v2009_v39 = vmul.f32 0.16666667, %v2007_v4 }
 0x889   : > { %v2010_v2 = vpack.c.bf16 %v2009_v39, %v2008_v37 }
 0x88b   : > { %2989 = vmatmul.mubr.msk.bf16.vlgmr.msra.gmra.mrb[24].mxu0 %vm1216_vm2, %v2010_v2 }
 0x88c   : > { %2783 = vmatpush3.bf16.msra.mxu0 %v3105_v29 }
 0x88d   : > { %2784 = vmatprep.subr.bf16.mxu0 %v3106_v44 }
 0x890   : > { %2785 = vmatpush3.bf16.msra.mxu0 %v3107_v51 }
 0x891   : > { %2786 = vmatprep.subr.bf16.mxu0 %v3108_v53 }
 0x894   : > { %2787 = vmatpush3.bf16.msra.mxu0 %v3109_v55  ;;  %v2685_v55 = vld [vmem:[%s3941_s16] ss:$0 sm:$0xff] }
 0x895   : > { %2788 = vmatprep.subr.bf16.mxu0 %v3110_v63 }
 0x898   : > { %2789 = vmatpush3.bf16.msra.mxu0 %v3111_v1 }
 0x899   : > { %2790 = vmatprep.subr.bf16.mxu0 %v3112_v3 }
 0x89c   : > { %2791 = vmatpush3.bf16.msra.mxu0 %v3113_v15 }
 0x89d   : > { %2792 = vmatprep.subr.bf16.mxu0 %v3114_v18 }
 0x8a0   : > { %2793 = vmatpush3.bf16.msra.mxu0 %v3115_v10 }
 0x8a1   : > { %2794 = vmatprep.subr.bf16.mxu0 %v3116_v17 }
 0x8a4   : > { %2795 = vmatpush3.bf16.msra.mxu0 %v3117_v40 }
 0x8a5   : > { %2796 = vmatprep.subr.bf16.mxu0 %v3118_v42 }
 0x8a8   : > { %2797 = vmatpush3.bf16.msra.mxu0 %v3119_v61 }
 0x95e   : > { %v2080_v46 = vpop.f32.mrb[24].mxu0 }
 0x95f   : > { %v2096_v49 = vmul.f32 %v2651_v56, %v2080_v46  ;;  %v2990_v62 = vpop.f32.mrb[25].mxu0 }
 0x960   : > { %v2083_v54 = vpop.f32.mrb[26].mxu0 }
 0x961   : > { %v2097_v52 = vmul.f32 %v2651_v56, %v2083_v54  ;;  %v2991_v57 = vpop.f32.mrb[27].mxu0  ;;  %v3863_v58 = vadd.f32 %v2652_v30, %v2096_v49  ;;  %v2686_v49 = vld [vmem:[%s3942_s17] ss:$0 sm:$0xff] }
 0x963   : > { %v3865_v59 = vadd.f32 %v2652_v30, %v2097_v52 }
 0x965   : > { %v2107_v60 = vpack.c.bf16 %v3865_v59, %v3863_v58 }
 0x967   : > { %2237 = vmatmul.mubr.bf16.vlgmr.msra.gmra.mrb[28].mxu1 %v2107_v60 }
 0xa3a   : > { %v2238_v34 = vpop.f32.mrb[28].mxu1 }
 0xa3b   : > { %v2259_v23 = vmul.f32 %v2252_v31, %v2238_v34  ;;  %v2240_v5 = vpop.f32.mrb[29].mxu1 }
 0xa3c   : > { %v2260_v9 = vmul.f32 %v2256_v32, %v2240_v5  ;;  %v2242_v11 = vpop.f32.mrb[30].mxu1 }
 0xa3d   : > { %v2275_v12 = vadd.f32 %v2268_v33, %v2259_v23  ;;  %v2261_v16 = vmul.f32 %v2252_v31, %v2242_v11  ;;  %v2244_v45 = vpop.f32.mrb[31].mxu1 }
 0xa3e   : > { %v2276_v19 = vadd.f32 %v2272_v0, %v2260_v9  ;;  %v2262_v20 = vmul.f32 %v2256_v32, %v2244_v45 }
 0xa3f   : > { %v2279_v21 = vadd.f32 3.0, %v2275_v12  ;;  %v2277_v22 = vadd.f32 %v2268_v33, %v2261_v16 }
 0xa40   : > { %v2280_v25 = vadd.f32 3.0, %v2276_v19  ;;  %v2278_v26 = vadd.f32 %v2272_v0, %v2262_v20 }
 0xa41   : > { %v2283_v28 = vmax.f32 %v2279_v21, 0.0  ;;  %v2281_v35 = vadd.f32 3.0, %v2277_v22 }
 0xa42   : > { %v2284_v36 = vmax.f32 %v2280_v25, 0.0  ;;  %v2282_v41 = vadd.f32 3.0, %v2278_v26 }
 0xa43   : > { %v2287_v6 = vmin.f32 %v2283_v28, 6.0  ;;  %v2285_v7 = vmax.f32 %v2281_v35, 0.0 }
 0xa44   : > { %v2288_v43 = vmin.f32 %v2284_v36, 6.0  ;;  %v2286_v8 = vmax.f32 %v2282_v41, 0.0 }
 0xa45   : > { %v2291_v38 = vmul.f32 %v2287_v6, %v2275_v12  ;;  %v2289_v4 = vmin.f32 %v2285_v7, 6.0 }
 0xa46   : > { %v2292_v37 = vmul.f32 %v2288_v43, %v2276_v19  ;;  %v2290_v39 = vmin.f32 %v2286_v8, 6.0 }
 0xa47   : > { %v2293_v2 = vmul.f32 %v2289_v4, %v2277_v22  ;;  %v2295_v14 = vmul.f32 0.16666667, %v2291_v38 }
 0xa48   : > { %v2294_v47 = vmul.f32 %v2290_v39, %v2278_v26  ;;  %v2296_v50 = vmul.f32 0.16666667, %v2292_v37 }
 0xa49   : > { %v2297_v48 = vmul.f32 0.16666667, %v2293_v2 }
 0xa4a   : > { %v2298_v13 = vmul.f32 0.16666667, %v2294_v47 }
 0xa4b   : > { %v2299_v29 = vpack.c.bf16 %v2297_v48, %v2295_v14 }
 0xa4c   : > { %v2300_v44 = vpack.c.bf16 %v2298_v13, %v2296_v50 }
 0xa4e   : > { %2461 = vmatprep.mubr.bf16.mxu0 %v2300_v44 }
 0xa4f   : > { %2462 = vmatmul.mubr.bf16.vlgmr.msra.gmra.mrb[36].mxu0 %v2299_v29 }
 0xb22   : > { %v2798_v51 = vpop.f32.mrb[36].mxu0 }
 0xb23   : > { %v2799_v53 = vpop.f32.mrb[37].mxu0 }
 0xb24   : > { %v2800_v56 = vadd.f32 %v2799_v53, %v2798_v51  ;;  %v2801_v46 = vpop.f32.mrb[38].mxu0 }
 0xb25   : > { %v2802_v62 = vpop.f32.mrb[39].mxu0 }
 0xb26   : > { %v2477_v30 = vmul.f32 %v2800_v56, %v2685_v55  ;;  %v2803_v54 = vadd.f32 %v2802_v62, %v2801_v46 }
 0xb28   : > { %v2486_v52 = vadd.f32 %v2686_v49, %v2477_v30  ;;  %v2478_v57 = vmul.f32 %v2803_v54, %v2685_v55 }
 0xb2a   : > { %v2487_v60 = vadd.f32 %v2686_v49, %v2478_v57  ;;  %v2488_v63 = vadd.f32 %v2486_v52, %v3863_v58 }
 0xb2c   : > { %v2489_v1 = vadd.f32 %v2487_v60, %v3865_v59 }
 0xb2e   : > { %v2699_v3 = vpack.c.bf16 %v2489_v1, %v2488_v63 }
 0xb30   : > { %2700 = vst [vmem:[%s595_s25] sm:$0xff] %v2699_v3  }
 0xb31 PF: > { %s3955_s22 = sld [smem:[#allocation2_spill]] }
 0xb37   : > { %s28_s27 = sadd.s32 1, %s3955_s22  }
 0xb38   : > { %p25_p4 = scmp.ge.s32.totalorder %s28_s27, 4  }
 0xb3a   :  { %27 = sbr.rel (!%p25_p4) target bundleno = 5 (0x5), region = 128 }

// kernel: _lambda_.7
= control target key start
LH: loop header
LB: loop body
LE: loop exit
PB: predicated region body
PF: predicated region fallthrough
CT: control target
= control target key end

     0   :  { %s3131_s0 = inlined_call_operand.vmem [shape: bf16[2,16,128], index: 0, kind: input, shape index: {}]   ;;  %s3132_s1 = inlined_call_operand.vmem [shape: bf16[128,256], index: 1, kind: input, shape index: {}]   ;;  %s3133_s2 = inlined_call_operand.vmem [shape: f32[1,256], index: 2, kind: input, shape index: {}]   ;;  %s3134_s3 = inlined_call_operand.vmem [shape: f32[1,256], index: 3, kind: input, shape index: {}]   ;;  %s3135_s4 = inlined_call_operand.vmem [shape: f32[4,16,16], index: 4, kind: input, shape index: {}]   ;;  %s3136_s5 = inlined_call_operand.vmem [shape: bf16[128,128], index: 5, kind: input, shape index: {}]   ;;  %s3137_s6 = inlined_call_operand.hbm [shape: f32[1,128], index: 6, kind: input, shape index: {}]   ;;  %s3138_s7 = inlined_call_operand.hbm [shape: f32[1,128], index: 7, kind: input, shape index: {}]   ;;  %s3139_s8 = inlined_call_operand.vmem [shape: bf16[128,256], index: 8, kind: input, shape index: {}]   ;;  %s3140_s9 = inlined_call_operand.vmem [shape: f32[1,256], index: 9, kind: input, shape index: {}]   ;;  %s3141_s10 = inlined_call_operand.vmem [shape: f32[1,256], index: 10, kind: input, shape index: {}]   ;;  %s3142_s11 = inlined_call_operand.vmem [shape: bf16[256,128], index: 11, kind: input, shape index: {}]   ;;  %s3143_s12 = inlined_call_operand.hbm [shape: f32[1,128], index: 12, kind: input, shape index: {}]   ;;  %s3144_s13 = inlined_call_operand.hbm [shape: f32[1,128], index: 13, kind: input, shape index: {}]   ;;  %s3145_s14 = inlined_call_operand.vmem [shape: bf16[2,16,128], index: 14, kind: output, shape index: {}]  }
   0x1   :  { %3149 = sst [smem:[#allocation13_spill]] %s3145_s14 }
   0x2   :  { %19 = vsyncpa [#allocation3], 0 }
   0x3   :  { %20 = vsyncpa [#allocation5], 0 }
   0x4   :  { %21 = vsyncpa [#allocation8], 0  ;;  %s2645_s29 = smov 0  }
   0x5 LB: > { %3150 = sst [smem:[#allocation12_spill]] %s2554_s29  ;;  %s2651_s30 = sadd.s32 4294967295, %s2554_s29   ;;  %s2554_s29 = sphi %s2645_s29, %s27_s29  }
   0x6   : > { %p2012_p0 = scmp.ge.s32.totalorder %s2554_s29, 1  ;;  %p357_p1 = scmp.lt.s32.totalorder %s2554_s29, 3 }
   0x7   : > { %p3146_p2 = scmp.eq.s32.totalorder %s2651_s30, 0  ;;  %s2556_s15 = smov [#allocation4]  }
   0x8   : > { %s396_s16 = sshll.u32 %s2556_s15, 4  ;;  %p2656_p3 = pnand %p2012_p0, %p357_p1  ;;  %s397_s16 = int_to_ptr.vmem [resolvable:$true] %s396_s16 }
   0x9   : > { %s2557_s18 = smov [#allocation2]   ;;  %s2558_s20 = smov [#allocation6]  }
   0xa   : > { %s3151_s17 = scalar_select %p2656_p3, 1, 0 }
   0xb   : > { %s385_s19 = sshll.u32 %s2557_s18, 4  ;;  %p2275_p4 = pneg %p2656_p3  ;;  %s2668_s19 = int_to_ptr.vmem [resolvable:$true] %s385_s19 }
   0xc   : > { %s419_s21 = sshll.u32 %s2558_s20, 4  ;;  %s2559_s23 = smov [#allocation7]   ;;  %s2670_s21 = int_to_ptr.vmem [resolvable:$true] %s419_s21 }
   0xd   : > { %p2664_p5 = pnand %p3146_p2, %p2275_p4  ;;  %s430_s24 = sshll.u32 %s2559_s23, 4  ;;  %s2672_s24 = int_to_ptr.vmem [resolvable:$true] %s430_s24 }
   0xe   : > { %s2424_s27 = scalar_lea.hbm %s3138_s7, 16 }
   0xf   : > { %p2425_p6 = scmp.ne.s32.totalorder %s3138_s7, %s2424_s27  ;;  %p2682_p7 = pneg %p2664_p5 }
  0x10   : > { %p2431_p10 = scmp.lt.u32.totalorder %s2424_s27, %s3138_s7 }
  0x11   : > { %p2427_p8 = pnand %p2682_p7, %p2425_p6 }
  0x13   : > { %p2428_p9 = pneg %p2427_p8 }
  0x15   : > { %p2433_p11 = pnand %p2431_p10, %p2428_p9 }
  0x17   : > { %2436 = shalt.err (!%p2433_p11)
}
  0x18   : > { %s2437_s25 = scalar_lea.vmem %s397_s16, 16  ;;  %s2444_s26 = scalar_lea.vmem %s397_s16, 32 }
  0x19   : > { %p2438_p12 = scmp.ne.s32.totalorder %s397_s16, %s2437_s25  ;;  %p2445_p1 = scmp.lt.s32.totalorder %s397_s16, %s397_s16 }
  0x1a   : > { %p2446_p4 = scmp.lt.s32.totalorder %s2444_s26, %s2437_s25 }
  0x1b   : > { %p2440_p13 = pnand %p2438_p12, %p2682_p7 }
  0x1c   : > { %p2447_p2 = por %p2446_p4, %p2445_p1 }
  0x1d   : > { %p2441_p0 = pneg %p2440_p13 }
  0x1f   : > { %p2448_p3 = pnand %p2447_p2, %p2441_p0 }
  0x21   : > { %2451 = shalt.err (!%p2448_p3)
}
  0x22   : > { %2281 = dma.hbm_to_vmem [thread:$0]  (!%p2664_p5), %s3138_s7, 16, %s397_s16, [#allocation5]  }
  0x23   : > { %s2452_s23 = scalar_lea.hbm %s3137_s6, 16 }
  0x24   : > { %p2453_p6 = scmp.ne.s32.totalorder %s3137_s6, %s2452_s23  ;;  %p2459_p2 = scmp.lt.u32.totalorder %s2452_s23, %s3137_s6 }
  0x26   : > { %p2455_p8 = pnand %p2453_p6, %p2682_p7 }
  0x28   : > { %p2456_p9 = pneg %p2455_p8 }
  0x2a   : > { %p2461_p3 = pnand %p2459_p2, %p2456_p9 }
  0x2c   : > { %2464 = shalt.err (!%p2461_p3)
}
  0x2d   : > { %s2465_s16 = scalar_lea.vmem %s2668_s19, 16  ;;  %s2472_s14 = scalar_lea.vmem %s2668_s19, 32 }
  0x2e   : > { %p2466_p10 = scmp.ne.s32.totalorder %s2668_s19, %s2465_s16  ;;  %p2473_p13 = scmp.lt.s32.totalorder %s2668_s19, %s2668_s19 }
  0x2f   : > { %p2474_p0 = scmp.lt.s32.totalorder %s2472_s14, %s2465_s16 }
  0x30   : > { %p2468_p11 = pnand %p2466_p10, %p2682_p7 }
  0x31   : > { %p2475_p1 = por %p2474_p0, %p2473_p13 }
  0x32   : > { %p2469_p12 = pneg %p2468_p11 }
  0x34   : > { %p2476_p4 = pnand %p2475_p1, %p2469_p12 }
  0x36   : > { %2479 = shalt.err (!%p2476_p4)
}
  0x37   : > { %2278 = dma.hbm_to_vmem [thread:$0]  (!%p2664_p5), %s3137_s6, 16, %s2668_s19, [#allocation3]  }
  0x38   : > { %s2480_s20 = scalar_lea.hbm %s3143_s12, 16 }
  0x39   : > { %p2481_p6 = scmp.ne.s32.totalorder %s3143_s12, %s2480_s20  ;;  %p2487_p2 = scmp.lt.u32.totalorder %s2480_s20, %s3143_s12 }
  0x3b   : > { %p2483_p8 = pnand %p2481_p6, %p2682_p7 }
  0x3d   : > { %p2484_p9 = pneg %p2483_p8 }
  0x3f   : > { %p2489_p3 = pnand %p2487_p2, %p2484_p9 }
  0x41   : > { %2492 = shalt.err (!%p2489_p3)
}
  0x42   : > { %s2493_s19 = scalar_lea.vmem %s2670_s21, 16  ;;  %s2500_s14 = scalar_lea.vmem %s2670_s21, 32 }
  0x43   : > { %p2494_p10 = scmp.ne.s32.totalorder %s2670_s21, %s2493_s19  ;;  %p2501_p13 = scmp.lt.s32.totalorder %s2670_s21, %s2670_s21 }
  0x44   : > { %p2502_p0 = scmp.lt.s32.totalorder %s2500_s14, %s2493_s19 }
  0x45   : > { %p2496_p11 = pnand %p2494_p10, %p2682_p7 }
  0x46   : > { %p2503_p1 = por %p2502_p0, %p2501_p13 }
  0x47   : > { %p2497_p12 = pneg %p2496_p11 }
  0x49   : > { %p2504_p4 = pnand %p2503_p1, %p2497_p12 }
  0x4b   : > { %2507 = shalt.err (!%p2504_p4)
}
  0x4c   : > { %2284 = dma.hbm_to_vmem [thread:$0]  (!%p2664_p5), %s3143_s12, 16, %s2670_s21, [#allocation5]  }
  0x4d   : > { %s2508_s20 = scalar_lea.hbm %s3144_s13, 16 }
  0x4e   : > { %p2509_p6 = scmp.ne.s32.totalorder %s3144_s13, %s2508_s20  ;;  %p2515_p2 = scmp.lt.u32.totalorder %s2508_s20, %s3144_s13 }
  0x50   : > { %p2511_p8 = pnand %p2509_p6, %p2682_p7 }
  0x52   : > { %p2512_p9 = pneg %p2511_p8 }
  0x54   : > { %p2517_p3 = pnand %p2515_p2, %p2512_p9 }
  0x56   : > { %2520 = shalt.err (!%p2517_p3)
}
  0x57   : > { %s2521_s21 = scalar_lea.vmem %s2672_s24, 16  ;;  %s2528_s19 = scalar_lea.vmem %s2672_s24, 32 }
  0x58   : > { %p2522_p10 = scmp.ne.s32.totalorder %s2672_s24, %s2521_s21  ;;  %p2529_p13 = scmp.lt.s32.totalorder %s2672_s24, %s2672_s24 }
  0x59   : > { %p2530_p0 = scmp.lt.s32.totalorder %s2528_s19, %s2521_s21 }
  0x5a   : > { %p2524_p11 = pnand %p2522_p10, %p2682_p7 }
  0x5b   : > { %p2531_p1 = por %p2530_p0, %p2529_p13 }
  0x5c   : > { %p2525_p12 = pneg %p2524_p11 }
  0x5e   : > { %p2532_p4 = pnand %p2531_p1, %p2525_p12 }
  0x60   : > { %2535 = shalt.err (!%p2532_p4)
}
  0x61   : > { %2287 = dma.hbm_to_vmem [thread:$0]  (!%p2664_p5), %s3144_s13, 16, %s2672_s24, [#allocation8]  }
  0x62   : > { %p3154_p6 = scmp.ne.s32.totalorder %s3151_s17, 0 }
  0x63   : > { %p3155_p7 = scmp.eq.s32.totalorder (!%p3154_p6), %s2651_s30, 0 }
  0x64   : > { %451 = sbr.rel (%p3154_p6) target bundleno = 3793 (0xed1), region = 76 }
  0x6b   : > { %2541 = dma.done.wait (%p3155_p7), [#allocation3], 16   ;;  %p3156_p8 = pmov %p3155_p7 }
  0x6c   : > { %p3157_p9 = pmov %p3155_p7 }
  0x6d   : > { %2543 = vsyncadd (%p3156_p8), [#allocation3], 4294967280 }
  0x6e   : > { %2545 = dma.done.wait (%p3157_p9), [#allocation5], 32   ;;  %p3158_p2 = pmov %p3155_p7 }
  0x70   : > { %2547 = vsyncadd (%p3158_p2), [#allocation5], 4294967264  ;;  %p3159_p3 = pmov %p3158_p2 }
  0x71   : > { %p3160_p5 = pmov %p3158_p2 }
  0x72   : > { %2549 = dma.done.wait (%p3159_p3), [#allocation8], 16  }
  0x73   : > { %2551 = vsyncadd (%p3160_p5), [#allocation8], 4294967280  ;;  %v2560_v0 = vmov 0   ;;  %v2318_v1 = vld [vmem:[%s3132_s1 + $0x4] ss:$8 sps:$4 sm:$0xff]   ;;  %p509_p10 = scmp.lt.s32.totalorder %s2651_s30, 1  ;;  %v669_v18 = vlaneseq }
  0x74   : > { %656 = vmatprep.mubr.bf16.mxu0 %v2560_v0  ;;  %v2320_v2 = vld [vmem:[%s3132_s1] ss:$8 sps:$4 sm:$0xff]   ;;  %624 = vmatprep.subr.bf16.mxu0 %v2318_v1  ;;  %v2321_v3 = vld [vmem:[%s3132_s1 + $0x14] ss:$8 sps:$4 sm:$0xff]   ;;  %v2323_v4 = vld [vmem:[%s3132_s1 + $0x10] ss:$8 sps:$4 sm:$0xff]  }
  0x75   : > { %625 = vmatpush1.bf16.msra.mxu0 %v2320_v2  ;;  %v2324_v5 = vld [vmem:[%s3132_s1 + $0x24] ss:$8 sps:$4 sm:$0xff]   ;;  %v2326_v6 = vld [vmem:[%s3132_s1 + $0x20] ss:$8 sps:$4 sm:$0xff]   ;;  %v2327_v7 = vld [vmem:[%s3132_s1 + $0x34] ss:$8 sps:$4 sm:$0xff]  }
  0x76   : > { %626 = vmatprep.subr.bf16.mxu0 %v2321_v3  ;;  %v2329_v8 = vld [vmem:[%s3132_s1 + $0x30] ss:$8 sps:$4 sm:$0xff]   ;;  %v2330_v9 = vld [vmem:[%s3132_s1 + $0x44] ss:$8 sps:$4 sm:$0xff]   ;;  %s3164_s30 = smov (!%p509_p10, %s2651_s30), 1  ;;  %v670_v19 = vshrl.u32 %v669_v18, 7 }
  0x77   : > { %v2332_v10 = vld [vmem:[%s3132_s1 + $0x40] ss:$8 sps:$4 sm:$0xff]   ;;  %v2333_v11 = vld [vmem:[%s3132_s1 + $0x54] ss:$8 sps:$4 sm:$0xff]   ;;  %v2335_v12 = vld [vmem:[%s3132_s1 + $0x50] ss:$8 sps:$4 sm:$0xff]  }
  0x78   : > { %v2336_v13 = vld [vmem:[%s3132_s1 + $0x64] ss:$8 sps:$4 sm:$0xff]   ;;  %s2110_s26 = sshll.u32 %s3164_s30, 3  ;;  %v2338_v14 = vld [vmem:[%s3132_s1 + $0x60] ss:$8 sps:$4 sm:$0xff]   ;;  %v2846_v20 = vsub.s32 0, %v670_v19 }
  0x79   : > { %627 = vmatpush1.bf16.msra.mxu0 %v2323_v4  ;;  %v2339_v15 = vld [vmem:[%s3132_s1 + $0x74] ss:$8 sps:$4 sm:$0xff]   ;;  %s513_s22 = scalar_lea.vmem %s3131_s0, %s2110_s26  ;;  %v2341_v16 = vld [vmem:[%s3132_s1 + $0x70] ss:$8 sps:$4 sm:$0xff]   ;;  %v667_v21 = vld [vmem:[%s3133_s2] sm:$0x3] }
  0x7a   : > { %628 = vmatprep.subr.bf16.mxu0 %v2324_v5  ;;  %v2843_v17 = vld [vmem:[%s513_s22] sm:$0xff]   ;;  %v2851_v22 = vsub.s32 1, %v670_v19  ;;  %v2561_v23 = vmov 0.0   ;;  %v672_v24 = vrot.slane %v667_v21, %v2846_v20  ;;  %vm2562_vm0 = vmmov 0   ;;  %s2563_s23 = smov 64   ;;  %v755_v50 = vld [vmem:[%s3135_s4 + $0x8] sm:$0xff] }
  0x7b   : > { %2169 = vmatprep.subr.bf16.mxu1 %v2561_v23  ;;  %v683_v25 = vld [vmem:[%s3134_s3] sm:$0x3]  ;;  %2171 = vmatprep.mubr.msk.bf16.mxu1 %vm2562_vm0, %v2561_v23  ;;  %vm704_vm1 = vcmask 130048   ;;  %s2564_s14 = smov 48   ;;  %s2565_s29 = smov 112   ;;  %vm996_vm2 = vcmask 261120  }
  0x7c   : > { %v676_v26 = vrot.slane %v667_v21, %v2851_v22  ;;  %v692_v28 = vrot.slane %v683_v25, %v2851_v22  ;;  %v688_v30 = vrot.slane %v683_v25, %v2846_v20  ;;  %v754_v46 = vld [vmem:[%s3135_s4] sm:$0xff]  ;;  %s2566_s25 = smov 96   ;;  %s2567_s16 = smov 32  }
  0x7d   : > { %629 = vmatpush1.bf16.msra.mxu0 %v2326_v6  ;;  %s2568_s28 = smov 16   ;;  %s2569_s15 = smov 80  }
  0x7e   : > { %630 = vmatprep.subr.bf16.mxu0 %v2327_v7 }
  0x81   : > { %631 = vmatpush1.bf16.msra.mxu0 %v2329_v8 }
  0x82   : > { %632 = vmatprep.subr.bf16.mxu0 %v2330_v9 }
  0x85   : > { %633 = vmatpush1.bf16.msra.mxu0 %v2332_v10 }
  0x86   : > { %634 = vmatprep.subr.bf16.mxu0 %v2333_v11 }
  0x89   : > { %635 = vmatpush1.bf16.msra.mxu0 %v2335_v12 }
  0x8a   : > { %636 = vmatprep.subr.bf16.mxu0 %v2336_v13 }
  0x8d   : > { %637 = vmatpush1.bf16.msra.mxu0 %v2338_v14  ;;  %v2343_v14 = vld [vmem:[%s3136_s5] sm:$0xff]  }
  0x8e   : > { %638 = vmatprep.subr.bf16.mxu0 %v2339_v15  ;;  %v2344_v15 = vld [vmem:[%s3136_s5 + $0x8] sm:$0xff]  }
  0x91   : > { %639 = vmatpush1.bf16.msra.mxu0 %v2341_v16 }
  0x92   : > { %2201 = vmatprep.subr.bf16.mxu0 %v2561_v23 }
  0x94   : > { %657 = vmatmul.mubr.bf16.vlgmr.msra.gmra.mrb[0].mxu0 %v2843_v17 }
  0x95   : > { %2205 = vmatprep.mubr.msk.bf16.mxu0 %vm2562_vm0, %v2561_v23  ;;  %2202 = vmatpush3.bf16.msra.mxu0 %v2343_v14 }
  0x96   : > { %2203 = vmatprep.subr.bf16.mxu0 %v2561_v23 }
  0x99   : > { %2204 = vmatpush3.bf16.msra.mxu0 %v2344_v15 }
  0x9a   : > { %2221 = vmatprep.subr.bf16.mxu0 %v2561_v23 }
 0x167   : > { %v658_v27 = vpop.f32.mrb[0].mxu0 }
 0x168   : > { %v679_v29 = vmul.f32 %v672_v24, %v658_v27  ;;  %v660_v31 = vpop.f32.mrb[1].mxu0 }
 0x169   : > { %v680_v32 = vmul.f32 %v676_v26, %v660_v31  ;;  %v662_v33 = vpop.f32.mrb[2].mxu0 }
 0x16a   : > { %v681_v34 = vmul.f32 %v672_v24, %v662_v33  ;;  %v664_v35 = vpop.f32.mrb[3].mxu0  ;;  %v695_v38 = vadd.f32 %v688_v30, %v679_v29 }
 0x16b   : > { %v696_v36 = vadd.f32 %v692_v28, %v680_v32  ;;  %v682_v37 = vmul.f32 %v676_v26, %v664_v35  ;;  %v2047_v32 = vld [vmem:[%s3135_s4 + $0x10] sm:$0xff] }
 0x16c   : > { %v697_v39 = vadd.f32 %v688_v30, %v681_v34 }
 0x16d   : > { %v698_v40 = vadd.f32 %v692_v28, %v682_v37  ;;  %v2048_v37 = vld [vmem:[%s3135_s4 + $0x18] sm:$0xff] }
 0x16e   : > { %v2866_v41 = vpack.c.bf16 %v697_v39, %v695_v38 }
 0x16f   : > { %v2868_v42 = vpack.c.bf16 %v698_v40, %v696_v36 }
 0x170   : > { %702 = vrot.lane.b32.xlu0 %v2866_v41, %s2563_s23 }
 0x1e2   : > { %v703_v43 = vpop.permute.xlu0 %702 }
 0x1e3   : > { %v709_v44 = vsel %vm704_vm1, %v703_v43, 0 }
 0x1e4   : > { %2170 = vmatpush3.bf16.xpose.msra.mxu1 %v709_v44 }
 0x1e5   : > { %2175 = vmatprep.subr.bf16.mxu1 %v2561_v23 }
 0x1eb   : > { %2172 = vmatmul.mubr.msk.bf16.vlgmr.msra.gmra.mrb[0].mxu1 %vm704_vm1, %v2866_v41 }
 0x1ec   : > { %2176 = vmatpush3.bf16.msra.mxu1 %v2868_v42  ;;  %2177 = vmatprep.mubr.msk.bf16.mxu1 %vm2562_vm0, %v2561_v23 }
 0x1ed   : > { %2181 = vmatprep.subr.bf16.mxu1 %v2561_v23 }
 0x2be   : > { %v745_v45 = vpop.f32.mrb[0].mxu1 }
 0x2bf   : > { %v752_v47 = vmul.f32 0.25, %v745_v45  ;;  %v2173_v48 = vpop.f32.mrb[1].mxu1 }
 0x2c0   : > { %v748_v49 = vpop.f32.mrb[2].mxu1 }
 0x2c1   : > { %v753_v51 = vmul.f32 0.25, %v748_v49  ;;  %v2174_v52 = vpop.f32.mrb[3].mxu1  ;;  %v756_v53 = vadd.f32 %v754_v46, %v752_v47 }
 0x2c3   : > { %v758_v54 = vsel %vm704_vm1, %v756_v53, -inf  ;;  %v757_v55 = vadd.f32 %v755_v50, %v753_v51 }
 0x2c4   : > { %759 = vmax.xlane.f32.xlu0 %v758_v54 }
 0x2c5   : > { %v761_v56 = vsel %vm704_vm1, %v757_v55, -inf }
 0x2c6   : > { %762 = vmax.xlane.f32.xlu1 %v761_v56 }
 0x351   : > { %v760_v57 = vpop.xlane.xlu0 %759 }
 0x352   : > { %v764_v58 = vsub.f32 %v756_v53, %v760_v57 }
 0x353   : > { %v763_v59 = vpop.xlane.xlu1 %762 }
 0x354   : > { %v766_v60 = vmul.f32 1.442695, %v764_v58  ;;  %v765_v61 = vsub.f32 %v757_v55, %v763_v59 }
 0x356   : > { %2392 = vpow2.f32 %v766_v60  ;;  %v768_v62 = vmul.f32 1.442695, %v765_v61 }
 0x358   : > { %2394 = vpow2.f32 %v768_v62 }
 0x360   : > { %v2393_v63 = vpop.eup %2392 }
 0x361   : > { %v770_v1 = vsel %vm704_vm1, %v2393_v63, 0.0 }
 0x362   : > { %v2395_v2 = vpop.eup %2394  ;;  %771 = vadd.xlane.f32.xlu1 %v770_v1 }
 0x363   : > { %v773_v3 = vsel %vm704_vm1, %v2395_v2, 0.0 }
 0x366   : > { %774 = vadd.xlane.f32.xlu1 %v773_v3 }
 0x377   : > { %842 = vrot.lane.b32.xlu1 %v2866_v41, %s2564_s14 }
 0x37b   : > { %840 = vrot.lane.b32.xlu1 %v2866_v41, %s2565_s29  ;;  %s3161_s29 = sld [smem:[#allocation13_spill]] }
 0x3ef   : > { %v772_v4 = vpop.xlane.xlu1 %771 }
 0x3f0   : > { %2396 = vrcp.f32 %v772_v4  ;;  %v2345_v4 = vld [vmem:[%s3136_s5 + $0x10] sm:$0xff]  }
 0x3f3   : > { %v775_v5 = vpop.xlane.xlu1 %774 }
 0x3f4   : > { %2398 = vrcp.f32 %v775_v5  ;;  %v2346_v5 = vld [vmem:[%s3136_s5 + $0x18] sm:$0xff]  }
 0x3f7   : > { %v843_v10 = vpop.permute.xlu1 %842 }
 0x3f8   : > { %v848_v12 = vsel %vm704_vm1, %v843_v10, 0 }
 0x3fa   : > { %v2397_v6 = vpop.eup %2396 }
 0x3fb   : > { %v778_v8 = vmul.f32 %v2397_v6, %v2393_v63  ;;  %v841_v13 = vpop.permute.xlu1 %840 }
 0x3fe   : > { %v2399_v7 = vpop.eup %2398 }
 0x3ff   : > { %v779_v9 = vmul.f32 %v2399_v7, %v2395_v2 }
 0x401   : > { %v780_v11 = vpack.c.bf16 %v779_v9, %v778_v8 }
 0x403   : > { %2178 = vmatmul.mubr.msk.bf16.vlgmr.msra.gmra.mrb[4].mxu1 %vm704_vm1, %v780_v11 }
 0x404   : > { %2182 = vmatpush3.bf16.xpose.msra.mxu1 %v848_v12  ;;  %2183 = vmatprep.mubr.msk.bf16.mxu1 %vm2562_vm0, %v2561_v23 }
 0x405   : > { %2187 = vmatprep.subr.bf16.mxu1 %v2561_v23 }
 0x40b   : > { %2184 = vmatmul.mubr.msk.bf16.vlgmr.msra.gmra.mrb[8].mxu1 %vm704_vm1, %v841_v13 }
 0x40c   : > { %2189 = vmatprep.mubr.msk.bf16.mxu1 %vm2562_vm0, %v2561_v23 }
 0x4d6   : > { %v818_v16 = vpop.f32.mrb[4].mxu1 }
 0x4d7   : > { %v825_v18 = vadd.f32 3.0, %v818_v16  ;;  %v2179_v19 = vpop.f32.mrb[5].mxu1 }
 0x4d8   : > { %v821_v21 = vpop.f32.mrb[6].mxu1 }
 0x4d9   : > { %v827_v24 = vmax.f32 %v825_v18, 0.0  ;;  %v826_v25 = vadd.f32 3.0, %v821_v21  ;;  %v2180_v26 = vpop.f32.mrb[7].mxu1 }
 0x4db   : > { %v829_v27 = vmin.f32 %v827_v24, 6.0  ;;  %v828_v28 = vmax.f32 %v826_v25, 0.0 }
 0x4dd   : > { %v831_v29 = vmul.f32 %v829_v27, %v818_v16  ;;  %v830_v30 = vmin.f32 %v828_v28, 6.0 }
 0x4de   : > { %v884_v31 = vpop.f32.mrb[8].mxu1 }
 0x4df   : > { %v832_v33 = vmul.f32 %v830_v30, %v821_v21  ;;  %v891_v34 = vmul.f32 0.25, %v884_v31  ;;  %v2185_v35 = vpop.f32.mrb[9].mxu1  ;;  %v833_v38 = vmul.f32 0.16666667, %v831_v29 }
 0x4e0   : > { %v887_v36 = vpop.f32.mrb[10].mxu1 }
 0x4e1   : > { %v834_v39 = vmul.f32 0.16666667, %v832_v33  ;;  %v892_v40 = vmul.f32 0.25, %v887_v36  ;;  %v2186_v43 = vpop.f32.mrb[11].mxu1  ;;  %v896_v44 = vadd.f32 %v2047_v32, %v891_v34  ;;  %v2057_v33 = vld [vmem:[%s3135_s4 + $0x20] sm:$0xff] }
 0x4e3   : > { %v835_v45 = vpack.c.bf16 %v834_v39, %v833_v38  ;;  %v898_v46 = vsel %vm704_vm1, %v896_v44, -inf  ;;  %v897_v47 = vadd.f32 %v2048_v37, %v892_v40  ;;  %v2058_v37 = vld [vmem:[%s3135_s4 + $0x28] sm:$0xff] }
 0x4e4   : > { %899 = vmax.xlane.f32.xlu1 %v898_v46 }
 0x4e5   : > { %2206 = vmatmul.mubr.msk.bf16.vlgmr.msra.gmra.mrb[4].mxu0 %vm996_vm2, %v835_v45  ;;  %v901_v48 = vsel %vm704_vm1, %v897_v47, -inf }
 0x4e6   : > { %902 = vmax.xlane.f32.xlu0 %v901_v48  ;;  %2225 = vmatprep.mubr.msk.bf16.mxu0 %vm2562_vm0, %v2561_v23 }
 0x4f5   : > { %1097 = vrot.lane.b32.xlu1 %v2866_v41, %s2566_s25 }
 0x571   : > { %v900_v49 = vpop.xlane.xlu1 %899 }
 0x572   : > { %v904_v50 = vsub.f32 %v896_v44, %v900_v49 }
 0x573   : > { %v903_v51 = vpop.xlane.xlu0 %902 }
 0x574   : > { %v906_v52 = vmul.f32 1.442695, %v904_v50  ;;  %v905_v53 = vsub.f32 %v897_v47, %v903_v51 }
 0x575   : > { %v1098_v27 = vpop.permute.xlu1 %1097 }
 0x576   : > { %2400 = vpow2.f32 %v906_v52  ;;  %v908_v54 = vmul.f32 1.442695, %v905_v53 }
 0x578   : > { %2402 = vpow2.f32 %v908_v54 }
 0x580   : > { %v2401_v55 = vpop.eup %2400 }
 0x581   : > { %v910_v56 = vsel %vm704_vm1, %v2401_v55, 0.0 }
 0x582   : > { %v2403_v57 = vpop.eup %2402  ;;  %911 = vadd.xlane.f32.xlu0 %v910_v56 }
 0x583   : > { %v913_v58 = vsel %vm704_vm1, %v2403_v57, 0.0 }
 0x586   : > { %914 = vadd.xlane.f32.xlu0 %v913_v58 }
 0x59c   : > { %922 = vrot.lane.b32.xlu0 %v2868_v42, %s2566_s25 }
 0x5a0   : > { %1099 = vrot.lane.b32.xlu0 %v2866_v41, %s2567_s16 }
 0x60f   : > { %v912_v59 = vpop.xlane.xlu0 %911 }
 0x610   : > { %2404 = vrcp.f32 %v912_v59 }
 0x613   : > { %v915_v60 = vpop.xlane.xlu0 %914 }
 0x614   : > { %2406 = vrcp.f32 %v915_v60 }
 0x617   : > { %v923_v61 = vpop.permute.xlu0 %922 }
 0x618   : > { %2188 = vmatpush3.bf16.msra.mxu1 %v923_v61 }
 0x619   : > { %2193 = vmatprep.subr.bf16.mxu1 %v2561_v23 }
 0x61a   : > { %v2405_v62 = vpop.eup %2404 }
 0x61b   : > { %v918_v1 = vmul.f32 %v2405_v62, %v2401_v55  ;;  %v1100_v24 = vpop.permute.xlu0 %1099 }
 0x61c   : > { %v1105_v26 = vsel %vm704_vm1, %v1100_v24, 0 }
 0x61e   : > { %v2407_v63 = vpop.eup %2406 }
 0x61f   : > { %v919_v2 = vmul.f32 %v2407_v63, %v2403_v57 }
 0x621   : > { %v920_v3 = vpack.c.bf16 %v919_v2, %v918_v1 }
 0x623   : > { %2190 = vmatmul.mubr.msk.bf16.vlgmr.msra.gmra.mrb[12].mxu1 %vm704_vm1, %v920_v3  ;;  %v2347_v3 = vld [vmem:[%s3136_s5 + $0x20] sm:$0xff]  }
 0x624   : > { %2197 = vmatprep.mubr.msk.bf16.mxu1 %vm2562_vm0, %v2561_v23  ;;  %2194 = vmatpush3.bf16.msra.mxu1 %v2345_v4  ;;  %v2348_v4 = vld [vmem:[%s3136_s5 + $0x28] sm:$0xff]  }
 0x625   : > { %2195 = vmatprep.subr.bf16.mxu1 %v2561_v23  ;;  %2222 = vmatpush3.bf16.msra.mxu0 %v2347_v3 }
 0x626   : > { %2223 = vmatprep.subr.bf16.mxu0 %v2561_v23 }
 0x628   : > { %2196 = vmatpush3.bf16.msra.mxu1 %v2346_v5 }
 0x629   : > { %2209 = vmatprep.subr.bf16.mxu1 %v2561_v23  ;;  %2224 = vmatpush3.bf16.msra.mxu0 %v2348_v4 }
 0x62a   : > { %2235 = vmatprep.subr.bf16.mxu0 %v2561_v23 }
 0x6f6   : > { %v962_v6 = vpop.f32.mrb[12].mxu1 }
 0x6f7   : > { %v969_v7 = vadd.f32 3.0, %v962_v6  ;;  %v2191_v8 = vpop.f32.mrb[13].mxu1 }
 0x6f8   : > { %v965_v9 = vpop.f32.mrb[14].mxu1 }
 0x6f9   : > { %v971_v10 = vmax.f32 %v969_v7, 0.0  ;;  %v970_v11 = vadd.f32 3.0, %v965_v9  ;;  %v2192_v12 = vpop.f32.mrb[15].mxu1 }
 0x6fb   : > { %v973_v13 = vmin.f32 %v971_v10, 6.0  ;;  %v972_v14 = vmax.f32 %v970_v11, 0.0 }
 0x6fd   : > { %v975_v15 = vmul.f32 %v973_v13, %v962_v6  ;;  %v974_v16 = vmin.f32 %v972_v14, 6.0 }
 0x6ff   : > { %v976_v18 = vmul.f32 %v974_v16, %v965_v9  ;;  %v977_v19 = vmul.f32 0.16666667, %v975_v15  ;;  %v2064_v16 = vld [vmem:[%s3135_s4 + $0x30] sm:$0xff] }
 0x701   : > { %v978_v21 = vmul.f32 0.16666667, %v976_v18 }
 0x703   : > { %v979_v25 = vpack.c.bf16 %v978_v21, %v977_v19 }
 0x705   : > { %2198 = vmatmul.mubr.msk.bf16.vlgmr.msra.gmra.mrb[16].mxu1 %vm996_vm2, %v979_v25  ;;  %v2065_v25 = vld [vmem:[%s3135_s4 + $0x38] sm:$0xff] }
 0x706   : > { %2210 = vmatpush3.bf16.xpose.msra.mxu1 %v1105_v26  ;;  %2211 = vmatprep.mubr.msk.bf16.mxu1 %vm2562_vm0, %v2561_v23 }
 0x707   : > { %2215 = vmatprep.subr.bf16.mxu1 %v2561_v23 }
 0x70d   : > { %2212 = vmatmul.mubr.msk.bf16.vlgmr.msra.gmra.mrb[20].mxu1 %vm704_vm1, %v1098_v27 }
 0x70e   : > { %2217 = vmatprep.mubr.msk.bf16.mxu1 %vm2562_vm0, %v2561_v23 }
 0x7d8   : > { %v2945_v28 = vpop.f32.mrb[16].mxu1 }
 0x7d9   : > { %v2199_v29 = vpop.f32.mrb[17].mxu1 }
 0x7da   : > { %v2947_v30 = vpop.f32.mrb[18].mxu1 }
 0x7db   : > { %v2200_v31 = vpop.f32.mrb[19].mxu1 }
 0x7e0   : > { %v1141_v32 = vpop.f32.mrb[20].mxu1 }
 0x7e1   : > { %v1148_v34 = vmul.f32 0.25, %v1141_v32  ;;  %v2213_v35 = vpop.f32.mrb[21].mxu1 }
 0x7e2   : > { %v1144_v36 = vpop.f32.mrb[22].mxu1 }
 0x7e3   : > { %v1149_v38 = vmul.f32 0.25, %v1144_v36  ;;  %v2214_v39 = vpop.f32.mrb[23].mxu1  ;;  %v1153_v40 = vadd.f32 %v2057_v33, %v1148_v34 }
 0x7e5   : > { %v1155_v43 = vsel %vm704_vm1, %v1153_v40, -inf  ;;  %v1154_v44 = vadd.f32 %v2058_v37, %v1149_v38 }
 0x7e6   : > { %1156 = vmax.xlane.f32.xlu0 %v1155_v43 }
 0x7e7   : > { %v1158_v45 = vsel %vm704_vm1, %v1154_v44, -inf }
 0x7e8   : > { %1159 = vmax.xlane.f32.xlu1 %v1158_v45 }
 0x7f9   : > { %1300 = vrot.lane.b32.xlu1 %v2866_v41, %s2568_s28 }
 0x873   : > { %v1157_v46 = vpop.xlane.xlu0 %1156 }
 0x874   : > { %v1161_v47 = vsub.f32 %v1153_v40, %v1157_v46 }
 0x875   : > { %v1160_v48 = vpop.xlane.xlu1 %1159 }
 0x876   : > { %v1163_v49 = vmul.f32 1.442695, %v1161_v47  ;;  %v1162_v50 = vsub.f32 %v1154_v44, %v1160_v48 }
 0x878   : > { %2408 = vpow2.f32 %v1163_v49  ;;  %v1165_v51 = vmul.f32 1.442695, %v1162_v50 }
 0x879   : > { %v1301_v63 = vpop.permute.xlu1 %1300 }
 0x87a   : > { %2410 = vpow2.f32 %v1165_v51  ;;  %v1306_v2 = vsel %vm704_vm1, %v1301_v63, 0  ;;  %v2362_v63 = vld [vmem:[%s3139_s8 + $0x34] ss:$8 sps:$4 sm:$0xff]  }
 0x882   : > { %v2409_v52 = vpop.eup %2408 }
 0x883   : > { %v1167_v53 = vsel %vm704_vm1, %v2409_v52, 0.0 }
 0x884   : > { %v2411_v54 = vpop.eup %2410  ;;  %1168 = vadd.xlane.f32.xlu0 %v1167_v53 }
 0x885   : > { %v1170_v55 = vsel %vm704_vm1, %v2411_v54, 0.0 }
 0x888   : > { %1171 = vadd.xlane.f32.xlu0 %v1170_v55 }
 0x89e   : > { %1178 = vrot.lane.b32.xlu0 %v2868_v42, %s2563_s23 }
 0x8a2   : > { %1298 = vrot.lane.b32.xlu0 %v2866_v41, %s2569_s15 }
 0x911   : > { %v1169_v56 = vpop.xlane.xlu0 %1168 }
 0x912   : > { %2412 = vrcp.f32 %v1169_v56  ;;  %v2349_v56 = vld [vmem:[%s3136_s5 + $0x30] sm:$0xff]  }
 0x915   : > { %v1172_v57 = vpop.xlane.xlu0 %1171 }
 0x916   : > { %2414 = vrcp.f32 %v1172_v57  ;;  %v2350_v57 = vld [vmem:[%s3136_s5 + $0x38] sm:$0xff]  }
 0x919   : > { %v1179_v58 = vpop.permute.xlu0 %1178 }
 0x91a   : > { %2216 = vmatpush3.bf16.msra.mxu1 %v1179_v58  ;;  %v2351_v58 = vld [vmem:[%s3139_s8] ss:$8 sps:$4 sm:$0xff]  }
 0x91b   : > { %2229 = vmatprep.subr.bf16.mxu1 %v2561_v23 }
 0x91c   : > { %v2413_v59 = vpop.eup %2412 }
 0x91d   : > { %v1175_v61 = vmul.f32 %v2413_v59, %v2409_v52  ;;  %v1299_v41 = vpop.permute.xlu0 %1298  ;;  %v2353_v59 = vld [vmem:[%s3139_s8 + $0x4] ss:$8 sps:$4 sm:$0xff]  }
 0x920   : > { %v2415_v60 = vpop.eup %2414 }
 0x921   : > { %v1176_v62 = vmul.f32 %v2415_v60, %v2411_v54  ;;  %v2356_v60 = vld [vmem:[%s3139_s8 + $0x14] ss:$8 sps:$4 sm:$0xff]  }
 0x923   : > { %v1177_v1 = vpack.c.bf16 %v1176_v62, %v1175_v61  ;;  %v2359_v61 = vld [vmem:[%s3139_s8 + $0x24] ss:$8 sps:$4 sm:$0xff]   ;;  %v2357_v62 = vld [vmem:[%s3139_s8 + $0x20] ss:$8 sps:$4 sm:$0xff]  }
 0x925   : > { %2218 = vmatmul.mubr.msk.bf16.vlgmr.msra.gmra.mrb[24].mxu1 %vm704_vm1, %v1177_v1  ;;  %v2360_v1 = vld [vmem:[%s3139_s8 + $0x30] ss:$8 sps:$4 sm:$0xff]  }
 0x926   : > { %2230 = vmatpush3.bf16.xpose.msra.mxu1 %v1306_v2  ;;  %2231 = vmatprep.mubr.msk.bf16.mxu1 %vm2562_vm0, %v2561_v23  ;;  %v2365_v2 = vld [vmem:[%s3139_s8 + $0x44] ss:$8 sps:$4 sm:$0xff]  }
 0x927   : > { %1618 = vmatprep.subr.bf16.mxu1 %v2353_v59  ;;  %v2390_v59 = vld [vmem:[%s3142_s11 + $0x38] sm:$0xff]  }
 0x92d   : > { %2232 = vmatmul.mubr.msk.bf16.vlgmr.msra.gmra.mrb[28].mxu1 %vm704_vm1, %v1299_v41  ;;  %v2363_v41 = vld [vmem:[%s3139_s8 + $0x40] ss:$8 sps:$4 sm:$0xff]  }
 0x92e   : > { %1650 = vmatprep.mubr.bf16.mxu1 %v2560_v0  ;;  %1619 = vmatpush1.bf16.msra.mxu1 %v2351_v58  ;;  %v2389_v58 = vld [vmem:[%s3142_s11 + $0x78] sm:$0xff]  }
 0x92f   : > { %1620 = vmatprep.subr.bf16.mxu1 %v2356_v60  ;;  %v1661_v60 = vld [vmem:[%s3140_s9] sm:$0x3] }
 0x9f8   : > { %v1218_v5 = vpop.f32.mrb[24].mxu1 }
 0x9f9   : > { %v1225_v6 = vadd.f32 3.0, %v1218_v5  ;;  %v2219_v7 = vpop.f32.mrb[25].mxu1 }
 0x9fa   : > { %v1221_v8 = vpop.f32.mrb[26].mxu1 }
 0x9fb   : > { %v1227_v9 = vmax.f32 %v1225_v6, 0.0  ;;  %v1226_v0 = vadd.f32 3.0, %v1221_v8  ;;  %v2220_v10 = vpop.f32.mrb[27].mxu1 }
 0x9fd   : > { %v1229_v11 = vmin.f32 %v1227_v9, 6.0  ;;  %v1228_v12 = vmax.f32 %v1226_v0, 0.0 }
 0x9ff   : > { %v1231_v13 = vmul.f32 %v1229_v11, %v1218_v5  ;;  %v1230_v14 = vmin.f32 %v1228_v12, 6.0 }
 0xa00   : > { %v1342_v15 = vpop.f32.mrb[28].mxu1 }
 0xa01   : > { %v1232_v18 = vmul.f32 %v1230_v14, %v1221_v8  ;;  %v1349_v19 = vmul.f32 0.25, %v1342_v15  ;;  %v2233_v21 = vpop.f32.mrb[29].mxu1  ;;  %v1233_v26 = vmul.f32 0.16666667, %v1231_v13 }
 0xa02   : > { %v1345_v24 = vpop.f32.mrb[30].mxu1  ;;  %v2371_v21 = vld [vmem:[%s3139_s8 + $0x64] ss:$8 sps:$4 sm:$0xff]  }
 0xa03   : > { %v1234_v27 = vmul.f32 0.16666667, %v1232_v18  ;;  %v1350_v29 = vmul.f32 0.25, %v1345_v24  ;;  %v2234_v31 = vpop.f32.mrb[31].mxu1  ;;  %v1354_v32 = vadd.f32 %v2064_v16, %v1349_v19  ;;  %v2368_v18 = vld [vmem:[%s3139_s8 + $0x54] ss:$8 sps:$4 sm:$0xff]  }
 0xa04   : > { %v2366_v19 = vld [vmem:[%s3139_s8 + $0x50] ss:$8 sps:$4 sm:$0xff]   ;;  %v2369_v24 = vld [vmem:[%s3139_s8 + $0x60] ss:$8 sps:$4 sm:$0xff]  }
 0xa05   : > { %v1235_v33 = vpack.c.bf16 %v1234_v27, %v1233_v26  ;;  %v1356_v34 = vsel %vm704_vm1, %v1354_v32, -inf  ;;  %v1355_v35 = vadd.f32 %v2065_v25, %v1350_v29  ;;  %v2374_v25 = vld [vmem:[%s3139_s8 + $0x74] ss:$8 sps:$4 sm:$0xff]   ;;  %v2372_v26 = vld [vmem:[%s3139_s8 + $0x70] ss:$8 sps:$4 sm:$0xff]   ;;  %v2375_v27 = vld [vmem:[%s3142_s11 + $0x40] sm:$0xff]  }
 0xa06   : > { %1357 = vmax.xlane.f32.xlu0 %v1356_v34  ;;  %v2376_v29 = vld [vmem:[%s3142_s11] sm:$0xff]   ;;  %v2377_v31 = vld [vmem:[%s3142_s11 + $0x48] sm:$0xff]   ;;  %v2380_v34 = vld [vmem:[%s3142_s11 + $0x10] sm:$0xff]  }
 0xa07   : > { %2226 = vmatmul.mubr.msk.bf16.vlgmr.msra.gmra.mrb[4].mxu0 %vm996_vm2, %v1235_v33  ;;  %v1359_v36 = vsel %vm704_vm1, %v1355_v35, -inf  ;;  %v2379_v33 = vld [vmem:[%s3142_s11 + $0x50] sm:$0xff]  }
 0xa08   : > { %1360 = vmax.xlane.f32.xlu1 %v1359_v36  ;;  %2237 = vmatprep.mubr.msk.bf16.mxu0 %vm2562_vm0, %v2561_v23  ;;  %v2070_v36 = vld [vmem:[#allocation2] ss:$0 sm:$0xff] }
 0xa19   : > { %1379 = vrot.lane.b32.xlu1 %v2868_v42, %s2567_s16  ;;  %s518_s16 = scalar_lea.vmem %s3161_s29, %s2110_s26 }
 0xa93   : > { %v1358_v37 = vpop.xlane.xlu0 %1357 }
 0xa94   : > { %v1362_v38 = vsub.f32 %v1354_v32, %v1358_v37  ;;  %v2378_v32 = vld [vmem:[%s3142_s11 + $0x8] sm:$0xff]  }
 0xa95   : > { %v1361_v39 = vpop.xlane.xlu1 %1360 }
 0xa96   : > { %v1364_v40 = vmul.f32 1.442695, %v1362_v38  ;;  %v1363_v43 = vsub.f32 %v1355_v35, %v1361_v39  ;;  %v2071_v39 = vld [vmem:[#allocation4] ss:$0 sm:$0xff] }
 0xa98   : > { %2416 = vpow2.f32 %v1364_v40  ;;  %v1366_v44 = vmul.f32 1.442695, %v1363_v43  ;;  %v1517_v43 = vunpack.c.l.bf16 %v2843_v17 }
 0xa99   : > { %v1380_v45 = vpop.permute.xlu1 %1379 }
 0xa9a   : > { %2418 = vpow2.f32 %v1366_v44  ;;  %2236 = vmatpush3.bf16.msra.mxu0 %v1380_v45 }
 0xa9b   : > { %2241 = vmatprep.subr.bf16.mxu0 %v2561_v23 }
 0xaa2   : > { %v2417_v46 = vpop.eup %2416 }
 0xaa3   : > { %v1368_v47 = vsel %vm704_vm1, %v2417_v46, 0.0 }
 0xaa4   : > { %v2419_v48 = vpop.eup %2418  ;;  %1369 = vadd.xlane.f32.xlu0 %v1368_v47  ;;  %v1518_v47 = vunpack.c.h.bf16 %v2843_v17  ;;  %v2383_v17 = vld [vmem:[%s3142_s11 + $0x60] sm:$0xff]  }
 0xaa5   : > { %v1371_v49 = vsel %vm704_vm1, %v2419_v48, 0.0 }
 0xaa8   : > { %1372 = vadd.xlane.f32.xlu0 %v1371_v49 }
 0xb31   : > { %v1370_v42 = vpop.xlane.xlu0 %1369 }
 0xb32   : > { %2420 = vrcp.f32 %v1370_v42 }
 0xb35   : > { %v1373_v50 = vpop.xlane.xlu0 %1372 }
 0xb36   : > { %2422 = vrcp.f32 %v1373_v50 }
 0xb3c   : > { %v2421_v51 = vpop.eup %2420 }
 0xb3d   : > { %v1376_v53 = vmul.f32 %v2421_v51, %v2417_v46 }
 0xb40   : > { %v2423_v52 = vpop.eup %2422 }
 0xb41   : > { %v1377_v54 = vmul.f32 %v2423_v52, %v2419_v48  ;;  %v2381_v52 = vld [vmem:[%s3142_s11 + $0x58] sm:$0xff]  }
 0xb43   : > { %v1378_v55 = vpack.c.bf16 %v1377_v54, %v1376_v53  ;;  %v2384_v53 = vld [vmem:[%s3142_s11 + $0x20] sm:$0xff]   ;;  %v2385_v54 = vld [vmem:[%s3142_s11 + $0x68] sm:$0xff]  }
 0xb45   : > { %2238 = vmatmul.mubr.msk.bf16.vlgmr.msra.gmra.mrb[8].mxu0 %vm704_vm1, %v1378_v55  ;;  %v2386_v55 = vld [vmem:[%s3142_s11 + $0x28] sm:$0xff]  }
 0xb46   : > { %2245 = vmatprep.mubr.msk.bf16.mxu0 %vm2562_vm0, %v2561_v23  ;;  %2242 = vmatpush3.bf16.msra.mxu0 %v2349_v56  ;;  %v2387_v56 = vld [vmem:[%s3142_s11 + $0x70] sm:$0xff]  }
 0xb47   : > { %2243 = vmatprep.subr.bf16.mxu0 %v2561_v23  ;;  %v2354_v23 = vld [vmem:[%s3139_s8 + $0x10] ss:$8 sps:$4 sm:$0xff]  }
 0xb48   : > { %1621 = vmatpush1.bf16.msra.mxu1 %v2354_v23  ;;  %v1677_v23 = vld [vmem:[%s3141_s10] sm:$0x3] }
 0xb49   : > { %1622 = vmatprep.subr.bf16.mxu1 %v2359_v61  ;;  %v1666_v61 = vrot.slane %v1661_v60, %v2846_v20 }
 0xb4a   : > { %2244 = vmatpush3.bf16.msra.mxu0 %v2350_v57  ;;  %v2388_v57 = vld [vmem:[%s3142_s11 + $0x30] sm:$0xff]  }
 0xb4b   : > { %2147 = vmatprep.subr.bf16.mxu0 %v2375_v27 }
 0xb4c   : > { %1623 = vmatpush1.bf16.msra.mxu1 %v2357_v62  ;;  %v1670_v62 = vrot.slane %v1661_v60, %v2851_v22 }
 0xb4d   : > { %1624 = vmatprep.subr.bf16.mxu1 %v2362_v63  ;;  %v1682_v63 = vrot.slane %v1677_v23, %v2846_v20 }
 0xb50   : > { %1625 = vmatpush1.bf16.msra.mxu1 %v2360_v1 }
 0xb51   : > { %1626 = vmatprep.subr.bf16.mxu1 %v2365_v2  ;;  %v1686_v2 = vrot.slane %v1677_v23, %v2851_v22 }
 0xb54   : > { %1627 = vmatpush1.bf16.msra.mxu1 %v2363_v41 }
 0xb55   : > { %1628 = vmatprep.subr.bf16.mxu1 %v2368_v18 }
 0xb58   : > { %1629 = vmatpush1.bf16.msra.mxu1 %v2366_v19 }
 0xb59   : > { %1630 = vmatprep.subr.bf16.mxu1 %v2371_v21 }
 0xb5c   : > { %1631 = vmatpush1.bf16.msra.mxu1 %v2369_v24 }
 0xb5d   : > { %1632 = vmatprep.subr.bf16.mxu1 %v2374_v25 }
 0xb60   : > { %1633 = vmatpush1.bf16.msra.mxu1 %v2372_v26 }
 0xc18   : > { %v1419_v3 = vpop.f32.mrb[8].mxu0 }
 0xc19   : > { %v1426_v4 = vadd.f32 3.0, %v1419_v3  ;;  %v2239_v5 = vpop.f32.mrb[9].mxu0 }
 0xc1a   : > { %v1422_v6 = vpop.f32.mrb[10].mxu0 }
 0xc1b   : > { %v1428_v7 = vmax.f32 %v1426_v4, 0.0  ;;  %v1427_v8 = vadd.f32 3.0, %v1422_v6  ;;  %v2240_v9 = vpop.f32.mrb[11].mxu0 }
 0xc1d   : > { %v1430_v0 = vmin.f32 %v1428_v7, 6.0  ;;  %v1429_v10 = vmax.f32 %v1427_v8, 0.0 }
 0xc1f   : > { %v1432_v11 = vmul.f32 %v1430_v0, %v1419_v3  ;;  %v1431_v12 = vmin.f32 %v1429_v10, 6.0 }
 0xc21   : > { %v1433_v13 = vmul.f32 %v1431_v12, %v1422_v6  ;;  %v1434_v14 = vmul.f32 0.16666667, %v1432_v11 }
 0xc23   : > { %v1435_v15 = vmul.f32 0.16666667, %v1433_v13 }
 0xc25   : > { %v1436_v16 = vpack.c.bf16 %v1435_v15, %v1434_v14 }
 0xc27   : > { %2246 = vmatmul.mubr.msk.bf16.vlgmr.msra.gmra.mrb[4].mxu0 %vm996_vm2, %v1436_v16 }
 0xc28   : > { %2148 = vmatpush3.bf16.msra.mxu0 %v2376_v29 }
 0xc29   : > { %2149 = vmatprep.subr.bf16.mxu0 %v2377_v31 }
 0xc2c   : > { %2150 = vmatpush3.bf16.msra.mxu0 %v2378_v32 }
 0xc2d   : > { %2151 = vmatprep.subr.bf16.mxu0 %v2379_v33 }
 0xc30   : > { %2152 = vmatpush3.bf16.msra.mxu0 %v2380_v34 }
 0xc31   : > { %2153 = vmatprep.subr.bf16.mxu0 %v2381_v52 }
 0xcfa   : > { %v1490_v35 = vpop.f32.mrb[4].mxu0 }
 0xcfb   : > { %v2249_v37 = vadd.f32 %v1490_v35, %v2945_v28  ;;  %v2247_v38 = vpop.f32.mrb[5].mxu0 }
 0xcfc   : > { %v1493_v40 = vpop.f32.mrb[6].mxu0 }
 0xcfd   : > { %v1506_v44 = vmul.f32 %v2249_v37, %v2070_v36  ;;  %v2250_v45 = vadd.f32 %v1493_v40, %v2947_v30  ;;  %v2248_v46 = vpop.f32.mrb[7].mxu0  ;;  %v2382_v30 = vld [vmem:[%s3142_s11 + $0x18] sm:$0xff]   ;;  %v2104_v40 = vld [vmem:[#allocation6] ss:$0 sm:$0xff] }
 0xcfe   : > { %2154 = vmatpush3.bf16.msra.mxu0 %v2382_v30 }
 0xcff   : > { %v1515_v48 = vadd.f32 %v2071_v39, %v1506_v44  ;;  %v1507_v49 = vmul.f32 %v2250_v45, %v2070_v36  ;;  %2155 = vmatprep.subr.bf16.mxu0 %v2383_v17  ;;  %v2105_v45 = vld [vmem:[#allocation7] ss:$0 sm:$0xff] }
 0xd01   : > { %v3075_v42 = vadd.f32 %v1517_v43, %v1515_v48  ;;  %v1516_v50 = vadd.f32 %v2071_v39, %v1507_v49 }
 0xd02   : > { %2156 = vmatpush3.bf16.msra.mxu0 %v2384_v53 }
 0xd03   : > { %v3077_v51 = vadd.f32 %v1518_v47, %v1516_v50  ;;  %2157 = vmatprep.subr.bf16.mxu0 %v2385_v54 }
 0xd05   : > { %v1521_v28 = vpack.c.bf16 %v3077_v51, %v3075_v42 }
 0xd06   : > { %2158 = vmatpush3.bf16.msra.mxu0 %v2386_v55 }
 0xd07   : > { %1651 = vmatmul.mubr.bf16.vlgmr.msra.gmra.mrb[32].mxu1 %v1521_v28  ;;  %2159 = vmatprep.subr.bf16.mxu0 %v2387_v56 }
 0xd0a   : > { %2160 = vmatpush3.bf16.msra.mxu0 %v2388_v57 }
 0xd0b   : > { %2161 = vmatprep.subr.bf16.mxu0 %v2389_v58 }
 0xd0e   : > { %2162 = vmatpush3.bf16.msra.mxu0 %v2390_v59 }
 0xdda   : > { %v1652_v1 = vpop.f32.mrb[32].mxu1 }
 0xddb   : > { %v1673_v41 = vmul.f32 %v1666_v61, %v1652_v1  ;;  %v1654_v3 = vpop.f32.mrb[33].mxu1 }
 0xddc   : > { %v1674_v4 = vmul.f32 %v1670_v62, %v1654_v3  ;;  %v1656_v5 = vpop.f32.mrb[34].mxu1 }
 0xddd   : > { %v1689_v6 = vadd.f32 %v1682_v63, %v1673_v41  ;;  %v1675_v7 = vmul.f32 %v1666_v61, %v1656_v5  ;;  %v1658_v8 = vpop.f32.mrb[35].mxu1 }
 0xdde   : > { %v1690_v9 = vadd.f32 %v1686_v2, %v1674_v4  ;;  %v1676_v0 = vmul.f32 %v1670_v62, %v1658_v8 }
 0xddf   : > { %v1693_v10 = vadd.f32 3.0, %v1689_v6  ;;  %v1691_v11 = vadd.f32 %v1682_v63, %v1675_v7 }
 0xde0   : > { %v1694_v12 = vadd.f32 3.0, %v1690_v9  ;;  %v1692_v13 = vadd.f32 %v1686_v2, %v1676_v0 }
 0xde1   : > { %v1697_v14 = vmax.f32 %v1693_v10, 0.0  ;;  %v1695_v15 = vadd.f32 3.0, %v1691_v11 }
 0xde2   : > { %v1698_v16 = vmax.f32 %v1694_v12, 0.0  ;;  %v1696_v20 = vadd.f32 3.0, %v1692_v13 }
 0xde3   : > { %v1701_v18 = vmin.f32 %v1697_v14, 6.0  ;;  %v1699_v19 = vmax.f32 %v1695_v15, 0.0 }
 0xde4   : > { %v1702_v22 = vmin.f32 %v1698_v16, 6.0  ;;  %v1700_v21 = vmax.f32 %v1696_v20, 0.0 }
 0xde5   : > { %v1705_v24 = vmul.f32 %v1701_v18, %v1689_v6  ;;  %v1703_v25 = vmin.f32 %v1699_v19, 6.0 }
 0xde6   : > { %v1706_v26 = vmul.f32 %v1702_v22, %v1690_v9  ;;  %v1704_v27 = vmin.f32 %v1700_v21, 6.0 }
 0xde7   : > { %v1707_v29 = vmul.f32 %v1703_v25, %v1691_v11  ;;  %v1709_v32 = vmul.f32 0.16666667, %v1705_v24 }
 0xde8   : > { %v1708_v31 = vmul.f32 %v1704_v27, %v1692_v13  ;;  %v1710_v34 = vmul.f32 0.16666667, %v1706_v26 }
 0xde9   : > { %v1711_v33 = vmul.f32 0.16666667, %v1707_v29 }
 0xdea   : > { %v1712_v35 = vmul.f32 0.16666667, %v1708_v31 }
 0xdeb   : > { %v1713_v36 = vpack.c.bf16 %v1711_v33, %v1709_v32 }
 0xdec   : > { %v1714_v37 = vpack.c.bf16 %v1712_v35, %v1710_v34 }
 0xdee   : > { %1875 = vmatprep.mubr.bf16.mxu0 %v1714_v37 }
 0xdef   : > { %1876 = vmatmul.mubr.bf16.vlgmr.msra.gmra.mrb[12].mxu0 %v1713_v36 }
 0xec2   : > { %v2163_v38 = vpop.f32.mrb[12].mxu0 }
 0xec3   : > { %v2164_v39 = vpop.f32.mrb[13].mxu0 }
 0xec4   : > { %v2165_v43 = vadd.f32 %v2164_v39, %v2163_v38  ;;  %v2166_v44 = vpop.f32.mrb[14].mxu0 }
 0xec5   : > { %v2167_v46 = vpop.f32.mrb[15].mxu0 }
 0xec6   : > { %v1891_v47 = vmul.f32 %v2165_v43, %v2104_v40  ;;  %v2168_v48 = vadd.f32 %v2167_v46, %v2166_v44 }
 0xec8   : > { %v1900_v49 = vadd.f32 %v2105_v45, %v1891_v47  ;;  %v1892_v50 = vmul.f32 %v2168_v48, %v2104_v40 }
 0xeca   : > { %v1901_v28 = vadd.f32 %v2105_v45, %v1892_v50  ;;  %v1902_v52 = vadd.f32 %v1900_v49, %v3075_v42 }
 0xecc   : > { %v1903_v30 = vadd.f32 %v1901_v28, %v3077_v51 }
 0xece   : > { %v2117_v17 = vpack.c.bf16 %v1903_v30, %v1902_v52 }
 0xed0   : > { %2118 = vst [vmem:[%s518_s16] sm:$0xff] %v2117_v17  }
 0xed1 PF: > { %s3162_s17 = sld [smem:[#allocation12_spill]] }
 0xed7   : > { %s27_s29 = sadd.s32 1, %s3162_s17  }
 0xed8   : > { %p24_p11 = scmp.ge.s32.totalorder %s27_s29, 4  }
 0xeda   :  { %26 = sbr.rel (!%p24_p11) target bundleno = 5 (0x5), region = 126 }
 0xee1   :  { %1935 = vsyncpa [#allocation3], 1 }
 0xee2   :  { %1937 = vsyncpa [#allocation3 + $0x1], 1 }
 0xee3   :  { %1938 = vsyncpa [#allocation5], 1 }
 0xee4   :  { %1939 = vsyncpa [#allocation8], 1 }

// kernel: _lambda_.9
= control target key start
LH: loop header
LB: loop body
LE: loop exit
PB: predicated region body
PF: predicated region fallthrough
CT: control target
= control target key end

     0   :  { %s3768_s29 = smov 0   ;;  %s4530_s0 = inlined_call_operand.vmem [shape: bf16[2,4,256], index: 0, kind: input, shape index: {}]   ;;  %s4531_s1 = inlined_call_operand.vmem [shape: bf16[256,384], index: 1, kind: input, shape index: {}]   ;;  %s4532_s2 = inlined_call_operand.vmem [shape: f32[1,384], index: 2, kind: input, shape index: {}]   ;;  %s4533_s3 = inlined_call_operand.vmem [shape: f32[1,384], index: 3, kind: input, shape index: {}]   ;;  %s4534_s4 = inlined_call_operand.vmem [shape: f32[6,4,4], index: 4, kind: input, shape index: {}]   ;;  %s4535_s5 = inlined_call_operand.vmem [shape: bf16[192,256], index: 5, kind: input, shape index: {}]   ;;  %s4536_s6 = inlined_call_operand.vmem [shape: f32[1,256], index: 6, kind: input, shape index: {}]   ;;  %s4537_s7 = inlined_call_operand.vmem [shape: f32[1,256], index: 7, kind: input, shape index: {}]   ;;  %s4538_s8 = inlined_call_operand.vmem [shape: bf16[256,384], index: 8, kind: input, shape index: {}]   ;;  %s4539_s9 = inlined_call_operand.vmem [shape: f32[1,384], index: 9, kind: input, shape index: {}]   ;;  %s4540_s10 = inlined_call_operand.vmem [shape: f32[1,384], index: 10, kind: input, shape index: {}]   ;;  %s4541_s11 = inlined_call_operand.vmem [shape: bf16[384,256], index: 11, kind: input, shape index: {}]   ;;  %s4542_s12 = inlined_call_operand.vmem [shape: f32[1,256], index: 12, kind: input, shape index: {}]   ;;  %s4543_s13 = inlined_call_operand.vmem [shape: f32[1,256], index: 13, kind: input, shape index: {}]   ;;  %s4544_s14 = inlined_call_operand.vmem [shape: bf16[2,4,256], index: 14, kind: output, shape index: {}]  }
   0x1 LB: > { %s3026_s30 = sadd.s32 4294967295, %s3681_s29   ;;  %p3030_p0 = scmp.ge.s32.totalorder %s3681_s29, 1  ;;  %s3681_s29 = sphi %s3768_s29, %s24_s29  }
   0x2   : > { %p412_p1 = scmp.lt.s32.totalorder %s3681_s29, 3 }
   0x4   : > { %p413_p2 = pnand %p3030_p0, %p412_p1 }
   0x5   : > { %v3413_v0 = vld [vmem:[%s4531_s1 + $0x4] ss:$12 sps:$4 sm:$0xff] (!%p413_p2)   ;;  %v3415_v1 = vld [vmem:[%s4531_s1] ss:$12 sps:$4 sm:$0xff] (!%p413_p2)   ;;  %v3416_v2 = vld [vmem:[%s4531_s1 + $0x1c] ss:$12 sps:$4 sm:$0xff] (!%p413_p2)   ;;  %v538_v7 = vlaneseq (!%p413_p2) }
   0x6   : > { %416 = sbr.rel (%p413_p2) target bundleno = 4268 (0x10ac), region = 76  ;;  %801 = vmatprep.subr.bf16.mxu0 (!%p413_p2), %v3413_v0  ;;  %v3418_v3 = vld [vmem:[%s4531_s1 + $0x18] ss:$12 sps:$4 sm:$0xff] (!%p413_p2)   ;;  %v3419_v4 = vld [vmem:[%s4531_s1 + $0x34] ss:$12 sps:$4 sm:$0xff] (!%p413_p2)   ;;  %p458_p3 = scmp.lt.s32.totalorder (!%p413_p2), %s3026_s30, 1 }
   0x7   : > { %802 = vmatpush1.bf16.msra.mxu0 (!%p413_p2), %v3415_v1  ;;  %v3421_v5 = vld [vmem:[%s4531_s1 + $0x30] ss:$12 sps:$4 sm:$0xff] (!%p413_p2)   ;;  %v3422_v6 = vld [vmem:[%s4531_s1 + $0x4c] ss:$12 sps:$4 sm:$0xff] (!%p413_p2)   ;;  %v3424_v8 = vld [vmem:[%s4531_s1 + $0x48] ss:$12 sps:$4 sm:$0xff] (!%p413_p2)  }
   0x8   : > { %803 = vmatprep.subr.bf16.mxu0 (!%p413_p2), %v3416_v2  ;;  %v3425_v9 = vld [vmem:[%s4531_s1 + $0x64] ss:$12 sps:$4 sm:$0xff] (!%p413_p2)   ;;  %v3805_v10 = vshrl.u32 (!%p413_p2), %v538_v7, 7  ;;  %v3427_v11 = vld [vmem:[%s4531_s1 + $0x60] ss:$12 sps:$4 sm:$0xff] (!%p413_p2)   ;;  %v3683_v55 = vmov (!%p413_p2), 0.0  }
   0x9   : > { %v3428_v12 = vld [vmem:[%s4531_s1 + $0x7c] ss:$12 sps:$4 sm:$0xff] (!%p413_p2)   ;;  %v3430_v13 = vld [vmem:[%s4531_s1 + $0x78] ss:$12 sps:$4 sm:$0xff] (!%p413_p2)   ;;  %v3431_v14 = vld [vmem:[%s4531_s1 + $0x94] ss:$12 sps:$4 sm:$0xff] (!%p413_p2)  }
   0xa   : > { %v3433_v15 = vld [vmem:[%s4531_s1 + $0x90] ss:$12 sps:$4 sm:$0xff] (!%p413_p2)   ;;  %v3434_v17 = vld [vmem:[%s4531_s1 + $0xac] ss:$12 sps:$4 sm:$0xff] (!%p413_p2)   ;;  %v3436_v19 = vld [vmem:[%s4531_s1 + $0xa8] ss:$12 sps:$4 sm:$0xff] (!%p413_p2)  }
   0xb   : > { %804 = vmatpush1.bf16.msra.mxu0 (!%p413_p2), %v3418_v3  ;;  %v3437_v20 = vld [vmem:[%s4531_s1 + $0xc4] ss:$12 sps:$4 sm:$0xff] (!%p413_p2)   ;;  %v3439_v21 = vld [vmem:[%s4531_s1 + $0xc0] ss:$12 sps:$4 sm:$0xff] (!%p413_p2)   ;;  %v3440_v22 = vld [vmem:[%s4531_s1 + $0xdc] ss:$12 sps:$4 sm:$0xff] (!%p413_p2)  }
   0xc   : > { %805 = vmatprep.subr.bf16.mxu0 (!%p413_p2), %v3419_v4  ;;  %v3442_v23 = vld [vmem:[%s4531_s1 + $0xd8] ss:$12 sps:$4 sm:$0xff] (!%p413_p2)   ;;  %v3443_v24 = vld [vmem:[%s4531_s1 + $0xf4] ss:$12 sps:$4 sm:$0xff] (!%p413_p2)   ;;  %v3445_v25 = vld [vmem:[%s4531_s1 + $0xf0] ss:$12 sps:$4 sm:$0xff] (!%p413_p2)  }
   0xd   : > { %s4546_s30 = smov (!%p458_p3, %s3026_s30), 1  ;;  %v3446_v26 = vld [vmem:[%s4531_s1 + $0x10c] ss:$12 sps:$4 sm:$0xff]   ;;  %v3448_v27 = vld [vmem:[%s4531_s1 + $0x108] ss:$12 sps:$4 sm:$0xff]   ;;  %v3940_v52 = vsub.s32 0, %v3805_v10 }
   0xe   : > { %s3230_s21 = sshll.u32 %s4546_s30, 2  ;;  %v3449_v28 = vld [vmem:[%s4531_s1 + $0x124] ss:$12 sps:$4 sm:$0xff]   ;;  %v3451_v29 = vld [vmem:[%s4531_s1 + $0x120] ss:$12 sps:$4 sm:$0xff]   ;;  %v3943_v53 = vsub.s32 1, %v3805_v10 }
   0xf   : > { %806 = vmatpush1.bf16.msra.mxu0 %v3421_v5  ;;  %s3819_s26 = scalar_lea.vmem %s4530_s0, %s3230_s21  ;;  %v3452_v30 = vld [vmem:[%s4531_s1 + $0x13c] ss:$12 sps:$4 sm:$0xff]   ;;  %v3454_v31 = vld [vmem:[%s4531_s1 + $0x138] ss:$12 sps:$4 sm:$0xff]   ;;  %v3455_v32 = vld [vmem:[%s4531_s1 + $0x154] ss:$12 sps:$4 sm:$0xff]   ;;  %s467_s23 = scalar_lea.vmem %s4544_s14, %s3230_s21 }
  0x10   : > { %807 = vmatprep.subr.bf16.mxu0 %v3422_v6  ;;  %v3831_v16 = vld.sshfl [vmem:[%s3819_s26] sm:$0x33 pattern:$0x76325410]  ;;  %v3457_v33 = vld [vmem:[%s4531_s1 + $0x150] ss:$12 sps:$4 sm:$0xff]  }
  0x11   : > { %v542_v18 = vcombine.high %v3831_v16, %v3831_v16  ;;  %v3458_v34 = vld [vmem:[%s4531_s1 + $0x16c] ss:$12 sps:$4 sm:$0xff]   ;;  %v3460_v35 = vld [vmem:[%s4531_s1 + $0x168] ss:$12 sps:$4 sm:$0xff]   ;;  %v3467_v42 = vld [vmem:[%s4531_s1 + $0x110] ss:$12 sps:$4 sm:$0xff]  }
  0x12   : > { %v3461_v36 = vld [vmem:[%s4531_s1 + $0xc8] ss:$12 sps:$4 sm:$0xff]   ;;  %v3463_v38 = vld [vmem:[%s4531_s1 + $0xe0] ss:$12 sps:$4 sm:$0xff]   ;;  %v3465_v40 = vld [vmem:[%s4531_s1 + $0xf8] ss:$12 sps:$4 sm:$0xff]  }
  0x13   : > { %808 = vmatpush1.bf16.msra.mxu0 %v3424_v8  ;;  %833 = vmatprep.mubr.bf16.mxu0 %v542_v18  ;;  %v3462_v37 = vld [vmem:[%s4531_s1 + $0x8] ss:$12 sps:$4 sm:$0xff]   ;;  %v3464_v39 = vld [vmem:[%s4531_s1 + $0x20] ss:$12 sps:$4 sm:$0xff]   ;;  %v3466_v41 = vld [vmem:[%s4531_s1 + $0x38] ss:$12 sps:$4 sm:$0xff]  }
  0x14   : > { %809 = vmatprep.subr.bf16.mxu0 %v3425_v9  ;;  %874 = vmatprep.mubr.bf16.mxu1 %v542_v18  ;;  %v3468_v43 = vld [vmem:[%s4531_s1 + $0x50] ss:$12 sps:$4 sm:$0xff]   ;;  %v3469_v44 = vld [vmem:[%s4531_s1 + $0x128] ss:$12 sps:$4 sm:$0xff]   ;;  %v3471_v46 = vld [vmem:[%s4531_s1 + $0x140] ss:$12 sps:$4 sm:$0xff]  }
  0x15   : > { %3232 = vmatprep.subr.bf16.mxu1 %v3461_v36  ;;  %v3470_v45 = vld [vmem:[%s4531_s1 + $0x68] ss:$12 sps:$4 sm:$0xff]   ;;  %v3472_v47 = vld [vmem:[%s4531_s1 + $0x80] ss:$12 sps:$4 sm:$0xff]   ;;  %v3473_v48 = vld [vmem:[%s4531_s1 + $0x158] ss:$12 sps:$4 sm:$0xff]  }
  0x16   : > { %3233 = vmatpush3.bf16.msra.mxu1 %v3462_v37  ;;  %v3474_v49 = vld [vmem:[%s4531_s1 + $0x98] ss:$12 sps:$4 sm:$0xff]   ;;  %v3475_v50 = vld [vmem:[%s4531_s1 + $0x170] ss:$12 sps:$4 sm:$0xff]   ;;  %v3948_v54 = vld [vmem:[%s4532_s2] sm:$0x7] }
  0x17   : > { %810 = vmatpush1.bf16.msra.mxu0 %v3427_v11  ;;  %3234 = vmatprep.subr.bf16.mxu1 %v3463_v38  ;;  %v3476_v51 = vld [vmem:[%s4531_s1 + $0xb0] ss:$12 sps:$4 sm:$0xff]   ;;  %v3954_v56 = vld [vmem:[%s4533_s3] sm:$0x7]  ;;  %vm3684_vm0 = vmmov 0   ;;  %v887_v57 = vrot.slane %v3948_v54, %v3940_v52  ;;  %v891_v58 = vrot.slane %v3948_v54, %v3943_v53  ;;  %s3685_s19 = smov 32  }
  0x18   : > { %811 = vmatprep.subr.bf16.mxu0 %v3428_v12  ;;  %v907_v59 = vrot.slane %v3954_v56, %v3940_v52  ;;  %v911_v61 = vrot.slane %v3954_v56, %v3943_v53  ;;  %s3686_s20 = smov 64   ;;  %vm928_vm1 = vcmask 130048   ;;  %vm998_vm2 = vcmask 1041408   ;;  %v976_v18 = vld [vmem:[%s4534_s4] sm:$0xf]  ;;  %s3687_s24 = smov 16  }
  0x19   : > { %vm978_vm3 = vcmask 27648   ;;  %s3688_s25 = smov 112   ;;  %vm994_vm4 = vcmask 31744   ;;  %v3479_v37 = vld [vmem:[%s4535_s5 + $0x4] ss:$8 sps:$4 sm:$0xff]   ;;  %vm1196_vm5 = vcmask 261120  }
  0x1a   : > { %3235 = vmatpush3.bf16.msra.mxu1 %v3464_v39  ;;  %v3477_v38 = vld [vmem:[%s4535_s5] ss:$8 sps:$4 sm:$0xff]   ;;  %v3482_v39 = vld [vmem:[%s4535_s5 + $0x14] ss:$8 sps:$4 sm:$0xff]   ;;  %s3690_s28 = smov 96   ;;  %s3691_s16 = smov 80  }
  0x1b   : > { %812 = vmatpush1.bf16.msra.mxu0 %v3430_v13  ;;  %3236 = vmatprep.subr.bf16.mxu1 %v3465_v40  ;;  %v3480_v40 = vld [vmem:[%s4535_s5 + $0x10] ss:$8 sps:$4 sm:$0xff]   ;;  %s3692_s18 = smov 48  }
  0x1c   : > { %813 = vmatprep.subr.bf16.mxu0 %v3431_v14 }
  0x1e   : > { %3237 = vmatpush3.bf16.msra.mxu1 %v3466_v41  ;;  %v3689_v41 = vmov 0  }
  0x1f   : > { %814 = vmatpush1.bf16.msra.mxu0 %v3433_v15  ;;  %3238 = vmatprep.subr.bf16.mxu1 %v3467_v42 }
  0x20   : > { %815 = vmatprep.subr.bf16.mxu0 %v3434_v17 }
  0x22   : > { %3239 = vmatpush3.bf16.msra.mxu1 %v3468_v43 }
  0x23   : > { %816 = vmatpush1.bf16.msra.mxu0 %v3436_v19  ;;  %3240 = vmatprep.subr.bf16.mxu1 %v3469_v44 }
  0x24   : > { %817 = vmatprep.subr.bf16.mxu0 %v3437_v20 }
  0x26   : > { %3241 = vmatpush3.bf16.msra.mxu1 %v3470_v45 }
  0x27   : > { %818 = vmatpush1.bf16.msra.mxu0 %v3439_v21  ;;  %3242 = vmatprep.subr.bf16.mxu1 %v3471_v46 }
  0x28   : > { %819 = vmatprep.subr.bf16.mxu0 %v3440_v22 }
  0x2a   : > { %3243 = vmatpush3.bf16.msra.mxu1 %v3472_v47 }
  0x2b   : > { %820 = vmatpush1.bf16.msra.mxu0 %v3442_v23  ;;  %3244 = vmatprep.subr.bf16.mxu1 %v3473_v48 }
  0x2c   : > { %821 = vmatprep.subr.bf16.mxu0 %v3443_v24 }
  0x2e   : > { %3245 = vmatpush3.bf16.msra.mxu1 %v3474_v49 }
  0x2f   : > { %822 = vmatpush1.bf16.msra.mxu0 %v3445_v25  ;;  %3246 = vmatprep.subr.bf16.mxu1 %v3475_v50 }
  0x30   : > { %823 = vmatprep.subr.bf16.mxu0 %v3446_v26 }
  0x32   : > { %3247 = vmatpush3.bf16.msra.mxu1 %v3476_v51  ;;  %v3086_v51 = vld [vmem:[%s4534_s4 + $0x4] sm:$0xf] }
  0x33   : > { %824 = vmatpush1.bf16.msra.mxu0 %v3448_v27  ;;  %3300 = vmatprep.subr.bf16.mxu1 %v3683_v55 }
  0x34   : > { %825 = vmatprep.subr.bf16.mxu0 %v3449_v28 }
  0x35   : > { %875 = vmatmul.mubr.bf16.vlgmr.msra.gmra.mrb[0].mxu1 %v3831_v16 }
  0x36   : > { %3302 = vmatprep.mubr.msk.bf16.mxu1 %vm3684_vm0, %v3683_v55 }
  0x37   : > { %826 = vmatpush1.bf16.msra.mxu0 %v3451_v29 }
  0x38   : > { %827 = vmatprep.subr.bf16.mxu0 %v3452_v30 }
  0x3b   : > { %828 = vmatpush1.bf16.msra.mxu0 %v3454_v31 }
  0x3c   : > { %829 = vmatprep.subr.bf16.mxu0 %v3455_v32 }
  0x3f   : > { %830 = vmatpush1.bf16.msra.mxu0 %v3457_v33 }
  0x40   : > { %831 = vmatprep.subr.bf16.mxu0 %v3458_v34 }
  0x43   : > { %832 = vmatpush1.bf16.msra.mxu0 %v3460_v35 }
  0x44   : > { %1264 = vmatprep.subr.bf16.mxu0 %v3479_v37 }
  0x46   : > { %834 = vmatmul.mubr.bf16.vlgmr.msra.gmra.mrb[0].mxu0 %v3831_v16 }
  0x47   : > { %1265 = vmatpush1.bf16.msra.mxu0 %v3477_v38  ;;  %1296 = vmatprep.mubr.bf16.mxu0 %v3689_v41 }
  0x48   : > { %1266 = vmatprep.subr.bf16.mxu0 %v3482_v39 }
  0x4b   : > { %1267 = vmatpush1.bf16.msra.mxu0 %v3480_v40  ;;  %v3099_v40 = vld [vmem:[%s4534_s4 + $0x8] sm:$0xf] }
 0x108   : > { %v3248_v9 = vpop.f32.mrb[0].mxu1 }
 0x109   : > { %v3249_v11 = vpop.f32.mrb[1].mxu1 }
 0x10a   : > { %v3976_v13 = vadd.f32 %v3249_v11, %v3248_v9  ;;  %v3251_v14 = vpop.f32.mrb[2].mxu1  ;;  %v3485_v9 = vld [vmem:[%s4535_s5 + $0x24] ss:$8 sps:$4 sm:$0xff]  }
 0x10b   : > { %v3252_v15 = vpop.f32.mrb[3].mxu1 }
 0x119   : > { %v835_v60 = vpop.f32.mrb[0].mxu0 }
 0x11a   : > { %v899_v62 = vmul.f32 %v887_v57, %v835_v60  ;;  %v837_v63 = vpop.f32.mrb[1].mxu0 }
 0x11b   : > { %v900_v0 = vmul.f32 %v891_v58, %v837_v63  ;;  %v839_v1 = vpop.f32.mrb[2].mxu0 }
 0x11c   : > { %v919_v2 = vadd.f32 %v907_v59, %v899_v62  ;;  %v840_v3 = vpop.f32.mrb[3].mxu0 }
 0x11d   : > { %v920_v4 = vadd.f32 %v911_v61, %v900_v0 }
 0x11e   : > { %v3966_v5 = vpack.c.bf16 %v919_v2, %v919_v2 }
 0x11f   : > { %v3968_v6 = vpack.c.bf16 %v920_v4, %v920_v4 }
 0x120   : > { %926 = vrot.lane.b32.xlu0 %v3966_v5, %s3685_s19 }
 0x121   : > { %992 = vrot.lane.b32.xlu1 %v3968_v6, %s3686_s20 }
 0x192   : > { %v927_v7 = vpop.permute.xlu0 %926 }
 0x193   : > { %v933_v8 = vsel %vm928_vm1, %v927_v7, 0  ;;  %v993_v12 = vpop.permute.xlu1 %992 }
 0x194   : > { %3301 = vmatpush3.bf16.xpose.msra.mxu1 %v933_v8  ;;  %v1000_v16 = vsel %vm998_vm2, %v993_v12, 0 }
 0x195   : > { %3306 = vmatprep.subr.bf16.mxu1 %v3683_v55 }
 0x19b   : > { %3303 = vmatmul.mubr.msk.bf16.vlgmr.msra.gmra.mrb[4].mxu1 %vm928_vm1, %v3966_v5 }
 0x19c   : > { %3307 = vmatpush3.bf16.msra.mxu1 %v1000_v16  ;;  %3308 = vmatprep.mubr.msk.bf16.mxu1 %vm3684_vm0, %v3683_v55  ;;  %v3483_v16 = vld [vmem:[%s4535_s5 + $0x20] ss:$8 sps:$4 sm:$0xff]  }
 0x19d   : > { %3312 = vmatprep.subr.bf16.mxu1 %v3683_v55 }
 0x26e   : > { %v969_v17 = vpop.f32.mrb[4].mxu1 }
 0x26f   : > { %v975_v19 = vmul.f32 0.25, %v969_v17  ;;  %v3304_v20 = vpop.f32.mrb[5].mxu1 }
 0x270   : > { %v972_v21 = vpop.f32.mrb[6].mxu1 }
 0x271   : > { %v3305_v22 = vpop.f32.mrb[7].mxu1  ;;  %v977_v23 = vadd.f32 %v976_v18, %v975_v19  ;;  %v3488_v18 = vld [vmem:[%s4535_s5 + $0x34] ss:$8 sps:$4 sm:$0xff]   ;;  %v3486_v19 = vld [vmem:[%s4535_s5 + $0x30] ss:$8 sps:$4 sm:$0xff]   ;;  %v4043_v21 = vsub.s32 2, %v3805_v10 }
 0x272   : > { %v1311_v10 = vsel %vm928_vm1, %v3968_v6, 0 }
 0x273   : > { %v979_v24 = vsel %vm978_vm3, %v977_v23, -inf }
 0x274   : > { %980 = vmax.xlane.f32.xlu0 %v979_v24 }
 0x301   : > { %v981_v25 = vpop.xlane.xlu0 %980 }
 0x302   : > { %v982_v26 = vsub.f32 %v977_v23, %v981_v25 }
 0x304   : > { %v983_v27 = vmul.f32 1.442695, %v982_v26 }
 0x306   : > { %3649 = vpow2.f32 %v983_v27  ;;  %v895_v27 = vrot.slane %v3948_v54, %v4043_v21 }
 0x310   : > { %v3650_v28 = vpop.eup %3649 }
 0x311   : > { %v985_v29 = vsel %vm978_vm3, %v3650_v28, 0.0 }
 0x312   : > { %986 = vadd.xlane.f32.xlu1 %v985_v29 }
 0x323   : > { %1054 = vrot.lane.b32.xlu1 %v3966_v5, %s3687_s24 }
 0x327   : > { %1052 = vrot.lane.b32.xlu1 %v3966_v5, %s3688_s25 }
 0x39f   : > { %v987_v30 = vpop.xlane.xlu1 %986 }
 0x3a0   : > { %3651 = vrcp.f32 %v987_v30  ;;  %v901_v30 = vmul.f32 %v3976_v13, %v895_v27 }
 0x3a3   : > { %v1055_v33 = vpop.permute.xlu1 %1054 }
 0x3a4   : > { %v1060_v35 = vsel %vm928_vm1, %v1055_v33, 0 }
 0x3a7   : > { %v1053_v36 = vpop.permute.xlu1 %1052 }
 0x3aa   : > { %v3652_v31 = vpop.eup %3651 }
 0x3ab   : > { %v989_v32 = vmul.f32 %v3652_v31, %v3650_v28  ;;  %v915_v31 = vrot.slane %v3954_v56, %v4043_v21 }
 0x3ad   : > { %v990_v34 = vpack.c.bf16 %v989_v32, %v989_v32 }
 0x3af   : > { %3309 = vmatmul.mubr.msk.bf16.vlgmr.msra.gmra.mrb[8].mxu1 %vm994_vm4, %v990_v34  ;;  %v921_v34 = vadd.f32 %v915_v31, %v901_v30 }
 0x3b0   : > { %3313 = vmatpush3.bf16.xpose.msra.mxu1 %v1060_v35  ;;  %3314 = vmatprep.mubr.msk.bf16.mxu1 %vm3684_vm0, %v3683_v55 }
 0x3b1   : > { %3318 = vmatprep.subr.bf16.mxu1 %v3683_v55  ;;  %v4056_v54 = vpack.c.bf16 %v921_v34, %v921_v34 }
 0x3b3   : > { %v1373_v56 = vsel %vm998_vm2, %v4056_v54, 0 }
 0x3b7   : > { %3315 = vmatmul.mubr.msk.bf16.vlgmr.msra.gmra.mrb[12].mxu1 %vm928_vm1, %v1053_v36 }
 0x3b8   : > { %3320 = vmatprep.mubr.msk.bf16.mxu1 %vm3684_vm0, %v3683_v55 }
 0x482   : > { %v1036_v42 = vpop.f32.mrb[8].mxu1 }
 0x483   : > { %v1042_v43 = vadd.f32 3.0, %v1036_v42  ;;  %v3310_v44 = vpop.f32.mrb[9].mxu1 }
 0x484   : > { %v1039_v45 = vpop.f32.mrb[10].mxu1 }
 0x485   : > { %v1043_v46 = vmax.f32 %v1042_v43, 0.0  ;;  %v3311_v47 = vpop.f32.mrb[11].mxu1 }
 0x487   : > { %v1044_v48 = vmin.f32 %v1043_v46, 6.0 }
 0x489   : > { %v1045_v49 = vmul.f32 %v1044_v48, %v1036_v42 }
 0x48a   : > { %v1096_v50 = vpop.f32.mrb[12].mxu1 }
 0x48b   : > { %v1046_v57 = vmul.f32 0.16666667, %v1045_v49  ;;  %v1102_v58 = vmul.f32 0.25, %v1096_v50  ;;  %v3316_v59 = vpop.f32.mrb[13].mxu1 }
 0x48c   : > { %v1099_v60 = vpop.f32.mrb[14].mxu1 }
 0x48d   : > { %v1047_v61 = vpack.c.bf16 %v1046_v57, %v1046_v57  ;;  %v3317_v62 = vpop.f32.mrb[15].mxu1  ;;  %v1105_v63 = vadd.f32 %v3086_v51, %v1102_v58 }
 0x48f   : > { %3097 = vmatmul.mubr.msk.bf16.vlgmr.msra.gmra.mrb[4].mxu0 %vm1196_vm5, %v1047_v61  ;;  %v1106_v0 = vsel %vm978_vm3, %v1105_v63, -inf }
 0x490   : > { %1107 = vmax.xlane.f32.xlu1 %v1106_v0  ;;  %1480 = vmatprep.mubr.bf16.mxu0 %v3689_v41 }
 0x4a1   : > { %1493 = vrot.lane.b32.xlu1 %v3968_v6, %s3688_s25 }
 0x51d   : > { %v1108_v1 = vpop.xlane.xlu1 %1107 }
 0x51e   : > { %v1109_v2 = vsub.f32 %v1105_v63, %v1108_v1 }
 0x520   : > { %v1110_v3 = vmul.f32 1.442695, %v1109_v2 }
 0x521   : > { %v1494_v58 = vpop.permute.xlu1 %1493 }
 0x522   : > { %3653 = vpow2.f32 %v1110_v3  ;;  %v1499_v0 = vsel %vm928_vm1, %v1494_v58, 0 }
 0x52c   : > { %v3654_v4 = vpop.eup %3653 }
 0x52d   : > { %v1112_v7 = vsel %vm978_vm3, %v3654_v4, 0.0 }
 0x52e   : > { %1113 = vadd.xlane.f32.xlu0 %v1112_v7  ;;  %v3489_v7 = vld [vmem:[%s4535_s5 + $0x40] ss:$8 sps:$4 sm:$0xff]  }
 0x544   : > { %1118 = vrot.lane.b32.xlu0 %v3968_v6, %s3685_s19 }
 0x548   : > { %1305 = vrot.lane.b32.xlu0 %v3966_v5, %s3690_s28 }
 0x5bb   : > { %v1114_v8 = vpop.xlane.xlu0 %1113 }
 0x5bc   : > { %3655 = vrcp.f32 %v1114_v8  ;;  %v3494_v8 = vld [vmem:[%s4535_s5 + $0x54] ss:$8 sps:$4 sm:$0xff]  }
 0x5bf   : > { %v1119_v11 = vpop.permute.xlu0 %1118 }
 0x5c0   : > { %v1124_v12 = vsel %vm998_vm2, %v1119_v11, 0 }
 0x5c1   : > { %3319 = vmatpush3.bf16.msra.mxu1 %v1124_v12 }
 0x5c2   : > { %1200 = vmatprep.subr.bf16.mxu1 %v3485_v9  ;;  %v3492_v9 = vld [vmem:[%s4535_s5 + $0x50] ss:$8 sps:$4 sm:$0xff]  }
 0x5c3   : > { %v1306_v13 = vpop.permute.xlu0 %1305 }
 0x5c6   : > { %v3656_v14 = vpop.eup %3655 }
 0x5c7   : > { %v1116_v15 = vmul.f32 %v3656_v14, %v3654_v4  ;;  %v3491_v4 = vld [vmem:[%s4535_s5 + $0x44] ss:$8 sps:$4 sm:$0xff]  }
 0x5c8   : > { %1448 = vmatprep.subr.bf16.mxu0 %v3491_v4  ;;  %v3495_v4 = vld [vmem:[%s4535_s5 + $0x60] ss:$8 sps:$4 sm:$0xff]  }
 0x5c9   : > { %v1117_v17 = vpack.c.bf16 %v1116_v15, %v1116_v15  ;;  %1449 = vmatpush1.bf16.msra.mxu0 %v3489_v7  ;;  %v3500_v7 = vld [vmem:[%s4535_s5 + $0x74] ss:$8 sps:$4 sm:$0xff]  }
 0x5ca   : > { %1450 = vmatprep.subr.bf16.mxu0 %v3494_v8  ;;  %v3498_v8 = vld [vmem:[%s4535_s5 + $0x70] ss:$8 sps:$4 sm:$0xff]  }
 0x5cb   : > { %3321 = vmatmul.mubr.msk.bf16.vlgmr.msra.gmra.mrb[16].mxu1 %vm994_vm4, %v1117_v17 }
 0x5cc   : > { %1201 = vmatpush1.bf16.msra.mxu1 %v3483_v16  ;;  %1232 = vmatprep.mubr.bf16.mxu1 %v3689_v41 }
 0x5cd   : > { %1202 = vmatprep.subr.bf16.mxu1 %v3488_v18  ;;  %1451 = vmatpush1.bf16.msra.mxu0 %v3492_v9  ;;  %v3503_v9 = vld [vmem:[%s4535_s5 + $0x84] ss:$8 sps:$4 sm:$0xff]  }
 0x5ce   : > { %3342 = vmatprep.subr.bf16.mxu0 %v3683_v55 }
 0x5d0   : > { %1203 = vmatpush1.bf16.msra.mxu1 %v3486_v19 }
 0x5d1   : > { %3324 = vmatprep.subr.bf16.mxu1 %v3683_v55 }
 0x69e   : > { %v1160_v20 = vpop.f32.mrb[16].mxu1 }
 0x69f   : > { %v1166_v22 = vadd.f32 3.0, %v1160_v20  ;;  %v3322_v23 = vpop.f32.mrb[17].mxu1 }
 0x6a0   : > { %v1163_v24 = vpop.f32.mrb[18].mxu1 }
 0x6a1   : > { %v1167_v25 = vmax.f32 %v1166_v22, 0.0  ;;  %v3323_v26 = vpop.f32.mrb[19].mxu1 }
 0x6a3   : > { %v1168_v28 = vmin.f32 %v1167_v25, 6.0 }
 0x6a5   : > { %v1169_v29 = vmul.f32 %v1168_v28, %v1160_v20  ;;  %v3115_v28 = vld [vmem:[%s4534_s4 + $0x10] sm:$0xf] }
 0x6a7   : > { %v1170_v32 = vmul.f32 0.16666667, %v1169_v29 }
 0x6a9   : > { %v1171_v33 = vpack.c.bf16 %v1170_v32, %v1170_v32 }
 0x6ab   : > { %3092 = vmatmul.mubr.msk.bf16.vlgmr.msra.gmra.mrb[20].mxu1 %vm1196_vm5, %v1171_v33 }
 0x6ac   : > { %3325 = vmatpush3.bf16.xpose.msra.mxu1 %v1311_v10  ;;  %3326 = vmatprep.mubr.msk.bf16.mxu1 %vm3684_vm0, %v3683_v55 }
 0x6ad   : > { %3330 = vmatprep.subr.bf16.mxu1 %v3683_v55 }
 0x6b3   : > { %3327 = vmatmul.mubr.msk.bf16.vlgmr.msra.gmra.mrb[24].mxu1 %vm928_vm1, %v1306_v13  ;;  %v3107_v13 = vld [vmem:[%s4534_s4 + $0xc] sm:$0xf] }
 0x6b4   : > { %3331 = vmatpush3.bf16.msra.mxu1 %v1373_v56  ;;  %3332 = vmatprep.mubr.msk.bf16.mxu1 %vm3684_vm0, %v3683_v55 }
 0x6b5   : > { %3336 = vmatprep.subr.bf16.mxu1 %v3683_v55 }
 0x77e   : > { %v4064_v35 = vpop.f32.mrb[20].mxu1 }
 0x77f   : > { %v4066_v36 = vpop.f32.mrb[21].mxu1 }
 0x780   : > { %v1238_v37 = vpop.f32.mrb[22].mxu1 }
 0x781   : > { %v1239_v38 = vpop.f32.mrb[23].mxu1 }
 0x786   : > { %v1347_v39 = vpop.f32.mrb[24].mxu1 }
 0x787   : > { %v1353_v42 = vmul.f32 0.25, %v1347_v39  ;;  %v3328_v43 = vpop.f32.mrb[25].mxu1 }
 0x788   : > { %v1350_v44 = vpop.f32.mrb[26].mxu1 }
 0x789   : > { %v3329_v45 = vpop.f32.mrb[27].mxu1  ;;  %v1356_v46 = vadd.f32 %v3099_v40, %v1353_v42 }
 0x78b   : > { %v1357_v47 = vsel %vm978_vm3, %v1356_v46, -inf }
 0x78c   : > { %1358 = vmax.xlane.f32.xlu0 %v1357_v47 }
 0x819   : > { %v1359_v48 = vpop.xlane.xlu0 %1358 }
 0x81a   : > { %v1360_v49 = vsub.f32 %v1356_v46, %v1359_v48 }
 0x81c   : > { %v1361_v50 = vmul.f32 1.442695, %v1360_v49 }
 0x81e   : > { %3657 = vpow2.f32 %v1361_v50 }
 0x828   : > { %v3658_v51 = vpop.eup %3657 }
 0x829   : > { %v1363_v57 = vsel %vm978_vm3, %v3658_v51, 0.0 }
 0x82a   : > { %1364 = vadd.xlane.f32.xlu1 %v1363_v57 }
 0x83b   : > { %1491 = vrot.lane.b32.xlu1 %v3966_v5, %s3691_s16 }
 0x83f   : > { %1684 = vrot.lane.b32.xlu1 %v3968_v6, %s3690_s28 }
 0x843   : > { %1682 = vrot.lane.b32.xlu1 %v3966_v5, %s3686_s20 }
 0x8b7   : > { %v1365_v59 = vpop.xlane.xlu1 %1364 }
 0x8b8   : > { %3659 = vrcp.f32 %v1365_v59 }
 0x8bb   : > { %v1492_v63 = vpop.permute.xlu1 %1491 }
 0x8bf   : > { %v1685_v1 = vpop.permute.xlu1 %1684 }
 0x8c0   : > { %v1690_v2 = vsel %vm928_vm1, %v1685_v1, 0 }
 0x8c2   : > { %v3660_v60 = vpop.eup %3659 }
 0x8c3   : > { %v1367_v61 = vmul.f32 %v3660_v60, %v3658_v51  ;;  %v1683_v3 = vpop.permute.xlu1 %1682 }
 0x8c5   : > { %v1368_v62 = vpack.c.bf16 %v1367_v61, %v1367_v61 }
 0x8c7   : > { %3333 = vmatmul.mubr.msk.bf16.vlgmr.msra.gmra.mrb[28].mxu1 %vm994_vm4, %v1368_v62 }
 0x8c8   : > { %3337 = vmatpush3.bf16.xpose.msra.mxu1 %v1499_v0  ;;  %3338 = vmatprep.mubr.msk.bf16.mxu1 %vm3684_vm0, %v3683_v55 }
 0x8c9   : > { %3348 = vmatprep.subr.bf16.mxu1 %v3683_v55 }
 0x8cf   : > { %3339 = vmatmul.mubr.msk.bf16.vlgmr.msra.gmra.mrb[32].mxu1 %vm928_vm1, %v1492_v63 }
 0x8d0   : > { %3349 = vmatpush3.bf16.xpose.msra.mxu1 %v1690_v2  ;;  %3350 = vmatprep.mubr.msk.bf16.mxu1 %vm3684_vm0, %v3683_v55 }
 0x8d1   : > { %3354 = vmatprep.subr.bf16.mxu1 %v3683_v55 }
 0x8d7   : > { %3351 = vmatmul.mubr.msk.bf16.vlgmr.msra.gmra.mrb[36].mxu1 %vm928_vm1, %v1683_v3  ;;  %v3497_v3 = vld [vmem:[%s4535_s5 + $0x64] ss:$8 sps:$4 sm:$0xff]  }
 0x8d8   : > { %3356 = vmatprep.mubr.msk.bf16.mxu1 %vm3684_vm0, %v3683_v55 }
 0x99a   : > { %v1409_v11 = vpop.f32.mrb[28].mxu1 }
 0x99b   : > { %v1415_v12 = vadd.f32 3.0, %v1409_v11  ;;  %v3334_v14 = vpop.f32.mrb[29].mxu1 }
 0x99c   : > { %v1412_v15 = vpop.f32.mrb[30].mxu1 }
 0x99d   : > { %v1416_v16 = vmax.f32 %v1415_v12, 0.0  ;;  %v3335_v17 = vpop.f32.mrb[31].mxu1 }
 0x99e   : > { %v3123_v17 = vld [vmem:[%s4534_s4 + $0x14] sm:$0xf] }
 0x99f   : > { %v1417_v18 = vmin.f32 %v1416_v16, 6.0 }
 0x9a1   : > { %v1418_v19 = vmul.f32 %v1417_v18, %v1409_v11 }
 0x9a2   : > { %v1535_v20 = vpop.f32.mrb[32].mxu1 }
 0x9a3   : > { %v1419_v22 = vmul.f32 0.16666667, %v1418_v19  ;;  %v3340_v23 = vpop.f32.mrb[33].mxu1  ;;  %v1541_v10 = vmul.f32 0.25, %v1535_v20 }
 0x9a4   : > { %v1538_v24 = vpop.f32.mrb[34].mxu1 }
 0x9a5   : > { %v1420_v25 = vpack.c.bf16 %v1419_v22, %v1419_v22  ;;  %v3341_v26 = vpop.f32.mrb[35].mxu1  ;;  %v1544_v56 = vadd.f32 %v3107_v13, %v1541_v10  ;;  %v3501_v13 = vld [vmem:[%s4535_s5 + $0x80] ss:$8 sps:$4 sm:$0xff]  }
 0x9a7   : > { %3105 = vmatmul.mubr.msk.bf16.vlgmr.msra.gmra.mrb[4].mxu0 %vm1196_vm5, %v1420_v25  ;;  %v1545_v37 = vsel %vm978_vm3, %v1544_v56, -inf }
 0x9a8   : > { %3344 = vmatprep.mubr.msk.bf16.mxu0 %vm3684_vm0, %v3683_v55 }
 0x9aa   : > { %v1726_v27 = vpop.f32.mrb[36].mxu1 }
 0x9ab   : > { %v1732_v29 = vmul.f32 0.25, %v1726_v27  ;;  %v3352_v30 = vpop.f32.mrb[37].mxu1 }
 0x9ac   : > { %v1729_v31 = vpop.f32.mrb[38].mxu1 }
 0x9ad   : > { %v3353_v32 = vpop.f32.mrb[39].mxu1  ;;  %v1735_v33 = vadd.f32 %v3115_v28, %v1732_v29 }
 0x9af   : > { %v1736_v34 = vsel %vm978_vm3, %v1735_v33, -inf }
 0x9b0   : > { %1737 = vmax.xlane.f32.xlu0 %v1736_v34 }
 0x9c6   : > { %1748 = vrot.lane.b32.xlu0 %v4056_v54, %s3686_s20 }
 0x9ca   : > { %1874 = vrot.lane.b32.xlu0 %v3968_v6, %s3691_s16 }
 0x9ce   : > { %1872 = vrot.lane.b32.xlu0 %v3966_v5, %s3692_s18 }
 0x9ed   : > { %1546 = vmax.xlane.f32.xlu0 %v1545_v37 }
 0xa3d   : > { %v1738_v38 = vpop.xlane.xlu0 %1737 }
 0xa3e   : > { %v1739_v39 = vsub.f32 %v1735_v33, %v1738_v38  ;;  %v3506_v38 = vld [vmem:[%s4535_s5 + $0x94] ss:$8 sps:$4 sm:$0xff]  }
 0xa40   : > { %v1740_v40 = vmul.f32 1.442695, %v1739_v39  ;;  %v3504_v39 = vld [vmem:[%s4535_s5 + $0x90] ss:$8 sps:$4 sm:$0xff]  }
 0xa41   : > { %v1749_v42 = vpop.permute.xlu0 %1748 }
 0xa42   : > { %3661 = vpow2.f32 %v1740_v40  ;;  %v1754_v43 = vsel %vm998_vm2, %v1749_v42, 0 }
 0xa43   : > { %3355 = vmatpush3.bf16.msra.mxu1 %v1754_v43 }
 0xa44   : > { %3360 = vmatprep.subr.bf16.mxu1 %v3683_v55 }
 0xa45   : > { %v1875_v44 = vpop.permute.xlu0 %1874 }
 0xa46   : > { %v1880_v60 = vsel %vm928_vm1, %v1875_v44, 0 }
 0xa49   : > { %v1873_v45 = vpop.permute.xlu0 %1872 }
 0xa4c   : > { %v3662_v5 = vpop.eup %3661 }
 0xa4d   : > { %v1742_v6 = vsel %vm978_vm3, %v3662_v5, 0.0 }
 0xa4e   : > { %1743 = vadd.xlane.f32.xlu1 %v1742_v6 }
 0xa7a   : > { %v1547_v46 = vpop.xlane.xlu0 %1546 }
 0xa7b   : > { %v1548_v47 = vsub.f32 %v1544_v56, %v1547_v46 }
 0xa7d   : > { %v1549_v48 = vmul.f32 1.442695, %v1548_v47 }
 0xa7f   : > { %3663 = vpow2.f32 %v1549_v48 }
 0xa89   : > { %v3664_v49 = vpop.eup %3663 }
 0xa8a   : > { %v1551_v50 = vsel %vm978_vm3, %v3664_v49, 0.0 }
 0xa8b   : > { %1552 = vadd.xlane.f32.xlu1 %v1551_v50 }
 0xa9c   : > { %1558 = vrot.lane.b32.xlu1 %v4056_v54, %s3690_s28 }
 0xadb   : > { %v1744_v51 = vpop.xlane.xlu1 %1743 }
 0xadc   : > { %3665 = vrcp.f32 %v1744_v51 }
 0xae6   : > { %v3666_v57 = vpop.eup %3665 }
 0xae7   : > { %v1746_v58 = vmul.f32 %v3666_v57, %v3662_v5  ;;  %v3509_v57 = vld [vmem:[%s4535_s5 + $0xa4] ss:$8 sps:$4 sm:$0xff]  }
 0xae9   : > { %v1747_v59 = vpack.c.bf16 %v1746_v58, %v1746_v58  ;;  %v3512_v58 = vld [vmem:[%s4535_s5 + $0xb4] ss:$8 sps:$4 sm:$0xff]  }
 0xaeb   : > { %3357 = vmatmul.mubr.msk.bf16.vlgmr.msra.gmra.mrb[40].mxu1 %vm994_vm4, %v1747_v59  ;;  %v3510_v59 = vld [vmem:[%s4535_s5 + $0xb0] ss:$8 sps:$4 sm:$0xff]  }
 0xaec   : > { %3361 = vmatpush3.bf16.xpose.msra.mxu1 %v1880_v60  ;;  %3362 = vmatprep.mubr.msk.bf16.mxu1 %vm3684_vm0, %v3683_v55  ;;  %v3513_v60 = vld [vmem:[%s4538_s8] ss:$12 sps:$4 sm:$0xff]  }
 0xaf3   : > { %3363 = vmatmul.mubr.msk.bf16.vlgmr.msra.gmra.mrb[44].mxu1 %vm928_vm1, %v1873_v45 }
 0xb18   : > { %v1553_v61 = vpop.xlane.xlu1 %1552 }
 0xb19   : > { %3667 = vrcp.f32 %v1553_v61  ;;  %v3515_v61 = vld [vmem:[%s4538_s8 + $0x4] ss:$12 sps:$4 sm:$0xff]  }
 0xb1a   : > { %2418 = vmatprep.subr.bf16.mxu1 %v3515_v61  ;;  %v3603_v61 = vld [vmem:[%s4541_s11 + $0x84] ss:$8 sps:$4 sm:$0xff]  }
 0xb1b   : > { %2419 = vmatpush1.bf16.msra.mxu1 %v3513_v60  ;;  %v3598_v60 = vld [vmem:[%s4541_s11 + $0x70] ss:$8 sps:$4 sm:$0xff]  }
 0xb1c   : > { %v1559_v62 = vpop.permute.xlu1 %1558 }
 0xb1d   : > { %v1564_v63 = vsel %vm998_vm2, %v1559_v62, 0  ;;  %v3518_v62 = vld [vmem:[%s4538_s8 + $0x1c] ss:$12 sps:$4 sm:$0xff]  }
 0xb1e   : > { %3343 = vmatpush3.bf16.msra.mxu0 %v1564_v63  ;;  %v3516_v63 = vld [vmem:[%s4538_s8 + $0x18] ss:$12 sps:$4 sm:$0xff]   ;;  %2420 = vmatprep.subr.bf16.mxu1 %v3518_v62  ;;  %v3601_v62 = vld [vmem:[%s4541_s11 + $0x80] ss:$8 sps:$4 sm:$0xff]  }
 0xb1f   : > { %1639 = vmatprep.subr.bf16.mxu0 %v3497_v3  ;;  %2421 = vmatpush1.bf16.msra.mxu1 %v3516_v63  ;;  %v3522_v3 = vld [vmem:[%s4538_s8 + $0x48] ss:$12 sps:$4 sm:$0xff]  }
 0xb20   : > { %v3606_v63 = vld [vmem:[%s4541_s11 + $0x94] ss:$8 sps:$4 sm:$0xff]  }
 0xb23   : > { %v3668_v0 = vpop.eup %3667 }
 0xb24   : > { %v1555_v1 = vmul.f32 %v3668_v0, %v3664_v49  ;;  %v3521_v0 = vld [vmem:[%s4538_s8 + $0x34] ss:$12 sps:$4 sm:$0xff]  }
 0xb25   : > { %2422 = vmatprep.subr.bf16.mxu1 %v3521_v0  ;;  %v3604_v0 = vld [vmem:[%s4541_s11 + $0x90] ss:$8 sps:$4 sm:$0xff]  }
 0xb26   : > { %v1556_v2 = vpack.c.bf16 %v1555_v1, %v1555_v1  ;;  %v3519_v1 = vld [vmem:[%s4538_s8 + $0x30] ss:$12 sps:$4 sm:$0xff]  }
 0xb27   : > { %2423 = vmatpush1.bf16.msra.mxu1 %v3519_v1  ;;  %v3609_v1 = vld [vmem:[%s4541_s11 + $0xa4] ss:$8 sps:$4 sm:$0xff]  }
 0xb28   : > { %3345 = vmatmul.mubr.msk.bf16.vlgmr.msra.gmra.mrb[8].mxu0 %vm994_vm4, %v1556_v2  ;;  %v3524_v2 = vld [vmem:[%s4538_s8 + $0x4c] ss:$12 sps:$4 sm:$0xff]  }
 0xb29   : > { %1671 = vmatprep.mubr.bf16.mxu0 %v3689_v41  ;;  %1640 = vmatpush1.bf16.msra.mxu0 %v3495_v4  ;;  %v3527_v4 = vld [vmem:[%s4538_s8 + $0x64] ss:$12 sps:$4 sm:$0xff]  }
 0xb2a   : > { %1641 = vmatprep.subr.bf16.mxu0 %v3500_v7  ;;  %2424 = vmatprep.subr.bf16.mxu1 %v3524_v2  ;;  %v3525_v7 = vld [vmem:[%s4538_s8 + $0x60] ss:$12 sps:$4 sm:$0xff]  }
 0xb2b   : > { %2425 = vmatpush1.bf16.msra.mxu1 %v3522_v3  ;;  %v3607_v2 = vld [vmem:[%s4541_s11 + $0xa0] ss:$8 sps:$4 sm:$0xff]   ;;  %v3612_v3 = vld [vmem:[%s4541_s11 + $0xb4] ss:$8 sps:$4 sm:$0xff]  }
 0xb2c   : > { %2426 = vmatprep.subr.bf16.mxu1 %v3527_v4  ;;  %v3610_v4 = vld [vmem:[%s4541_s11 + $0xb0] ss:$8 sps:$4 sm:$0xff]  }
 0xb2d   : > { %1642 = vmatpush1.bf16.msra.mxu0 %v3498_v8  ;;  %v3530_v8 = vld [vmem:[%s4538_s8 + $0x7c] ss:$12 sps:$4 sm:$0xff]  }
 0xb2e   : > { %1829 = vmatprep.subr.bf16.mxu0 %v3503_v9  ;;  %v3528_v9 = vld [vmem:[%s4538_s8 + $0x78] ss:$12 sps:$4 sm:$0xff]  }
 0xb2f   : > { %2427 = vmatpush1.bf16.msra.mxu1 %v3525_v7  ;;  %v2062_v7 = vld [vmem:[%s4536_s6] sm:$0x3] }
 0xb30   : > { %2428 = vmatprep.subr.bf16.mxu1 %v3530_v8  ;;  %v2076_v8 = vld [vmem:[%s4537_s7] sm:$0x3] }
 0xb33   : > { %2429 = vmatpush1.bf16.msra.mxu1 %v3528_v9  ;;  %v2067_v9 = vrot.slane %v2062_v7, %v3940_v52 }
 0xbbe   : > { %v1790_v11 = vpop.f32.mrb[40].mxu1 }
 0xbbf   : > { %v3358_v12 = vpop.f32.mrb[41].mxu1  ;;  %v1796_v29 = vadd.f32 3.0, %v1790_v11 }
 0xbc0   : > { %v1793_v14 = vpop.f32.mrb[42].mxu1  ;;  %v3531_v12 = vld [vmem:[%s4538_s8 + $0x90] ss:$12 sps:$4 sm:$0xff]  }
 0xbc1   : > { %v3359_v15 = vpop.f32.mrb[43].mxu1  ;;  %v1797_v33 = vmax.f32 %v1796_v29, 0.0  ;;  %v3536_v14 = vld [vmem:[%s4538_s8 + $0xac] ss:$12 sps:$4 sm:$0xff]  }
 0xbc2   : > { %v3534_v15 = vld [vmem:[%s4538_s8 + $0xa8] ss:$12 sps:$4 sm:$0xff]  }
 0xbc3   : > { %v1798_v56 = vmin.f32 %v1797_v33, 6.0 }
 0xbc5   : > { %v1799_v40 = vmul.f32 %v1798_v56, %v1790_v11  ;;  %v3533_v11 = vld [vmem:[%s4538_s8 + $0x94] ss:$12 sps:$4 sm:$0xff]   ;;  %v3554_v56 = vld [vmem:[%s4538_s8 + $0x13c] ss:$12 sps:$4 sm:$0xff]  }
 0xbc6   : > { %v1916_v16 = vpop.f32.mrb[44].mxu1  ;;  %2430 = vmatprep.subr.bf16.mxu1 %v3533_v11  ;;  %v3673_v11 = vld [vmem:[%s3819_s26] sm:$0xf] }
 0xbc7   : > { %v1922_v18 = vmul.f32 0.25, %v1916_v16  ;;  %v3364_v19 = vpop.f32.mrb[45].mxu1  ;;  %v1800_v42 = vmul.f32 0.16666667, %v1799_v40  ;;  %2431 = vmatpush1.bf16.msra.mxu1 %v3531_v12  ;;  %v3539_v16 = vld [vmem:[%s4538_s8 + $0xc4] ss:$12 sps:$4 sm:$0xff]   ;;  %v2090_v12 = vunpack.c.l.bf16 %v3673_v11 }
 0xbc8   : > { %v1919_v20 = vpop.f32.mrb[46].mxu1  ;;  %2432 = vmatprep.subr.bf16.mxu1 %v3536_v14  ;;  %v3540_v19 = vld [vmem:[%s4538_s8 + $0xd8] ss:$12 sps:$4 sm:$0xff]   ;;  %v3558_v40 = vld [vmem:[%s4538_s8 + $0x168] ss:$12 sps:$4 sm:$0xff]  }
 0xbc9   : > { %v3365_v22 = vpop.f32.mrb[47].mxu1  ;;  %v1925_v23 = vadd.f32 %v3123_v17, %v1922_v18  ;;  %v1801_v43 = vpack.c.bf16 %v1800_v42, %v1800_v42  ;;  %v3537_v17 = vld [vmem:[%s4538_s8 + $0xc0] ss:$12 sps:$4 sm:$0xff]   ;;  %v3542_v18 = vld [vmem:[%s4538_s8 + $0xdc] ss:$12 sps:$4 sm:$0xff]  }
 0xbca   : > { %v3545_v20 = vld [vmem:[%s4538_s8 + $0xf4] ss:$12 sps:$4 sm:$0xff]   ;;  %v3543_v22 = vld [vmem:[%s4538_s8 + $0xf0] ss:$12 sps:$4 sm:$0xff]   ;;  %v3560_v42 = vld [vmem:[%s4538_s8 + $0x16c] ss:$12 sps:$4 sm:$0xff]  }
 0xbcb   : > { %v1926_v24 = vsel %vm978_vm3, %v1925_v23, -inf  ;;  %2433 = vmatpush1.bf16.msra.mxu1 %v3534_v15  ;;  %v2071_v15 = vrot.slane %v2062_v7, %v3943_v53 }
 0xbcc   : > { %1927 = vmax.xlane.f32.xlu1 %v1926_v24  ;;  %2434 = vmatprep.subr.bf16.mxu1 %v3539_v16  ;;  %v3546_v24 = vld [vmem:[%s4538_s8 + $0x108] ss:$12 sps:$4 sm:$0xff]  }
 0xbcf   : > { %2435 = vmatpush1.bf16.msra.mxu1 %v3537_v17  ;;  %v2081_v17 = vrot.slane %v2076_v8, %v3940_v52 }
 0xbd0   : > { %2436 = vmatprep.subr.bf16.mxu1 %v3542_v18 }
 0xbd3   : > { %2437 = vmatpush1.bf16.msra.mxu1 %v3540_v19 }
 0xbd4   : > { %2438 = vmatprep.subr.bf16.mxu1 %v3545_v20  ;;  %v2085_v20 = vrot.slane %v2076_v8, %v3943_v53 }
 0xbd7   : > { %2439 = vmatpush1.bf16.msra.mxu1 %v3543_v22 }
 0xbfb   : > { %v1600_v25 = vpop.f32.mrb[8].mxu0 }
 0xbfc   : > { %v1606_v26 = vadd.f32 3.0, %v1600_v25  ;;  %v3346_v27 = vpop.f32.mrb[9].mxu0 }
 0xbfd   : > { %v1603_v28 = vpop.f32.mrb[10].mxu0 }
 0xbfe   : > { %v1607_v30 = vmax.f32 %v1606_v26, 0.0  ;;  %v3347_v31 = vpop.f32.mrb[11].mxu0  ;;  %v3549_v26 = vld [vmem:[%s4538_s8 + $0x120] ss:$12 sps:$4 sm:$0xff]  }
 0xc00   : > { %v1608_v32 = vmin.f32 %v1607_v30, 6.0 }
 0xc02   : > { %v1609_v34 = vmul.f32 %v1608_v32, %v1600_v25  ;;  %v3551_v25 = vld [vmem:[%s4538_s8 + $0x124] ss:$12 sps:$4 sm:$0xff]  }
 0xc04   : > { %v1610_v10 = vmul.f32 0.16666667, %v1609_v34 }
 0xc06   : > { %v1611_v37 = vpack.c.bf16 %v1610_v10, %v1610_v10 }
 0xc08   : > { %3113 = vmatmul.mubr.msk.bf16.vlgmr.msra.gmra.mrb[4].mxu0 %vm1196_vm5, %v1611_v37  ;;  %v3552_v37 = vld [vmem:[%s4538_s8 + $0x138] ss:$12 sps:$4 sm:$0xff]  }
 0xc09   : > { %1830 = vmatpush1.bf16.msra.mxu0 %v3501_v13  ;;  %1861 = vmatprep.mubr.bf16.mxu0 %v3689_v41 }
 0xc0a   : > { %1831 = vmatprep.subr.bf16.mxu0 %v3506_v38  ;;  %v3557_v38 = vld [vmem:[%s4538_s8 + $0x154] ss:$12 sps:$4 sm:$0xff]  }
 0xc0d   : > { %1832 = vmatpush1.bf16.msra.mxu0 %v3504_v39  ;;  %v3555_v39 = vld [vmem:[%s4538_s8 + $0x150] ss:$12 sps:$4 sm:$0xff]  }
 0xc0e   : > { %3366 = vmatprep.subr.bf16.mxu0 %v3683_v55 }
 0xc14   : > { %3121 = vmatmul.mubr.msk.bf16.vlgmr.msra.gmra.mrb[4].mxu0 %vm1196_vm5, %v1801_v43  ;;  %v3561_v43 = vld [vmem:[%s4538_s8 + $0xc8] ss:$12 sps:$4 sm:$0xff]  }
 0xc15   : > { %3368 = vmatprep.mubr.msk.bf16.mxu0 %vm3684_vm0, %v3683_v55 }
 0xc59   : > { %v1928_v5 = vpop.xlane.xlu1 %1927 }
 0xc5a   : > { %v1929_v6 = vsub.f32 %v1925_v23, %v1928_v5  ;;  %v3548_v23 = vld [vmem:[%s4538_s8 + $0x10c] ss:$12 sps:$4 sm:$0xff]   ;;  %v3577_v5 = vld [vmem:[%s4541_s11] ss:$8 sps:$4 sm:$0xff]  }
 0xc5b   : > { %2440 = vmatprep.subr.bf16.mxu1 %v3548_v23 }
 0xc5c   : > { %v1930_v44 = vmul.f32 1.442695, %v1929_v6  ;;  %2441 = vmatpush1.bf16.msra.mxu1 %v3546_v24  ;;  %v3579_v6 = vld [vmem:[%s4541_s11 + $0x4] ss:$8 sps:$4 sm:$0xff]  }
 0xc5d   : > { %2442 = vmatprep.subr.bf16.mxu1 %v3551_v25 }
 0xc5e   : > { %3669 = vpow2.f32 %v1930_v44  ;;  %v3582_v44 = vld [vmem:[%s4541_s11 + $0x14] ss:$8 sps:$4 sm:$0xff]  }
 0xc60   : > { %2443 = vmatpush1.bf16.msra.mxu1 %v3549_v26  ;;  %v2092_v26 = vcombine.high %v2090_v12, %v2090_v12 }
 0xc61   : > { %2444 = vmatprep.subr.bf16.mxu1 %v3554_v56  ;;  %v3568_v56 = vld [vmem:[%s4538_s8 + $0x50] ss:$12 sps:$4 sm:$0xff]  }
 0xc64   : > { %2445 = vmatpush1.bf16.msra.mxu1 %v3552_v37  ;;  %v3569_v37 = vld [vmem:[%s4538_s8 + $0x128] ss:$12 sps:$4 sm:$0xff]  }
 0xc65   : > { %2446 = vmatprep.subr.bf16.mxu1 %v3557_v38  ;;  %v3570_v38 = vld [vmem:[%s4538_s8 + $0x68] ss:$12 sps:$4 sm:$0xff]  }
 0xc68   : > { %v3670_v45 = vpop.eup %3669  ;;  %2447 = vmatpush1.bf16.msra.mxu1 %v3555_v39  ;;  %v3571_v39 = vld [vmem:[%s4538_s8 + $0x140] ss:$12 sps:$4 sm:$0xff]  }
 0xc69   : > { %v1932_v46 = vsel %vm978_vm3, %v3670_v45, 0.0  ;;  %2448 = vmatprep.subr.bf16.mxu1 %v3560_v42  ;;  %v3573_v42 = vld [vmem:[%s4538_s8 + $0x158] ss:$12 sps:$4 sm:$0xff]  }
 0xc6a   : > { %1933 = vadd.xlane.f32.xlu0 %v1932_v46  ;;  %v3585_v46 = vld [vmem:[%s4541_s11 + $0x24] ss:$8 sps:$4 sm:$0xff]  }
 0xc6c   : > { %2449 = vmatpush1.bf16.msra.mxu1 %v3558_v40  ;;  %v3572_v40 = vld [vmem:[%s4538_s8 + $0x80] ss:$12 sps:$4 sm:$0xff]  }
 0xc6d   : > { %3278 = vmatprep.subr.bf16.mxu1 %v3561_v43  ;;  %v3574_v43 = vld [vmem:[%s4538_s8 + $0x98] ss:$12 sps:$4 sm:$0xff]  }
 0xc80   : > { %1938 = vrot.lane.b32.xlu0 %v4056_v54, %s3685_s19  ;;  %v3507_v54 = vld [vmem:[%s4535_s5 + $0xa0] ss:$8 sps:$4 sm:$0xff]  }
 0xcf7   : > { %v1934_v47 = vpop.xlane.xlu0 %1933 }
 0xcf8   : > { %3671 = vrcp.f32 %v1934_v47  ;;  %v3583_v47 = vld [vmem:[%s4541_s11 + $0x20] ss:$8 sps:$4 sm:$0xff]  }
 0xcfb   : > { %v1939_v48 = vpop.permute.xlu0 %1938 }
 0xcfc   : > { %v1944_v49 = vsel %vm998_vm2, %v1939_v48, 0  ;;  %v3588_v48 = vld [vmem:[%s4541_s11 + $0x34] ss:$8 sps:$4 sm:$0xff]  }
 0xcfd   : > { %3367 = vmatpush3.bf16.msra.mxu0 %v1944_v49  ;;  %v3586_v49 = vld [vmem:[%s4541_s11 + $0x30] ss:$8 sps:$4 sm:$0xff]  }
 0xcfe   : > { %2019 = vmatprep.subr.bf16.mxu0 %v3509_v57  ;;  %v3592_v57 = vld [vmem:[%s4541_s11 + $0x50] ss:$8 sps:$4 sm:$0xff]  }
 0xd02   : > { %v3672_v50 = vpop.eup %3671 }
 0xd03   : > { %v1936_v51 = vmul.f32 %v3672_v50, %v3670_v45  ;;  %v3580_v45 = vld [vmem:[%s4541_s11 + $0x10] ss:$8 sps:$4 sm:$0xff]   ;;  %v3591_v50 = vld [vmem:[%s4541_s11 + $0x44] ss:$8 sps:$4 sm:$0xff]  }
 0xd05   : > { %v1937_v55 = vpack.c.bf16 %v1936_v51, %v1936_v51  ;;  %v3589_v51 = vld [vmem:[%s4541_s11 + $0x40] ss:$8 sps:$4 sm:$0xff]  }
 0xd07   : > { %3369 = vmatmul.mubr.msk.bf16.vlgmr.msra.gmra.mrb[12].mxu0 %vm994_vm4, %v1937_v55  ;;  %v3594_v55 = vld [vmem:[%s4541_s11 + $0x54] ss:$8 sps:$4 sm:$0xff]  }
 0xd08   : > { %2051 = vmatprep.mubr.bf16.mxu0 %v3689_v41  ;;  %2020 = vmatpush1.bf16.msra.mxu0 %v3507_v54  ;;  %v3597_v54 = vld [vmem:[%s4541_s11 + $0x64] ss:$8 sps:$4 sm:$0xff]  }
 0xd09   : > { %2021 = vmatprep.subr.bf16.mxu0 %v3512_v58  ;;  %v3595_v58 = vld [vmem:[%s4541_s11 + $0x60] ss:$8 sps:$4 sm:$0xff]  }
 0xd0c   : > { %2022 = vmatpush1.bf16.msra.mxu0 %v3510_v59  ;;  %v3600_v59 = vld [vmem:[%s4541_s11 + $0x74] ss:$8 sps:$4 sm:$0xff]  }
 0xd0d   : > { %2845 = vmatprep.subr.bf16.mxu0 %v3579_v6  ;;  %v3576_v6 = vld [vmem:[%s4538_s8 + $0xb0] ss:$12 sps:$4 sm:$0xff]  }
 0xdda   : > { %v1980_v27 = vpop.f32.mrb[12].mxu0 }
 0xddb   : > { %v1986_v28 = vadd.f32 3.0, %v1980_v27  ;;  %v3370_v29 = vpop.f32.mrb[13].mxu0 }
 0xddc   : > { %v1983_v30 = vpop.f32.mrb[14].mxu0 }
 0xddd   : > { %v1987_v31 = vmax.f32 %v1986_v28, 0.0  ;;  %v3371_v32 = vpop.f32.mrb[15].mxu0 }
 0xdde   : > { %v3563_v32 = vld [vmem:[%s4538_s8 + $0xe0] ss:$12 sps:$4 sm:$0xff]  }
 0xddf   : > { %v1988_v33 = vmin.f32 %v1987_v31, 6.0 }
 0xde1   : > { %v1989_v34 = vmul.f32 %v1988_v33, %v1980_v27  ;;  %v3564_v33 = vld [vmem:[%s4538_s8 + $0x20] ss:$12 sps:$4 sm:$0xff]  }
 0xde3   : > { %v1990_v10 = vmul.f32 0.16666667, %v1989_v34  ;;  %v3565_v34 = vld [vmem:[%s4538_s8 + $0xf8] ss:$12 sps:$4 sm:$0xff]  }
 0xde5   : > { %v1991_v13 = vpack.c.bf16 %v1990_v10, %v1990_v10  ;;  %v3566_v10 = vld [vmem:[%s4538_s8 + $0x38] ss:$12 sps:$4 sm:$0xff]  }
 0xde7   : > { %3129 = vmatmul.mubr.msk.bf16.vlgmr.msra.gmra.mrb[4].mxu0 %vm1196_vm5, %v1991_v13  ;;  %v3567_v13 = vld [vmem:[%s4538_s8 + $0x110] ss:$12 sps:$4 sm:$0xff]  }
 0xde8   : > { %2846 = vmatpush1.bf16.msra.mxu0 %v3577_v5  ;;  %v3575_v5 = vld [vmem:[%s4538_s8 + $0x170] ss:$12 sps:$4 sm:$0xff]  }
 0xde9   : > { %2847 = vmatprep.subr.bf16.mxu0 %v3582_v44  ;;  %v3615_v44 = vld [vmem:[%s4541_s11 + $0xc4] ss:$8 sps:$4 sm:$0xff]  }
 0xdec   : > { %2848 = vmatpush1.bf16.msra.mxu0 %v3580_v45  ;;  %v3613_v45 = vld [vmem:[%s4541_s11 + $0xc0] ss:$8 sps:$4 sm:$0xff]  }
 0xded   : > { %2849 = vmatprep.subr.bf16.mxu0 %v3585_v46  ;;  %v3618_v46 = vld [vmem:[%s4541_s11 + $0xd4] ss:$8 sps:$4 sm:$0xff]  }
 0xdf0   : > { %2850 = vmatpush1.bf16.msra.mxu0 %v3583_v47  ;;  %v3616_v47 = vld [vmem:[%s4541_s11 + $0xd0] ss:$8 sps:$4 sm:$0xff]  }
 0xdf1   : > { %2851 = vmatprep.subr.bf16.mxu0 %v3588_v48  ;;  %v3621_v48 = vld [vmem:[%s4541_s11 + $0xe4] ss:$8 sps:$4 sm:$0xff]  }
 0xdf4   : > { %2852 = vmatpush1.bf16.msra.mxu0 %v3586_v49  ;;  %v3619_v49 = vld [vmem:[%s4541_s11 + $0xe0] ss:$8 sps:$4 sm:$0xff]  }
 0xdf5   : > { %2853 = vmatprep.subr.bf16.mxu0 %v3591_v50  ;;  %v3624_v50 = vld [vmem:[%s4541_s11 + $0xf4] ss:$8 sps:$4 sm:$0xff]  }
 0xdf8   : > { %2854 = vmatpush1.bf16.msra.mxu0 %v3589_v51  ;;  %v3622_v51 = vld [vmem:[%s4541_s11 + $0xf0] ss:$8 sps:$4 sm:$0xff]  }
 0xdf9   : > { %2855 = vmatprep.subr.bf16.mxu0 %v3594_v55  ;;  %v3627_v55 = vld [vmem:[%s4541_s11 + $0x104] ss:$8 sps:$4 sm:$0xff]  }
 0xdfc   : > { %2856 = vmatpush1.bf16.msra.mxu0 %v3592_v57  ;;  %v2499_v57 = vld [vmem:[%s4539_s9] sm:$0x7] }
 0xdfd   : > { %2857 = vmatprep.subr.bf16.mxu0 %v3597_v54  ;;  %v2519_v54 = vld [vmem:[%s4540_s10] sm:$0x7] }
 0xe00   : > { %2858 = vmatpush1.bf16.msra.mxu0 %v3595_v58  ;;  %v2504_v58 = vrot.slane %v2499_v57, %v3940_v52 }
 0xe01   : > { %2859 = vmatprep.subr.bf16.mxu0 %v3600_v59  ;;  %v2508_v59 = vrot.slane %v2499_v57, %v3943_v53 }
 0xe04   : > { %2860 = vmatpush1.bf16.msra.mxu0 %v3598_v60  ;;  %v2524_v60 = vrot.slane %v2519_v54, %v3940_v52 }
 0xe05   : > { %2861 = vmatprep.subr.bf16.mxu0 %v3603_v61 }
 0xe08   : > { %2862 = vmatpush1.bf16.msra.mxu0 %v3601_v62  ;;  %v2528_v62 = vrot.slane %v2519_v54, %v3943_v53 }
 0xe09   : > { %2863 = vmatprep.subr.bf16.mxu0 %v3606_v63 }
 0xe0c   : > { %2864 = vmatpush1.bf16.msra.mxu0 %v3604_v0 }
 0xe0d   : > { %2865 = vmatprep.subr.bf16.mxu0 %v3609_v1 }
 0xe10   : > { %2866 = vmatpush1.bf16.msra.mxu0 %v3607_v2 }
 0xe11   : > { %2867 = vmatprep.subr.bf16.mxu0 %v3612_v3 }
 0xe14   : > { %2868 = vmatpush1.bf16.msra.mxu0 %v3610_v4 }
 0xe15   : > { %2869 = vmatprep.subr.bf16.mxu0 %v3615_v44 }
 0xe18   : > { %2870 = vmatpush1.bf16.msra.mxu0 %v3613_v45  ;;  %v3646_v45 = vld [vmem:[%s4541_s11 + $0x170] ss:$8 sps:$4 sm:$0xff]  }
 0xe19   : > { %2871 = vmatprep.subr.bf16.mxu0 %v3618_v46 }
 0xe1c   : > { %2872 = vmatpush1.bf16.msra.mxu0 %v3616_v47 }
 0xe1d   : > { %2873 = vmatprep.subr.bf16.mxu0 %v3621_v48 }
 0xe20   : > { %2874 = vmatpush1.bf16.msra.mxu0 %v3619_v49  ;;  %v2927_v49 = vld [vmem:[%s4542_s12] sm:$0x3] }
 0xe21   : > { %2875 = vmatprep.subr.bf16.mxu0 %v3624_v50  ;;  %v2941_v50 = vld [vmem:[%s4543_s13] sm:$0x3] }
 0xe24   : > { %2876 = vmatpush1.bf16.msra.mxu0 %v3622_v51  ;;  %v2932_v51 = vrot.slane %v2927_v49, %v3940_v52 }
 0xe25   : > { %2886 = vmatprep.subr.bf16.mxu0 %v3627_v55  ;;  %v2936_v55 = vrot.slane %v2927_v49, %v3943_v53 }
 0xeba   : > { %v2053_v14 = vpop.f32.mrb[4].mxu0 }
 0xebb   : > { %v3372_v16 = vadd.f32 %v2053_v14, %v4064_v35  ;;  %v2055_v18 = vpop.f32.mrb[5].mxu0 }
 0xebc   : > { %v3373_v19 = vadd.f32 %v2055_v18, %v4066_v36  ;;  %v2057_v22 = vpop.f32.mrb[6].mxu0  ;;  %v3562_v36 = vld [vmem:[%s4538_s8 + $0x8] ss:$12 sps:$4 sm:$0xff]  }
 0xebd   : > { %v2074_v23 = vmul.f32 %v3372_v16, %v2067_v9  ;;  %v2058_v24 = vpop.f32.mrb[7].mxu0  ;;  %v3625_v22 = vld [vmem:[%s4541_s11 + $0x100] ss:$8 sps:$4 sm:$0xff]  }
 0xebe   : > { %v2075_v25 = vmul.f32 %v3373_v19, %v2071_v15  ;;  %v3630_v24 = vld [vmem:[%s4541_s11 + $0x114] ss:$8 sps:$4 sm:$0xff]  }
 0xebf   : > { %v2088_v27 = vadd.f32 %v2081_v17, %v2074_v23 }
 0xec0   : > { %v2089_v28 = vadd.f32 %v2085_v20, %v2075_v25  ;;  %v3628_v25 = vld [vmem:[%s4541_s11 + $0x110] ss:$8 sps:$4 sm:$0xff]  }
 0xec1   : > { %v4372_v29 = vadd.f32 %v2090_v12, %v2088_v27  ;;  %v3631_v27 = vld [vmem:[%s4541_s11 + $0x120] ss:$8 sps:$4 sm:$0xff]  }
 0xec2   : > { %v4374_v30 = vadd.f32 %v2092_v26, %v2089_v28  ;;  %v3633_v26 = vld [vmem:[%s4541_s11 + $0x124] ss:$8 sps:$4 sm:$0xff]   ;;  %v3636_v28 = vld [vmem:[%s4541_s11 + $0x134] ss:$8 sps:$4 sm:$0xff]  }
 0xec3   : > { %v2096_v31 = vpack.c.bf16 %v4372_v29, %v4372_v29 }
 0xec4   : > { %v2097_v35 = vpack.c.bf16 %v4374_v30, %v4374_v30 }
 0xec6   : > { %2450 = vmatprep.mubr.bf16.mxu1 %v2097_v35 }
 0xec7   : > { %2451 = vmatmul.mubr.bf16.vlgmr.msra.gmra.mrb[48].mxu1 %v2096_v31 }
 0xec8   : > { %3279 = vmatpush3.bf16.msra.mxu1 %v3562_v36  ;;  %2491 = vmatprep.mubr.bf16.mxu1 %v2097_v35  ;;  %v3639_v35 = vld [vmem:[%s4541_s11 + $0x144] ss:$8 sps:$4 sm:$0xff]  }
 0xec9   : > { %3280 = vmatprep.subr.bf16.mxu1 %v3563_v32  ;;  %v3637_v32 = vld [vmem:[%s4541_s11 + $0x140] ss:$8 sps:$4 sm:$0xff]  }
 0xecc   : > { %3281 = vmatpush3.bf16.msra.mxu1 %v3564_v33 }
 0xecd   : > { %3282 = vmatprep.subr.bf16.mxu1 %v3565_v34  ;;  %v3642_v34 = vld [vmem:[%s4541_s11 + $0x154] ss:$8 sps:$4 sm:$0xff]  }
 0xed0   : > { %3283 = vmatpush3.bf16.msra.mxu1 %v3566_v10 }
 0xed1   : > { %3284 = vmatprep.subr.bf16.mxu1 %v3567_v13  ;;  %v2532_v13 = vrot.slane %v2519_v54, %v4043_v21 }
 0xed4   : > { %3285 = vmatpush3.bf16.msra.mxu1 %v3568_v56 }
 0xed5   : > { %3286 = vmatprep.subr.bf16.mxu1 %v3569_v37 }
 0xed8   : > { %3287 = vmatpush3.bf16.msra.mxu1 %v3570_v38 }
 0xed9   : > { %3288 = vmatprep.subr.bf16.mxu1 %v3571_v39  ;;  %v3640_v39 = vld [vmem:[%s4541_s11 + $0x150] ss:$8 sps:$4 sm:$0xff]  }
 0xedc   : > { %3289 = vmatpush3.bf16.msra.mxu1 %v3572_v40  ;;  %v3645_v40 = vld [vmem:[%s4541_s11 + $0x164] ss:$8 sps:$4 sm:$0xff]  }
 0xedd   : > { %3290 = vmatprep.subr.bf16.mxu1 %v3573_v42 }
 0xee0   : > { %3291 = vmatpush3.bf16.msra.mxu1 %v3574_v43 }
 0xee1   : > { %3292 = vmatprep.subr.bf16.mxu1 %v3575_v5  ;;  %v3648_v5 = vld [vmem:[%s4541_s11 + $0x174] ss:$8 sps:$4 sm:$0xff]  }
 0xee4   : > { %3293 = vmatpush3.bf16.msra.mxu1 %v3576_v6 }
 0xee7   : > { %2492 = vmatmul.mubr.bf16.vlgmr.msra.gmra.mrb[52].mxu1 %v2096_v31  ;;  %v2512_v31 = vrot.slane %v2499_v57, %v4043_v21  ;;  %v3643_v21 = vld [vmem:[%s4541_s11 + $0x160] ss:$8 sps:$4 sm:$0xff]   ;;  %v2946_v57 = vrot.slane %v2941_v50, %v3940_v52 }
 0xf9a   : > { %v2452_v61 = vpop.f32.mrb[48].mxu1 }
 0xf9b   : > { %v2516_v63 = vmul.f32 %v2504_v58, %v2452_v61  ;;  %v2454_v0 = vpop.f32.mrb[49].mxu1  ;;  %v2950_v58 = vrot.slane %v2941_v50, %v3943_v53 }
 0xf9c   : > { %v2517_v1 = vmul.f32 %v2508_v59, %v2454_v0  ;;  %v2456_v2 = vpop.f32.mrb[50].mxu1 }
 0xf9d   : > { %v2536_v3 = vadd.f32 %v2524_v60, %v2516_v63  ;;  %v2457_v4 = vpop.f32.mrb[51].mxu1 }
 0xf9e   : > { %v2537_v7 = vadd.f32 %v2528_v62, %v2517_v1 }
 0xf9f   : > { %v2539_v8 = vadd.f32 3.0, %v2536_v3 }
 0xfa0   : > { %v2540_v9 = vadd.f32 3.0, %v2537_v7 }
 0xfa1   : > { %v2542_v11 = vmax.f32 %v2539_v8, 0.0 }
 0xfa2   : > { %v2543_v12 = vmax.f32 %v2540_v9, 0.0 }
 0xfa3   : > { %v2545_v14 = vmin.f32 %v2542_v11, 6.0 }
 0xfa4   : > { %v2546_v15 = vmin.f32 %v2543_v12, 6.0 }
 0xfa5   : > { %v2548_v16 = vmul.f32 %v2545_v14, %v2536_v3 }
 0xfa6   : > { %v2549_v17 = vmul.f32 %v2546_v15, %v2537_v7 }
 0xfa7   : > { %v2551_v18 = vmul.f32 0.16666667, %v2548_v16 }
 0xfa8   : > { %v2552_v19 = vmul.f32 0.16666667, %v2549_v17 }
 0xfa9   : > { %v2554_v23 = vpack.c.bf16 %v2551_v18, %v2551_v18 }
 0xfaa   : > { %v2555_v20 = vpack.c.bf16 %v2552_v19, %v2552_v19 }
 0xfac   : > { %2877 = vmatprep.mubr.bf16.mxu0 %v2555_v20 }
 0xfad   : > { %2878 = vmatmul.mubr.bf16.vlgmr.msra.gmra.mrb[16].mxu0 %v2554_v23 }
 0xfae   : > { %2887 = vmatpush1.bf16.msra.mxu0 %v3625_v22  ;;  %2918 = vmatprep.mubr.bf16.mxu0 %v3689_v41  ;;  %v3634_v41 = vld [vmem:[%s4541_s11 + $0x130] ss:$8 sps:$4 sm:$0xff]  }
 0xfaf   : > { %2888 = vmatprep.subr.bf16.mxu0 %v3630_v24 }
 0xfb2   : > { %2889 = vmatpush1.bf16.msra.mxu0 %v3628_v25 }
 0xfb3   : > { %2890 = vmatprep.subr.bf16.mxu0 %v3633_v26 }
 0xfb6   : > { %2891 = vmatpush1.bf16.msra.mxu0 %v3631_v27 }
 0xfb7   : > { %2892 = vmatprep.subr.bf16.mxu0 %v3636_v28 }
 0xfba   : > { %v3294_v36 = vpop.f32.mrb[52].mxu1  ;;  %2893 = vmatpush1.bf16.msra.mxu0 %v3634_v41 }
 0xfbb   : > { %v3295_v33 = vpop.f32.mrb[53].mxu1  ;;  %2894 = vmatprep.subr.bf16.mxu0 %v3639_v35 }
 0xfbc   : > { %v3296_v10 = vadd.f32 %v3295_v33, %v3294_v36  ;;  %v3297_v56 = vpop.f32.mrb[54].mxu1 }
 0xfbd   : > { %v3298_v37 = vpop.f32.mrb[55].mxu1 }
 0xfbe   : > { %v2518_v38 = vmul.f32 %v3296_v10, %v2512_v31  ;;  %2895 = vmatpush1.bf16.msra.mxu0 %v3637_v32 }
 0xfbf   : > { %2896 = vmatprep.subr.bf16.mxu0 %v3642_v34 }
 0xfc0   : > { %v2538_v42 = vadd.f32 %v2532_v13, %v2518_v38 }
 0xfc2   : > { %v2541_v43 = vadd.f32 3.0, %v2538_v42  ;;  %2897 = vmatpush1.bf16.msra.mxu0 %v3640_v39 }
 0xfc3   : > { %2898 = vmatprep.subr.bf16.mxu0 %v3645_v40 }
 0xfc4   : > { %v2544_v6 = vmax.f32 %v2541_v43, 0.0 }
 0xfc6   : > { %v2547_v44 = vmin.f32 %v2544_v6, 6.0  ;;  %2899 = vmatpush1.bf16.msra.mxu0 %v3643_v21 }
 0xfc7   : > { %2900 = vmatprep.subr.bf16.mxu0 %v3648_v5 }
 0xfc8   : > { %v2550_v46 = vmul.f32 %v2547_v44, %v2538_v42 }
 0xfca   : > { %v2553_v47 = vmul.f32 0.16666667, %v2550_v46  ;;  %2901 = vmatpush1.bf16.msra.mxu0 %v3646_v45 }
 0xfcc   : > { %v2556_v48 = vpack.c.bf16 %v2553_v47, %v2553_v47 }
 0xfce   : > { %2919 = vmatmul.mubr.bf16.vlgmr.msra.gmra.mrb[16].mxu0 %v2556_v48 }
0x10a1   : > { %v2920_v54 = vpop.f32.mrb[16].mxu0 }
0x10a2   : > { %v2939_v59 = vmul.f32 %v2932_v51, %v2920_v54  ;;  %v2922_v60 = vpop.f32.mrb[17].mxu0 }
0x10a3   : > { %v2940_v61 = vmul.f32 %v2936_v55, %v2922_v60  ;;  %v2924_v62 = vpop.f32.mrb[18].mxu0 }
0x10a4   : > { %v2953_v63 = vadd.f32 %v2946_v57, %v2939_v59  ;;  %v2925_v0 = vpop.f32.mrb[19].mxu0 }
0x10a5   : > { %v2954_v1 = vadd.f32 %v2950_v58, %v2940_v61 }
0x10a6   : > { %v2955_v2 = vadd.f32 %v2953_v63, %v4372_v29 }
0x10a7   : > { %v2956_v3 = vadd.f32 %v2954_v1, %v4374_v30 }
0x10a9   : > { %v3226_v52 = vpack.c.bf16 %v2956_v3, %v2955_v2 }
0x10ab   : > { %3227 = vst.sshfl [vmem:[%s467_s23] sm:$0x33 pattern:$0x76325410] %v3226_v52 }
0x10ac PF: > { %s24_s29 = sadd.s32 1, %s3681_s29  }
0x10ad   : > { %p21_p4 = scmp.ge.s32.totalorder %s24_s29, 4  }
0x10af   :  { %23 = sbr.rel (!%p21_p4) target bundleno = 1 (0x1), region = 111 }

// kernel: _lambda_.8
= control target key start
LH: loop header
LB: loop body
LE: loop exit
PB: predicated region body
PF: predicated region fallthrough
CT: control target
= control target key end

     0   :  { %s4796_s27 = smov 0   ;;  %s5724_s0 = inlined_call_operand.vmem [shape: bf16[2,16,128], index: 0, kind: input, shape index: {}]   ;;  %s5725_s1 = inlined_call_operand.vmem [shape: bf16[2,4,128], index: 1, kind: input, shape index: {}]   ;;  %s5726_s2 = inlined_call_operand.vmem [shape: bf16[128,640], index: 2, kind: input, shape index: {}]   ;;  %s5727_s3 = inlined_call_operand.vmem [shape: f32[1,640], index: 3, kind: input, shape index: {}]   ;;  %s5728_s4 = inlined_call_operand.vmem [shape: f32[1,640], index: 4, kind: input, shape index: {}]   ;;  %s5729_s5 = inlined_call_operand.vmem [shape: bf16[128,128], index: 5, kind: input, shape index: {}]   ;;  %s5730_s6 = inlined_call_operand.vmem [shape: f32[1,128], index: 6, kind: input, shape index: {}]   ;;  %s5731_s7 = inlined_call_operand.vmem [shape: f32[1,128], index: 7, kind: input, shape index: {}]   ;;  %s5732_s8 = inlined_call_operand.vmem [shape: f32[8,4,16], index: 8, kind: input, shape index: {}]   ;;  %s5733_s9 = inlined_call_operand.vmem [shape: bf16[512,256], index: 9, kind: input, shape index: {}]   ;;  %s5734_s10 = inlined_call_operand.vmem [shape: f32[1,256], index: 10, kind: input, shape index: {}]   ;;  %s5735_s11 = inlined_call_operand.vmem [shape: f32[1,256], index: 11, kind: input, shape index: {}]   ;;  %s5736_s12 = inlined_call_operand.vmem [shape: bf16[256,384], index: 12, kind: input, shape index: {}]   ;;  %s5737_s13 = inlined_call_operand.vmem [shape: f32[1,384], index: 13, kind: input, shape index: {}]   ;;  %s5738_s14 = inlined_call_operand.vmem [shape: f32[1,384], index: 14, kind: input, shape index: {}]   ;;  %s5739_s15 = inlined_call_operand.vmem [shape: bf16[384,256], index: 15, kind: input, shape index: {}]   ;;  %s5740_s16 = inlined_call_operand.vmem [shape: f32[1,256], index: 16, kind: input, shape index: {}]   ;;  %s5741_s17 = inlined_call_operand.vmem [shape: f32[1,256], index: 17, kind: input, shape index: {}]   ;;  %s5742_s18 = inlined_call_operand.vmem [shape: bf16[2,4,256], index: 18, kind: output, shape index: {}]  }
   0x1   :  { %5745 = sst [smem:[#allocation3_spill]] %s5724_s0 }
   0x2   :  { %5746 = sst [smem:[#allocation4_spill]] %s5725_s1 }
   0x3   :  { %5747 = sst [smem:[#allocation5_spill]] %s5726_s2 }
   0x4 LB: > { %5748 = sst [smem:[#allocation2_spill]] %s4689_s27  ;;  %s3840_s28 = sadd.s32 4294967295, %s4689_s27   ;;  %s4689_s27 = sphi %s4796_s27, %s28_s27  }
   0x5   : > { %p3844_p0 = scmp.ge.s32.totalorder %s4689_s27, 1  ;;  %p521_p1 = scmp.lt.s32.totalorder %s4689_s27, 3 }
   0x7   : > { %p522_p2 = pnand %p3844_p0, %p521_p1 }
   0x8   : > { %s5749_s0 = sld [smem:[#allocation5_spill]] (!%p522_p2)  ;;  %p579_p3 = scmp.lt.s32.totalorder (!%p522_p2), %s3840_s28, 1  ;;  %v4691_v2 = vmov (!%p522_p2), 0   ;;  %v4692_v4 = vmov (!%p522_p2), 0.0   ;;  %vm4693_vm0 = vmmov (!%p522_p2), 0   ;;  %v4403_v42 = vld [vmem:[%s5729_s5] sm:$0xff] (!%p522_p2)   ;;  %v987_v52 = vlaneseq (!%p522_p2) }
   0x9   : > { %525 = sbr.rel (%p522_p2) target bundleno = 5370 (0x14fa), region = 92  ;;  %890 = vmatprep.mubr.bf16.mxu1 (!%p522_p2), %v4691_v2  ;;  %4170 = vmatprep.subr.bf16.mxu0 (!%p522_p2), %v4692_v4  ;;  %s5750_s21 = sld [smem:[#allocation3_spill]] (!%p522_p2)  ;;  %v4404_v43 = vld [vmem:[%s5729_s5 + $0x8] sm:$0xff] (!%p522_p2)   ;;  %v4405_v44 = vld [vmem:[%s5729_s5 + $0x10] sm:$0xff] (!%p522_p2)   ;;  %v4406_v45 = vld [vmem:[%s5729_s5 + $0x18] sm:$0xff] (!%p522_p2)   ;;  %vm1186_vm1 = vcmask (!%p522_p2), 130048  }
   0xa   : > { %4186 = vmatprep.mubr.msk.bf16.mxu0 (!%p522_p2), %vm4693_vm0, %v4692_v4  ;;  %v4407_v46 = vld [vmem:[%s5729_s5 + $0x20] sm:$0xff] (!%p522_p2)   ;;  %v4408_v47 = vld [vmem:[%s5729_s5 + $0x28] sm:$0xff] (!%p522_p2)   ;;  %v4409_v48 = vld [vmem:[%s5729_s5 + $0x30] sm:$0xff] (!%p522_p2)   ;;  %s5751_s30 = sld [smem:[#allocation4_spill]] (!%p522_p2)  ;;  %v4991_v53 = vshrl.u32 (!%p522_p2), %v987_v52, 7  ;;  %vm1236_vm2 = vcmask (!%p522_p2), 125952  }
   0xb   : > { %v4410_v49 = vld [vmem:[%s5729_s5 + $0x38] sm:$0xff] (!%p522_p2)   ;;  %v985_v55 = vld [vmem:[%s5727_s3] sm:$0x1f] (!%p522_p2)  ;;  %s4695_s27 = smov (!%p522_p2), 64   ;;  %s4696_s20 = smov (!%p522_p2), 96   ;;  %vm1475_vm3 = vcmask (!%p522_p2), 523264  }
   0xc   : > { %v4994_v54 = vsub.s32 (!%p522_p2), 0, %v4991_v53  ;;  %v5000_v56 = vsub.s32 (!%p522_p2), 1, %v4991_v53  ;;  %v1022_v57 = vld [vmem:[%s5728_s4] sm:$0x1f] (!%p522_p2)  ;;  %s4697_s1 = smov (!%p522_p2), 80   ;;  %s4699_s29 = smov (!%p522_p2), 32  }
   0xd   : > { %s4700_s2 = smov (!%p522_p2), 16  }
   0xe   : > { %v4354_v0 = vld [vmem:[%s5749_s0 + $0x4] ss:$20 sps:$4 sm:$0xff] (!%p522_p2)   ;;  %v4356_v1 = vld [vmem:[%s5749_s0] ss:$20 sps:$4 sm:$0xff] (!%p522_p2)   ;;  %v4359_v5 = vld [vmem:[%s5749_s0 + $0x28] ss:$20 sps:$4 sm:$0xff] (!%p522_p2)   ;;  %v990_v58 = vrot.slane (!%p522_p2), %v985_v55, %v4994_v54  ;;  %v994_v59 = vrot.slane (!%p522_p2), %v985_v55, %v5000_v56  ;;  %v1027_v60 = vrot.slane (!%p522_p2), %v1022_v57, %v4994_v54 }
   0xf   : > { %858 = vmatprep.subr.bf16.mxu1 (!%p522_p2), %v4354_v0  ;;  %v4357_v3 = vld [vmem:[%s5749_s0 + $0x2c] ss:$20 sps:$4 sm:$0xff] (!%p522_p2)   ;;  %v4360_v6 = vld [vmem:[%s5749_s0 + $0x54] ss:$20 sps:$4 sm:$0xff] (!%p522_p2)   ;;  %v4362_v7 = vld [vmem:[%s5749_s0 + $0x50] ss:$20 sps:$4 sm:$0xff] (!%p522_p2)  }
  0x10   : > { %s5754_s28 = smov (!%p579_p3, %s3840_s28), 1  ;;  %859 = vmatpush1.bf16.msra.mxu1 %v4356_v1  ;;  %v4363_v8 = vld [vmem:[%s5749_s0 + $0x7c] ss:$20 sps:$4 sm:$0xff]   ;;  %v4365_v9 = vld [vmem:[%s5749_s0 + $0x78] ss:$20 sps:$4 sm:$0xff]   ;;  %v1031_v1 = vrot.slane %v1022_v57, %v5000_v56 }
  0x11   : > { %860 = vmatprep.subr.bf16.mxu1 %v4357_v3  ;;  %s4096_s25 = sshll.u32 %s5754_s28, 3  ;;  %v4366_v10 = vld [vmem:[%s5749_s0 + $0xa4] ss:$20 sps:$4 sm:$0xff]   ;;  %v4368_v11 = vld [vmem:[%s5749_s0 + $0xa0] ss:$20 sps:$4 sm:$0xff]   ;;  %s3847_s23 = sshll.u32 %s5754_s28, 1 }
  0x12   : > { %s583_s22 = scalar_lea.vmem %s5750_s21, %s4096_s25  ;;  %v4369_v12 = vld [vmem:[%s5749_s0 + $0xcc] ss:$20 sps:$4 sm:$0xff]   ;;  %v4371_v13 = vld [vmem:[%s5749_s0 + $0xc8] ss:$20 sps:$4 sm:$0xff]   ;;  %v4374_v15 = vld [vmem:[%s5749_s0 + $0xf0] ss:$20 sps:$4 sm:$0xff]   ;;  %s587_s19 = scalar_lea.vmem %s5751_s30, %s3847_s23 }
  0x13   : > { %v4372_v14 = vld [vmem:[%s5749_s0 + $0xf4] ss:$20 sps:$4 sm:$0xff]   ;;  %v4375_v16 = vld [vmem:[%s5749_s0 + $0x11c] ss:$20 sps:$4 sm:$0xff]   ;;  %v4377_v17 = vld [vmem:[%s5749_s0 + $0x118] ss:$20 sps:$4 sm:$0xff]  }
  0x14   : > { %861 = vmatpush1.bf16.msra.mxu1 %v4359_v5  ;;  %v4381_v18 = vld [vmem:[%s5749_s0 + $0xc] ss:$20 sps:$4 sm:$0xff]   ;;  %v4379_v20 = vld [vmem:[%s5749_s0 + $0x8] ss:$20 sps:$4 sm:$0xff]   ;;  %v4411_v21 = vld [vmem:[%s5749_s0 + $0x10] ss:$20 sps:$4 sm:$0xff]  }
  0x15   : > { %862 = vmatprep.subr.bf16.mxu1 %v4360_v6  ;;  %v4865_v19 = vld [vmem:[%s583_s22] sm:$0xff]   ;;  %v4384_v22 = vld [vmem:[%s5749_s0 + $0x34] ss:$20 sps:$4 sm:$0xff]   ;;  %4171 = vmatpush3.bf16.msra.mxu0 %v4411_v21  ;;  %v4412_v23 = vld [vmem:[%s5749_s0 + $0x38] ss:$20 sps:$4 sm:$0xff]   ;;  %s4694_s23 = smov 112  }
  0x16   : > { %4172 = vmatprep.subr.bf16.mxu0 %v4692_v4  ;;  %v4382_v24 = vld [vmem:[%s5749_s0 + $0x30] ss:$20 sps:$4 sm:$0xff]   ;;  %v4385_v26 = vld [vmem:[%s5749_s0 + $0x58] ss:$20 sps:$4 sm:$0xff]   ;;  %v4413_v27 = vld [vmem:[%s5749_s0 + $0x60] ss:$20 sps:$4 sm:$0xff]  }
  0x17   : > { %v4387_v25 = vld [vmem:[%s5749_s0 + $0x5c] ss:$20 sps:$4 sm:$0xff]   ;;  %v4390_v28 = vld [vmem:[%s5749_s0 + $0x84] ss:$20 sps:$4 sm:$0xff]   ;;  %v4388_v30 = vld [vmem:[%s5749_s0 + $0x80] ss:$20 sps:$4 sm:$0xff]  }
  0x18   : > { %863 = vmatpush1.bf16.msra.mxu1 %v4362_v7  ;;  %v4414_v29 = vld [vmem:[%s5749_s0 + $0x88] ss:$20 sps:$4 sm:$0xff]   ;;  %v4393_v31 = vld [vmem:[%s5749_s0 + $0xac] ss:$20 sps:$4 sm:$0xff]   ;;  %v4415_v32 = vld [vmem:[%s5749_s0 + $0xb0] ss:$20 sps:$4 sm:$0xff]  }
  0x19   : > { %864 = vmatprep.subr.bf16.mxu1 %v4363_v8  ;;  %4173 = vmatpush3.bf16.msra.mxu0 %v4412_v23  ;;  %v4391_v33 = vld [vmem:[%s5749_s0 + $0xa8] ss:$20 sps:$4 sm:$0xff]   ;;  %v4416_v35 = vld [vmem:[%s5749_s0 + $0xd8] ss:$20 sps:$4 sm:$0xff]   ;;  %v4394_v36 = vld [vmem:[%s5749_s0 + $0xd0] ss:$20 sps:$4 sm:$0xff]  }
  0x1a   : > { %4174 = vmatprep.subr.bf16.mxu0 %v4692_v4  ;;  %v4396_v34 = vld [vmem:[%s5749_s0 + $0xd4] ss:$20 sps:$4 sm:$0xff]   ;;  %v4399_v37 = vld [vmem:[%s5749_s0 + $0xfc] ss:$20 sps:$4 sm:$0xff]   ;;  %v4397_v39 = vld [vmem:[%s5749_s0 + $0xf8] ss:$20 sps:$4 sm:$0xff]  }
  0x1b   : > { %v4417_v38 = vld [vmem:[%s5749_s0 + $0x100] ss:$20 sps:$4 sm:$0xff]   ;;  %v4402_v40 = vld [vmem:[%s5749_s0 + $0x124] ss:$20 sps:$4 sm:$0xff]   ;;  %v4418_v51 = vld [vmem:[%s5749_s0 + $0x128] ss:$20 sps:$4 sm:$0xff]  }
  0x1c   : > { %865 = vmatpush1.bf16.msra.mxu1 %v4365_v9  ;;  %v4400_v41 = vld [vmem:[%s5749_s0 + $0x120] ss:$20 sps:$4 sm:$0xff]   ;;  %s4097_s30 = sshll.u32 %s5754_s28, 2 }
  0x1d   : > { %866 = vmatprep.subr.bf16.mxu1 %v4366_v10  ;;  %4175 = vmatpush3.bf16.msra.mxu0 %v4413_v27  ;;  %v1064_v50 = vld [vmem:[%s587_s19] sm:$0x3] }
  0x1e   : > { %4176 = vmatprep.subr.bf16.mxu0 %v4692_v4 }
  0x20   : > { %867 = vmatpush1.bf16.msra.mxu1 %v4368_v11 }
  0x21   : > { %868 = vmatprep.subr.bf16.mxu1 %v4369_v12  ;;  %4177 = vmatpush3.bf16.msra.mxu0 %v4414_v29 }
  0x22   : > { %4178 = vmatprep.subr.bf16.mxu0 %v4692_v4 }
  0x24   : > { %869 = vmatpush1.bf16.msra.mxu1 %v4371_v13 }
  0x25   : > { %870 = vmatprep.subr.bf16.mxu1 %v4372_v14  ;;  %4179 = vmatpush3.bf16.msra.mxu0 %v4415_v32 }
  0x26   : > { %4180 = vmatprep.subr.bf16.mxu0 %v4692_v4 }
  0x28   : > { %871 = vmatpush1.bf16.msra.mxu1 %v4374_v15  ;;  %v5021_v15 = vsub.s32 2, %v4991_v53 }
  0x29   : > { %872 = vmatprep.subr.bf16.mxu1 %v4375_v16  ;;  %4181 = vmatpush3.bf16.msra.mxu0 %v4416_v35  ;;  %v1001_v16 = vsub.s32 3, %v4991_v53  ;;  %v3899_v35 = vld [vmem:[%s5730_s6] ss:$0 sm:$0xff] }
  0x2a   : > { %4182 = vmatprep.subr.bf16.mxu0 %v4692_v4 }
  0x2c   : > { %873 = vmatpush1.bf16.msra.mxu1 %v4377_v17  ;;  %v998_v17 = vrot.slane %v985_v55, %v5021_v15 }
  0x2d   : > { %901 = vmatprep.subr.bf16.mxu1 %v4381_v18  ;;  %4183 = vmatpush3.bf16.msra.mxu0 %v4417_v38  ;;  %v1002_v18 = vrot.slane %v985_v55, %v1001_v16 }
  0x2e   : > { %4184 = vmatprep.subr.bf16.mxu0 %v4692_v4 }
  0x2f   : > { %891 = vmatmul.mubr.bf16.vlgmr.msra.gmra.mrb[0].mxu1 %v4865_v19 }
  0x30   : > { %902 = vmatpush1.bf16.msra.mxu1 %v4379_v20  ;;  %933 = vmatprep.mubr.bf16.mxu1 %v4691_v2 }
  0x31   : > { %903 = vmatprep.subr.bf16.mxu1 %v4384_v22  ;;  %4185 = vmatpush3.bf16.msra.mxu0 %v4418_v51 }
  0x32   : > { %4210 = vmatprep.subr.bf16.mxu0 %v4692_v4 }
  0x34   : > { %904 = vmatpush1.bf16.msra.mxu1 %v4382_v24  ;;  %4187 = vmatmul.mubr.bf16.vlgmr.msra.gmra.mrb[0].mxu0 %v4865_v19  ;;  %v1039_v24 = vrot.slane %v1022_v57, %v1001_v16 }
  0x35   : > { %905 = vmatprep.subr.bf16.mxu1 %v4387_v25  ;;  %4212 = vmatprep.mubr.msk.bf16.mxu0 %vm4693_vm0, %v4692_v4 }
  0x38   : > { %906 = vmatpush1.bf16.msra.mxu1 %v4385_v26 }
  0x39   : > { %907 = vmatprep.subr.bf16.mxu1 %v4390_v28 }
  0x3c   : > { %908 = vmatpush1.bf16.msra.mxu1 %v4388_v30 }
  0x3d   : > { %909 = vmatprep.subr.bf16.mxu1 %v4393_v31 }
  0x40   : > { %910 = vmatpush1.bf16.msra.mxu1 %v4391_v33 }
  0x41   : > { %911 = vmatprep.subr.bf16.mxu1 %v4396_v34 }
  0x44   : > { %912 = vmatpush1.bf16.msra.mxu1 %v4394_v36 }
  0x45   : > { %913 = vmatprep.subr.bf16.mxu1 %v4399_v37  ;;  %v3900_v37 = vld [vmem:[%s5731_s7] ss:$0 sm:$0xff] }
  0x48   : > { %914 = vmatpush1.bf16.msra.mxu1 %v4397_v39 }
  0x49   : > { %915 = vmatprep.subr.bf16.mxu1 %v4402_v40 }
  0x4c   : > { %916 = vmatpush1.bf16.msra.mxu1 %v4400_v41 }
  0x4d   : > { %4190 = vmatprep.subr.bf16.mxu1 %v4692_v4 }
  0x4f   : > { %934 = vmatmul.mubr.bf16.vlgmr.msra.gmra.mrb[4].mxu1 %v4865_v19  ;;  %v1035_v19 = vrot.slane %v1022_v57, %v5021_v15 }
  0x50   : > { %4191 = vmatpush3.bf16.msra.mxu1 %v4403_v42  ;;  %4206 = vmatprep.mubr.msk.bf16.mxu1 %vm4693_vm0, %v4692_v4 }
  0x51   : > { %4192 = vmatprep.subr.bf16.mxu1 %v4692_v4 }
  0x54   : > { %4193 = vmatpush3.bf16.msra.mxu1 %v4404_v43 }
  0x55   : > { %4194 = vmatprep.subr.bf16.mxu1 %v4692_v4 }
  0x58   : > { %4195 = vmatpush3.bf16.msra.mxu1 %v4405_v44  ;;  %v1005_v44 = vsub.s32 4, %v4991_v53 }
  0x59   : > { %4196 = vmatprep.subr.bf16.mxu1 %v4692_v4 }
  0x5c   : > { %4197 = vmatpush3.bf16.msra.mxu1 %v4406_v45  ;;  %v1006_v45 = vrot.slane %v985_v55, %v1005_v44  ;;  %v1234_v55 = vld [vmem:[%s5732_s8] sm:$0xf] }
  0x5d   : > { %4198 = vmatprep.subr.bf16.mxu1 %v4692_v4 }
  0x60   : > { %4199 = vmatpush3.bf16.msra.mxu1 %v4407_v46  ;;  %v1043_v46 = vrot.slane %v1022_v57, %v1005_v44 }
  0x61   : > { %4200 = vmatprep.subr.bf16.mxu1 %v4692_v4 }
  0x64   : > { %4201 = vmatpush3.bf16.msra.mxu1 %v4408_v47 }
  0x65   : > { %4202 = vmatprep.subr.bf16.mxu1 %v4692_v4 }
  0x68   : > { %4203 = vmatpush3.bf16.msra.mxu1 %v4409_v48 }
  0x69   : > { %4204 = vmatprep.subr.bf16.mxu1 %v4692_v4 }
  0x6c   : > { %4205 = vmatpush3.bf16.msra.mxu1 %v4410_v49 }
  0x6d   : > { %4216 = vmatprep.subr.bf16.mxu1 %v4692_v4 }
  0x6f   : > { %4207 = vmatmul.mubr.bf16.vlgmr.msra.gmra.mrb[8].mxu1 %v1064_v50 }
  0x70   : > { %4218 = vmatprep.mubr.msk.bf16.mxu1 %vm4693_vm0, %v4692_v4 }
 0x102   : > { %v892_v61 = vpop.f32.mrb[0].mxu1 }
 0x103   : > { %v1012_v62 = vmul.f32 %v990_v58, %v892_v61  ;;  %v894_v63 = vpop.f32.mrb[1].mxu1 }
 0x104   : > { %v1013_v0 = vmul.f32 %v994_v59, %v894_v63  ;;  %v896_v3 = vpop.f32.mrb[2].mxu1 }
 0x105   : > { %v1049_v5 = vadd.f32 %v1027_v60, %v1012_v62  ;;  %v1017_v6 = vmul.f32 %v990_v58, %v896_v3  ;;  %v898_v7 = vpop.f32.mrb[3].mxu1 }
 0x106   : > { %v1018_v8 = vmul.f32 %v994_v59, %v898_v7  ;;  %v1050_v10 = vadd.f32 %v1031_v1, %v1013_v0 }
 0x107   : > { %v1054_v9 = vadd.f32 %v1027_v60, %v1017_v6  ;;  %v978_v47 = vpop.f32.mrb[0].mxu0 }
 0x108   : > { %v1055_v11 = vadd.f32 %v1031_v1, %v1018_v8  ;;  %v1016_v48 = vmul.f32 %v1006_v45, %v978_v47  ;;  %v4188_v49 = vpop.f32.mrb[1].mxu0  ;;  %v3904_v8 = vld [vmem:[%s5732_s8 + $0x4] sm:$0xf]  ;;  %v4431_v47 = vld [vmem:[%s5733_s9 + $0x40] ss:$8 sps:$4 sm:$0xff]  }
 0x109   : > { %v5009_v12 = vpack.c.bf16 %v1054_v9, %v1049_v5  ;;  %v981_v50 = vpop.f32.mrb[2].mxu0  ;;  %v4436_v49 = vld [vmem:[%s5733_s9 + $0x54] ss:$8 sps:$4 sm:$0xff]  }
 0x10a   : > { %v5011_v13 = vpack.c.bf16 %v1055_v11, %v1050_v10  ;;  %v1053_v51 = vadd.f32 %v1043_v46, %v1016_v48  ;;  %v1021_v52 = vmul.f32 %v1006_v45, %v981_v50  ;;  %v4189_v58 = vpop.f32.mrb[3].mxu0  ;;  %v4434_v50 = vld [vmem:[%s5733_s9 + $0x50] ss:$8 sps:$4 sm:$0xff]  }
 0x10b   : > { %1310 = vrot.lane.b32.xlu0 %v5009_v12, %s4694_s23  ;;  %v1191_v14 = vsel %vm1186_vm1, %v5009_v12, 0  ;;  %v4442_v58 = vld [vmem:[%s5733_s9 + $0x74] ss:$8 sps:$4 sm:$0xff]  }
 0x10c   : > { %4211 = vmatpush3.bf16.xpose.msra.mxu0 %v1191_v14  ;;  %4217 = vmatpush3.bf16.msra.mxu1 %v5011_v13  ;;  %v1058_v59 = vadd.f32 %v1043_v46, %v1021_v52  ;;  %v4437_v52 = vld [vmem:[%s5733_s9 + $0x60] ss:$8 sps:$4 sm:$0xff]  }
 0x10d   : > { %4222 = vmatprep.subr.bf16.mxu0 %v4692_v4  ;;  %4228 = vmatprep.subr.bf16.mxu1 %v4692_v4 }
 0x10e   : > { %v5045_v60 = vpack.c.bf16 %v1058_v59, %v1053_v51  ;;  %v4439_v51 = vld [vmem:[%s5733_s9 + $0x64] ss:$8 sps:$4 sm:$0xff]   ;;  %v4440_v59 = vld [vmem:[%s5733_s9 + $0x70] ss:$8 sps:$4 sm:$0xff]  }
 0x122   : > { %v935_v20 = vpop.f32.mrb[4].mxu1 }
 0x123   : > { %v1014_v21 = vmul.f32 %v998_v17, %v935_v20  ;;  %v937_v22 = vpop.f32.mrb[5].mxu1 }
 0x124   : > { %v1015_v23 = vmul.f32 %v1002_v18, %v937_v22  ;;  %v939_v25 = vpop.f32.mrb[6].mxu1 }
 0x125   : > { %v1051_v26 = vadd.f32 %v1035_v19, %v1014_v21  ;;  %v1019_v27 = vmul.f32 %v998_v17, %v939_v25  ;;  %v941_v28 = vpop.f32.mrb[7].mxu1 }
 0x126   : > { %v1020_v29 = vmul.f32 %v1002_v18, %v941_v28  ;;  %v1052_v31 = vadd.f32 %v1039_v24, %v1015_v23 }
 0x127   : > { %v1056_v30 = vadd.f32 %v1035_v19, %v1019_v27 }
 0x128   : > { %v1057_v32 = vadd.f32 %v1039_v24, %v1020_v29  ;;  %v4419_v29 = vld [vmem:[%s5733_s9] ss:$8 sps:$4 sm:$0xff]  }
 0x129   : > { %v5026_v33 = vpack.c.bf16 %v1056_v30, %v1051_v26  ;;  %v4421_v30 = vld [vmem:[%s5733_s9 + $0x4] ss:$8 sps:$4 sm:$0xff]  }
 0x12a   : > { %v5028_v34 = vpack.c.bf16 %v1057_v32, %v1052_v31 }
 0x142   : > { %v1163_v36 = vpop.f32.mrb[8].mxu1 }
 0x143   : > { %v1176_v38 = vmul.f32 %v3899_v35, %v1163_v36  ;;  %v4208_v39 = vpop.f32.mrb[9].mxu1  ;;  %v4424_v35 = vld [vmem:[%s5733_s9 + $0x14] ss:$8 sps:$4 sm:$0xff]   ;;  %v4422_v36 = vld [vmem:[%s5733_s9 + $0x10] ss:$8 sps:$4 sm:$0xff]  }
 0x144   : > { %v1166_v40 = vpop.f32.mrb[10].mxu1  ;;  %v4430_v39 = vld [vmem:[%s5733_s9 + $0x34] ss:$8 sps:$4 sm:$0xff]  }
 0x145   : > { %v1184_v41 = vadd.f32 %v3900_v37, %v1176_v38  ;;  %v4209_v42 = vpop.f32.mrb[11].mxu1  ;;  %v4427_v37 = vld [vmem:[%s5733_s9 + $0x24] ss:$8 sps:$4 sm:$0xff]   ;;  %v4425_v38 = vld [vmem:[%s5733_s9 + $0x20] ss:$8 sps:$4 sm:$0xff]  }
 0x146   : > { %v4428_v40 = vld [vmem:[%s5733_s9 + $0x30] ss:$8 sps:$4 sm:$0xff]   ;;  %v4433_v42 = vld [vmem:[%s5733_s9 + $0x44] ss:$8 sps:$4 sm:$0xff]  }
 0x147   : > { %v5036_v43 = vpack.c.bf16 %v1184_v41, %v1184_v41 }
 0x149   : > { %1307 = vrot.lane.b32.xlu0 %v5036_v43, %s4694_s23  ;;  %4213 = vmatmul.mubr.msk.bf16.vlgmr.msra.gmra.mrb[4].mxu0 %vm1186_vm1, %v5036_v43 }
 0x14a   : > { %4224 = vmatprep.mubr.msk.bf16.mxu0 %vm4693_vm0, %v4692_v4 }
 0x17d   : > { %v1311_v61 = vpop.permute.xlu0 %1310 }
 0x17e   : > { %v1316_v62 = vsel %vm1186_vm1, %v1311_v61, 0 }
 0x17f   : > { %4223 = vmatpush3.bf16.xpose.msra.mxu0 %v1316_v62 }
 0x180   : > { %1563 = vmatprep.subr.bf16.mxu0 %v4421_v30 }
 0x1bb   : > { %v1308_v63 = vpop.permute.xlu0 %1307 }
 0x1bc   : > { %4225 = vmatmul.mubr.msk.bf16.vlgmr.msra.gmra.mrb[8].mxu0 %vm1186_vm1, %v1308_v63 }
 0x1bd   : > { %1595 = vmatprep.mubr.bf16.mxu0 %v4691_v2  ;;  %1564 = vmatpush1.bf16.msra.mxu0 %v4419_v29 }
 0x1be   : > { %1565 = vmatprep.subr.bf16.mxu0 %v4424_v35 }
 0x1c1   : > { %1566 = vmatpush1.bf16.msra.mxu0 %v4422_v36 }
 0x1c2   : > { %1567 = vmatprep.subr.bf16.mxu0 %v4427_v37 }
 0x1c5   : > { %1568 = vmatpush1.bf16.msra.mxu0 %v4425_v38 }
 0x1c6   : > { %1569 = vmatprep.subr.bf16.mxu0 %v4430_v39 }
 0x1c9   : > { %1570 = vmatpush1.bf16.msra.mxu0 %v4428_v40  ;;  %v4443_v40 = vld [vmem:[%s5733_s9 + $0x80] ss:$8 sps:$4 sm:$0xff]  }
 0x21c   : > { %v1227_v53 = vpop.f32.mrb[4].mxu0 }
 0x21d   : > { %v1233_v57 = vmul.f32 0.25, %v1227_v53  ;;  %v4214_v0 = vpop.f32.mrb[5].mxu0 }
 0x21e   : > { %v1230_v1 = vpop.f32.mrb[6].mxu0 }
 0x21f   : > { %v4215_v3 = vpop.f32.mrb[7].mxu0  ;;  %v1235_v5 = vadd.f32 %v1234_v55, %v1233_v57 }
 0x221   : > { %v1237_v6 = vsel %vm1236_vm2, %v1235_v5, -inf }
 0x222   : > { %1238 = vmax.xlane.f32.xlu1 %v1237_v6 }
 0x28f   : > { %v1352_v7 = vpop.f32.mrb[8].mxu0 }
 0x290   : > { %v1358_v9 = vmul.f32 0.25, %v1352_v7  ;;  %v4226_v10 = vpop.f32.mrb[9].mxu0 }
 0x291   : > { %v1355_v11 = vpop.f32.mrb[10].mxu0 }
 0x292   : > { %v4227_v14 = vpop.f32.mrb[11].mxu0  ;;  %v1361_v16 = vadd.f32 %v3904_v8, %v1358_v9 }
 0x294   : > { %v1362_v17 = vsel %vm1236_vm2, %v1361_v16, -inf }
 0x295   : > { %1363 = vmax.xlane.f32.xlu1 %v1362_v17 }
 0x2af   : > { %v1239_v18 = vpop.xlane.xlu1 %1238 }
 0x2b0   : > { %v1240_v19 = vsub.f32 %v1235_v5, %v1239_v18 }
 0x2b2   : > { %v1241_v20 = vmul.f32 1.442695, %v1240_v19 }
 0x2b4   : > { %4651 = vpow2.f32 %v1241_v20 }
 0x2be   : > { %v4652_v21 = vpop.eup %4651 }
 0x2bf   : > { %v1243_v22 = vsel %vm1236_vm2, %v4652_v21, 0.0 }
 0x2c0   : > { %1244 = vadd.xlane.f32.xlu0 %v1243_v22 }
 0x322   : > { %v1364_v23 = vpop.xlane.xlu1 %1363 }
 0x323   : > { %v1365_v24 = vsub.f32 %v1361_v16, %v1364_v23 }
 0x325   : > { %v1366_v25 = vmul.f32 1.442695, %v1365_v24 }
 0x327   : > { %4653 = vpow2.f32 %v1366_v25 }
 0x331   : > { %v4654_v26 = vpop.eup %4653 }
 0x332   : > { %v1368_v27 = vsel %vm1236_vm2, %v4654_v26, 0.0 }
 0x333   : > { %1369 = vadd.xlane.f32.xlu1 %v1368_v27  ;;  %v3925_v27 = vld [vmem:[%s5732_s8 + $0x8] sm:$0xf] }
 0x344   : > { %1375 = vrot.lane.b32.xlu1 %v5011_v13, %s4695_s27 }
 0x348   : > { %1606 = vrot.lane.b32.xlu1 %v5009_v12, %s4696_s20 }
 0x34c   : > { %1604 = vrot.lane.b32.xlu1 %v5036_v43, %s4696_s20  ;;  %s4698_s20 = smov 48  }
 0x34d   : > { %v1245_v28 = vpop.xlane.xlu0 %1244 }
 0x34e   : > { %4655 = vrcp.f32 %v1245_v28 }
 0x358   : > { %v4656_v31 = vpop.eup %4655 }
 0x359   : > { %v1247_v32 = vmul.f32 %v4656_v31, %v4652_v21 }
 0x35b   : > { %v1248_v13 = vpack.c.bf16 %v1247_v32, %v1247_v32 }
 0x35d   : > { %4219 = vmatmul.mubr.msk.bf16.vlgmr.msra.gmra.mrb[12].mxu1 %vm1186_vm1, %v1248_v13 }
 0x35e   : > { %4230 = vmatprep.mubr.msk.bf16.mxu1 %vm4693_vm0, %v4692_v4 }
 0x3c0   : > { %v1370_v41 = vpop.xlane.xlu1 %1369 }
 0x3c1   : > { %4657 = vrcp.f32 %v1370_v41 }
 0x3c4   : > { %v1376_v44 = vpop.permute.xlu1 %1375 }
 0x3c5   : > { %4229 = vmatpush3.bf16.msra.mxu1 %v1376_v44 }
 0x3c6   : > { %1479 = vmatprep.subr.bf16.mxu1 %v4433_v42 }
 0x3c8   : > { %v1607_v18 = vpop.permute.xlu1 %1606 }
 0x3c9   : > { %v1612_v20 = vsel %vm1186_vm1, %v1607_v18, 0 }
 0x3cb   : > { %v4658_v45 = vpop.eup %4657 }
 0x3cc   : > { %v1372_v46 = vmul.f32 %v4658_v45, %v4654_v26  ;;  %v1605_v21 = vpop.permute.xlu1 %1604 }
 0x3ce   : > { %v1373_v48 = vpack.c.bf16 %v1372_v46, %v1372_v46 }
 0x3d0   : > { %4231 = vmatmul.mubr.msk.bf16.vlgmr.msra.gmra.mrb[16].mxu1 %vm1186_vm1, %v1373_v48 }
 0x3d1   : > { %1480 = vmatpush1.bf16.msra.mxu1 %v4431_v47  ;;  %1511 = vmatprep.mubr.bf16.mxu1 %v4691_v2 }
 0x3d2   : > { %1481 = vmatprep.subr.bf16.mxu1 %v4436_v49 }
 0x3d5   : > { %1482 = vmatpush1.bf16.msra.mxu1 %v4434_v50  ;;  %v4448_v50 = vld [vmem:[%s5733_s9 + $0x94] ss:$8 sps:$4 sm:$0xff]  }
 0x3d6   : > { %1483 = vmatprep.subr.bf16.mxu1 %v4439_v51  ;;  %v4446_v51 = vld [vmem:[%s5733_s9 + $0x90] ss:$8 sps:$4 sm:$0xff]  }
 0x3d9   : > { %1484 = vmatpush1.bf16.msra.mxu1 %v4437_v52  ;;  %v4451_v52 = vld [vmem:[%s5733_s9 + $0xa4] ss:$8 sps:$4 sm:$0xff]  }
 0x3da   : > { %1485 = vmatprep.subr.bf16.mxu1 %v4442_v58  ;;  %v4449_v58 = vld [vmem:[%s5733_s9 + $0xa0] ss:$8 sps:$4 sm:$0xff]  }
 0x3dd   : > { %1486 = vmatpush1.bf16.msra.mxu1 %v4440_v59  ;;  %v4454_v59 = vld [vmem:[%s5733_s9 + $0xb4] ss:$8 sps:$4 sm:$0xff]  }
 0x3de   : > { %4234 = vmatprep.subr.bf16.mxu1 %v4692_v4 }
 0x430   : > { %v1286_v61 = vpop.f32.mrb[12].mxu1 }
 0x431   : > { %v1292_v62 = vadd.f32 3.0, %v1286_v61  ;;  %v4220_v63 = vpop.f32.mrb[13].mxu1 }
 0x432   : > { %v1289_v53 = vpop.f32.mrb[14].mxu1 }
 0x433   : > { %v1293_v55 = vmax.f32 %v1292_v62, 0.0  ;;  %v4221_v57 = vpop.f32.mrb[15].mxu1 }
 0x435   : > { %v1294_v0 = vmin.f32 %v1293_v55, 6.0 }
 0x437   : > { %v1295_v1 = vmul.f32 %v1294_v0, %v1286_v61  ;;  %v4452_v61 = vld [vmem:[%s5733_s9 + $0xb0] ss:$8 sps:$4 sm:$0xff]  }
 0x439   : > { %v1296_v3 = vmul.f32 0.16666667, %v1295_v1 }
 0x43b   : > { %v1297_v5 = vpack.c.bf16 %v1296_v3, %v1296_v3 }
 0x43d   : > { %3923 = vmatmul.mubr.msk.bf16.vlgmr.msra.gmra.mrb[12].mxu0 %vm1475_vm3, %v1297_v5 }
 0x43e   : > { %1802 = vmatprep.mubr.bf16.mxu0 %v4691_v2 }
 0x4a3   : > { %v1415_v6 = vpop.f32.mrb[16].mxu1 }
 0x4a4   : > { %v1421_v7 = vadd.f32 3.0, %v1415_v6  ;;  %v4232_v8 = vpop.f32.mrb[17].mxu1 }
 0x4a5   : > { %v1418_v9 = vpop.f32.mrb[18].mxu1 }
 0x4a6   : > { %v1422_v10 = vmax.f32 %v1421_v7, 0.0  ;;  %v4233_v11 = vpop.f32.mrb[19].mxu1 }
 0x4a8   : > { %v1423_v14 = vmin.f32 %v1422_v10, 6.0 }
 0x4aa   : > { %v1424_v16 = vmul.f32 %v1423_v14, %v1415_v6  ;;  %v3937_v6 = vld [vmem:[%s5732_s8 + $0xc] sm:$0xf] }
 0x4ac   : > { %v1425_v17 = vmul.f32 0.16666667, %v1424_v16 }
 0x4ae   : > { %v1426_v19 = vpack.c.bf16 %v1425_v17, %v1425_v17 }
 0x4b0   : > { %3914 = vmatmul.mubr.msk.bf16.vlgmr.msra.gmra.mrb[20].mxu1 %vm1475_vm3, %v1426_v19 }
 0x4b1   : > { %4235 = vmatpush3.bf16.xpose.msra.mxu1 %v1612_v20  ;;  %4236 = vmatprep.mubr.msk.bf16.mxu1 %vm4693_vm0, %v4692_v4 }
 0x4b2   : > { %4240 = vmatprep.subr.bf16.mxu1 %v4692_v4 }
 0x4b8   : > { %4237 = vmatmul.mubr.msk.bf16.vlgmr.msra.gmra.mrb[24].mxu1 %vm1186_vm1, %v1605_v21 }
 0x4b9   : > { %4241 = vmatpush3.bf16.msra.mxu1 %v5026_v33  ;;  %4242 = vmatprep.mubr.msk.bf16.mxu1 %vm4693_vm0, %v4692_v4 }
 0x4ba   : > { %4246 = vmatprep.subr.bf16.mxu1 %v4692_v4 }
 0x583   : > { %v5130_v22 = vpop.f32.mrb[20].mxu1 }
 0x584   : > { %v5132_v23 = vpop.f32.mrb[21].mxu1 }
 0x585   : > { %v1517_v24 = vpop.f32.mrb[22].mxu1 }
 0x586   : > { %v1518_v25 = vpop.f32.mrb[23].mxu1 }
 0x587   : > { %v4455_v25 = vld [vmem:[%s5733_s9 + $0xc0] ss:$8 sps:$4 sm:$0xff]  }
 0x58b   : > { %v1648_v26 = vpop.f32.mrb[24].mxu1 }
 0x58c   : > { %v1654_v28 = vmul.f32 0.25, %v1648_v26  ;;  %v4238_v29 = vpop.f32.mrb[25].mxu1  ;;  %v4457_v26 = vld [vmem:[%s5733_s9 + $0xc4] ss:$8 sps:$4 sm:$0xff]  }
 0x58d   : > { %v1651_v30 = vpop.f32.mrb[26].mxu1 }
 0x58e   : > { %v4239_v31 = vpop.f32.mrb[27].mxu1  ;;  %v1657_v32 = vadd.f32 %v3925_v27, %v1654_v28 }
 0x590   : > { %v1658_v13 = vsel %vm1236_vm2, %v1657_v32, -inf }
 0x591   : > { %1659 = vmax.xlane.f32.xlu1 %v1658_v13 }
 0x5a2   : > { %1880 = vrot.lane.b32.xlu1 %v5026_v33, %s4695_s27  ;;  %v4445_v33 = vld [vmem:[%s5733_s9 + $0x84] ss:$8 sps:$4 sm:$0xff]  }
 0x5a3   : > { %1770 = vmatprep.subr.bf16.mxu0 %v4445_v33 }
 0x5a4   : > { %1771 = vmatpush1.bf16.msra.mxu0 %v4443_v40  ;;  %v4464_v40 = vld [vmem:[%s5733_s9 + $0xf0] ss:$8 sps:$4 sm:$0xff]  }
 0x5a5   : > { %1772 = vmatprep.subr.bf16.mxu0 %v4448_v50  ;;  %v3949_v50 = vld [vmem:[%s5732_s8 + $0x10] sm:$0xf] }
 0x5a8   : > { %1773 = vmatpush1.bf16.msra.mxu0 %v4446_v51 }
 0x5a9   : > { %1774 = vmatprep.subr.bf16.mxu0 %v4451_v52 }
 0x5ac   : > { %1775 = vmatpush1.bf16.msra.mxu0 %v4449_v58 }
 0x5ad   : > { %1776 = vmatprep.subr.bf16.mxu0 %v4454_v59 }
 0x5b0   : > { %1777 = vmatpush1.bf16.msra.mxu0 %v4452_v61 }
 0x5b1   : > { %1983 = vmatprep.subr.bf16.mxu0 %v4457_v26 }
 0x61e   : > { %v1660_v35 = vpop.xlane.xlu1 %1659 }
 0x61f   : > { %v1661_v36 = vsub.f32 %v1657_v32, %v1660_v35  ;;  %v4460_v35 = vld [vmem:[%s5733_s9 + $0xd4] ss:$8 sps:$4 sm:$0xff]  }
 0x621   : > { %v1662_v37 = vmul.f32 1.442695, %v1661_v36  ;;  %v4458_v36 = vld [vmem:[%s5733_s9 + $0xd0] ss:$8 sps:$4 sm:$0xff]  }
 0x622   : > { %v1881_v49 = vpop.permute.xlu1 %1880 }
 0x623   : > { %4659 = vpow2.f32 %v1662_v37  ;;  %v4463_v37 = vld [vmem:[%s5733_s9 + $0xe4] ss:$8 sps:$4 sm:$0xff]  }
 0x62d   : > { %v4660_v38 = vpop.eup %4659 }
 0x62e   : > { %v1664_v39 = vsel %vm1236_vm2, %v4660_v38, 0.0 }
 0x62f   : > { %1665 = vadd.xlane.f32.xlu0 %v1664_v39  ;;  %v4466_v39 = vld [vmem:[%s5733_s9 + $0xf4] ss:$8 sps:$4 sm:$0xff]  }
 0x645   : > { %1815 = vrot.lane.b32.xlu0 %v5009_v12, %s4697_s1 }
 0x649   : > { %1813 = vrot.lane.b32.xlu0 %v5036_v43, %s4697_s1  ;;  %s592_s1 = scalar_lea.vmem %s5742_s18, %s4097_s30 }
 0x6bc   : > { %v1666_v41 = vpop.xlane.xlu0 %1665 }
 0x6bd   : > { %4661 = vrcp.f32 %v1666_v41 }
 0x6c0   : > { %v1816_v45 = vpop.permute.xlu0 %1815 }
 0x6c1   : > { %v1821_v47 = vsel %vm1186_vm1, %v1816_v45, 0 }
 0x6c4   : > { %v1814_v48 = vpop.permute.xlu0 %1813 }
 0x6c7   : > { %v4662_v42 = vpop.eup %4661 }
 0x6c8   : > { %v1668_v44 = vmul.f32 %v4662_v42, %v4660_v38  ;;  %v4461_v38 = vld [vmem:[%s5733_s9 + $0xe0] ss:$8 sps:$4 sm:$0xff]  }
 0x6ca   : > { %v1669_v46 = vpack.c.bf16 %v1668_v44, %v1668_v44 }
 0x6cc   : > { %4243 = vmatmul.mubr.msk.bf16.vlgmr.msra.gmra.mrb[28].mxu1 %vm1186_vm1, %v1669_v46 }
 0x6cd   : > { %4247 = vmatpush3.bf16.xpose.msra.mxu1 %v1821_v47  ;;  %4248 = vmatprep.mubr.msk.bf16.mxu1 %vm4693_vm0, %v4692_v4 }
 0x6ce   : > { %4252 = vmatprep.subr.bf16.mxu1 %v4692_v4 }
 0x6d4   : > { %4249 = vmatmul.mubr.msk.bf16.vlgmr.msra.gmra.mrb[32].mxu1 %vm1186_vm1, %v1814_v48 }
 0x6d5   : > { %4253 = vmatpush3.bf16.msra.mxu1 %v1881_v49  ;;  %4254 = vmatprep.mubr.msk.bf16.mxu1 %vm4693_vm0, %v4692_v4 }
 0x6d6   : > { %4258 = vmatprep.subr.bf16.mxu1 %v4692_v4 }
 0x79f   : > { %v1707_v62 = vpop.f32.mrb[28].mxu1 }
 0x7a0   : > { %v1713_v63 = vadd.f32 3.0, %v1707_v62  ;;  %v4244_v53 = vpop.f32.mrb[29].mxu1 }
 0x7a1   : > { %v1710_v55 = vpop.f32.mrb[30].mxu1 }
 0x7a2   : > { %v1714_v57 = vmax.f32 %v1713_v63, 0.0  ;;  %v4245_v0 = vpop.f32.mrb[31].mxu1 }
 0x7a4   : > { %v1715_v1 = vmin.f32 %v1714_v57, 6.0 }
 0x7a6   : > { %v1716_v3 = vmul.f32 %v1715_v1, %v1707_v62 }
 0x7a7   : > { %v1857_v5 = vpop.f32.mrb[32].mxu1 }
 0x7a8   : > { %v1717_v7 = vmul.f32 0.16666667, %v1716_v3  ;;  %v1863_v8 = vmul.f32 0.25, %v1857_v5  ;;  %v4250_v9 = vpop.f32.mrb[33].mxu1  ;;  %v4467_v5 = vld [vmem:[%s5733_s9 + $0x100] ss:$8 sps:$4 sm:$0xff]  }
 0x7a9   : > { %v1860_v10 = vpop.f32.mrb[34].mxu1 }
 0x7aa   : > { %v1718_v11 = vpack.c.bf16 %v1717_v7, %v1717_v7  ;;  %v4251_v14 = vpop.f32.mrb[35].mxu1  ;;  %v1866_v16 = vadd.f32 %v3937_v6, %v1863_v8  ;;  %v4469_v6 = vld [vmem:[%s5733_s9 + $0x104] ss:$8 sps:$4 sm:$0xff]  }
 0x7ac   : > { %3935 = vmatmul.mubr.msk.bf16.vlgmr.msra.gmra.mrb[12].mxu0 %vm1475_vm3, %v1718_v11  ;;  %v1867_v17 = vsel %vm1236_vm2, %v1866_v16, -inf }
 0x7ad   : > { %1868 = vmax.xlane.f32.xlu0 %v1867_v17  ;;  %2015 = vmatprep.mubr.bf16.mxu0 %v4691_v2  ;;  %v4472_v17 = vld [vmem:[%s5733_s9 + $0x114] ss:$8 sps:$4 sm:$0xff]  }
 0x7ae   : > { %1984 = vmatpush1.bf16.msra.mxu0 %v4455_v25 }
 0x7af   : > { %1985 = vmatprep.subr.bf16.mxu0 %v4460_v35  ;;  %v3961_v35 = vld [vmem:[%s5732_s8 + $0x14] sm:$0xf] }
 0x7b2   : > { %1986 = vmatpush1.bf16.msra.mxu0 %v4458_v36 }
 0x7b3   : > { %1987 = vmatprep.subr.bf16.mxu0 %v4463_v37 }
 0x7b6   : > { %1988 = vmatpush1.bf16.msra.mxu0 %v4461_v38 }
 0x7b7   : > { %1989 = vmatprep.subr.bf16.mxu0 %v4466_v39 }
 0x7ba   : > { %1990 = vmatpush1.bf16.msra.mxu0 %v4464_v40 }
 0x7bb   : > { %2192 = vmatprep.subr.bf16.mxu0 %v4469_v6 }
 0x83a   : > { %v1869_v18 = vpop.xlane.xlu0 %1868 }
 0x83b   : > { %v1870_v19 = vsub.f32 %v1866_v16, %v1869_v18  ;;  %v4470_v18 = vld [vmem:[%s5733_s9 + $0x110] ss:$8 sps:$4 sm:$0xff]  }
 0x83d   : > { %v1871_v20 = vmul.f32 1.442695, %v1870_v19  ;;  %v4475_v19 = vld [vmem:[%s5733_s9 + $0x124] ss:$8 sps:$4 sm:$0xff]  }
 0x83f   : > { %4663 = vpow2.f32 %v1871_v20  ;;  %v4473_v20 = vld [vmem:[%s5733_s9 + $0x120] ss:$8 sps:$4 sm:$0xff]  }
 0x849   : > { %v4664_v21 = vpop.eup %4663 }
 0x84a   : > { %v1873_v24 = vsel %vm1236_vm2, %v4664_v21, 0.0 }
 0x84b   : > { %1874 = vadd.xlane.f32.xlu1 %v1873_v24  ;;  %v4476_v24 = vld [vmem:[%s5733_s9 + $0x130] ss:$8 sps:$4 sm:$0xff]  }
 0x85c   : > { %2028 = vrot.lane.b32.xlu1 %v5009_v12, %s4695_s27 }
 0x860   : > { %2026 = vrot.lane.b32.xlu1 %v5036_v43, %s4695_s27 }
 0x8d8   : > { %v1875_v27 = vpop.xlane.xlu1 %1874 }
 0x8d9   : > { %4665 = vrcp.f32 %v1875_v27 }
 0x8dc   : > { %v2029_v30 = vpop.permute.xlu1 %2028 }
 0x8dd   : > { %v2034_v32 = vsel %vm1186_vm1, %v2029_v30, 0 }
 0x8e0   : > { %v2027_v13 = vpop.permute.xlu1 %2026 }
 0x8e3   : > { %v4666_v28 = vpop.eup %4665 }
 0x8e4   : > { %v1877_v29 = vmul.f32 %v4666_v28, %v4664_v21  ;;  %v4478_v21 = vld [vmem:[%s5733_s9 + $0x134] ss:$8 sps:$4 sm:$0xff]  }
 0x8e6   : > { %v1878_v31 = vpack.c.bf16 %v1877_v29, %v1877_v29 }
 0x8e8   : > { %4255 = vmatmul.mubr.msk.bf16.vlgmr.msra.gmra.mrb[36].mxu1 %vm1186_vm1, %v1878_v31 }
 0x8e9   : > { %4259 = vmatpush3.bf16.xpose.msra.mxu1 %v2034_v32  ;;  %4260 = vmatprep.mubr.msk.bf16.mxu1 %vm4693_vm0, %v4692_v4 }
 0x8ea   : > { %4264 = vmatprep.subr.bf16.mxu1 %v4692_v4 }
 0x8f0   : > { %4261 = vmatmul.mubr.msk.bf16.vlgmr.msra.gmra.mrb[40].mxu1 %vm1186_vm1, %v2027_v13 }
 0x8f1   : > { %4265 = vmatpush3.bf16.msra.mxu1 %v5028_v34  ;;  %4266 = vmatprep.mubr.msk.bf16.mxu1 %vm4693_vm0, %v4692_v4 }
 0x8f2   : > { %4270 = vmatprep.subr.bf16.mxu1 %v4692_v4 }
 0x9bb   : > { %v1920_v33 = vpop.f32.mrb[36].mxu1 }
 0x9bc   : > { %v1926_v41 = vadd.f32 3.0, %v1920_v33  ;;  %v4256_v42 = vpop.f32.mrb[37].mxu1 }
 0x9bd   : > { %v1923_v44 = vpop.f32.mrb[38].mxu1 }
 0x9be   : > { %v1927_v45 = vmax.f32 %v1926_v41, 0.0  ;;  %v4257_v46 = vpop.f32.mrb[39].mxu1 }
 0x9c0   : > { %v1928_v47 = vmin.f32 %v1927_v45, 6.0 }
 0x9c2   : > { %v1929_v48 = vmul.f32 %v1928_v47, %v1920_v33 }
 0x9c3   : > { %v2070_v49 = vpop.f32.mrb[40].mxu1 }
 0x9c4   : > { %v1930_v51 = vmul.f32 0.16666667, %v1929_v48  ;;  %v2076_v52 = vmul.f32 0.25, %v2070_v49  ;;  %v4262_v58 = vpop.f32.mrb[41].mxu1  ;;  %v4479_v49 = vld [vmem:[%s5733_s9 + $0x140] ss:$8 sps:$4 sm:$0xff]  }
 0x9c5   : > { %v2073_v59 = vpop.f32.mrb[42].mxu1 }
 0x9c6   : > { %v1931_v61 = vpack.c.bf16 %v1930_v51, %v1930_v51  ;;  %v4263_v62 = vpop.f32.mrb[43].mxu1  ;;  %v2079_v63 = vadd.f32 %v3949_v50, %v2076_v52  ;;  %v4481_v50 = vld [vmem:[%s5733_s9 + $0x144] ss:$8 sps:$4 sm:$0xff]  }
 0x9c8   : > { %3947 = vmatmul.mubr.msk.bf16.vlgmr.msra.gmra.mrb[12].mxu0 %vm1475_vm3, %v1931_v61  ;;  %v2080_v53 = vsel %vm1236_vm2, %v2079_v63, -inf }
 0x9c9   : > { %2081 = vmax.xlane.f32.xlu0 %v2080_v53  ;;  %2224 = vmatprep.mubr.bf16.mxu0 %v4691_v2  ;;  %v4484_v53 = vld [vmem:[%s5733_s9 + $0x154] ss:$8 sps:$4 sm:$0xff]  }
 0x9ca   : > { %2193 = vmatpush1.bf16.msra.mxu0 %v4467_v5 }
 0x9cb   : > { %2194 = vmatprep.subr.bf16.mxu0 %v4472_v17 }
 0x9ce   : > { %2195 = vmatpush1.bf16.msra.mxu0 %v4470_v18 }
 0x9cf   : > { %2196 = vmatprep.subr.bf16.mxu0 %v4475_v19 }
 0x9d2   : > { %2197 = vmatpush1.bf16.msra.mxu0 %v4473_v20 }
 0x9d3   : > { %2198 = vmatprep.subr.bf16.mxu0 %v4478_v21 }
 0x9d6   : > { %2199 = vmatpush1.bf16.msra.mxu0 %v4476_v24 }
 0x9d7   : > { %2405 = vmatprep.subr.bf16.mxu0 %v4481_v50 }
 0x9df   : > { %2237 = vrot.lane.b32.xlu0 %v5009_v12, %s4698_s20 }
 0x9e3   : > { %2235 = vrot.lane.b32.xlu0 %v5036_v43, %s4698_s20 }
 0xa56   : > { %v2082_v55 = vpop.xlane.xlu0 %2081 }
 0xa57   : > { %v2083_v57 = vsub.f32 %v2079_v63, %v2082_v55  ;;  %v4482_v55 = vld [vmem:[%s5733_s9 + $0x150] ss:$8 sps:$4 sm:$0xff]  }
 0xa59   : > { %v2084_v0 = vmul.f32 1.442695, %v2083_v57  ;;  %v4487_v57 = vld [vmem:[%s5733_s9 + $0x164] ss:$8 sps:$4 sm:$0xff]  }
 0xa5a   : > { %v2238_v10 = vpop.permute.xlu0 %2237 }
 0xa5b   : > { %4667 = vpow2.f32 %v2084_v0  ;;  %v2243_v14 = vsel %vm1186_vm1, %v2238_v10, 0  ;;  %v4485_v0 = vld [vmem:[%s5733_s9 + $0x160] ss:$8 sps:$4 sm:$0xff]  }
 0xa65   : > { %v4668_v1 = vpop.eup %4667 }
 0xa66   : > { %v2086_v3 = vsel %vm1236_vm2, %v4668_v1, 0.0 }
 0xa67   : > { %2087 = vadd.xlane.f32.xlu1 %v2086_v3  ;;  %v4488_v3 = vld [vmem:[%s5733_s9 + $0x170] ss:$8 sps:$4 sm:$0xff]  }
 0xa78   : > { %2302 = vrot.lane.b32.xlu1 %v5028_v34, %s4695_s27  ;;  %v2236_v34 = vpop.permute.xlu0 %2235 }
 0xaf4   : > { %v2088_v7 = vpop.xlane.xlu1 %2087 }
 0xaf5   : > { %4669 = vrcp.f32 %v2088_v7 }
 0xaf8   : > { %v2303_v16 = vpop.permute.xlu1 %2302 }
 0xaff   : > { %v4670_v8 = vpop.eup %4669 }
 0xb00   : > { %v2090_v9 = vmul.f32 %v4670_v8, %v4668_v1  ;;  %v4490_v1 = vld [vmem:[%s5733_s9 + $0x174] ss:$8 sps:$4 sm:$0xff]  }
 0xb02   : > { %v2091_v11 = vpack.c.bf16 %v2090_v9, %v2090_v9 }
 0xb04   : > { %4267 = vmatmul.mubr.msk.bf16.vlgmr.msra.gmra.mrb[44].mxu1 %vm1186_vm1, %v2091_v11 }
 0xb05   : > { %4271 = vmatpush3.bf16.xpose.msra.mxu1 %v2243_v14  ;;  %4272 = vmatprep.mubr.msk.bf16.mxu1 %vm4693_vm0, %v4692_v4 }
 0xb06   : > { %4276 = vmatprep.subr.bf16.mxu1 %v4692_v4 }
 0xb0c   : > { %4273 = vmatmul.mubr.msk.bf16.vlgmr.msra.gmra.mrb[48].mxu1 %vm1186_vm1, %v2236_v34 }
 0xb0d   : > { %4277 = vmatpush3.bf16.msra.mxu1 %v2303_v16  ;;  %4278 = vmatprep.mubr.msk.bf16.mxu1 %vm4693_vm0, %v4692_v4  ;;  %v3973_v16 = vld [vmem:[%s5732_s8 + $0x18] sm:$0xf] }
 0xb0e   : > { %4282 = vmatprep.subr.bf16.mxu1 %v4692_v4 }
 0xbd7   : > { %v2129_v25 = vpop.f32.mrb[44].mxu1 }
 0xbd8   : > { %v2135_v26 = vadd.f32 3.0, %v2129_v25  ;;  %v4268_v27 = vpop.f32.mrb[45].mxu1 }
 0xbd9   : > { %v2132_v28 = vpop.f32.mrb[46].mxu1 }
 0xbda   : > { %v2136_v29 = vmax.f32 %v2135_v26, 0.0  ;;  %v4269_v30 = vpop.f32.mrb[47].mxu1 }
 0xbdc   : > { %v2137_v31 = vmin.f32 %v2136_v29, 6.0 }
 0xbde   : > { %v2138_v32 = vmul.f32 %v2137_v31, %v2129_v25 }
 0xbdf   : > { %v2279_v13 = vpop.f32.mrb[48].mxu1 }
 0xbe0   : > { %v2139_v36 = vmul.f32 0.16666667, %v2138_v32  ;;  %v2285_v37 = vmul.f32 0.25, %v2279_v13  ;;  %v4274_v38 = vpop.f32.mrb[49].mxu1  ;;  %v4491_v32 = vld [vmem:[%s5733_s9 + $0x180] ss:$8 sps:$4 sm:$0xff]  }
 0xbe1   : > { %v2282_v39 = vpop.f32.mrb[50].mxu1  ;;  %v4493_v13 = vld [vmem:[%s5733_s9 + $0x184] ss:$8 sps:$4 sm:$0xff]  }
 0xbe2   : > { %v2140_v40 = vpack.c.bf16 %v2139_v36, %v2139_v36  ;;  %v4275_v33 = vpop.f32.mrb[51].mxu1  ;;  %v2288_v41 = vadd.f32 %v3961_v35, %v2285_v37 }
 0xbe3   : > { %v4494_v33 = vld [vmem:[%s5733_s9 + $0x190] ss:$8 sps:$4 sm:$0xff]  }
 0xbe4   : > { %3959 = vmatmul.mubr.msk.bf16.vlgmr.msra.gmra.mrb[12].mxu0 %vm1475_vm3, %v2140_v40  ;;  %v2289_v42 = vsel %vm1236_vm2, %v2288_v41, -inf  ;;  %v4496_v40 = vld [vmem:[%s5733_s9 + $0x194] ss:$8 sps:$4 sm:$0xff]  }
 0xbe5   : > { %2290 = vmax.xlane.f32.xlu0 %v2289_v42  ;;  %2437 = vmatprep.mubr.bf16.mxu0 %v4691_v2  ;;  %v4497_v42 = vld [vmem:[%s5733_s9 + $0x1a0] ss:$8 sps:$4 sm:$0xff]  }
 0xbe6   : > { %2406 = vmatpush1.bf16.msra.mxu0 %v4479_v49 }
 0xbe7   : > { %2407 = vmatprep.subr.bf16.mxu0 %v4484_v53 }
 0xbea   : > { %2408 = vmatpush1.bf16.msra.mxu0 %v4482_v55 }
 0xbeb   : > { %2409 = vmatprep.subr.bf16.mxu0 %v4487_v57 }
 0xbee   : > { %2410 = vmatpush1.bf16.msra.mxu0 %v4485_v0 }
 0xbef   : > { %2411 = vmatprep.subr.bf16.mxu0 %v4490_v1 }
 0xbf2   : > { %2412 = vmatpush1.bf16.msra.mxu0 %v4488_v3 }
 0xbf3   : > { %2614 = vmatprep.subr.bf16.mxu0 %v4493_v13  ;;  %v4524_v13 = vld [vmem:[%s5736_s12 + $0x48] ss:$12 sps:$4 sm:$0xff]  }
 0xbfb   : > { %2448 = vrot.lane.b32.xlu0 %v5036_v43, %s4699_s29 }
 0xc72   : > { %v2291_v44 = vpop.xlane.xlu0 %2290 }
 0xc73   : > { %v2292_v45 = vsub.f32 %v2288_v41, %v2291_v44  ;;  %v4499_v41 = vld [vmem:[%s5733_s9 + $0x1a4] ss:$8 sps:$4 sm:$0xff]   ;;  %v4500_v44 = vld [vmem:[%s5733_s9 + $0x1b0] ss:$8 sps:$4 sm:$0xff]  }
 0xc75   : > { %v2293_v46 = vmul.f32 1.442695, %v2292_v45 }
 0xc76   : > { %v2449_v63 = vpop.permute.xlu0 %2448 }
 0xc77   : > { %4671 = vpow2.f32 %v2293_v46 }
 0xc81   : > { %v4672_v47 = vpop.eup %4671 }
 0xc82   : > { %v2295_v48 = vsel %vm1236_vm2, %v4672_v47, 0.0 }
 0xc83   : > { %2296 = vadd.xlane.f32.xlu1 %v2295_v48 }
 0xc94   : > { %2450 = vrot.lane.b32.xlu1 %v5009_v12, %s4699_s29 }
 0xd10   : > { %v2297_v51 = vpop.xlane.xlu1 %2296 }
 0xd11   : > { %4673 = vrcp.f32 %v2297_v51 }
 0xd14   : > { %v2451_v59 = vpop.permute.xlu1 %2450 }
 0xd15   : > { %v2456_v62 = vsel %vm1186_vm1, %v2451_v59, 0  ;;  %v3985_v59 = vld [vmem:[%s5732_s8 + $0x1c] sm:$0xf] }
 0xd1b   : > { %v4674_v52 = vpop.eup %4673 }
 0xd1c   : > { %v2299_v58 = vmul.f32 %v4674_v52, %v4672_v47 }
 0xd1e   : > { %v2300_v61 = vpack.c.bf16 %v2299_v58, %v2299_v58 }
 0xd20   : > { %4279 = vmatmul.mubr.msk.bf16.vlgmr.msra.gmra.mrb[52].mxu1 %vm1186_vm1, %v2300_v61 }
 0xd21   : > { %4283 = vmatpush3.bf16.xpose.msra.mxu1 %v2456_v62  ;;  %4284 = vmatprep.mubr.msk.bf16.mxu1 %vm4693_vm0, %v4692_v4 }
 0xd22   : > { %4288 = vmatprep.subr.bf16.mxu1 %v4692_v4 }
 0xd28   : > { %4285 = vmatmul.mubr.msk.bf16.vlgmr.msra.gmra.mrb[56].mxu1 %vm1186_vm1, %v2449_v63 }
 0xd29   : > { %4289 = vmatpush3.bf16.msra.mxu1 %v5045_v60  ;;  %4290 = vmatprep.mubr.msk.bf16.mxu1 %vm4693_vm0, %v4692_v4 }
 0xd2a   : > { %4294 = vmatprep.subr.bf16.mxu1 %v4692_v4 }
 0xdf3   : > { %v2342_v5 = vpop.f32.mrb[52].mxu1 }
 0xdf4   : > { %v2348_v6 = vadd.f32 3.0, %v2342_v5  ;;  %v4280_v7 = vpop.f32.mrb[53].mxu1 }
 0xdf5   : > { %v2345_v8 = vpop.f32.mrb[54].mxu1 }
 0xdf6   : > { %v2349_v9 = vmax.f32 %v2348_v6, 0.0  ;;  %v4281_v10 = vpop.f32.mrb[55].mxu1 }
 0xdf7   : > { %v4503_v10 = vld [vmem:[%s5733_s9 + $0x1c0] ss:$8 sps:$4 sm:$0xff]  }
 0xdf8   : > { %v2350_v11 = vmin.f32 %v2349_v9, 6.0 }
 0xdfa   : > { %v2351_v14 = vmul.f32 %v2350_v11, %v2342_v5  ;;  %v4505_v11 = vld [vmem:[%s5733_s9 + $0x1c4] ss:$8 sps:$4 sm:$0xff]  }
 0xdfb   : > { %v2492_v34 = vpop.f32.mrb[56].mxu1 }
 0xdfc   : > { %v2352_v17 = vmul.f32 0.16666667, %v2351_v14  ;;  %v2498_v18 = vmul.f32 0.25, %v2492_v34  ;;  %v4286_v19 = vpop.f32.mrb[57].mxu1 }
 0xdfd   : > { %v2495_v20 = vpop.f32.mrb[58].mxu1  ;;  %v4511_v19 = vld [vmem:[%s5733_s9 + $0x1e4] ss:$8 sps:$4 sm:$0xff]  }
 0xdfe   : > { %v2353_v21 = vpack.c.bf16 %v2352_v17, %v2352_v17  ;;  %v4287_v24 = vpop.f32.mrb[59].mxu1  ;;  %v2501_v25 = vadd.f32 %v3973_v16, %v2498_v18  ;;  %v4508_v17 = vld [vmem:[%s5733_s9 + $0x1d4] ss:$8 sps:$4 sm:$0xff]   ;;  %v4506_v18 = vld [vmem:[%s5733_s9 + $0x1d0] ss:$8 sps:$4 sm:$0xff]  }
 0xdff   : > { %v4509_v20 = vld [vmem:[%s5733_s9 + $0x1e0] ss:$8 sps:$4 sm:$0xff]   ;;  %v4512_v24 = vld [vmem:[%s5733_s9 + $0x1f0] ss:$8 sps:$4 sm:$0xff]  }
 0xe00   : > { %3971 = vmatmul.mubr.msk.bf16.vlgmr.msra.gmra.mrb[12].mxu0 %vm1475_vm3, %v2353_v21  ;;  %v2502_v26 = vsel %vm1236_vm2, %v2501_v25, -inf  ;;  %v4514_v21 = vld [vmem:[%s5733_s9 + $0x1f4] ss:$8 sps:$4 sm:$0xff]  }
 0xe01   : > { %2503 = vmax.xlane.f32.xlu1 %v2502_v26  ;;  %2646 = vmatprep.mubr.bf16.mxu0 %v4691_v2  ;;  %v4517_v26 = vld [vmem:[%s5736_s12 + $0x4] ss:$12 sps:$4 sm:$0xff]  }
 0xe02   : > { %2615 = vmatpush1.bf16.msra.mxu0 %v4491_v32  ;;  %v4526_v32 = vld [vmem:[%s5736_s12 + $0x4c] ss:$12 sps:$4 sm:$0xff]  }
 0xe03   : > { %2616 = vmatprep.subr.bf16.mxu0 %v4496_v40  ;;  %v4536_v40 = vld [vmem:[%s5736_s12 + $0xa8] ss:$12 sps:$4 sm:$0xff]  }
 0xe06   : > { %2617 = vmatpush1.bf16.msra.mxu0 %v4494_v33  ;;  %v4541_v33 = vld [vmem:[%s5736_s12 + $0xc4] ss:$12 sps:$4 sm:$0xff]  }
 0xe07   : > { %2618 = vmatprep.subr.bf16.mxu0 %v4499_v41  ;;  %v4539_v41 = vld [vmem:[%s5736_s12 + $0xc0] ss:$12 sps:$4 sm:$0xff]  }
 0xe0a   : > { %2619 = vmatpush1.bf16.msra.mxu0 %v4497_v42  ;;  %v4546_v42 = vld [vmem:[%s5736_s12 + $0xdc] ss:$12 sps:$4 sm:$0xff]  }
 0xe12   : > { %2659 = vrot.lane.b32.xlu1 %v5009_v12, %s4700_s2 }
 0xe8e   : > { %v2504_v27 = vpop.xlane.xlu1 %2503 }
 0xe8f   : > { %v2505_v28 = vsub.f32 %v2501_v25, %v2504_v27  ;;  %v4515_v25 = vld [vmem:[%s5736_s12] ss:$12 sps:$4 sm:$0xff]   ;;  %v4520_v27 = vld [vmem:[%s5736_s12 + $0x1c] ss:$12 sps:$4 sm:$0xff]  }
 0xe91   : > { %v2506_v29 = vmul.f32 1.442695, %v2505_v28  ;;  %v4518_v28 = vld [vmem:[%s5736_s12 + $0x18] ss:$12 sps:$4 sm:$0xff]  }
 0xe92   : > { %v2660_v37 = vpop.permute.xlu1 %2659 }
 0xe93   : > { %4675 = vpow2.f32 %v2506_v29  ;;  %v2665_v39 = vsel %vm1186_vm1, %v2660_v37, 0  ;;  %v4523_v29 = vld [vmem:[%s5736_s12 + $0x34] ss:$12 sps:$4 sm:$0xff]   ;;  %v4530_v37 = vld [vmem:[%s5736_s12 + $0x78] ss:$12 sps:$4 sm:$0xff]  }
 0xe9d   : > { %v4676_v30 = vpop.eup %4675 }
 0xe9e   : > { %v2508_v31 = vsel %vm1236_vm2, %v4676_v30, 0.0 }
 0xe9f   : > { %2509 = vadd.xlane.f32.xlu0 %v2508_v31  ;;  %v4521_v31 = vld [vmem:[%s5736_s12 + $0x30] ss:$12 sps:$4 sm:$0xff]  }
 0xeb5   : > { %2657 = vrot.lane.b32.xlu0 %v5036_v43, %s4700_s2 }
 0xf2c   : > { %v2510_v12 = vpop.xlane.xlu0 %2509 }
 0xf2d   : > { %4677 = vrcp.f32 %v2510_v12  ;;  %v4529_v12 = vld [vmem:[%s5736_s12 + $0x64] ss:$12 sps:$4 sm:$0xff]  }
 0xf30   : > { %v2658_v43 = vpop.permute.xlu0 %2657 }
 0xf37   : > { %v4678_v35 = vpop.eup %4677 }
 0xf38   : > { %v2512_v36 = vmul.f32 %v4678_v35, %v4676_v30  ;;  %v4542_v30 = vld [vmem:[%s5736_s12 + $0xc8] ss:$12 sps:$4 sm:$0xff]   ;;  %v4527_v35 = vld [vmem:[%s5736_s12 + $0x60] ss:$12 sps:$4 sm:$0xff]  }
 0xf3a   : > { %v2513_v38 = vpack.c.bf16 %v2512_v36, %v2512_v36  ;;  %v4532_v36 = vld [vmem:[%s5736_s12 + $0x7c] ss:$12 sps:$4 sm:$0xff]  }
 0xf3c   : > { %4291 = vmatmul.mubr.msk.bf16.vlgmr.msra.gmra.mrb[60].mxu1 %vm1186_vm1, %v2513_v38  ;;  %v4535_v38 = vld [vmem:[%s5736_s12 + $0x94] ss:$12 sps:$4 sm:$0xff]  }
 0xf3d   : > { %4295 = vmatpush3.bf16.xpose.msra.mxu1 %v2665_v39  ;;  %4296 = vmatprep.mubr.msk.bf16.mxu1 %vm4693_vm0, %v4692_v4  ;;  %v4533_v39 = vld [vmem:[%s5736_s12 + $0x90] ss:$12 sps:$4 sm:$0xff]  }
 0xf3e   : > { %4300 = vmatprep.subr.bf16.mxu1 %v4692_v4 }
 0xf44   : > { %4297 = vmatmul.mubr.msk.bf16.vlgmr.msra.gmra.mrb[64].mxu1 %vm1186_vm1, %v2658_v43  ;;  %v4538_v43 = vld [vmem:[%s5736_s12 + $0xac] ss:$12 sps:$4 sm:$0xff]  }
 0xf45   : > { %4302 = vmatprep.mubr.msk.bf16.mxu1 %vm4693_vm0, %v4692_v4  ;;  %v4502_v4 = vld [vmem:[%s5733_s9 + $0x1b4] ss:$8 sps:$4 sm:$0xff]  }
 0xf46   : > { %2620 = vmatprep.subr.bf16.mxu0 %v4502_v4  ;;  %v4544_v4 = vld [vmem:[%s5736_s12 + $0xd8] ss:$12 sps:$4 sm:$0xff]  }
 0xf47   : > { %2621 = vmatpush1.bf16.msra.mxu0 %v4500_v44  ;;  %v4551_v44 = vld [vmem:[%s5736_s12 + $0xf4] ss:$12 sps:$4 sm:$0xff]  }
 0xf48   : > { %2827 = vmatprep.subr.bf16.mxu0 %v4505_v11  ;;  %v4563_v11 = vld [vmem:[%s5736_s12 + $0x68] ss:$12 sps:$4 sm:$0xff]  }
0x100f   : > { %v2551_v45 = vpop.f32.mrb[60].mxu1 }
0x1010   : > { %v2557_v46 = vadd.f32 3.0, %v2551_v45  ;;  %v4292_v47 = vpop.f32.mrb[61].mxu1 }
0x1011   : > { %v2554_v48 = vpop.f32.mrb[62].mxu1  ;;  %v4554_v47 = vld [vmem:[%s5736_s12 + $0x108] ss:$12 sps:$4 sm:$0xff]  }
0x1012   : > { %v2558_v49 = vmax.f32 %v2557_v46, 0.0  ;;  %v4293_v50 = vpop.f32.mrb[63].mxu1  ;;  %v4556_v46 = vld [vmem:[%s5736_s12 + $0x10c] ss:$12 sps:$4 sm:$0xff]   ;;  %v4561_v48 = vld [vmem:[%s5736_s12 + $0x124] ss:$12 sps:$4 sm:$0xff]  }
0x1013   : > { %v4566_v50 = vld [vmem:[%s5736_s12 + $0x13c] ss:$12 sps:$4 sm:$0xff]  }
0x1014   : > { %v2559_v51 = vmin.f32 %v2558_v49, 6.0  ;;  %v4559_v49 = vld [vmem:[%s5736_s12 + $0x120] ss:$12 sps:$4 sm:$0xff]  }
0x1016   : > { %v2560_v52 = vmul.f32 %v2559_v51, %v2551_v45  ;;  %v4549_v45 = vld [vmem:[%s5736_s12 + $0xf0] ss:$12 sps:$4 sm:$0xff]   ;;  %v4564_v51 = vld [vmem:[%s5736_s12 + $0x138] ss:$12 sps:$4 sm:$0xff]  }
0x1017   : > { %v2701_v58 = vpop.f32.mrb[64].mxu1 }
0x1018   : > { %v2561_v61 = vmul.f32 0.16666667, %v2560_v52  ;;  %v2707_v62 = vmul.f32 0.25, %v2701_v58  ;;  %v4298_v63 = vpop.f32.mrb[65].mxu1 }
0x1019   : > { %v2704_v53 = vpop.f32.mrb[66].mxu1 }
0x101a   : > { %v2562_v55 = vpack.c.bf16 %v2561_v61, %v2561_v61  ;;  %v4299_v57 = vpop.f32.mrb[67].mxu1  ;;  %v2710_v0 = vadd.f32 %v3985_v59, %v2707_v62 }
0x101c   : > { %3983 = vmatmul.mubr.msk.bf16.vlgmr.msra.gmra.mrb[12].mxu0 %vm1475_vm3, %v2562_v55  ;;  %v2711_v1 = vsel %vm1236_vm2, %v2710_v0, -inf }
0x101d   : > { %2712 = vmax.xlane.f32.xlu1 %v2711_v1  ;;  %2859 = vmatprep.mubr.bf16.mxu0 %v4691_v2 }
0x101e   : > { %2828 = vmatpush1.bf16.msra.mxu0 %v4503_v10  ;;  %v4562_v10 = vld [vmem:[%s5736_s12 + $0x128] ss:$12 sps:$4 sm:$0xff]  }
0x101f   : > { %2829 = vmatprep.subr.bf16.mxu0 %v4508_v17  ;;  %v4569_v17 = vld [vmem:[%s5736_s12 + $0x150] ss:$12 sps:$4 sm:$0xff]  }
0x1022   : > { %2830 = vmatpush1.bf16.msra.mxu0 %v4506_v18  ;;  %v4573_v18 = vld [vmem:[%s5736_s12 + $0x98] ss:$12 sps:$4 sm:$0xff]  }
0x1023   : > { %2831 = vmatprep.subr.bf16.mxu0 %v4511_v19  ;;  %v4576_v19 = vld [vmem:[%s5736_s12 + $0x16c] ss:$12 sps:$4 sm:$0xff]  }
0x1026   : > { %2832 = vmatpush1.bf16.msra.mxu0 %v4509_v20  ;;  %v4577_v20 = vld [vmem:[%s5736_s12 + $0x170] ss:$12 sps:$4 sm:$0xff]  }
0x1027   : > { %2833 = vmatprep.subr.bf16.mxu0 %v4514_v21  ;;  %v4574_v21 = vld [vmem:[%s5736_s12 + $0x168] ss:$12 sps:$4 sm:$0xff]  }
0x102a   : > { %2834 = vmatpush1.bf16.msra.mxu0 %v4512_v24  ;;  %v4578_v24 = vld [vmem:[%s5736_s12 + $0xb0] ss:$12 sps:$4 sm:$0xff]  }
0x102b   : > { %4148 = vmatprep.subr.bf16.mxu0 %v4542_v30 }
0x102e   : > { %2724 = vrot.lane.b32.xlu1 %v5045_v60, %s4695_s27 }
0x10aa   : > { %v2713_v3 = vpop.xlane.xlu1 %2712 }
0x10ab   : > { %v2714_v5 = vsub.f32 %v2710_v0, %v2713_v3  ;;  %v4543_v0 = vld [vmem:[%s5736_s12 + $0x8] ss:$12 sps:$4 sm:$0xff]   ;;  %v4547_v3 = vld [vmem:[%s5736_s12 + $0xe0] ss:$12 sps:$4 sm:$0xff]  }
0x10ad   : > { %v2715_v6 = vmul.f32 1.442695, %v2714_v5  ;;  %v4548_v5 = vld [vmem:[%s5736_s12 + $0x20] ss:$12 sps:$4 sm:$0xff]  }
0x10ae   : > { %v2725_v7 = vpop.permute.xlu1 %2724 }
0x10af   : > { %4679 = vpow2.f32 %v2715_v6  ;;  %4301 = vmatpush3.bf16.msra.mxu1 %v2725_v7  ;;  %v4552_v6 = vld [vmem:[%s5736_s12 + $0xf8] ss:$12 sps:$4 sm:$0xff]  }
0x10b0   : > { %3220 = vmatprep.subr.bf16.mxu1 %v4517_v26  ;;  %v4553_v7 = vld [vmem:[%s5736_s12 + $0x38] ss:$12 sps:$4 sm:$0xff]   ;;  %v2870_v26 = vld [vmem:[%s5734_s10] sm:$0x3] }
0x10b1   : > { %v2879_v30 = vrot.slane %v2870_v26, %v5000_v56 }
0x10b9   : > { %v4680_v8 = vpop.eup %4679 }
0x10ba   : > { %v2717_v9 = vsel %vm1236_vm2, %v4680_v8, 0.0 }
0x10bb   : > { %2718 = vadd.xlane.f32.xlu0 %v2717_v9  ;;  %v4558_v9 = vld [vmem:[%s5736_s12 + $0x50] ss:$12 sps:$4 sm:$0xff]  }
0x1148   : > { %v2719_v60 = vpop.xlane.xlu0 %2718 }
0x1149   : > { %4681 = vrcp.f32 %v2719_v60  ;;  %v4567_v60 = vld [vmem:[%s5736_s12 + $0x140] ss:$12 sps:$4 sm:$0xff]  }
0x1153   : > { %v4682_v14 = vpop.eup %4681 }
0x1154   : > { %v2721_v34 = vmul.f32 %v4682_v14, %v4680_v8  ;;  %v4557_v8 = vld [vmem:[%s5736_s12 + $0x110] ss:$12 sps:$4 sm:$0xff]   ;;  %v4568_v14 = vld [vmem:[%s5736_s12 + $0x80] ss:$12 sps:$4 sm:$0xff]  }
0x1156   : > { %v2722_v16 = vpack.c.bf16 %v2721_v34, %v2721_v34  ;;  %v4571_v34 = vld [vmem:[%s5736_s12 + $0x154] ss:$12 sps:$4 sm:$0xff]  }
0x1158   : > { %4303 = vmatmul.mubr.msk.bf16.vlgmr.msra.gmra.mrb[68].mxu1 %vm1186_vm1, %v2722_v16  ;;  %v4572_v16 = vld [vmem:[%s5736_s12 + $0x158] ss:$12 sps:$4 sm:$0xff]  }
0x1159   : > { %3221 = vmatpush1.bf16.msra.mxu1 %v4515_v25  ;;  %v4581_v25 = vld [vmem:[%s5739_s15 + $0x4] ss:$8 sps:$4 sm:$0xff]  }
0x115a   : > { %3222 = vmatprep.subr.bf16.mxu1 %v4520_v27  ;;  %v2884_v27 = vld [vmem:[%s5735_s11] sm:$0x3] }
0x115d   : > { %3223 = vmatpush1.bf16.msra.mxu1 %v4518_v28  ;;  %v2875_v28 = vrot.slane %v2870_v26, %v4994_v54 }
0x115e   : > { %3224 = vmatprep.subr.bf16.mxu1 %v4523_v29 }
0x1161   : > { %3225 = vmatpush1.bf16.msra.mxu1 %v4521_v31 }
0x1162   : > { %3226 = vmatprep.subr.bf16.mxu1 %v4526_v32  ;;  %v2889_v32 = vrot.slane %v2884_v27, %v4994_v54 }
0x1165   : > { %3227 = vmatpush1.bf16.msra.mxu1 %v4524_v13 }
0x1166   : > { %3228 = vmatprep.subr.bf16.mxu1 %v4529_v12 }
0x1169   : > { %3229 = vmatpush1.bf16.msra.mxu1 %v4527_v35  ;;  %v2893_v35 = vrot.slane %v2884_v27, %v5000_v56 }
0x116a   : > { %3230 = vmatprep.subr.bf16.mxu1 %v4532_v36 }
0x116d   : > { %3231 = vmatpush1.bf16.msra.mxu1 %v4530_v37 }
0x116e   : > { %3232 = vmatprep.subr.bf16.mxu1 %v4535_v38 }
0x1171   : > { %3233 = vmatpush1.bf16.msra.mxu1 %v4533_v39 }
0x1172   : > { %3234 = vmatprep.subr.bf16.mxu1 %v4538_v43 }
0x1175   : > { %3235 = vmatpush1.bf16.msra.mxu1 %v4536_v40 }
0x1176   : > { %3236 = vmatprep.subr.bf16.mxu1 %v4541_v33 }
0x1179   : > { %3237 = vmatpush1.bf16.msra.mxu1 %v4539_v41  ;;  %v4584_v41 = vld [vmem:[%s5739_s15 + $0x14] ss:$8 sps:$4 sm:$0xff]  }
0x117a   : > { %3238 = vmatprep.subr.bf16.mxu1 %v4546_v42  ;;  %v4582_v42 = vld [vmem:[%s5739_s15 + $0x10] ss:$8 sps:$4 sm:$0xff]  }
0x117d   : > { %3239 = vmatpush1.bf16.msra.mxu1 %v4544_v4  ;;  %v4587_v4 = vld [vmem:[%s5739_s15 + $0x24] ss:$8 sps:$4 sm:$0xff]  }
0x117e   : > { %3240 = vmatprep.subr.bf16.mxu1 %v4551_v44  ;;  %v4585_v44 = vld [vmem:[%s5739_s15 + $0x20] ss:$8 sps:$4 sm:$0xff]  }
0x1181   : > { %3241 = vmatpush1.bf16.msra.mxu1 %v4549_v45  ;;  %v4590_v45 = vld [vmem:[%s5739_s15 + $0x34] ss:$8 sps:$4 sm:$0xff]  }
0x1182   : > { %3242 = vmatprep.subr.bf16.mxu1 %v4556_v46  ;;  %v4588_v46 = vld [vmem:[%s5739_s15 + $0x30] ss:$8 sps:$4 sm:$0xff]  }
0x1185   : > { %3243 = vmatpush1.bf16.msra.mxu1 %v4554_v47  ;;  %v4593_v47 = vld [vmem:[%s5739_s15 + $0x44] ss:$8 sps:$4 sm:$0xff]  }
0x1186   : > { %3244 = vmatprep.subr.bf16.mxu1 %v4561_v48  ;;  %v4591_v48 = vld [vmem:[%s5739_s15 + $0x40] ss:$8 sps:$4 sm:$0xff]  }
0x1189   : > { %3245 = vmatpush1.bf16.msra.mxu1 %v4559_v49  ;;  %v4596_v49 = vld [vmem:[%s5739_s15 + $0x54] ss:$8 sps:$4 sm:$0xff]  }
0x118a   : > { %3246 = vmatprep.subr.bf16.mxu1 %v4566_v50  ;;  %v4594_v50 = vld [vmem:[%s5739_s15 + $0x50] ss:$8 sps:$4 sm:$0xff]  }
0x118d   : > { %3247 = vmatpush1.bf16.msra.mxu1 %v4564_v51  ;;  %v4599_v51 = vld [vmem:[%s5739_s15 + $0x64] ss:$8 sps:$4 sm:$0xff]  }
0x118e   : > { %3248 = vmatprep.subr.bf16.mxu1 %v4571_v34  ;;  %v3321_v34 = vld [vmem:[%s5738_s14] sm:$0x7] }
0x1191   : > { %3249 = vmatpush1.bf16.msra.mxu1 %v4569_v17 }
0x1192   : > { %3250 = vmatprep.subr.bf16.mxu1 %v4576_v19 }
0x1195   : > { %3251 = vmatpush1.bf16.msra.mxu1 %v4574_v21  ;;  %v3330_v21 = vrot.slane %v3321_v34, %v5000_v56 }
0x122b   : > { %v2764_v52 = vpop.f32.mrb[68].mxu1 }
0x122c   : > { %v2770_v58 = vadd.f32 3.0, %v2764_v52  ;;  %v4304_v59 = vpop.f32.mrb[69].mxu1 }
0x122d   : > { %v2767_v61 = vpop.f32.mrb[70].mxu1  ;;  %v4600_v59 = vld [vmem:[%s5739_s15 + $0x70] ss:$8 sps:$4 sm:$0xff]  }
0x122e   : > { %v2771_v62 = vmax.f32 %v2770_v58, 0.0  ;;  %v4305_v63 = vpop.f32.mrb[71].mxu1  ;;  %v4602_v58 = vld [vmem:[%s5739_s15 + $0x74] ss:$8 sps:$4 sm:$0xff]   ;;  %v4605_v61 = vld [vmem:[%s5739_s15 + $0x84] ss:$8 sps:$4 sm:$0xff]  }
0x122f   : > { %v4608_v63 = vld [vmem:[%s5739_s15 + $0x94] ss:$8 sps:$4 sm:$0xff]  }
0x1230   : > { %v2772_v53 = vmin.f32 %v2771_v62, 6.0  ;;  %v4603_v62 = vld [vmem:[%s5739_s15 + $0x80] ss:$8 sps:$4 sm:$0xff]  }
0x1232   : > { %v2773_v55 = vmul.f32 %v2772_v53, %v2764_v52  ;;  %v4597_v52 = vld [vmem:[%s5739_s15 + $0x60] ss:$8 sps:$4 sm:$0xff]   ;;  %v4606_v53 = vld [vmem:[%s5739_s15 + $0x90] ss:$8 sps:$4 sm:$0xff]  }
0x1234   : > { %v2774_v57 = vmul.f32 0.16666667, %v2773_v55  ;;  %v4611_v55 = vld [vmem:[%s5739_s15 + $0xa4] ss:$8 sps:$4 sm:$0xff]  }
0x1236   : > { %v2775_v1 = vpack.c.bf16 %v2774_v57, %v2774_v57  ;;  %v4609_v57 = vld [vmem:[%s5739_s15 + $0xa0] ss:$8 sps:$4 sm:$0xff]  }
0x1238   : > { %3995 = vmatmul.mubr.msk.bf16.vlgmr.msra.gmra.mrb[12].mxu0 %vm1475_vm3, %v2775_v1  ;;  %v4612_v1 = vld [vmem:[%s5739_s15 + $0xb0] ss:$8 sps:$4 sm:$0xff]  }
0x1239   : > { %4149 = vmatpush3.bf16.msra.mxu0 %v4543_v0  ;;  %v4614_v0 = vld [vmem:[%s5739_s15 + $0xb4] ss:$8 sps:$4 sm:$0xff]  }
0x123a   : > { %4150 = vmatprep.subr.bf16.mxu0 %v4547_v3  ;;  %v4617_v3 = vld [vmem:[%s5739_s15 + $0xc4] ss:$8 sps:$4 sm:$0xff]  }
0x123d   : > { %4151 = vmatpush3.bf16.msra.mxu0 %v4548_v5  ;;  %v4615_v5 = vld [vmem:[%s5739_s15 + $0xc0] ss:$8 sps:$4 sm:$0xff]  }
0x123e   : > { %4152 = vmatprep.subr.bf16.mxu0 %v4552_v6  ;;  %v4620_v6 = vld [vmem:[%s5739_s15 + $0xd4] ss:$8 sps:$4 sm:$0xff]  }
0x1241   : > { %4153 = vmatpush3.bf16.msra.mxu0 %v4553_v7  ;;  %v4618_v7 = vld [vmem:[%s5739_s15 + $0xd0] ss:$8 sps:$4 sm:$0xff]  }
0x1242   : > { %4154 = vmatprep.subr.bf16.mxu0 %v4557_v8  ;;  %v4623_v8 = vld [vmem:[%s5739_s15 + $0xe4] ss:$8 sps:$4 sm:$0xff]  }
0x1245   : > { %4155 = vmatpush3.bf16.msra.mxu0 %v4558_v9  ;;  %v4621_v9 = vld [vmem:[%s5739_s15 + $0xe0] ss:$8 sps:$4 sm:$0xff]  }
0x1246   : > { %4156 = vmatprep.subr.bf16.mxu0 %v4562_v10  ;;  %v4626_v10 = vld [vmem:[%s5739_s15 + $0xf4] ss:$8 sps:$4 sm:$0xff]  }
0x1249   : > { %4157 = vmatpush3.bf16.msra.mxu0 %v4563_v11  ;;  %v4624_v11 = vld [vmem:[%s5739_s15 + $0xf0] ss:$8 sps:$4 sm:$0xff]  }
0x124a   : > { %4158 = vmatprep.subr.bf16.mxu0 %v4567_v60  ;;  %v4629_v60 = vld [vmem:[%s5739_s15 + $0x104] ss:$8 sps:$4 sm:$0xff]  }
0x124d   : > { %4159 = vmatpush3.bf16.msra.mxu0 %v4568_v14  ;;  %v3301_v14 = vld [vmem:[%s5737_s13] sm:$0x7] }
0x124e   : > { %4160 = vmatprep.subr.bf16.mxu0 %v4572_v16  ;;  %v3306_v16 = vrot.slane %v3301_v14, %v4994_v54  ;;  %v3310_v17 = vrot.slane %v3301_v14, %v5000_v56 }
0x1251   : > { %4161 = vmatpush3.bf16.msra.mxu0 %v4573_v18  ;;  %v3326_v18 = vrot.slane %v3321_v34, %v4994_v54 }
0x1252   : > { %4162 = vmatprep.subr.bf16.mxu0 %v4577_v20 }
0x1255   : > { %4163 = vmatpush3.bf16.msra.mxu0 %v4578_v24 }
0x1256   : > { %3647 = vmatprep.subr.bf16.mxu0 %v4581_v25 }
0x130b   : > { %v2861_v29 = vpop.f32.mrb[12].mxu0 }
0x130c   : > { %v4306_v31 = vadd.f32 %v2861_v29, %v5130_v22  ;;  %v2863_v13 = vpop.f32.mrb[13].mxu0  ;;  %v4579_v22 = vld [vmem:[%s5739_s15] ss:$8 sps:$4 sm:$0xff]  }
0x130d   : > { %v4307_v12 = vadd.f32 %v2863_v13, %v5132_v23  ;;  %v2865_v36 = vpop.f32.mrb[14].mxu0 }
0x130e   : > { %v2882_v37 = vmul.f32 %v4306_v31, %v2875_v28  ;;  %v2866_v38 = vpop.f32.mrb[15].mxu0 }
0x130f   : > { %v2883_v39 = vmul.f32 %v4307_v12, %v2879_v30 }
0x1310   : > { %v5543_v43 = vadd.f32 %v2889_v32, %v2882_v37 }
0x1311   : > { %v5545_v40 = vadd.f32 %v2893_v35, %v2883_v39 }
0x1312   : > { %v2898_v23 = vpack.c.bf16 %v5543_v43, %v5543_v43 }
0x1313   : > { %v2899_v33 = vpack.c.bf16 %v5545_v40, %v5545_v40 }
0x1315   : > { %3252 = vmatprep.mubr.bf16.mxu1 %v2899_v33  ;;  %3293 = vmatprep.mubr.bf16.mxu0 %v2899_v33 }
0x1316   : > { %3253 = vmatmul.mubr.bf16.vlgmr.msra.gmra.mrb[72].mxu1 %v2898_v23  ;;  %3294 = vmatmul.mubr.bf16.vlgmr.msra.gmra.mrb[16].mxu0 %v2898_v23 }
0x1317   : > { %3648 = vmatpush1.bf16.msra.mxu0 %v4579_v22 }
0x1318   : > { %3649 = vmatprep.subr.bf16.mxu0 %v4584_v41 }
0x131b   : > { %3650 = vmatpush1.bf16.msra.mxu0 %v4582_v42 }
0x131c   : > { %3651 = vmatprep.subr.bf16.mxu0 %v4587_v4 }
0x131f   : > { %3652 = vmatpush1.bf16.msra.mxu0 %v4585_v44  ;;  %v4627_v44 = vld [vmem:[%s5739_s15 + $0x100] ss:$8 sps:$4 sm:$0xff]  }
0x1320   : > { %3653 = vmatprep.subr.bf16.mxu0 %v4590_v45 }
0x1323   : > { %3654 = vmatpush1.bf16.msra.mxu0 %v4588_v46  ;;  %v3314_v46 = vrot.slane %v3301_v14, %v5021_v15 }
0x1324   : > { %3655 = vmatprep.subr.bf16.mxu0 %v4593_v47  ;;  %v4632_v47 = vld [vmem:[%s5739_s15 + $0x114] ss:$8 sps:$4 sm:$0xff]  }
0x1327   : > { %3656 = vmatpush1.bf16.msra.mxu0 %v4591_v48  ;;  %v4630_v48 = vld [vmem:[%s5739_s15 + $0x110] ss:$8 sps:$4 sm:$0xff]  }
0x1328   : > { %3657 = vmatprep.subr.bf16.mxu0 %v4596_v49 }
0x132b   : > { %3658 = vmatpush1.bf16.msra.mxu0 %v4594_v50  ;;  %v3334_v50 = vrot.slane %v3321_v34, %v5021_v15 }
0x132c   : > { %3659 = vmatprep.subr.bf16.mxu0 %v4599_v51  ;;  %v4635_v51 = vld [vmem:[%s5739_s15 + $0x124] ss:$8 sps:$4 sm:$0xff]  }
0x132f   : > { %3660 = vmatpush1.bf16.msra.mxu0 %v4597_v52  ;;  %v4633_v52 = vld [vmem:[%s5739_s15 + $0x120] ss:$8 sps:$4 sm:$0xff]  }
0x1330   : > { %3661 = vmatprep.subr.bf16.mxu0 %v4602_v58 }
0x1333   : > { %3662 = vmatpush1.bf16.msra.mxu0 %v4600_v59  ;;  %v4638_v59 = vld [vmem:[%s5739_s15 + $0x134] ss:$8 sps:$4 sm:$0xff]  }
0x1334   : > { %3663 = vmatprep.subr.bf16.mxu0 %v4605_v61  ;;  %v4641_v61 = vld [vmem:[%s5739_s15 + $0x144] ss:$8 sps:$4 sm:$0xff]  }
0x1337   : > { %3664 = vmatpush1.bf16.msra.mxu0 %v4603_v62  ;;  %v4639_v62 = vld [vmem:[%s5739_s15 + $0x140] ss:$8 sps:$4 sm:$0xff]  }
0x1338   : > { %3665 = vmatprep.subr.bf16.mxu0 %v4608_v63 }
0x133b   : > { %3666 = vmatpush1.bf16.msra.mxu0 %v4606_v53  ;;  %v4644_v53 = vld [vmem:[%s5739_s15 + $0x154] ss:$8 sps:$4 sm:$0xff]  }
0x133c   : > { %3667 = vmatprep.subr.bf16.mxu0 %v4611_v55  ;;  %v4642_v55 = vld [vmem:[%s5739_s15 + $0x150] ss:$8 sps:$4 sm:$0xff]  }
0x133f   : > { %3668 = vmatpush1.bf16.msra.mxu0 %v4609_v57 }
0x1340   : > { %3669 = vmatprep.subr.bf16.mxu0 %v4614_v0  ;;  %v4647_v0 = vld [vmem:[%s5739_s15 + $0x164] ss:$8 sps:$4 sm:$0xff]  }
0x1343   : > { %3670 = vmatpush1.bf16.msra.mxu0 %v4612_v1  ;;  %v4645_v1 = vld [vmem:[%s5739_s15 + $0x160] ss:$8 sps:$4 sm:$0xff]  }
0x1344   : > { %3671 = vmatprep.subr.bf16.mxu0 %v4617_v3 }
0x1347   : > { %3672 = vmatpush1.bf16.msra.mxu0 %v4615_v5  ;;  %v4650_v5 = vld [vmem:[%s5739_s15 + $0x174] ss:$8 sps:$4 sm:$0xff]  }
0x1348   : > { %3673 = vmatprep.subr.bf16.mxu0 %v4620_v6  ;;  %v4648_v6 = vld [vmem:[%s5739_s15 + $0x170] ss:$8 sps:$4 sm:$0xff]  }
0x134b   : > { %3674 = vmatpush1.bf16.msra.mxu0 %v4618_v7 }
0x134c   : > { %3675 = vmatprep.subr.bf16.mxu0 %v4623_v8 }
0x134f   : > { %3676 = vmatpush1.bf16.msra.mxu0 %v4621_v9  ;;  %v3729_v9 = vld [vmem:[%s5740_s16] sm:$0x3] }
0x1350   : > { %3677 = vmatprep.subr.bf16.mxu0 %v4626_v10  ;;  %v3743_v10 = vld [vmem:[%s5741_s17] sm:$0x3] }
0x1351   : > { %v3748_v14 = vrot.slane %v3743_v10, %v4994_v54 }
0x1353   : > { %3678 = vmatpush1.bf16.msra.mxu0 %v4624_v11  ;;  %v3734_v11 = vrot.slane %v3729_v9, %v4994_v54 }
0x1354   : > { %3688 = vmatprep.subr.bf16.mxu0 %v4629_v60  ;;  %v3738_v60 = vrot.slane %v3729_v9, %v5000_v56 }
0x13e9   : > { %v3254_v19 = vpop.f32.mrb[72].mxu1  ;;  %v4164_v20 = vpop.f32.mrb[16].mxu0 }
0x13ea   : > { %v3318_v24 = vmul.f32 %v3306_v16, %v3254_v19  ;;  %v3256_v25 = vpop.f32.mrb[73].mxu1  ;;  %v4165_v26 = vpop.f32.mrb[17].mxu0  ;;  %v3752_v16 = vrot.slane %v3743_v10, %v5000_v56 }
0x13eb   : > { %v3319_v27 = vmul.f32 %v3310_v17, %v3256_v25  ;;  %v4166_v28 = vadd.f32 %v4165_v26, %v4164_v20  ;;  %v3258_v29 = vpop.f32.mrb[74].mxu1  ;;  %v4167_v30 = vpop.f32.mrb[18].mxu0 }
0x13ec   : > { %v3338_v31 = vadd.f32 %v3326_v18, %v3318_v24  ;;  %v3259_v32 = vpop.f32.mrb[75].mxu1  ;;  %v4168_v13 = vpop.f32.mrb[19].mxu0 }
0x13ed   : > { %v3339_v12 = vadd.f32 %v3330_v21, %v3319_v27  ;;  %v3320_v49 = vmul.f32 %v4166_v28, %v3314_v46 }
0x13ee   : > { %v3341_v35 = vadd.f32 3.0, %v3338_v31 }
0x13ef   : > { %v3342_v36 = vadd.f32 3.0, %v3339_v12  ;;  %v3340_v58 = vadd.f32 %v3334_v50, %v3320_v49 }
0x13f0   : > { %v3344_v37 = vmax.f32 %v3341_v35, 0.0 }
0x13f1   : > { %v3345_v38 = vmax.f32 %v3342_v36, 0.0  ;;  %v3343_v15 = vadd.f32 3.0, %v3340_v58 }
0x13f2   : > { %v3347_v39 = vmin.f32 %v3344_v37, 6.0 }
0x13f3   : > { %v3348_v33 = vmin.f32 %v3345_v38, 6.0  ;;  %v3346_v63 = vmax.f32 %v3343_v15, 0.0 }
0x13f4   : > { %v3350_v22 = vmul.f32 %v3347_v39, %v3338_v31 }
0x13f5   : > { %v3351_v23 = vmul.f32 %v3348_v33, %v3339_v12  ;;  %v3349_v57 = vmin.f32 %v3346_v63, 6.0 }
0x13f6   : > { %v3353_v41 = vmul.f32 0.16666667, %v3350_v22 }
0x13f7   : > { %v3354_v42 = vmul.f32 0.16666667, %v3351_v23  ;;  %v3352_v3 = vmul.f32 %v3349_v57, %v3340_v58 }
0x13f8   : > { %v3356_v45 = vpack.c.bf16 %v3353_v41, %v3353_v41 }
0x13f9   : > { %v3357_v4 = vpack.c.bf16 %v3354_v42, %v3354_v42  ;;  %v3355_v7 = vmul.f32 0.16666667, %v3352_v3 }
0x13fb   : > { %3679 = vmatprep.mubr.bf16.mxu0 %v3357_v4  ;;  %v3358_v8 = vpack.c.bf16 %v3355_v7, %v3355_v7 }
0x13fc   : > { %3680 = vmatmul.mubr.bf16.vlgmr.msra.gmra.mrb[20].mxu0 %v3356_v45 }
0x13fd   : > { %3689 = vmatpush1.bf16.msra.mxu0 %v4627_v44  ;;  %3720 = vmatprep.mubr.bf16.mxu0 %v4691_v2  ;;  %v4636_v2 = vld [vmem:[%s5739_s15 + $0x130] ss:$8 sps:$4 sm:$0xff]  }
0x13fe   : > { %3690 = vmatprep.subr.bf16.mxu0 %v4632_v47 }
0x1401   : > { %3691 = vmatpush1.bf16.msra.mxu0 %v4630_v48 }
0x1402   : > { %3692 = vmatprep.subr.bf16.mxu0 %v4635_v51 }
0x1405   : > { %3693 = vmatpush1.bf16.msra.mxu0 %v4633_v52 }
0x1406   : > { %3694 = vmatprep.subr.bf16.mxu0 %v4638_v59 }
0x1409   : > { %3695 = vmatpush1.bf16.msra.mxu0 %v4636_v2 }
0x140a   : > { %3696 = vmatprep.subr.bf16.mxu0 %v4641_v61 }
0x140d   : > { %3697 = vmatpush1.bf16.msra.mxu0 %v4639_v62 }
0x140e   : > { %3698 = vmatprep.subr.bf16.mxu0 %v4644_v53 }
0x1411   : > { %3699 = vmatpush1.bf16.msra.mxu0 %v4642_v55 }
0x1412   : > { %3700 = vmatprep.subr.bf16.mxu0 %v4647_v0 }
0x1415   : > { %3701 = vmatpush1.bf16.msra.mxu0 %v4645_v1 }
0x1416   : > { %3702 = vmatprep.subr.bf16.mxu0 %v4650_v5 }
0x1419   : > { %3703 = vmatpush1.bf16.msra.mxu0 %v4648_v6 }
0x141c   : > { %3721 = vmatmul.mubr.bf16.vlgmr.msra.gmra.mrb[20].mxu0 %v3358_v8 }
0x14ef   : > { %v3722_v34 = vpop.f32.mrb[20].mxu0 }
0x14f0   : > { %v3741_v17 = vmul.f32 %v3734_v11, %v3722_v34  ;;  %v3724_v18 = vpop.f32.mrb[21].mxu0 }
0x14f1   : > { %v3742_v19 = vmul.f32 %v3738_v60, %v3724_v18  ;;  %v3726_v20 = vpop.f32.mrb[22].mxu0 }
0x14f2   : > { %v3755_v21 = vadd.f32 %v3748_v14, %v3741_v17  ;;  %v3727_v24 = vpop.f32.mrb[23].mxu0 }
0x14f3   : > { %v3756_v25 = vadd.f32 %v3752_v16, %v3742_v19 }
0x14f4   : > { %v3757_v26 = vadd.f32 %v3755_v21, %v5543_v43 }
0x14f5   : > { %v3758_v27 = vadd.f32 %v3756_v25, %v5545_v40 }
0x14f7   : > { %v4092_v54 = vpack.c.bf16 %v3758_v27, %v3757_v26 }
0x14f9   : > { %4093 = vst.sshfl [vmem:[%s592_s1] sm:$0x33 pattern:$0x76325410] %v4092_v54 }
0x14fa PF: > { %s5752_s20 = sld [smem:[#allocation2_spill]] }
0x1500   : > { %s28_s27 = sadd.s32 1, %s5752_s20  }
0x1501   : > { %p25_p4 = scmp.ge.s32.totalorder %s28_s27, 4  }
0x1503   :  { %27 = sbr.rel (!%p25_p4) target bundleno = 4 (0x4), region = 132 }

</bundles_post_ra>
